<compile_context>
chip_gen: v6e
topology: v6e:2x2x1
jax: 0.10.0
libtpu: 0.0.40
codegen_flags: <defaults>
</compile_context>

<pallas_src>
import math
import functools

import jax
import jax.numpy as jnp
from jax import lax
from jax.experimental import pallas as pl
from jax.experimental.pallas import tpu as pltpu


# ----------------------------------------------------------------------------
# Helpers
# ----------------------------------------------------------------------------

def _full_spec(shape):
    """Whole-array block; index map ignores grid indices."""
    nd = len(shape)
    return pl.BlockSpec(shape, lambda *_: (0,) * nd)


def build_meta(cfg, T, B):
    """Static (trace-time) structure derived from cfg only — never from params."""
    branches = []
    incs = (cfg['inc1'], cfg['inc2'])
    for j in range(2):
        E = incs[j]
        nch = cfg['num_channels'][j]
        K = cfg['kernel_size'][j]
        tcn = []
        cin = E
        for i, cout in enumerate(nch):
            tcn.append({'K': K, 'd': 2 ** i, 'cin': cin, 'cout': cout,
                        'down': cin != cout})
            cin = cout
        branches.append({'E': E, 'H': cfg['nheads'][j], 'L': cfg['nlayers'][j],
                         'F': cfg['feedforward_dim'][j], 'tcn': tcn,
                         'c_last': nch[-1]})
    return {'B': B, 'T': T, 'out_dim': min(cfg['num_channels'][0]),
            'branches': branches}


# ----------------------------------------------------------------------------
# The single fused kernel
# ----------------------------------------------------------------------------

def make_cross_tbert_kernel(meta):
    B, T = meta['B'], meta['T']
    M = B * T

    def layer_norm(x, g, b, eps=1e-5):
        mu = jnp.mean(x, axis=-1, keepdims=True)
        var = jnp.mean(jnp.square(x - mu), axis=-1, keepdims=True)
        return (x - mu) * lax.rsqrt(var + eps) * g + b

    def kernel(*refs):
        o_ref = refs[-1]
        cursor = [2]                       # refs[0], refs[1] are the two inputs

        def nxt():
            r = refs[cursor[0]]
            cursor[0] += 1
            return r

        # Cached causal row masks, one per distinct shift (JAX does not CSE
        # iota/compare; build each only once per trace and reuse).
        mask_cache = {}

        def causal_keep(s):
            if s not in mask_cache:
                rows = lax.broadcasted_iota(jnp.int32, (M, 1), 0)
                mask_cache[s] = (rows % T) >= s
            return mask_cache[s]

        outs = []
        for bi, bm in enumerate(meta['branches']):
            E, H, L = bm['E'], bm['H'], bm['L']
            dh = E // H
            scale = 1.0 / math.sqrt(dh)
            x0 = refs[bi][...].astype(jnp.float32)                 # [M, E]

            # -------- transformer branch (post-norm self-attention stack) ----
            xt = x0
            for _ in range(L):
                wqkv, bqkv, wo, bo = nxt(), nxt(), nxt(), nxt()
                ln1g, ln1b = nxt(), nxt()
                w1, b1, w2, b2 = nxt(), nxt(), nxt(), nxt()
                ln2g, ln2b = nxt(), nxt()

                # Fused Q|K|V projection: one wide MXU matmul, kept as a value.
                qkv = (jnp.dot(xt, wqkv[...],
                               preferred_element_type=jnp.float32)
                       + bqkv[...])                                # [M, 3E]
                qkv3 = qkv.reshape(B, T, 3 * E)

                sa = jnp.zeros((M, E), jnp.float32)
                for h in range(H):
                    c0 = h * dh
                    q = qkv3[:, :, c0:c0 + dh]                     # [B, T, dh]
                    k = qkv3[:, :, E + c0:E + c0 + dh]
                    v = qkv3[:, :, 2 * E + c0:2 * E + c0 + dh]
                    s = jnp.einsum('bqd,bkd->bqk', q, k,
                                   preferred_element_type=jnp.float32) * scale
                    s = s - jnp.max(s, axis=-1, keepdims=True)
                    p = jnp.exp(s)
                    p = p / jnp.sum(p, axis=-1, keepdims=True)
                    oh = jnp.einsum('bqk,bkd->bqd', p, v,
                                    preferred_element_type=jnp.float32)
                    # Merge heads through row blocks of W_o (no lane concat).
                    sa = sa + jnp.dot(oh.reshape(M, dh), wo[c0:c0 + dh, :],
                                      preferred_element_type=jnp.float32)
                sa = sa + bo[...]

                x1 = layer_norm(xt + sa, ln1g[...], ln1b[...])
                ff = jnp.maximum(
                    jnp.dot(x1, w1[...], preferred_element_type=jnp.float32)
                    + b1[...], 0.0)
                ff = (jnp.dot(ff, w2[...], preferred_element_type=jnp.float32)
                      + b2[...])
                xt = layer_norm(x1 + ff, ln2g[...], ln2b[...])

            # -------- TCN branch (causal dilated convs, same [M, C] layout) --
            xc = x0
            for tm in bm['tcn']:
                K, d = tm['K'], tm['d']
                cw1, cb1, cw2, cb2 = nxt(), nxt(), nxt(), nxt()

                def causal_conv(inp, w_ref, b_ref, K=K, d=d):
                    cout = w_ref.shape[-1]
                    acc = jnp.zeros((M, cout), jnp.float32)
                    for k in range(K):
                        s = (K - 1 - k) * d        # causal left shift of tap k
                        if s == 0:
                            xs = inp
                        else:
                            # static roll -> sublane slice/concat (no MXU);
                            # mask zeroes rows that wrapped across batches /
                            # correspond to the causal zero padding.
                            xs = jnp.roll(inp, s, axis=0)
                            xs = jnp.where(causal_keep(s), xs, 0.0)
                        acc = acc + jnp.dot(
                            xs, w_ref[k], preferred_element_type=jnp.float32)
                    return acc + b_ref[...]

                h1 = jnp.maximum(causal_conv(xc, cw1, cb1), 0.0)
                h2 = jnp.maximum(causal_conv(h1, cw2, cb2), 0.0)
                if tm['down']:
                    dw, db = nxt(), nxt()
                    res = (jnp.dot(xc, dw[...],
                                   preferred_element_type=jnp.float32)
                           + db[...])
                else:
                    res = xc
                xc = jnp.maximum(h2 + res, 0.0)                # block residual

            # -------- head: fuse_linear + (concat folded into split matmul) --
            fw, fb, lw, lb = nxt(), nxt(), nxt(), nxt()
            c = bm['c_last']
            fuse = (jnp.dot(xt, fw[...], preferred_element_type=jnp.float32)
                    + fb[...])                                   # [M, c]
            # cat([tcn, fuse], -1) @ W  ==  tcn @ W[:c] + fuse @ W[c:]
            y = (jnp.dot(xc, lw[0:c, :], preferred_element_type=jnp.float32)
                 + jnp.dot(fuse, lw[c:2 * c, :],
                           preferred_element_type=jnp.float32)
                 + lb[...])                                      # [M, out_dim]
            outs.append(y)

        assert cursor[0] == len(refs) - 1     # trace-time operand-order check
        # Single lane-dense store of both branch outputs.
        o_ref[...] = jnp.concatenate(outs, axis=-1).astype(o_ref.dtype)

    return kernel


# ----------------------------------------------------------------------------
# Wrapper
# ----------------------------------------------------------------------------

def _branch_operands(bp, bm):
    ops = []
    for lp in bp['layers']:
        ops += [lp['wqkv'], lp['bqkv'], lp['wo'], lp['bo'],
                lp['ln1g'], lp['ln1b'], lp['w1'], lp['b1'],
                lp['w2'], lp['b2'], lp['ln2g'], lp['ln2b']]
    for blk, tm in zip(bp['tcn'], bm['tcn']):
        ops += [blk['w1'], blk['b1'], blk['w2'], blk['b2']]
        if tm['down']:
            ops += [blk['wd'], blk['bd']]
    ops += [bp['fuse_w'], bp['fuse_b'], bp['lin_w'], bp['lin_b']]
    return ops


def cross_tbert_forward(f1, f2, params, cfg):
    """f1: [T, B, inc1], f2: [T, B, inc2] -> [T, B, 2*min(num_channels[0])]."""
    T, B, _ = f1.shape
    meta = build_meta(cfg, T, B)
    M = B * T
    out_dim = meta['out_dim']

    # Batch-major row slabs [B*T, E] (only wrapper-side layout ops).
    x1 = jnp.transpose(f1, (1, 0, 2)).reshape(M, f1.shape[2])
    x2 = jnp.transpose(f2, (1, 0, 2)).reshape(M, f2.shape[2])

    operands = [x1, x2]
    for key, bm in zip(('f1', 'f2'), meta['branches']):
        operands += _branch_operands(params[key], bm)

    out2d = pl.pallas_call(
        make_cross_tbert_kernel(meta),
        out_shape=jax.ShapeDtypeStruct((M, 2 * out_dim), f1.dtype),
        grid=(1,),
        in_specs=[_full_spec(a.shape) for a in operands],
        out_specs=_full_spec((M, 2 * out_dim)),
        compiler_params=pltpu.CompilerParams(
            dimension_semantics=("arbitrary",)),
    )(*operands)

    # [B*T, 2*out] -> [T, B, 2*out]
    return out2d.reshape(B, T, 2 * out_dim).transpose(1, 0, 2)


# ----------------------------------------------------------------------------
# Deterministic parameter initialization (kernel-ready layouts, arrays only)
# ----------------------------------------------------------------------------

def _init_linear(key, din, dout, scale=0.05):
    w = jax.random.normal(key, (din, dout), jnp.float32) * scale
    b = jnp.zeros((1, dout), jnp.float32)
    return w, b


def init_branch_params(key, bm, out_dim):
    E, F, L = bm['E'], bm['F'], bm['L']
    layers = []
    for l in range(L):
        ks = jax.random.split(jax.random.fold_in(key, l), 6)
        wq, _ = _init_linear(ks[0], E, E)
        wk, _ = _init_linear(ks[1], E, E)
        wv, _ = _init_linear(ks[2], E, E)
        wo, bo = _init_linear(ks[3], E, E)
        w1, b1 = _init_linear(ks[4], E, F)
        w2, b2 = _init_linear(ks[5], F, E)
        layers.append(dict(
            wqkv=jnp.concatenate([wq, wk, wv], axis=1),      # [E, 3E]
            bqkv=jnp.zeros((1, 3 * E), jnp.float32),
            wo=wo, bo=bo,
            ln1g=jnp.ones((1, E), jnp.float32),
            ln1b=jnp.zeros((1, E), jnp.float32),
            w1=w1, b1=b1, w2=w2, b2=b2,
            ln2g=jnp.ones((1, E), jnp.float32),
            ln2b=jnp.zeros((1, E), jnp.float32)))
    tcn = []
    for i, tm in enumerate(bm['tcn']):
        ks = jax.random.split(jax.random.fold_in(key, 1000 + i), 3)
        K, cin, cout = tm['K'], tm['cin'], tm['cout']
        # weight_norm is a pure reparametrization at inference; effective conv
        # weights are drawn directly, stored per-tap as [K, Cin, Cout].
        blk = dict(
            w1=jax.random.normal(ks[0], (K, cin, cout), jnp.float32) * 0.05,
            b1=jnp.zeros((1, cout), jnp.float32),
            w2=jax.random.normal(ks[1], (K, cout, cout), jnp.float32) * 0.05,
            b2=jnp.zeros((1, cout), jnp.float32))
        if tm['down']:
            blk['wd'] = jax.random.normal(ks[2], (cin, cout), jnp.float32) * 0.05
            blk['bd'] = jnp.zeros((1, cout), jnp.float32)
        tcn.append(blk)
    kf, kl = jax.random.split(jax.random.fold_in(key, 2000))
    fuse_w, fuse_b = _init_linear(kf, E, bm['c_last'])
    lin_w, lin_b = _init_linear(kl, 2 * bm['c_last'], out_dim)
    return dict(layers=layers, tcn=tcn,
                fuse_w=fuse_w, fuse_b=fuse_b, lin_w=lin_w, lin_b=lin_b)


def init_cross_tbert(key, cfg, T, B):
    meta = build_meta(cfg, T, B)
    k1, k2 = jax.random.split(key)
    return {'f1': init_branch_params(k1, meta['branches'][0], meta['out_dim']),
            'f2': init_branch_params(k2, meta['branches'][1], meta['out_dim'])}


# ----------------------------------------------------------------------------
# Main
# ----------------------------------------------------------------------------

if __name__ == "__main__":
    cfg = {
        'inc1': 32,
        'inc2': 32,
        'feedforward_dim': [64, 64],
        'num_channels': [[16, 16], [16, 16]],
        'nheads': [4, 4],
        'nlayers': [2, 2],
        'kernel_size': [3, 3],
        'dropout': 0.3,   # identity in eval mode
    }
    T, B = 8, 2

    key = jax.random.PRNGKey(0)
    kp, ka, kb = jax.random.split(key, 3)
    params = init_cross_tbert(kp, cfg, T, B)

    f1 = jax.random.normal(ka, (T, B, cfg['inc1']), jnp.float32)
    f2 = jax.random.normal(kb, (T, B, cfg['inc2']), jnp.float32)

    fwd = jax.jit(functools.partial(cross_tbert_forward, cfg=cfg))
    out = jax.block_until_ready(fwd(f1, f2, params))

    expected = (T, B, 2 * min(cfg['num_channels'][0]))
    assert out.shape == expected, (out.shape, expected)
    assert bool(jnp.all(jnp.isfinite(out)))
    print("KERNEL_OK")
</pallas_src>

<mosaic_0001>
module attributes {stable_mosaic.version = 11 : i64} {
  func.func @kernel(%arg0: i32, %arg1: memref<16x32xf32, #tpu.memory_space<vmem>>, %arg2: memref<16x32xf32, #tpu.memory_space<vmem>>, %arg3: memref<32x96xf32, #tpu.memory_space<vmem>>, %arg4: memref<1x96xf32, #tpu.memory_space<vmem>>, %arg5: memref<32x32xf32, #tpu.memory_space<vmem>>, %arg6: memref<1x32xf32, #tpu.memory_space<vmem>>, %arg7: memref<1x32xf32, #tpu.memory_space<vmem>>, %arg8: memref<1x32xf32, #tpu.memory_space<vmem>>, %arg9: memref<32x64xf32, #tpu.memory_space<vmem>>, %arg10: memref<1x64xf32, #tpu.memory_space<vmem>>, %arg11: memref<64x32xf32, #tpu.memory_space<vmem>>, %arg12: memref<1x32xf32, #tpu.memory_space<vmem>>, %arg13: memref<1x32xf32, #tpu.memory_space<vmem>>, %arg14: memref<1x32xf32, #tpu.memory_space<vmem>>, %arg15: memref<32x96xf32, #tpu.memory_space<vmem>>, %arg16: memref<1x96xf32, #tpu.memory_space<vmem>>, %arg17: memref<32x32xf32, #tpu.memory_space<vmem>>, %arg18: memref<1x32xf32, #tpu.memory_space<vmem>>, %arg19: memref<1x32xf32, #tpu.memory_space<vmem>>, %arg20: memref<1x32xf32, #tpu.memory_space<vmem>>, %arg21: memref<32x64xf32, #tpu.memory_space<vmem>>, %arg22: memref<1x64xf32, #tpu.memory_space<vmem>>, %arg23: memref<64x32xf32, #tpu.memory_space<vmem>>, %arg24: memref<1x32xf32, #tpu.memory_space<vmem>>, %arg25: memref<1x32xf32, #tpu.memory_space<vmem>>, %arg26: memref<1x32xf32, #tpu.memory_space<vmem>>, %arg27: memref<3x32x16xf32, #tpu.memory_space<vmem>>, %arg28: memref<1x16xf32, #tpu.memory_space<vmem>>, %arg29: memref<3x16x16xf32, #tpu.memory_space<vmem>>, %arg30: memref<1x16xf32, #tpu.memory_space<vmem>>, %arg31: memref<32x16xf32, #tpu.memory_space<vmem>>, %arg32: memref<1x16xf32, #tpu.memory_space<vmem>>, %arg33: memref<3x16x16xf32, #tpu.memory_space<vmem>>, %arg34: memref<1x16xf32, #tpu.memory_space<vmem>>, %arg35: memref<3x16x16xf32, #tpu.memory_space<vmem>>, %arg36: memref<1x16xf32, #tpu.memory_space<vmem>>, %arg37: memref<32x16xf32, #tpu.memory_space<vmem>>, %arg38: memref<1x16xf32, #tpu.memory_space<vmem>>, %arg39: memref<32x16xf32, #tpu.memory_space<vmem>>, %arg40: memref<1x16xf32, #tpu.memory_space<vmem>>, %arg41: memref<32x96xf32, #tpu.memory_space<vmem>>, %arg42: memref<1x96xf32, #tpu.memory_space<vmem>>, %arg43: memref<32x32xf32, #tpu.memory_space<vmem>>, %arg44: memref<1x32xf32, #tpu.memory_space<vmem>>, %arg45: memref<1x32xf32, #tpu.memory_space<vmem>>, %arg46: memref<1x32xf32, #tpu.memory_space<vmem>>, %arg47: memref<32x64xf32, #tpu.memory_space<vmem>>, %arg48: memref<1x64xf32, #tpu.memory_space<vmem>>, %arg49: memref<64x32xf32, #tpu.memory_space<vmem>>, %arg50: memref<1x32xf32, #tpu.memory_space<vmem>>, %arg51: memref<1x32xf32, #tpu.memory_space<vmem>>, %arg52: memref<1x32xf32, #tpu.memory_space<vmem>>, %arg53: memref<32x96xf32, #tpu.memory_space<vmem>>, %arg54: memref<1x96xf32, #tpu.memory_space<vmem>>, %arg55: memref<32x32xf32, #tpu.memory_space<vmem>>, %arg56: memref<1x32xf32, #tpu.memory_space<vmem>>, %arg57: memref<1x32xf32, #tpu.memory_space<vmem>>, %arg58: memref<1x32xf32, #tpu.memory_space<vmem>>, %arg59: memref<32x64xf32, #tpu.memory_space<vmem>>, %arg60: memref<1x64xf32, #tpu.memory_space<vmem>>, %arg61: memref<64x32xf32, #tpu.memory_space<vmem>>, %arg62: memref<1x32xf32, #tpu.memory_space<vmem>>, %arg63: memref<1x32xf32, #tpu.memory_space<vmem>>, %arg64: memref<1x32xf32, #tpu.memory_space<vmem>>, %arg65: memref<3x32x16xf32, #tpu.memory_space<vmem>>, %arg66: memref<1x16xf32, #tpu.memory_space<vmem>>, %arg67: memref<3x16x16xf32, #tpu.memory_space<vmem>>, %arg68: memref<1x16xf32, #tpu.memory_space<vmem>>, %arg69: memref<32x16xf32, #tpu.memory_space<vmem>>, %arg70: memref<1x16xf32, #tpu.memory_space<vmem>>, %arg71: memref<3x16x16xf32, #tpu.memory_space<vmem>>, %arg72: memref<1x16xf32, #tpu.memory_space<vmem>>, %arg73: memref<3x16x16xf32, #tpu.memory_space<vmem>>, %arg74: memref<1x16xf32, #tpu.memory_space<vmem>>, %arg75: memref<32x16xf32, #tpu.memory_space<vmem>>, %arg76: memref<1x16xf32, #tpu.memory_space<vmem>>, %arg77: memref<32x16xf32, #tpu.memory_space<vmem>>, %arg78: memref<1x16xf32, #tpu.memory_space<vmem>>, %arg79: memref<16x32xf32, #tpu.memory_space<vmem>>) attributes {dimension_semantics = [#tpu.dimension_semantics<arbitrary>], iteration_bounds = array<i64: 1>, scalar_prefetch = 0 : i64, scratch_operands = 0 : i64, tpu.core_type = #tpu.core_type<tc>, window_params = [{pipeline_mode = #tpu.pipeline_mode<synchronous>, transform_indices = @transform_0, window_bounds = array<i64: 16, 32>}, {pipeline_mode = #tpu.pipeline_mode<synchronous>, transform_indices = @transform_1, window_bounds = array<i64: 16, 32>}, {pipeline_mode = #tpu.pipeline_mode<synchronous>, transform_indices = @transform_2, window_bounds = array<i64: 32, 96>}, {pipeline_mode = #tpu.pipeline_mode<synchronous>, transform_indices = @transform_3, window_bounds = array<i64: 1, 96>}, {pipeline_mode = #tpu.pipeline_mode<synchronous>, transform_indices = @transform_4, window_bounds = array<i64: 32, 32>}, {pipeline_mode = #tpu.pipeline_mode<synchronous>, transform_indices = @transform_5, window_bounds = array<i64: 1, 32>}, {pipeline_mode = #tpu.pipeline_mode<synchronous>, transform_indices = @transform_6, window_bounds = array<i64: 1, 32>}, {pipeline_mode = #tpu.pipeline_mode<synchronous>, transform_indices = @transform_7, window_bounds = array<i64: 1, 32>}, {pipeline_mode = #tpu.pipeline_mode<synchronous>, transform_indices = @transform_8, window_bounds = array<i64: 32, 64>}, {pipeline_mode = #tpu.pipeline_mode<synchronous>, transform_indices = @transform_9, window_bounds = array<i64: 1, 64>}, {pipeline_mode = #tpu.pipeline_mode<synchronous>, transform_indices = @transform_10, window_bounds = array<i64: 64, 32>}, {pipeline_mode = #tpu.pipeline_mode<synchronous>, transform_indices = @transform_11, window_bounds = array<i64: 1, 32>}, {pipeline_mode = #tpu.pipeline_mode<synchronous>, transform_indices = @transform_12, window_bounds = array<i64: 1, 32>}, {pipeline_mode = #tpu.pipeline_mode<synchronous>, transform_indices = @transform_13, window_bounds = array<i64: 1, 32>}, {pipeline_mode = #tpu.pipeline_mode<synchronous>, transform_indices = @transform_14, window_bounds = array<i64: 32, 96>}, {pipeline_mode = #tpu.pipeline_mode<synchronous>, transform_indices = @transform_15, window_bounds = array<i64: 1, 96>}, {pipeline_mode = #tpu.pipeline_mode<synchronous>, transform_indices = @transform_16, window_bounds = array<i64: 32, 32>}, {pipeline_mode = #tpu.pipeline_mode<synchronous>, transform_indices = @transform_17, window_bounds = array<i64: 1, 32>}, {pipeline_mode = #tpu.pipeline_mode<synchronous>, transform_indices = @transform_18, window_bounds = array<i64: 1, 32>}, {pipeline_mode = #tpu.pipeline_mode<synchronous>, transform_indices = @transform_19, window_bounds = array<i64: 1, 32>}, {pipeline_mode = #tpu.pipeline_mode<synchronous>, transform_indices = @transform_20, window_bounds = array<i64: 32, 64>}, {pipeline_mode = #tpu.pipeline_mode<synchronous>, transform_indices = @transform_21, window_bounds = array<i64: 1, 64>}, {pipeline_mode = #tpu.pipeline_mode<synchronous>, transform_indices = @transform_22, window_bounds = array<i64: 64, 32>}, {pipeline_mode = #tpu.pipeline_mode<synchronous>, transform_indices = @transform_23, window_bounds = array<i64: 1, 32>}, {pipeline_mode = #tpu.pipeline_mode<synchronous>, transform_indices = @transform_24, window_bounds = array<i64: 1, 32>}, {pipeline_mode = #tpu.pipeline_mode<synchronous>, transform_indices = @transform_25, window_bounds = array<i64: 1, 32>}, {pipeline_mode = #tpu.pipeline_mode<synchronous>, transform_indices = @transform_26, window_bounds = array<i64: 3, 32, 16>}, {pipeline_mode = #tpu.pipeline_mode<synchronous>, transform_indices = @transform_27, window_bounds = array<i64: 1, 16>}, {pipeline_mode = #tpu.pipeline_mode<synchronous>, transform_indices = @transform_28, window_bounds = array<i64: 3, 16, 16>}, {pipeline_mode = #tpu.pipeline_mode<synchronous>, transform_indices = @transform_29, window_bounds = array<i64: 1, 16>}, {pipeline_mode = #tpu.pipeline_mode<synchronous>, transform_indices = @transform_30, window_bounds = array<i64: 32, 16>}, {pipeline_mode = #tpu.pipeline_mode<synchronous>, transform_indices = @transform_31, window_bounds = array<i64: 1, 16>}, {pipeline_mode = #tpu.pipeline_mode<synchronous>, transform_indices = @transform_32, window_bounds = array<i64: 3, 16, 16>}, {pipeline_mode = #tpu.pipeline_mode<synchronous>, transform_indices = @transform_33, window_bounds = array<i64: 1, 16>}, {pipeline_mode = #tpu.pipeline_mode<synchronous>, transform_indices = @transform_34, window_bounds = array<i64: 3, 16, 16>}, {pipeline_mode = #tpu.pipeline_mode<synchronous>, transform_indices = @transform_35, window_bounds = array<i64: 1, 16>}, {pipeline_mode = #tpu.pipeline_mode<synchronous>, transform_indices = @transform_36, window_bounds = array<i64: 32, 16>}, {pipeline_mode = #tpu.pipeline_mode<synchronous>, transform_indices = @transform_37, window_bounds = array<i64: 1, 16>}, {pipeline_mode = #tpu.pipeline_mode<synchronous>, transform_indices = @transform_38, window_bounds = array<i64: 32, 16>}, {pipeline_mode = #tpu.pipeline_mode<synchronous>, transform_indices = @transform_39, window_bounds = array<i64: 1, 16>}, {pipeline_mode = #tpu.pipeline_mode<synchronous>, transform_indices = @transform_40, window_bounds = array<i64: 32, 96>}, {pipeline_mode = #tpu.pipeline_mode<synchronous>, transform_indices = @transform_41, window_bounds = array<i64: 1, 96>}, {pipeline_mode = #tpu.pipeline_mode<synchronous>, transform_indices = @transform_42, window_bounds = array<i64: 32, 32>}, {pipeline_mode = #tpu.pipeline_mode<synchronous>, transform_indices = @transform_43, window_bounds = array<i64: 1, 32>}, {pipeline_mode = #tpu.pipeline_mode<synchronous>, transform_indices = @transform_44, window_bounds = array<i64: 1, 32>}, {pipeline_mode = #tpu.pipeline_mode<synchronous>, transform_indices = @transform_45, window_bounds = array<i64: 1, 32>}, {pipeline_mode = #tpu.pipeline_mode<synchronous>, transform_indices = @transform_46, window_bounds = array<i64: 32, 64>}, {pipeline_mode = #tpu.pipeline_mode<synchronous>, transform_indices = @transform_47, window_bounds = array<i64: 1, 64>}, {pipeline_mode = #tpu.pipeline_mode<synchronous>, transform_indices = @transform_48, window_bounds = array<i64: 64, 32>}, {pipeline_mode = #tpu.pipeline_mode<synchronous>, transform_indices = @transform_49, window_bounds = array<i64: 1, 32>}, {pipeline_mode = #tpu.pipeline_mode<synchronous>, transform_indices = @transform_50, window_bounds = array<i64: 1, 32>}, {pipeline_mode = #tpu.pipeline_mode<synchronous>, transform_indices = @transform_51, window_bounds = array<i64: 1, 32>}, {pipeline_mode = #tpu.pipeline_mode<synchronous>, transform_indices = @transform_52, window_bounds = array<i64: 32, 96>}, {pipeline_mode = #tpu.pipeline_mode<synchronous>, transform_indices = @transform_53, window_bounds = array<i64: 1, 96>}, {pipeline_mode = #tpu.pipeline_mode<synchronous>, transform_indices = @transform_54, window_bounds = array<i64: 32, 32>}, {pipeline_mode = #tpu.pipeline_mode<synchronous>, transform_indices = @transform_55, window_bounds = array<i64: 1, 32>}, {pipeline_mode = #tpu.pipeline_mode<synchronous>, transform_indices = @transform_56, window_bounds = array<i64: 1, 32>}, {pipeline_mode = #tpu.pipeline_mode<synchronous>, transform_indices = @transform_57, window_bounds = array<i64: 1, 32>}, {pipeline_mode = #tpu.pipeline_mode<synchronous>, transform_indices = @transform_58, window_bounds = array<i64: 32, 64>}, {pipeline_mode = #tpu.pipeline_mode<synchronous>, transform_indices = @transform_59, window_bounds = array<i64: 1, 64>}, {pipeline_mode = #tpu.pipeline_mode<synchronous>, transform_indices = @transform_60, window_bounds = array<i64: 64, 32>}, {pipeline_mode = #tpu.pipeline_mode<synchronous>, transform_indices = @transform_61, window_bounds = array<i64: 1, 32>}, {pipeline_mode = #tpu.pipeline_mode<synchronous>, transform_indices = @transform_62, window_bounds = array<i64: 1, 32>}, {pipeline_mode = #tpu.pipeline_mode<synchronous>, transform_indices = @transform_63, window_bounds = array<i64: 1, 32>}, {pipeline_mode = #tpu.pipeline_mode<synchronous>, transform_indices = @transform_64, window_bounds = array<i64: 3, 32, 16>}, {pipeline_mode = #tpu.pipeline_mode<synchronous>, transform_indices = @transform_65, window_bounds = array<i64: 1, 16>}, {pipeline_mode = #tpu.pipeline_mode<synchronous>, transform_indices = @transform_66, window_bounds = array<i64: 3, 16, 16>}, {pipeline_mode = #tpu.pipeline_mode<synchronous>, transform_indices = @transform_67, window_bounds = array<i64: 1, 16>}, {pipeline_mode = #tpu.pipeline_mode<synchronous>, transform_indices = @transform_68, window_bounds = array<i64: 32, 16>}, {pipeline_mode = #tpu.pipeline_mode<synchronous>, transform_indices = @transform_69, window_bounds = array<i64: 1, 16>}, {pipeline_mode = #tpu.pipeline_mode<synchronous>, transform_indices = @transform_70, window_bounds = array<i64: 3, 16, 16>}, {pipeline_mode = #tpu.pipeline_mode<synchronous>, transform_indices = @transform_71, window_bounds = array<i64: 1, 16>}, {pipeline_mode = #tpu.pipeline_mode<synchronous>, transform_indices = @transform_72, window_bounds = array<i64: 3, 16, 16>}, {pipeline_mode = #tpu.pipeline_mode<synchronous>, transform_indices = @transform_73, window_bounds = array<i64: 1, 16>}, {pipeline_mode = #tpu.pipeline_mode<synchronous>, transform_indices = @transform_74, window_bounds = array<i64: 32, 16>}, {pipeline_mode = #tpu.pipeline_mode<synchronous>, transform_indices = @transform_75, window_bounds = array<i64: 1, 16>}, {pipeline_mode = #tpu.pipeline_mode<synchronous>, transform_indices = @transform_76, window_bounds = array<i64: 32, 16>}, {pipeline_mode = #tpu.pipeline_mode<synchronous>, transform_indices = @transform_77, window_bounds = array<i64: 1, 16>}, {pipeline_mode = #tpu.pipeline_mode<synchronous>, transform_indices = @transform_78, window_bounds = array<i64: 16, 32>}]} {
    %c0 = arith.constant 0 : index
    %c0_0 = arith.constant 0 : index
    %0 = vector.load %arg1[%c0, %c0_0] : memref<16x32xf32, #tpu.memory_space<vmem>>, vector<16x32xf32>
    %c0_1 = arith.constant 0 : index
    %c0_2 = arith.constant 0 : index
    %1 = vector.load %arg3[%c0_1, %c0_2] : memref<32x96xf32, #tpu.memory_space<vmem>>, vector<32x96xf32>
    %cst = arith.constant dense<0.000000e+00> : vector<16x96xf32>
    %2 = tpu.matmul %0, %1, %cst {dimension_numbers = #tpu.dot_dimension_numbers<[1], [0], [0], [1], [0, 0, 1, 1], [], []>} : vector<16x32xf32>, vector<32x96xf32>, vector<16x96xf32> -> vector<16x96xf32>
    %c0_3 = arith.constant 0 : index
    %c0_4 = arith.constant 0 : index
    %3 = vector.load %arg4[%c0_3, %c0_4] : memref<1x96xf32, #tpu.memory_space<vmem>>, vector<1x96xf32>
    %4 = vector.broadcast %3 : vector<1x96xf32> to vector<16x96xf32>
    %5 = arith.addf %2, %4 : vector<16x96xf32>
    %6 = vector.shape_cast %5 : vector<16x96xf32> to vector<2x8x96xf32>
    %cst_5 = arith.constant 0.000000e+00 : f32
    %7 = vector.broadcast %cst_5 : f32 to vector<16x32xf32>
    %8 = vector.extract_strided_slice %6 {offsets = [0, 0, 0], sizes = [2, 8, 8], strides = [1, 1, 1]} : vector<2x8x96xf32> to vector<2x8x8xf32>
    %9 = vector.extract_strided_slice %6 {offsets = [0, 0, 32], sizes = [2, 8, 8], strides = [1, 1, 1]} : vector<2x8x96xf32> to vector<2x8x8xf32>
    %10 = vector.extract_strided_slice %6 {offsets = [0, 0, 64], sizes = [2, 8, 8], strides = [1, 1, 1]} : vector<2x8x96xf32> to vector<2x8x8xf32>
    "tpu.trace_start"() <{level = 10 : i32, message = "bqd,bkd->bqk"}> : () -> ()
    %cst_6 = arith.constant dense<0.000000e+00> : vector<2x8x8xf32>
    %11 = tpu.matmul %8, %9, %cst_6 {dimension_numbers = #tpu.dot_dimension_numbers<[2], [2], [1], [1], [0, 0, 0, 1, 1, 1], [0], [0]>} : vector<2x8x8xf32>, vector<2x8x8xf32>, vector<2x8x8xf32> -> vector<2x8x8xf32>
    "tpu.trace_stop"() : () -> ()
    %cst_7 = arith.constant 0.353553385 : f32
    %12 = vector.broadcast %cst_7 : f32 to vector<2x8x8xf32>
    %13 = arith.mulf %11, %12 : vector<2x8x8xf32>
    %cst_8 = arith.constant dense<0xFF800000> : vector<2x8xf32>
    %14 = vector.multi_reduction <maximumf>, %13, %cst_8 [2] : vector<2x8x8xf32> to vector<2x8xf32>
    %15 = vector.shape_cast %14 : vector<2x8xf32> to vector<2x8x1xf32>
    %16 = vector.broadcast %15 : vector<2x8x1xf32> to vector<2x8x8xf32>
    %17 = arith.subf %13, %16 : vector<2x8x8xf32>
    %18 = math.exp %17 : vector<2x8x8xf32>
    %cst_9 = arith.constant dense<0.000000e+00> : vector<2x8xf32>
    %19 = vector.multi_reduction <add>, %18, %cst_9 [2] : vector<2x8x8xf32> to vector<2x8xf32>
    %20 = vector.shape_cast %19 : vector<2x8xf32> to vector<2x8x1xf32>
    %21 = vector.broadcast %20 : vector<2x8x1xf32> to vector<2x8x8xf32>
    %22 = arith.divf %18, %21 : vector<2x8x8xf32>
    "tpu.trace_start"() <{level = 10 : i32, message = "bqk,bkd->bqd"}> : () -> ()
    %cst_10 = arith.constant dense<0.000000e+00> : vector<2x8x8xf32>
    %23 = tpu.matmul %22, %10, %cst_10 {dimension_numbers = #tpu.dot_dimension_numbers<[2], [1], [1], [2], [0, 0, 0, 1, 1, 2], [0], [0]>} : vector<2x8x8xf32>, vector<2x8x8xf32>, vector<2x8x8xf32> -> vector<2x8x8xf32>
    "tpu.trace_stop"() : () -> ()
    %24 = vector.shape_cast %23 : vector<2x8x8xf32> to vector<16x8xf32>
    %c0_11 = arith.constant 0 : index
    %c0_12 = arith.constant 0 : index
    %25 = vector.load %arg5[%c0_11, %c0_12] : memref<32x32xf32, #tpu.memory_space<vmem>>, vector<8x32xf32>
    %cst_13 = arith.constant dense<0.000000e+00> : vector<16x32xf32>
    %26 = tpu.matmul %24, %25, %cst_13 {dimension_numbers = #tpu.dot_dimension_numbers<[1], [0], [0], [1], [0, 0, 1, 1], [], []>} : vector<16x8xf32>, vector<8x32xf32>, vector<16x32xf32> -> vector<16x32xf32>
    %27 = arith.addf %7, %26 : vector<16x32xf32>
    %28 = vector.extract_strided_slice %6 {offsets = [0, 0, 8], sizes = [2, 8, 8], strides = [1, 1, 1]} : vector<2x8x96xf32> to vector<2x8x8xf32>
    %29 = vector.extract_strided_slice %6 {offsets = [0, 0, 40], sizes = [2, 8, 8], strides = [1, 1, 1]} : vector<2x8x96xf32> to vector<2x8x8xf32>
    %30 = vector.extract_strided_slice %6 {offsets = [0, 0, 72], sizes = [2, 8, 8], strides = [1, 1, 1]} : vector<2x8x96xf32> to vector<2x8x8xf32>
    "tpu.trace_start"() <{level = 10 : i32, message = "bqd,bkd->bqk"}> : () -> ()
    %cst_14 = arith.constant dense<0.000000e+00> : vector<2x8x8xf32>
    %31 = tpu.matmul %28, %29, %cst_14 {dimension_numbers = #tpu.dot_dimension_numbers<[2], [2], [1], [1], [0, 0, 0, 1, 1, 1], [0], [0]>} : vector<2x8x8xf32>, vector<2x8x8xf32>, vector<2x8x8xf32> -> vector<2x8x8xf32>
    "tpu.trace_stop"() : () -> ()
    %cst_15 = arith.constant 0.353553385 : f32
    %32 = vector.broadcast %cst_15 : f32 to vector<2x8x8xf32>
    %33 = arith.mulf %31, %32 : vector<2x8x8xf32>
    %cst_16 = arith.constant dense<0xFF800000> : vector<2x8xf32>
    %34 = vector.multi_reduction <maximumf>, %33, %cst_16 [2] : vector<2x8x8xf32> to vector<2x8xf32>
    %35 = vector.shape_cast %34 : vector<2x8xf32> to vector<2x8x1xf32>
    %36 = vector.broadcast %35 : vector<2x8x1xf32> to vector<2x8x8xf32>
    %37 = arith.subf %33, %36 : vector<2x8x8xf32>
    %38 = math.exp %37 : vector<2x8x8xf32>
    %cst_17 = arith.constant dense<0.000000e+00> : vector<2x8xf32>
    %39 = vector.multi_reduction <add>, %38, %cst_17 [2] : vector<2x8x8xf32> to vector<2x8xf32>
    %40 = vector.shape_cast %39 : vector<2x8xf32> to vector<2x8x1xf32>
    %41 = vector.broadcast %40 : vector<2x8x1xf32> to vector<2x8x8xf32>
    %42 = arith.divf %38, %41 : vector<2x8x8xf32>
    "tpu.trace_start"() <{level = 10 : i32, message = "bqk,bkd->bqd"}> : () -> ()
    %cst_18 = arith.constant dense<0.000000e+00> : vector<2x8x8xf32>
    %43 = tpu.matmul %42, %30, %cst_18 {dimension_numbers = #tpu.dot_dimension_numbers<[2], [1], [1], [2], [0, 0, 0, 1, 1, 2], [0], [0]>} : vector<2x8x8xf32>, vector<2x8x8xf32>, vector<2x8x8xf32> -> vector<2x8x8xf32>
    "tpu.trace_stop"() : () -> ()
    %44 = vector.shape_cast %43 : vector<2x8x8xf32> to vector<16x8xf32>
    %c8 = arith.constant 8 : index
    %c0_19 = arith.constant 0 : index
    %45 = vector.load %arg5[%c8, %c0_19] : memref<32x32xf32, #tpu.memory_space<vmem>>, vector<8x32xf32>
    %cst_20 = arith.constant dense<0.000000e+00> : vector<16x32xf32>
    %46 = tpu.matmul %44, %45, %cst_20 {dimension_numbers = #tpu.dot_dimension_numbers<[1], [0], [0], [1], [0, 0, 1, 1], [], []>} : vector<16x8xf32>, vector<8x32xf32>, vector<16x32xf32> -> vector<16x32xf32>
    %47 = arith.addf %27, %46 : vector<16x32xf32>
    %48 = vector.extract_strided_slice %6 {offsets = [0, 0, 16], sizes = [2, 8, 8], strides = [1, 1, 1]} : vector<2x8x96xf32> to vector<2x8x8xf32>
    %49 = vector.extract_strided_slice %6 {offsets = [0, 0, 48], sizes = [2, 8, 8], strides = [1, 1, 1]} : vector<2x8x96xf32> to vector<2x8x8xf32>
    %50 = vector.extract_strided_slice %6 {offsets = [0, 0, 80], sizes = [2, 8, 8], strides = [1, 1, 1]} : vector<2x8x96xf32> to vector<2x8x8xf32>
    "tpu.trace_start"() <{level = 10 : i32, message = "bqd,bkd->bqk"}> : () -> ()
    %cst_21 = arith.constant dense<0.000000e+00> : vector<2x8x8xf32>
    %51 = tpu.matmul %48, %49, %cst_21 {dimension_numbers = #tpu.dot_dimension_numbers<[2], [2], [1], [1], [0, 0, 0, 1, 1, 1], [0], [0]>} : vector<2x8x8xf32>, vector<2x8x8xf32>, vector<2x8x8xf32> -> vector<2x8x8xf32>
    "tpu.trace_stop"() : () -> ()
    %cst_22 = arith.constant 0.353553385 : f32
    %52 = vector.broadcast %cst_22 : f32 to vector<2x8x8xf32>
    %53 = arith.mulf %51, %52 : vector<2x8x8xf32>
    %cst_23 = arith.constant dense<0xFF800000> : vector<2x8xf32>
    %54 = vector.multi_reduction <maximumf>, %53, %cst_23 [2] : vector<2x8x8xf32> to vector<2x8xf32>
    %55 = vector.shape_cast %54 : vector<2x8xf32> to vector<2x8x1xf32>
    %56 = vector.broadcast %55 : vector<2x8x1xf32> to vector<2x8x8xf32>
    %57 = arith.subf %53, %56 : vector<2x8x8xf32>
    %58 = math.exp %57 : vector<2x8x8xf32>
    %cst_24 = arith.constant dense<0.000000e+00> : vector<2x8xf32>
    %59 = vector.multi_reduction <add>, %58, %cst_24 [2] : vector<2x8x8xf32> to vector<2x8xf32>
    %60 = vector.shape_cast %59 : vector<2x8xf32> to vector<2x8x1xf32>
    %61 = vector.broadcast %60 : vector<2x8x1xf32> to vector<2x8x8xf32>
    %62 = arith.divf %58, %61 : vector<2x8x8xf32>
    "tpu.trace_start"() <{level = 10 : i32, message = "bqk,bkd->bqd"}> : () -> ()
    %cst_25 = arith.constant dense<0.000000e+00> : vector<2x8x8xf32>
    %63 = tpu.matmul %62, %50, %cst_25 {dimension_numbers = #tpu.dot_dimension_numbers<[2], [1], [1], [2], [0, 0, 0, 1, 1, 2], [0], [0]>} : vector<2x8x8xf32>, vector<2x8x8xf32>, vector<2x8x8xf32> -> vector<2x8x8xf32>
    "tpu.trace_stop"() : () -> ()
    %64 = vector.shape_cast %63 : vector<2x8x8xf32> to vector<16x8xf32>
    %c16 = arith.constant 16 : index
    %c0_26 = arith.constant 0 : index
    %65 = vector.load %arg5[%c16, %c0_26] : memref<32x32xf32, #tpu.memory_space<vmem>>, vector<8x32xf32>
    %cst_27 = arith.constant dense<0.000000e+00> : vector<16x32xf32>
    %66 = tpu.matmul %64, %65, %cst_27 {dimension_numbers = #tpu.dot_dimension_numbers<[1], [0], [0], [1], [0, 0, 1, 1], [], []>} : vector<16x8xf32>, vector<8x32xf32>, vector<16x32xf32> -> vector<16x32xf32>
    %67 = arith.addf %47, %66 : vector<16x32xf32>
    %68 = vector.extract_strided_slice %6 {offsets = [0, 0, 24], sizes = [2, 8, 8], strides = [1, 1, 1]} : vector<2x8x96xf32> to vector<2x8x8xf32>
    %69 = vector.extract_strided_slice %6 {offsets = [0, 0, 56], sizes = [2, 8, 8], strides = [1, 1, 1]} : vector<2x8x96xf32> to vector<2x8x8xf32>
    %70 = vector.extract_strided_slice %6 {offsets = [0, 0, 88], sizes = [2, 8, 8], strides = [1, 1, 1]} : vector<2x8x96xf32> to vector<2x8x8xf32>
    "tpu.trace_start"() <{level = 10 : i32, message = "bqd,bkd->bqk"}> : () -> ()
    %cst_28 = arith.constant dense<0.000000e+00> : vector<2x8x8xf32>
    %71 = tpu.matmul %68, %69, %cst_28 {dimension_numbers = #tpu.dot_dimension_numbers<[2], [2], [1], [1], [0, 0, 0, 1, 1, 1], [0], [0]>} : vector<2x8x8xf32>, vector<2x8x8xf32>, vector<2x8x8xf32> -> vector<2x8x8xf32>
    "tpu.trace_stop"() : () -> ()
    %cst_29 = arith.constant 0.353553385 : f32
    %72 = vector.broadcast %cst_29 : f32 to vector<2x8x8xf32>
    %73 = arith.mulf %71, %72 : vector<2x8x8xf32>
    %cst_30 = arith.constant dense<0xFF800000> : vector<2x8xf32>
    %74 = vector.multi_reduction <maximumf>, %73, %cst_30 [2] : vector<2x8x8xf32> to vector<2x8xf32>
    %75 = vector.shape_cast %74 : vector<2x8xf32> to vector<2x8x1xf32>
    %76 = vector.broadcast %75 : vector<2x8x1xf32> to vector<2x8x8xf32>
    %77 = arith.subf %73, %76 : vector<2x8x8xf32>
    %78 = math.exp %77 : vector<2x8x8xf32>
    %cst_31 = arith.constant dense<0.000000e+00> : vector<2x8xf32>
    %79 = vector.multi_reduction <add>, %78, %cst_31 [2] : vector<2x8x8xf32> to vector<2x8xf32>
    %80 = vector.shape_cast %79 : vector<2x8xf32> to vector<2x8x1xf32>
    %81 = vector.broadcast %80 : vector<2x8x1xf32> to vector<2x8x8xf32>
    %82 = arith.divf %78, %81 : vector<2x8x8xf32>
    "tpu.trace_start"() <{level = 10 : i32, message = "bqk,bkd->bqd"}> : () -> ()
    %cst_32 = arith.constant dense<0.000000e+00> : vector<2x8x8xf32>
    %83 = tpu.matmul %82, %70, %cst_32 {dimension_numbers = #tpu.dot_dimension_numbers<[2], [1], [1], [2], [0, 0, 0, 1, 1, 2], [0], [0]>} : vector<2x8x8xf32>, vector<2x8x8xf32>, vector<2x8x8xf32> -> vector<2x8x8xf32>
    "tpu.trace_stop"() : () -> ()
    %84 = vector.shape_cast %83 : vector<2x8x8xf32> to vector<16x8xf32>
    %c24 = arith.constant 24 : index
    %c0_33 = arith.constant 0 : index
    %85 = vector.load %arg5[%c24, %c0_33] : memref<32x32xf32, #tpu.memory_space<vmem>>, vector<8x32xf32>
    %cst_34 = arith.constant dense<0.000000e+00> : vector<16x32xf32>
    %86 = tpu.matmul %84, %85, %cst_34 {dimension_numbers = #tpu.dot_dimension_numbers<[1], [0], [0], [1], [0, 0, 1, 1], [], []>} : vector<16x8xf32>, vector<8x32xf32>, vector<16x32xf32> -> vector<16x32xf32>
    %87 = arith.addf %67, %86 : vector<16x32xf32>
    %c0_35 = arith.constant 0 : index
    %c0_36 = arith.constant 0 : index
    %88 = vector.load %arg6[%c0_35, %c0_36] : memref<1x32xf32, #tpu.memory_space<vmem>>, vector<1x32xf32>
    %89 = vector.broadcast %88 : vector<1x32xf32> to vector<16x32xf32>
    %90 = arith.addf %87, %89 : vector<16x32xf32>
    %91 = arith.addf %0, %90 : vector<16x32xf32>
    %c0_37 = arith.constant 0 : index
    %c0_38 = arith.constant 0 : index
    %92 = vector.load %arg7[%c0_37, %c0_38] : memref<1x32xf32, #tpu.memory_space<vmem>>, vector<1x32xf32>
    %c0_39 = arith.constant 0 : index
    %c0_40 = arith.constant 0 : index
    %93 = vector.load %arg8[%c0_39, %c0_40] : memref<1x32xf32, #tpu.memory_space<vmem>>, vector<1x32xf32>
    %cst_41 = arith.constant dense<0.000000e+00> : vector<16xf32>
    %94 = vector.multi_reduction <add>, %91, %cst_41 [1] : vector<16x32xf32> to vector<16xf32>
    %95 = vector.shape_cast %94 : vector<16xf32> to vector<16x1xf32>
    %cst_42 = arith.constant 3.200000e+01 : f32
    %96 = vector.broadcast %cst_42 : f32 to vector<16x1xf32>
    %97 = arith.divf %95, %96 : vector<16x1xf32>
    %98 = vector.broadcast %97 : vector<16x1xf32> to vector<16x32xf32>
    %99 = arith.subf %91, %98 : vector<16x32xf32>
    %100 = arith.mulf %99, %99 : vector<16x32xf32>
    %cst_43 = arith.constant dense<0.000000e+00> : vector<16xf32>
    %101 = vector.multi_reduction <add>, %100, %cst_43 [1] : vector<16x32xf32> to vector<16xf32>
    %102 = vector.shape_cast %101 : vector<16xf32> to vector<16x1xf32>
    %cst_44 = arith.constant 3.200000e+01 : f32
    %103 = vector.broadcast %cst_44 : f32 to vector<16x1xf32>
    %104 = arith.divf %102, %103 : vector<16x1xf32>
    %105 = vector.broadcast %97 : vector<16x1xf32> to vector<16x32xf32>
    %106 = arith.subf %91, %105 : vector<16x32xf32>
    %cst_45 = arith.constant 9.99999974E-6 : f32
    %107 = vector.broadcast %cst_45 : f32 to vector<16x1xf32>
    %108 = arith.addf %104, %107 : vector<16x1xf32>
    %109 = math.rsqrt %108 : vector<16x1xf32>
    %110 = vector.broadcast %109 : vector<16x1xf32> to vector<16x32xf32>
    %111 = arith.mulf %106, %110 : vector<16x32xf32>
    %112 = vector.broadcast %92 : vector<1x32xf32> to vector<16x32xf32>
    %113 = arith.mulf %111, %112 : vector<16x32xf32>
    %114 = vector.broadcast %93 : vector<1x32xf32> to vector<16x32xf32>
    %115 = arith.addf %113, %114 : vector<16x32xf32>
    %c0_46 = arith.constant 0 : index
    %c0_47 = arith.constant 0 : index
    %116 = vector.load %arg9[%c0_46, %c0_47] : memref<32x64xf32, #tpu.memory_space<vmem>>, vector<32x64xf32>
    %cst_48 = arith.constant dense<0.000000e+00> : vector<16x64xf32>
    %117 = tpu.matmul %115, %116, %cst_48 {dimension_numbers = #tpu.dot_dimension_numbers<[1], [0], [0], [1], [0, 0, 1, 1], [], []>} : vector<16x32xf32>, vector<32x64xf32>, vector<16x64xf32> -> vector<16x64xf32>
    %c0_49 = arith.constant 0 : index
    %c0_50 = arith.constant 0 : index
    %118 = vector.load %arg10[%c0_49, %c0_50] : memref<1x64xf32, #tpu.memory_space<vmem>>, vector<1x64xf32>
    %119 = vector.broadcast %118 : vector<1x64xf32> to vector<16x64xf32>
    %120 = arith.addf %117, %119 : vector<16x64xf32>
    %cst_51 = arith.constant 0.000000e+00 : f32
    %121 = vector.broadcast %cst_51 : f32 to vector<16x64xf32>
    %122 = arith.maximumf %120, %121 : vector<16x64xf32>
    %c0_52 = arith.constant 0 : index
    %c0_53 = arith.constant 0 : index
    %123 = vector.load %arg11[%c0_52, %c0_53] : memref<64x32xf32, #tpu.memory_space<vmem>>, vector<64x32xf32>
    %cst_54 = arith.constant dense<0.000000e+00> : vector<16x32xf32>
    %124 = tpu.matmul %122, %123, %cst_54 {dimension_numbers = #tpu.dot_dimension_numbers<[1], [0], [0], [1], [0, 0, 1, 1], [], []>} : vector<16x64xf32>, vector<64x32xf32>, vector<16x32xf32> -> vector<16x32xf32>
    %c0_55 = arith.constant 0 : index
    %c0_56 = arith.constant 0 : index
    %125 = vector.load %arg12[%c0_55, %c0_56] : memref<1x32xf32, #tpu.memory_space<vmem>>, vector<1x32xf32>
    %126 = vector.broadcast %125 : vector<1x32xf32> to vector<16x32xf32>
    %127 = arith.addf %124, %126 : vector<16x32xf32>
    %128 = arith.addf %115, %127 : vector<16x32xf32>
    %c0_57 = arith.constant 0 : index
    %c0_58 = arith.constant 0 : index
    %129 = vector.load %arg13[%c0_57, %c0_58] : memref<1x32xf32, #tpu.memory_space<vmem>>, vector<1x32xf32>
    %c0_59 = arith.constant 0 : index
    %c0_60 = arith.constant 0 : index
    %130 = vector.load %arg14[%c0_59, %c0_60] : memref<1x32xf32, #tpu.memory_space<vmem>>, vector<1x32xf32>
    %cst_61 = arith.constant dense<0.000000e+00> : vector<16xf32>
    %131 = vector.multi_reduction <add>, %128, %cst_61 [1] : vector<16x32xf32> to vector<16xf32>
    %132 = vector.shape_cast %131 : vector<16xf32> to vector<16x1xf32>
    %cst_62 = arith.constant 3.200000e+01 : f32
    %133 = vector.broadcast %cst_62 : f32 to vector<16x1xf32>
    %134 = arith.divf %132, %133 : vector<16x1xf32>
    %135 = vector.broadcast %134 : vector<16x1xf32> to vector<16x32xf32>
    %136 = arith.subf %128, %135 : vector<16x32xf32>
    %137 = arith.mulf %136, %136 : vector<16x32xf32>
    %cst_63 = arith.constant dense<0.000000e+00> : vector<16xf32>
    %138 = vector.multi_reduction <add>, %137, %cst_63 [1] : vector<16x32xf32> to vector<16xf32>
    %139 = vector.shape_cast %138 : vector<16xf32> to vector<16x1xf32>
    %cst_64 = arith.constant 3.200000e+01 : f32
    %140 = vector.broadcast %cst_64 : f32 to vector<16x1xf32>
    %141 = arith.divf %139, %140 : vector<16x1xf32>
    %142 = vector.broadcast %134 : vector<16x1xf32> to vector<16x32xf32>
    %143 = arith.subf %128, %142 : vector<16x32xf32>
    %cst_65 = arith.constant 9.99999974E-6 : f32
    %144 = vector.broadcast %cst_65 : f32 to vector<16x1xf32>
    %145 = arith.addf %141, %144 : vector<16x1xf32>
    %146 = math.rsqrt %145 : vector<16x1xf32>
    %147 = vector.broadcast %146 : vector<16x1xf32> to vector<16x32xf32>
    %148 = arith.mulf %143, %147 : vector<16x32xf32>
    %149 = vector.broadcast %129 : vector<1x32xf32> to vector<16x32xf32>
    %150 = arith.mulf %148, %149 : vector<16x32xf32>
    %151 = vector.broadcast %130 : vector<1x32xf32> to vector<16x32xf32>
    %152 = arith.addf %150, %151 : vector<16x32xf32>
    %c0_66 = arith.constant 0 : index
    %c0_67 = arith.constant 0 : index
    %153 = vector.load %arg15[%c0_66, %c0_67] : memref<32x96xf32, #tpu.memory_space<vmem>>, vector<32x96xf32>
    %cst_68 = arith.constant dense<0.000000e+00> : vector<16x96xf32>
    %154 = tpu.matmul %152, %153, %cst_68 {dimension_numbers = #tpu.dot_dimension_numbers<[1], [0], [0], [1], [0, 0, 1, 1], [], []>} : vector<16x32xf32>, vector<32x96xf32>, vector<16x96xf32> -> vector<16x96xf32>
    %c0_69 = arith.constant 0 : index
    %c0_70 = arith.constant 0 : index
    %155 = vector.load %arg16[%c0_69, %c0_70] : memref<1x96xf32, #tpu.memory_space<vmem>>, vector<1x96xf32>
    %156 = vector.broadcast %155 : vector<1x96xf32> to vector<16x96xf32>
    %157 = arith.addf %154, %156 : vector<16x96xf32>
    %158 = vector.shape_cast %157 : vector<16x96xf32> to vector<2x8x96xf32>
    %cst_71 = arith.constant 0.000000e+00 : f32
    %159 = vector.broadcast %cst_71 : f32 to vector<16x32xf32>
    %160 = vector.extract_strided_slice %158 {offsets = [0, 0, 0], sizes = [2, 8, 8], strides = [1, 1, 1]} : vector<2x8x96xf32> to vector<2x8x8xf32>
    %161 = vector.extract_strided_slice %158 {offsets = [0, 0, 32], sizes = [2, 8, 8], strides = [1, 1, 1]} : vector<2x8x96xf32> to vector<2x8x8xf32>
    %162 = vector.extract_strided_slice %158 {offsets = [0, 0, 64], sizes = [2, 8, 8], strides = [1, 1, 1]} : vector<2x8x96xf32> to vector<2x8x8xf32>
    "tpu.trace_start"() <{level = 10 : i32, message = "bqd,bkd->bqk"}> : () -> ()
    %cst_72 = arith.constant dense<0.000000e+00> : vector<2x8x8xf32>
    %163 = tpu.matmul %160, %161, %cst_72 {dimension_numbers = #tpu.dot_dimension_numbers<[2], [2], [1], [1], [0, 0, 0, 1, 1, 1], [0], [0]>} : vector<2x8x8xf32>, vector<2x8x8xf32>, vector<2x8x8xf32> -> vector<2x8x8xf32>
    "tpu.trace_stop"() : () -> ()
    %cst_73 = arith.constant 0.353553385 : f32
    %164 = vector.broadcast %cst_73 : f32 to vector<2x8x8xf32>
    %165 = arith.mulf %163, %164 : vector<2x8x8xf32>
    %cst_74 = arith.constant dense<0xFF800000> : vector<2x8xf32>
    %166 = vector.multi_reduction <maximumf>, %165, %cst_74 [2] : vector<2x8x8xf32> to vector<2x8xf32>
    %167 = vector.shape_cast %166 : vector<2x8xf32> to vector<2x8x1xf32>
    %168 = vector.broadcast %167 : vector<2x8x1xf32> to vector<2x8x8xf32>
    %169 = arith.subf %165, %168 : vector<2x8x8xf32>
    %170 = math.exp %169 : vector<2x8x8xf32>
    %cst_75 = arith.constant dense<0.000000e+00> : vector<2x8xf32>
    %171 = vector.multi_reduction <add>, %170, %cst_75 [2] : vector<2x8x8xf32> to vector<2x8xf32>
    %172 = vector.shape_cast %171 : vector<2x8xf32> to vector<2x8x1xf32>
    %173 = vector.broadcast %172 : vector<2x8x1xf32> to vector<2x8x8xf32>
    %174 = arith.divf %170, %173 : vector<2x8x8xf32>
    "tpu.trace_start"() <{level = 10 : i32, message = "bqk,bkd->bqd"}> : () -> ()
    %cst_76 = arith.constant dense<0.000000e+00> : vector<2x8x8xf32>
    %175 = tpu.matmul %174, %162, %cst_76 {dimension_numbers = #tpu.dot_dimension_numbers<[2], [1], [1], [2], [0, 0, 0, 1, 1, 2], [0], [0]>} : vector<2x8x8xf32>, vector<2x8x8xf32>, vector<2x8x8xf32> -> vector<2x8x8xf32>
    "tpu.trace_stop"() : () -> ()
    %176 = vector.shape_cast %175 : vector<2x8x8xf32> to vector<16x8xf32>
    %c0_77 = arith.constant 0 : index
    %c0_78 = arith.constant 0 : index
    %177 = vector.load %arg17[%c0_77, %c0_78] : memref<32x32xf32, #tpu.memory_space<vmem>>, vector<8x32xf32>
    %cst_79 = arith.constant dense<0.000000e+00> : vector<16x32xf32>
    %178 = tpu.matmul %176, %177, %cst_79 {dimension_numbers = #tpu.dot_dimension_numbers<[1], [0], [0], [1], [0, 0, 1, 1], [], []>} : vector<16x8xf32>, vector<8x32xf32>, vector<16x32xf32> -> vector<16x32xf32>
    %179 = arith.addf %159, %178 : vector<16x32xf32>
    %180 = vector.extract_strided_slice %158 {offsets = [0, 0, 8], sizes = [2, 8, 8], strides = [1, 1, 1]} : vector<2x8x96xf32> to vector<2x8x8xf32>
    %181 = vector.extract_strided_slice %158 {offsets = [0, 0, 40], sizes = [2, 8, 8], strides = [1, 1, 1]} : vector<2x8x96xf32> to vector<2x8x8xf32>
    %182 = vector.extract_strided_slice %158 {offsets = [0, 0, 72], sizes = [2, 8, 8], strides = [1, 1, 1]} : vector<2x8x96xf32> to vector<2x8x8xf32>
    "tpu.trace_start"() <{level = 10 : i32, message = "bqd,bkd->bqk"}> : () -> ()
    %cst_80 = arith.constant dense<0.000000e+00> : vector<2x8x8xf32>
    %183 = tpu.matmul %180, %181, %cst_80 {dimension_numbers = #tpu.dot_dimension_numbers<[2], [2], [1], [1], [0, 0, 0, 1, 1, 1], [0], [0]>} : vector<2x8x8xf32>, vector<2x8x8xf32>, vector<2x8x8xf32> -> vector<2x8x8xf32>
    "tpu.trace_stop"() : () -> ()
    %cst_81 = arith.constant 0.353553385 : f32
    %184 = vector.broadcast %cst_81 : f32 to vector<2x8x8xf32>
    %185 = arith.mulf %183, %184 : vector<2x8x8xf32>
    %cst_82 = arith.constant dense<0xFF800000> : vector<2x8xf32>
    %186 = vector.multi_reduction <maximumf>, %185, %cst_82 [2] : vector<2x8x8xf32> to vector<2x8xf32>
    %187 = vector.shape_cast %186 : vector<2x8xf32> to vector<2x8x1xf32>
    %188 = vector.broadcast %187 : vector<2x8x1xf32> to vector<2x8x8xf32>
    %189 = arith.subf %185, %188 : vector<2x8x8xf32>
    %190 = math.exp %189 : vector<2x8x8xf32>
    %cst_83 = arith.constant dense<0.000000e+00> : vector<2x8xf32>
    %191 = vector.multi_reduction <add>, %190, %cst_83 [2] : vector<2x8x8xf32> to vector<2x8xf32>
    %192 = vector.shape_cast %191 : vector<2x8xf32> to vector<2x8x1xf32>
    %193 = vector.broadcast %192 : vector<2x8x1xf32> to vector<2x8x8xf32>
    %194 = arith.divf %190, %193 : vector<2x8x8xf32>
    "tpu.trace_start"() <{level = 10 : i32, message = "bqk,bkd->bqd"}> : () -> ()
    %cst_84 = arith.constant dense<0.000000e+00> : vector<2x8x8xf32>
    %195 = tpu.matmul %194, %182, %cst_84 {dimension_numbers = #tpu.dot_dimension_numbers<[2], [1], [1], [2], [0, 0, 0, 1, 1, 2], [0], [0]>} : vector<2x8x8xf32>, vector<2x8x8xf32>, vector<2x8x8xf32> -> vector<2x8x8xf32>
    "tpu.trace_stop"() : () -> ()
    %196 = vector.shape_cast %195 : vector<2x8x8xf32> to vector<16x8xf32>
    %c8_85 = arith.constant 8 : index
    %c0_86 = arith.constant 0 : index
    %197 = vector.load %arg17[%c8_85, %c0_86] : memref<32x32xf32, #tpu.memory_space<vmem>>, vector<8x32xf32>
    %cst_87 = arith.constant dense<0.000000e+00> : vector<16x32xf32>
    %198 = tpu.matmul %196, %197, %cst_87 {dimension_numbers = #tpu.dot_dimension_numbers<[1], [0], [0], [1], [0, 0, 1, 1], [], []>} : vector<16x8xf32>, vector<8x32xf32>, vector<16x32xf32> -> vector<16x32xf32>
    %199 = arith.addf %179, %198 : vector<16x32xf32>
    %200 = vector.extract_strided_slice %158 {offsets = [0, 0, 16], sizes = [2, 8, 8], strides = [1, 1, 1]} : vector<2x8x96xf32> to vector<2x8x8xf32>
    %201 = vector.extract_strided_slice %158 {offsets = [0, 0, 48], sizes = [2, 8, 8], strides = [1, 1, 1]} : vector<2x8x96xf32> to vector<2x8x8xf32>
    %202 = vector.extract_strided_slice %158 {offsets = [0, 0, 80], sizes = [2, 8, 8], strides = [1, 1, 1]} : vector<2x8x96xf32> to vector<2x8x8xf32>
    "tpu.trace_start"() <{level = 10 : i32, message = "bqd,bkd->bqk"}> : () -> ()
    %cst_88 = arith.constant dense<0.000000e+00> : vector<2x8x8xf32>
    %203 = tpu.matmul %200, %201, %cst_88 {dimension_numbers = #tpu.dot_dimension_numbers<[2], [2], [1], [1], [0, 0, 0, 1, 1, 1], [0], [0]>} : vector<2x8x8xf32>, vector<2x8x8xf32>, vector<2x8x8xf32> -> vector<2x8x8xf32>
    "tpu.trace_stop"() : () -> ()
    %cst_89 = arith.constant 0.353553385 : f32
    %204 = vector.broadcast %cst_89 : f32 to vector<2x8x8xf32>
    %205 = arith.mulf %203, %204 : vector<2x8x8xf32>
    %cst_90 = arith.constant dense<0xFF800000> : vector<2x8xf32>
    %206 = vector.multi_reduction <maximumf>, %205, %cst_90 [2] : vector<2x8x8xf32> to vector<2x8xf32>
    %207 = vector.shape_cast %206 : vector<2x8xf32> to vector<2x8x1xf32>
    %208 = vector.broadcast %207 : vector<2x8x1xf32> to vector<2x8x8xf32>
    %209 = arith.subf %205, %208 : vector<2x8x8xf32>
    %210 = math.exp %209 : vector<2x8x8xf32>
    %cst_91 = arith.constant dense<0.000000e+00> : vector<2x8xf32>
    %211 = vector.multi_reduction <add>, %210, %cst_91 [2] : vector<2x8x8xf32> to vector<2x8xf32>
    %212 = vector.shape_cast %211 : vector<2x8xf32> to vector<2x8x1xf32>
    %213 = vector.broadcast %212 : vector<2x8x1xf32> to vector<2x8x8xf32>
    %214 = arith.divf %210, %213 : vector<2x8x8xf32>
    "tpu.trace_start"() <{level = 10 : i32, message = "bqk,bkd->bqd"}> : () -> ()
    %cst_92 = arith.constant dense<0.000000e+00> : vector<2x8x8xf32>
    %215 = tpu.matmul %214, %202, %cst_92 {dimension_numbers = #tpu.dot_dimension_numbers<[2], [1], [1], [2], [0, 0, 0, 1, 1, 2], [0], [0]>} : vector<2x8x8xf32>, vector<2x8x8xf32>, vector<2x8x8xf32> -> vector<2x8x8xf32>
    "tpu.trace_stop"() : () -> ()
    %216 = vector.shape_cast %215 : vector<2x8x8xf32> to vector<16x8xf32>
    %c16_93 = arith.constant 16 : index
    %c0_94 = arith.constant 0 : index
    %217 = vector.load %arg17[%c16_93, %c0_94] : memref<32x32xf32, #tpu.memory_space<vmem>>, vector<8x32xf32>
    %cst_95 = arith.constant dense<0.000000e+00> : vector<16x32xf32>
    %218 = tpu.matmul %216, %217, %cst_95 {dimension_numbers = #tpu.dot_dimension_numbers<[1], [0], [0], [1], [0, 0, 1, 1], [], []>} : vector<16x8xf32>, vector<8x32xf32>, vector<16x32xf32> -> vector<16x32xf32>
    %219 = arith.addf %199, %218 : vector<16x32xf32>
    %220 = vector.extract_strided_slice %158 {offsets = [0, 0, 24], sizes = [2, 8, 8], strides = [1, 1, 1]} : vector<2x8x96xf32> to vector<2x8x8xf32>
    %221 = vector.extract_strided_slice %158 {offsets = [0, 0, 56], sizes = [2, 8, 8], strides = [1, 1, 1]} : vector<2x8x96xf32> to vector<2x8x8xf32>
    %222 = vector.extract_strided_slice %158 {offsets = [0, 0, 88], sizes = [2, 8, 8], strides = [1, 1, 1]} : vector<2x8x96xf32> to vector<2x8x8xf32>
    "tpu.trace_start"() <{level = 10 : i32, message = "bqd,bkd->bqk"}> : () -> ()
    %cst_96 = arith.constant dense<0.000000e+00> : vector<2x8x8xf32>
    %223 = tpu.matmul %220, %221, %cst_96 {dimension_numbers = #tpu.dot_dimension_numbers<[2], [2], [1], [1], [0, 0, 0, 1, 1, 1], [0], [0]>} : vector<2x8x8xf32>, vector<2x8x8xf32>, vector<2x8x8xf32> -> vector<2x8x8xf32>
    "tpu.trace_stop"() : () -> ()
    %cst_97 = arith.constant 0.353553385 : f32
    %224 = vector.broadcast %cst_97 : f32 to vector<2x8x8xf32>
    %225 = arith.mulf %223, %224 : vector<2x8x8xf32>
    %cst_98 = arith.constant dense<0xFF800000> : vector<2x8xf32>
    %226 = vector.multi_reduction <maximumf>, %225, %cst_98 [2] : vector<2x8x8xf32> to vector<2x8xf32>
    %227 = vector.shape_cast %226 : vector<2x8xf32> to vector<2x8x1xf32>
    %228 = vector.broadcast %227 : vector<2x8x1xf32> to vector<2x8x8xf32>
    %229 = arith.subf %225, %228 : vector<2x8x8xf32>
    %230 = math.exp %229 : vector<2x8x8xf32>
    %cst_99 = arith.constant dense<0.000000e+00> : vector<2x8xf32>
    %231 = vector.multi_reduction <add>, %230, %cst_99 [2] : vector<2x8x8xf32> to vector<2x8xf32>
    %232 = vector.shape_cast %231 : vector<2x8xf32> to vector<2x8x1xf32>
    %233 = vector.broadcast %232 : vector<2x8x1xf32> to vector<2x8x8xf32>
    %234 = arith.divf %230, %233 : vector<2x8x8xf32>
    "tpu.trace_start"() <{level = 10 : i32, message = "bqk,bkd->bqd"}> : () -> ()
    %cst_100 = arith.constant dense<0.000000e+00> : vector<2x8x8xf32>
    %235 = tpu.matmul %234, %222, %cst_100 {dimension_numbers = #tpu.dot_dimension_numbers<[2], [1], [1], [2], [0, 0, 0, 1, 1, 2], [0], [0]>} : vector<2x8x8xf32>, vector<2x8x8xf32>, vector<2x8x8xf32> -> vector<2x8x8xf32>
    "tpu.trace_stop"() : () -> ()
    %236 = vector.shape_cast %235 : vector<2x8x8xf32> to vector<16x8xf32>
    %c24_101 = arith.constant 24 : index
    %c0_102 = arith.constant 0 : index
    %237 = vector.load %arg17[%c24_101, %c0_102] : memref<32x32xf32, #tpu.memory_space<vmem>>, vector<8x32xf32>
    %cst_103 = arith.constant dense<0.000000e+00> : vector<16x32xf32>
    %238 = tpu.matmul %236, %237, %cst_103 {dimension_numbers = #tpu.dot_dimension_numbers<[1], [0], [0], [1], [0, 0, 1, 1], [], []>} : vector<16x8xf32>, vector<8x32xf32>, vector<16x32xf32> -> vector<16x32xf32>
    %239 = arith.addf %219, %238 : vector<16x32xf32>
    %c0_104 = arith.constant 0 : index
    %c0_105 = arith.constant 0 : index
    %240 = vector.load %arg18[%c0_104, %c0_105] : memref<1x32xf32, #tpu.memory_space<vmem>>, vector<1x32xf32>
    %241 = vector.broadcast %240 : vector<1x32xf32> to vector<16x32xf32>
    %242 = arith.addf %239, %241 : vector<16x32xf32>
    %243 = arith.addf %152, %242 : vector<16x32xf32>
    %c0_106 = arith.constant 0 : index
    %c0_107 = arith.constant 0 : index
    %244 = vector.load %arg19[%c0_106, %c0_107] : memref<1x32xf32, #tpu.memory_space<vmem>>, vector<1x32xf32>
    %c0_108 = arith.constant 0 : index
    %c0_109 = arith.constant 0 : index
    %245 = vector.load %arg20[%c0_108, %c0_109] : memref<1x32xf32, #tpu.memory_space<vmem>>, vector<1x32xf32>
    %cst_110 = arith.constant dense<0.000000e+00> : vector<16xf32>
    %246 = vector.multi_reduction <add>, %243, %cst_110 [1] : vector<16x32xf32> to vector<16xf32>
    %247 = vector.shape_cast %246 : vector<16xf32> to vector<16x1xf32>
    %cst_111 = arith.constant 3.200000e+01 : f32
    %248 = vector.broadcast %cst_111 : f32 to vector<16x1xf32>
    %249 = arith.divf %247, %248 : vector<16x1xf32>
    %250 = vector.broadcast %249 : vector<16x1xf32> to vector<16x32xf32>
    %251 = arith.subf %243, %250 : vector<16x32xf32>
    %252 = arith.mulf %251, %251 : vector<16x32xf32>
    %cst_112 = arith.constant dense<0.000000e+00> : vector<16xf32>
    %253 = vector.multi_reduction <add>, %252, %cst_112 [1] : vector<16x32xf32> to vector<16xf32>
    %254 = vector.shape_cast %253 : vector<16xf32> to vector<16x1xf32>
    %cst_113 = arith.constant 3.200000e+01 : f32
    %255 = vector.broadcast %cst_113 : f32 to vector<16x1xf32>
    %256 = arith.divf %254, %255 : vector<16x1xf32>
    %257 = vector.broadcast %249 : vector<16x1xf32> to vector<16x32xf32>
    %258 = arith.subf %243, %257 : vector<16x32xf32>
    %cst_114 = arith.constant 9.99999974E-6 : f32
    %259 = vector.broadcast %cst_114 : f32 to vector<16x1xf32>
    %260 = arith.addf %256, %259 : vector<16x1xf32>
    %261 = math.rsqrt %260 : vector<16x1xf32>
    %262 = vector.broadcast %261 : vector<16x1xf32> to vector<16x32xf32>
    %263 = arith.mulf %258, %262 : vector<16x32xf32>
    %264 = vector.broadcast %244 : vector<1x32xf32> to vector<16x32xf32>
    %265 = arith.mulf %263, %264 : vector<16x32xf32>
    %266 = vector.broadcast %245 : vector<1x32xf32> to vector<16x32xf32>
    %267 = arith.addf %265, %266 : vector<16x32xf32>
    %c0_115 = arith.constant 0 : index
    %c0_116 = arith.constant 0 : index
    %268 = vector.load %arg21[%c0_115, %c0_116] : memref<32x64xf32, #tpu.memory_space<vmem>>, vector<32x64xf32>
    %cst_117 = arith.constant dense<0.000000e+00> : vector<16x64xf32>
    %269 = tpu.matmul %267, %268, %cst_117 {dimension_numbers = #tpu.dot_dimension_numbers<[1], [0], [0], [1], [0, 0, 1, 1], [], []>} : vector<16x32xf32>, vector<32x64xf32>, vector<16x64xf32> -> vector<16x64xf32>
    %c0_118 = arith.constant 0 : index
    %c0_119 = arith.constant 0 : index
    %270 = vector.load %arg22[%c0_118, %c0_119] : memref<1x64xf32, #tpu.memory_space<vmem>>, vector<1x64xf32>
    %271 = vector.broadcast %270 : vector<1x64xf32> to vector<16x64xf32>
    %272 = arith.addf %269, %271 : vector<16x64xf32>
    %cst_120 = arith.constant 0.000000e+00 : f32
    %273 = vector.broadcast %cst_120 : f32 to vector<16x64xf32>
    %274 = arith.maximumf %272, %273 : vector<16x64xf32>
    %c0_121 = arith.constant 0 : index
    %c0_122 = arith.constant 0 : index
    %275 = vector.load %arg23[%c0_121, %c0_122] : memref<64x32xf32, #tpu.memory_space<vmem>>, vector<64x32xf32>
    %cst_123 = arith.constant dense<0.000000e+00> : vector<16x32xf32>
    %276 = tpu.matmul %274, %275, %cst_123 {dimension_numbers = #tpu.dot_dimension_numbers<[1], [0], [0], [1], [0, 0, 1, 1], [], []>} : vector<16x64xf32>, vector<64x32xf32>, vector<16x32xf32> -> vector<16x32xf32>
    %c0_124 = arith.constant 0 : index
    %c0_125 = arith.constant 0 : index
    %277 = vector.load %arg24[%c0_124, %c0_125] : memref<1x32xf32, #tpu.memory_space<vmem>>, vector<1x32xf32>
    %278 = vector.broadcast %277 : vector<1x32xf32> to vector<16x32xf32>
    %279 = arith.addf %276, %278 : vector<16x32xf32>
    %280 = arith.addf %267, %279 : vector<16x32xf32>
    %c0_126 = arith.constant 0 : index
    %c0_127 = arith.constant 0 : index
    %281 = vector.load %arg25[%c0_126, %c0_127] : memref<1x32xf32, #tpu.memory_space<vmem>>, vector<1x32xf32>
    %c0_128 = arith.constant 0 : index
    %c0_129 = arith.constant 0 : index
    %282 = vector.load %arg26[%c0_128, %c0_129] : memref<1x32xf32, #tpu.memory_space<vmem>>, vector<1x32xf32>
    %cst_130 = arith.constant dense<0.000000e+00> : vector<16xf32>
    %283 = vector.multi_reduction <add>, %280, %cst_130 [1] : vector<16x32xf32> to vector<16xf32>
    %284 = vector.shape_cast %283 : vector<16xf32> to vector<16x1xf32>
    %cst_131 = arith.constant 3.200000e+01 : f32
    %285 = vector.broadcast %cst_131 : f32 to vector<16x1xf32>
    %286 = arith.divf %284, %285 : vector<16x1xf32>
    %287 = vector.broadcast %286 : vector<16x1xf32> to vector<16x32xf32>
    %288 = arith.subf %280, %287 : vector<16x32xf32>
    %289 = arith.mulf %288, %288 : vector<16x32xf32>
    %cst_132 = arith.constant dense<0.000000e+00> : vector<16xf32>
    %290 = vector.multi_reduction <add>, %289, %cst_132 [1] : vector<16x32xf32> to vector<16xf32>
    %291 = vector.shape_cast %290 : vector<16xf32> to vector<16x1xf32>
    %cst_133 = arith.constant 3.200000e+01 : f32
    %292 = vector.broadcast %cst_133 : f32 to vector<16x1xf32>
    %293 = arith.divf %291, %292 : vector<16x1xf32>
    %294 = vector.broadcast %286 : vector<16x1xf32> to vector<16x32xf32>
    %295 = arith.subf %280, %294 : vector<16x32xf32>
    %cst_134 = arith.constant 9.99999974E-6 : f32
    %296 = vector.broadcast %cst_134 : f32 to vector<16x1xf32>
    %297 = arith.addf %293, %296 : vector<16x1xf32>
    %298 = math.rsqrt %297 : vector<16x1xf32>
    %299 = vector.broadcast %298 : vector<16x1xf32> to vector<16x32xf32>
    %300 = arith.mulf %295, %299 : vector<16x32xf32>
    %301 = vector.broadcast %281 : vector<1x32xf32> to vector<16x32xf32>
    %302 = arith.mulf %300, %301 : vector<16x32xf32>
    %303 = vector.broadcast %282 : vector<1x32xf32> to vector<16x32xf32>
    %304 = arith.addf %302, %303 : vector<16x32xf32>
    %cst_135 = arith.constant 0.000000e+00 : f32
    %305 = vector.broadcast %cst_135 : f32 to vector<16x16xf32>
    %306 = vector.extract_strided_slice %0 {offsets = [14, 0], sizes = [2, 32], strides = [1, 1]} : vector<16x32xf32> to vector<2x32xf32>
    %307 = vector.extract_strided_slice %0 {offsets = [0, 0], sizes = [14, 32], strides = [1, 1]} : vector<16x32xf32> to vector<14x32xf32>
    %308 = tpu.concatenate %306, %307 in 0 : vector<2x32xf32>, vector<14x32xf32> -> vector<16x32xf32>
    %309 = tpu.iota {dimensions = array<i32: 0>} : vector<16x1xi32>
    %c8_i32 = arith.constant 8 : i32
    %c0_i32 = arith.constant 0 : i32
    %310 = arith.cmpi eq, %c8_i32, %c0_i32 : i32
    %c1_i32 = arith.constant 1 : i32
    %311 = arith.select %310, %c1_i32, %c8_i32 : i32
    %312 = vector.broadcast %311 : i32 to vector<16x1xi32>
    %313 = arith.remsi %309, %312 : vector<16x1xi32>
    %c0_i32_136 = arith.constant 0 : i32
    %314 = vector.broadcast %c0_i32_136 : i32 to vector<16x1xi32>
    %315 = arith.cmpi ne, %313, %314 : vector<16x1xi32>
    %c0_i32_137 = arith.constant 0 : i32
    %316 = vector.broadcast %c0_i32_137 : i32 to vector<16x1xi32>
    %317 = arith.cmpi slt, %313, %316 : vector<16x1xi32>
    %c0_i32_138 = arith.constant 0 : i32
    %318 = arith.cmpi slt, %311, %c0_i32_138 : i32
    %319 = vector.broadcast %318 : i1 to vector<16x1xi1>
    %320 = vector.broadcast %319 : vector<16x1xi1> to vector<16x1xi1>
    %321 = arith.xori %317, %320 : vector<16x1xi1>
    %322 = arith.andi %321, %315 : vector<16x1xi1>
    %323 = vector.broadcast %311 : i32 to vector<16x1xi32>
    %324 = arith.addi %313, %323 : vector<16x1xi32>
    %325 = arith.select %322, %324, %313 : vector<16x1xi1>, vector<16x1xi32>
    %c2_i32 = arith.constant 2 : i32
    %326 = vector.broadcast %c2_i32 : i32 to vector<16x1xi32>
    %327 = arith.cmpi sge, %325, %326 : vector<16x1xi32>
    %cst_139 = arith.constant 0.000000e+00 : f32
    %328 = vector.shape_cast %327 : vector<16x1xi1> to vector<16x1xi1>
    %329 = vector.broadcast %328 : vector<16x1xi1> to vector<16x32xi1>
    %330 = vector.broadcast %cst_139 : f32 to vector<16x32xf32>
    %331 = arith.select %329, %308, %330 : vector<16x32xi1>, vector<16x32xf32>
    %c0_140 = arith.constant 0 : index
    %c0_141 = arith.constant 0 : index
    %c0_142 = arith.constant 0 : index
    %332 = vector.load %arg27[%c0_140, %c0_141, %c0_142] : memref<3x32x16xf32, #tpu.memory_space<vmem>>, vector<1x32x16xf32>
    %333 = vector.shape_cast %332 : vector<1x32x16xf32> to vector<32x16xf32>
    %cst_143 = arith.constant dense<0.000000e+00> : vector<16x16xf32>
    %334 = tpu.matmul %331, %333, %cst_143 {dimension_numbers = #tpu.dot_dimension_numbers<[1], [0], [0], [1], [0, 0, 1, 1], [], []>} : vector<16x32xf32>, vector<32x16xf32>, vector<16x16xf32> -> vector<16x16xf32>
    %335 = arith.addf %305, %334 : vector<16x16xf32>
    %336 = vector.extract_strided_slice %0 {offsets = [15, 0], sizes = [1, 32], strides = [1, 1]} : vector<16x32xf32> to vector<1x32xf32>
    %337 = vector.extract_strided_slice %0 {offsets = [0, 0], sizes = [15, 32], strides = [1, 1]} : vector<16x32xf32> to vector<15x32xf32>
    %338 = tpu.concatenate %336, %337 in 0 : vector<1x32xf32>, vector<15x32xf32> -> vector<16x32xf32>
    %339 = tpu.iota {dimensions = array<i32: 0>} : vector<16x1xi32>
    %c8_i32_144 = arith.constant 8 : i32
    %c0_i32_145 = arith.constant 0 : i32
    %340 = arith.cmpi eq, %c8_i32_144, %c0_i32_145 : i32
    %c1_i32_146 = arith.constant 1 : i32
    %341 = arith.select %340, %c1_i32_146, %c8_i32_144 : i32
    %342 = vector.broadcast %341 : i32 to vector<16x1xi32>
    %343 = arith.remsi %339, %342 : vector<16x1xi32>
    %c0_i32_147 = arith.constant 0 : i32
    %344 = vector.broadcast %c0_i32_147 : i32 to vector<16x1xi32>
    %345 = arith.cmpi ne, %343, %344 : vector<16x1xi32>
    %c0_i32_148 = arith.constant 0 : i32
    %346 = vector.broadcast %c0_i32_148 : i32 to vector<16x1xi32>
    %347 = arith.cmpi slt, %343, %346 : vector<16x1xi32>
    %c0_i32_149 = arith.constant 0 : i32
    %348 = arith.cmpi slt, %341, %c0_i32_149 : i32
    %349 = vector.broadcast %348 : i1 to vector<16x1xi1>
    %350 = vector.broadcast %349 : vector<16x1xi1> to vector<16x1xi1>
    %351 = arith.xori %347, %350 : vector<16x1xi1>
    %352 = arith.andi %351, %345 : vector<16x1xi1>
    %353 = vector.broadcast %341 : i32 to vector<16x1xi32>
    %354 = arith.addi %343, %353 : vector<16x1xi32>
    %355 = arith.select %352, %354, %343 : vector<16x1xi1>, vector<16x1xi32>
    %c1_i32_150 = arith.constant 1 : i32
    %356 = vector.broadcast %c1_i32_150 : i32 to vector<16x1xi32>
    %357 = arith.cmpi sge, %355, %356 : vector<16x1xi32>
    %cst_151 = arith.constant 0.000000e+00 : f32
    %358 = vector.shape_cast %357 : vector<16x1xi1> to vector<16x1xi1>
    %359 = vector.broadcast %358 : vector<16x1xi1> to vector<16x32xi1>
    %360 = vector.broadcast %cst_151 : f32 to vector<16x32xf32>
    %361 = arith.select %359, %338, %360 : vector<16x32xi1>, vector<16x32xf32>
    %c1 = arith.constant 1 : index
    %c0_152 = arith.constant 0 : index
    %c0_153 = arith.constant 0 : index
    %362 = vector.load %arg27[%c1, %c0_152, %c0_153] : memref<3x32x16xf32, #tpu.memory_space<vmem>>, vector<1x32x16xf32>
    %363 = vector.shape_cast %362 : vector<1x32x16xf32> to vector<32x16xf32>
    %cst_154 = arith.constant dense<0.000000e+00> : vector<16x16xf32>
    %364 = tpu.matmul %361, %363, %cst_154 {dimension_numbers = #tpu.dot_dimension_numbers<[1], [0], [0], [1], [0, 0, 1, 1], [], []>} : vector<16x32xf32>, vector<32x16xf32>, vector<16x16xf32> -> vector<16x16xf32>
    %365 = arith.addf %335, %364 : vector<16x16xf32>
    %c2 = arith.constant 2 : index
    %c0_155 = arith.constant 0 : index
    %c0_156 = arith.constant 0 : index
    %366 = vector.load %arg27[%c2, %c0_155, %c0_156] : memref<3x32x16xf32, #tpu.memory_space<vmem>>, vector<1x32x16xf32>
    %367 = vector.shape_cast %366 : vector<1x32x16xf32> to vector<32x16xf32>
    %cst_157 = arith.constant dense<0.000000e+00> : vector<16x16xf32>
    %368 = tpu.matmul %0, %367, %cst_157 {dimension_numbers = #tpu.dot_dimension_numbers<[1], [0], [0], [1], [0, 0, 1, 1], [], []>} : vector<16x32xf32>, vector<32x16xf32>, vector<16x16xf32> -> vector<16x16xf32>
    %369 = arith.addf %365, %368 : vector<16x16xf32>
    %c0_158 = arith.constant 0 : index
    %c0_159 = arith.constant 0 : index
    %370 = vector.load %arg28[%c0_158, %c0_159] : memref<1x16xf32, #tpu.memory_space<vmem>>, vector<1x16xf32>
    %371 = vector.broadcast %370 : vector<1x16xf32> to vector<16x16xf32>
    %372 = arith.addf %369, %371 : vector<16x16xf32>
    %cst_160 = arith.constant 0.000000e+00 : f32
    %373 = vector.broadcast %cst_160 : f32 to vector<16x16xf32>
    %374 = arith.maximumf %372, %373 : vector<16x16xf32>
    %cst_161 = arith.constant 0.000000e+00 : f32
    %375 = vector.broadcast %cst_161 : f32 to vector<16x16xf32>
    %376 = vector.extract_strided_slice %374 {offsets = [14, 0], sizes = [2, 16], strides = [1, 1]} : vector<16x16xf32> to vector<2x16xf32>
    %377 = vector.extract_strided_slice %374 {offsets = [0, 0], sizes = [14, 16], strides = [1, 1]} : vector<16x16xf32> to vector<14x16xf32>
    %378 = tpu.concatenate %376, %377 in 0 : vector<2x16xf32>, vector<14x16xf32> -> vector<16x16xf32>
    %cst_162 = arith.constant 0.000000e+00 : f32
    %379 = vector.shape_cast %327 : vector<16x1xi1> to vector<16x1xi1>
    %380 = vector.broadcast %379 : vector<16x1xi1> to vector<16x16xi1>
    %381 = vector.broadcast %cst_162 : f32 to vector<16x16xf32>
    %382 = arith.select %380, %378, %381 : vector<16x16xi1>, vector<16x16xf32>
    %c0_163 = arith.constant 0 : index
    %c0_164 = arith.constant 0 : index
    %c0_165 = arith.constant 0 : index
    %383 = vector.load %arg29[%c0_163, %c0_164, %c0_165] : memref<3x16x16xf32, #tpu.memory_space<vmem>>, vector<1x16x16xf32>
    %384 = vector.shape_cast %383 : vector<1x16x16xf32> to vector<16x16xf32>
    %cst_166 = arith.constant dense<0.000000e+00> : vector<16x16xf32>
    %385 = tpu.matmul %382, %384, %cst_166 {dimension_numbers = #tpu.dot_dimension_numbers<[1], [0], [0], [1], [0, 0, 1, 1], [], []>} : vector<16x16xf32>, vector<16x16xf32>, vector<16x16xf32> -> vector<16x16xf32>
    %386 = arith.addf %375, %385 : vector<16x16xf32>
    %387 = vector.extract_strided_slice %374 {offsets = [15, 0], sizes = [1, 16], strides = [1, 1]} : vector<16x16xf32> to vector<1x16xf32>
    %388 = vector.extract_strided_slice %374 {offsets = [0, 0], sizes = [15, 16], strides = [1, 1]} : vector<16x16xf32> to vector<15x16xf32>
    %389 = tpu.concatenate %387, %388 in 0 : vector<1x16xf32>, vector<15x16xf32> -> vector<16x16xf32>
    %cst_167 = arith.constant 0.000000e+00 : f32
    %390 = vector.shape_cast %357 : vector<16x1xi1> to vector<16x1xi1>
    %391 = vector.broadcast %390 : vector<16x1xi1> to vector<16x16xi1>
    %392 = vector.broadcast %cst_167 : f32 to vector<16x16xf32>
    %393 = arith.select %391, %389, %392 : vector<16x16xi1>, vector<16x16xf32>
    %c1_168 = arith.constant 1 : index
    %c0_169 = arith.constant 0 : index
    %c0_170 = arith.constant 0 : index
    %394 = vector.load %arg29[%c1_168, %c0_169, %c0_170] : memref<3x16x16xf32, #tpu.memory_space<vmem>>, vector<1x16x16xf32>
    %395 = vector.shape_cast %394 : vector<1x16x16xf32> to vector<16x16xf32>
    %cst_171 = arith.constant dense<0.000000e+00> : vector<16x16xf32>
    %396 = tpu.matmul %393, %395, %cst_171 {dimension_numbers = #tpu.dot_dimension_numbers<[1], [0], [0], [1], [0, 0, 1, 1], [], []>} : vector<16x16xf32>, vector<16x16xf32>, vector<16x16xf32> -> vector<16x16xf32>
    %397 = arith.addf %386, %396 : vector<16x16xf32>
    %c2_172 = arith.constant 2 : index
    %c0_173 = arith.constant 0 : index
    %c0_174 = arith.constant 0 : index
    %398 = vector.load %arg29[%c2_172, %c0_173, %c0_174] : memref<3x16x16xf32, #tpu.memory_space<vmem>>, vector<1x16x16xf32>
    %399 = vector.shape_cast %398 : vector<1x16x16xf32> to vector<16x16xf32>
    %cst_175 = arith.constant dense<0.000000e+00> : vector<16x16xf32>
    %400 = tpu.matmul %374, %399, %cst_175 {dimension_numbers = #tpu.dot_dimension_numbers<[1], [0], [0], [1], [0, 0, 1, 1], [], []>} : vector<16x16xf32>, vector<16x16xf32>, vector<16x16xf32> -> vector<16x16xf32>
    %401 = arith.addf %397, %400 : vector<16x16xf32>
    %c0_176 = arith.constant 0 : index
    %c0_177 = arith.constant 0 : index
    %402 = vector.load %arg30[%c0_176, %c0_177] : memref<1x16xf32, #tpu.memory_space<vmem>>, vector<1x16xf32>
    %403 = vector.broadcast %402 : vector<1x16xf32> to vector<16x16xf32>
    %404 = arith.addf %401, %403 : vector<16x16xf32>
    %cst_178 = arith.constant 0.000000e+00 : f32
    %405 = vector.broadcast %cst_178 : f32 to vector<16x16xf32>
    %406 = arith.maximumf %404, %405 : vector<16x16xf32>
    %c0_179 = arith.constant 0 : index
    %c0_180 = arith.constant 0 : index
    %407 = vector.load %arg31[%c0_179, %c0_180] : memref<32x16xf32, #tpu.memory_space<vmem>>, vector<32x16xf32>
    %cst_181 = arith.constant dense<0.000000e+00> : vector<16x16xf32>
    %408 = tpu.matmul %0, %407, %cst_181 {dimension_numbers = #tpu.dot_dimension_numbers<[1], [0], [0], [1], [0, 0, 1, 1], [], []>} : vector<16x32xf32>, vector<32x16xf32>, vector<16x16xf32> -> vector<16x16xf32>
    %c0_182 = arith.constant 0 : index
    %c0_183 = arith.constant 0 : index
    %409 = vector.load %arg32[%c0_182, %c0_183] : memref<1x16xf32, #tpu.memory_space<vmem>>, vector<1x16xf32>
    %410 = vector.broadcast %409 : vector<1x16xf32> to vector<16x16xf32>
    %411 = arith.addf %408, %410 : vector<16x16xf32>
    %412 = arith.addf %406, %411 : vector<16x16xf32>
    %cst_184 = arith.constant 0.000000e+00 : f32
    %413 = vector.broadcast %cst_184 : f32 to vector<16x16xf32>
    %414 = arith.maximumf %412, %413 : vector<16x16xf32>
    %cst_185 = arith.constant 0.000000e+00 : f32
    %415 = vector.broadcast %cst_185 : f32 to vector<16x16xf32>
    %416 = vector.extract_strided_slice %414 {offsets = [12, 0], sizes = [4, 16], strides = [1, 1]} : vector<16x16xf32> to vector<4x16xf32>
    %417 = vector.extract_strided_slice %414 {offsets = [0, 0], sizes = [12, 16], strides = [1, 1]} : vector<16x16xf32> to vector<12x16xf32>
    %418 = tpu.concatenate %416, %417 in 0 : vector<4x16xf32>, vector<12x16xf32> -> vector<16x16xf32>
    %419 = tpu.iota {dimensions = array<i32: 0>} : vector<16x1xi32>
    %c8_i32_186 = arith.constant 8 : i32
    %c0_i32_187 = arith.constant 0 : i32
    %420 = arith.cmpi eq, %c8_i32_186, %c0_i32_187 : i32
    %c1_i32_188 = arith.constant 1 : i32
    %421 = arith.select %420, %c1_i32_188, %c8_i32_186 : i32
    %422 = vector.broadcast %421 : i32 to vector<16x1xi32>
    %423 = arith.remsi %419, %422 : vector<16x1xi32>
    %c0_i32_189 = arith.constant 0 : i32
    %424 = vector.broadcast %c0_i32_189 : i32 to vector<16x1xi32>
    %425 = arith.cmpi ne, %423, %424 : vector<16x1xi32>
    %c0_i32_190 = arith.constant 0 : i32
    %426 = vector.broadcast %c0_i32_190 : i32 to vector<16x1xi32>
    %427 = arith.cmpi slt, %423, %426 : vector<16x1xi32>
    %c0_i32_191 = arith.constant 0 : i32
    %428 = arith.cmpi slt, %421, %c0_i32_191 : i32
    %429 = vector.broadcast %428 : i1 to vector<16x1xi1>
    %430 = vector.broadcast %429 : vector<16x1xi1> to vector<16x1xi1>
    %431 = arith.xori %427, %430 : vector<16x1xi1>
    %432 = arith.andi %431, %425 : vector<16x1xi1>
    %433 = vector.broadcast %421 : i32 to vector<16x1xi32>
    %434 = arith.addi %423, %433 : vector<16x1xi32>
    %435 = arith.select %432, %434, %423 : vector<16x1xi1>, vector<16x1xi32>
    %c4_i32 = arith.constant 4 : i32
    %436 = vector.broadcast %c4_i32 : i32 to vector<16x1xi32>
    %437 = arith.cmpi sge, %435, %436 : vector<16x1xi32>
    %cst_192 = arith.constant 0.000000e+00 : f32
    %438 = vector.shape_cast %437 : vector<16x1xi1> to vector<16x1xi1>
    %439 = vector.broadcast %438 : vector<16x1xi1> to vector<16x16xi1>
    %440 = vector.broadcast %cst_192 : f32 to vector<16x16xf32>
    %441 = arith.select %439, %418, %440 : vector<16x16xi1>, vector<16x16xf32>
    %c0_193 = arith.constant 0 : index
    %c0_194 = arith.constant 0 : index
    %c0_195 = arith.constant 0 : index
    %442 = vector.load %arg33[%c0_193, %c0_194, %c0_195] : memref<3x16x16xf32, #tpu.memory_space<vmem>>, vector<1x16x16xf32>
    %443 = vector.shape_cast %442 : vector<1x16x16xf32> to vector<16x16xf32>
    %cst_196 = arith.constant dense<0.000000e+00> : vector<16x16xf32>
    %444 = tpu.matmul %441, %443, %cst_196 {dimension_numbers = #tpu.dot_dimension_numbers<[1], [0], [0], [1], [0, 0, 1, 1], [], []>} : vector<16x16xf32>, vector<16x16xf32>, vector<16x16xf32> -> vector<16x16xf32>
    %445 = arith.addf %415, %444 : vector<16x16xf32>
    %446 = vector.extract_strided_slice %414 {offsets = [14, 0], sizes = [2, 16], strides = [1, 1]} : vector<16x16xf32> to vector<2x16xf32>
    %447 = vector.extract_strided_slice %414 {offsets = [0, 0], sizes = [14, 16], strides = [1, 1]} : vector<16x16xf32> to vector<14x16xf32>
    %448 = tpu.concatenate %446, %447 in 0 : vector<2x16xf32>, vector<14x16xf32> -> vector<16x16xf32>
    %cst_197 = arith.constant 0.000000e+00 : f32
    %449 = vector.shape_cast %327 : vector<16x1xi1> to vector<16x1xi1>
    %450 = vector.broadcast %449 : vector<16x1xi1> to vector<16x16xi1>
    %451 = vector.broadcast %cst_197 : f32 to vector<16x16xf32>
    %452 = arith.select %450, %448, %451 : vector<16x16xi1>, vector<16x16xf32>
    %c1_198 = arith.constant 1 : index
    %c0_199 = arith.constant 0 : index
    %c0_200 = arith.constant 0 : index
    %453 = vector.load %arg33[%c1_198, %c0_199, %c0_200] : memref<3x16x16xf32, #tpu.memory_space<vmem>>, vector<1x16x16xf32>
    %454 = vector.shape_cast %453 : vector<1x16x16xf32> to vector<16x16xf32>
    %cst_201 = arith.constant dense<0.000000e+00> : vector<16x16xf32>
    %455 = tpu.matmul %452, %454, %cst_201 {dimension_numbers = #tpu.dot_dimension_numbers<[1], [0], [0], [1], [0, 0, 1, 1], [], []>} : vector<16x16xf32>, vector<16x16xf32>, vector<16x16xf32> -> vector<16x16xf32>
    %456 = arith.addf %445, %455 : vector<16x16xf32>
    %c2_202 = arith.constant 2 : index
    %c0_203 = arith.constant 0 : index
    %c0_204 = arith.constant 0 : index
    %457 = vector.load %arg33[%c2_202, %c0_203, %c0_204] : memref<3x16x16xf32, #tpu.memory_space<vmem>>, vector<1x16x16xf32>
    %458 = vector.shape_cast %457 : vector<1x16x16xf32> to vector<16x16xf32>
    %cst_205 = arith.constant dense<0.000000e+00> : vector<16x16xf32>
    %459 = tpu.matmul %414, %458, %cst_205 {dimension_numbers = #tpu.dot_dimension_numbers<[1], [0], [0], [1], [0, 0, 1, 1], [], []>} : vector<16x16xf32>, vector<16x16xf32>, vector<16x16xf32> -> vector<16x16xf32>
    %460 = arith.addf %456, %459 : vector<16x16xf32>
    %c0_206 = arith.constant 0 : index
    %c0_207 = arith.constant 0 : index
    %461 = vector.load %arg34[%c0_206, %c0_207] : memref<1x16xf32, #tpu.memory_space<vmem>>, vector<1x16xf32>
    %462 = vector.broadcast %461 : vector<1x16xf32> to vector<16x16xf32>
    %463 = arith.addf %460, %462 : vector<16x16xf32>
    %cst_208 = arith.constant 0.000000e+00 : f32
    %464 = vector.broadcast %cst_208 : f32 to vector<16x16xf32>
    %465 = arith.maximumf %463, %464 : vector<16x16xf32>
    %cst_209 = arith.constant 0.000000e+00 : f32
    %466 = vector.broadcast %cst_209 : f32 to vector<16x16xf32>
    %467 = vector.extract_strided_slice %465 {offsets = [12, 0], sizes = [4, 16], strides = [1, 1]} : vector<16x16xf32> to vector<4x16xf32>
    %468 = vector.extract_strided_slice %465 {offsets = [0, 0], sizes = [12, 16], strides = [1, 1]} : vector<16x16xf32> to vector<12x16xf32>
    %469 = tpu.concatenate %467, %468 in 0 : vector<4x16xf32>, vector<12x16xf32> -> vector<16x16xf32>
    %cst_210 = arith.constant 0.000000e+00 : f32
    %470 = vector.shape_cast %437 : vector<16x1xi1> to vector<16x1xi1>
    %471 = vector.broadcast %470 : vector<16x1xi1> to vector<16x16xi1>
    %472 = vector.broadcast %cst_210 : f32 to vector<16x16xf32>
    %473 = arith.select %471, %469, %472 : vector<16x16xi1>, vector<16x16xf32>
    %c0_211 = arith.constant 0 : index
    %c0_212 = arith.constant 0 : index
    %c0_213 = arith.constant 0 : index
    %474 = vector.load %arg35[%c0_211, %c0_212, %c0_213] : memref<3x16x16xf32, #tpu.memory_space<vmem>>, vector<1x16x16xf32>
    %475 = vector.shape_cast %474 : vector<1x16x16xf32> to vector<16x16xf32>
    %cst_214 = arith.constant dense<0.000000e+00> : vector<16x16xf32>
    %476 = tpu.matmul %473, %475, %cst_214 {dimension_numbers = #tpu.dot_dimension_numbers<[1], [0], [0], [1], [0, 0, 1, 1], [], []>} : vector<16x16xf32>, vector<16x16xf32>, vector<16x16xf32> -> vector<16x16xf32>
    %477 = arith.addf %466, %476 : vector<16x16xf32>
    %478 = vector.extract_strided_slice %465 {offsets = [14, 0], sizes = [2, 16], strides = [1, 1]} : vector<16x16xf32> to vector<2x16xf32>
    %479 = vector.extract_strided_slice %465 {offsets = [0, 0], sizes = [14, 16], strides = [1, 1]} : vector<16x16xf32> to vector<14x16xf32>
    %480 = tpu.concatenate %478, %479 in 0 : vector<2x16xf32>, vector<14x16xf32> -> vector<16x16xf32>
    %cst_215 = arith.constant 0.000000e+00 : f32
    %481 = vector.shape_cast %327 : vector<16x1xi1> to vector<16x1xi1>
    %482 = vector.broadcast %481 : vector<16x1xi1> to vector<16x16xi1>
    %483 = vector.broadcast %cst_215 : f32 to vector<16x16xf32>
    %484 = arith.select %482, %480, %483 : vector<16x16xi1>, vector<16x16xf32>
    %c1_216 = arith.constant 1 : index
    %c0_217 = arith.constant 0 : index
    %c0_218 = arith.constant 0 : index
    %485 = vector.load %arg35[%c1_216, %c0_217, %c0_218] : memref<3x16x16xf32, #tpu.memory_space<vmem>>, vector<1x16x16xf32>
    %486 = vector.shape_cast %485 : vector<1x16x16xf32> to vector<16x16xf32>
    %cst_219 = arith.constant dense<0.000000e+00> : vector<16x16xf32>
    %487 = tpu.matmul %484, %486, %cst_219 {dimension_numbers = #tpu.dot_dimension_numbers<[1], [0], [0], [1], [0, 0, 1, 1], [], []>} : vector<16x16xf32>, vector<16x16xf32>, vector<16x16xf32> -> vector<16x16xf32>
    %488 = arith.addf %477, %487 : vector<16x16xf32>
    %c2_220 = arith.constant 2 : index
    %c0_221 = arith.constant 0 : index
    %c0_222 = arith.constant 0 : index
    %489 = vector.load %arg35[%c2_220, %c0_221, %c0_222] : memref<3x16x16xf32, #tpu.memory_space<vmem>>, vector<1x16x16xf32>
    %490 = vector.shape_cast %489 : vector<1x16x16xf32> to vector<16x16xf32>
    %cst_223 = arith.constant dense<0.000000e+00> : vector<16x16xf32>
    %491 = tpu.matmul %465, %490, %cst_223 {dimension_numbers = #tpu.dot_dimension_numbers<[1], [0], [0], [1], [0, 0, 1, 1], [], []>} : vector<16x16xf32>, vector<16x16xf32>, vector<16x16xf32> -> vector<16x16xf32>
    %492 = arith.addf %488, %491 : vector<16x16xf32>
    %c0_224 = arith.constant 0 : index
    %c0_225 = arith.constant 0 : index
    %493 = vector.load %arg36[%c0_224, %c0_225] : memref<1x16xf32, #tpu.memory_space<vmem>>, vector<1x16xf32>
    %494 = vector.broadcast %493 : vector<1x16xf32> to vector<16x16xf32>
    %495 = arith.addf %492, %494 : vector<16x16xf32>
    %cst_226 = arith.constant 0.000000e+00 : f32
    %496 = vector.broadcast %cst_226 : f32 to vector<16x16xf32>
    %497 = arith.maximumf %495, %496 : vector<16x16xf32>
    %498 = arith.addf %497, %414 : vector<16x16xf32>
    %cst_227 = arith.constant 0.000000e+00 : f32
    %499 = vector.broadcast %cst_227 : f32 to vector<16x16xf32>
    %500 = arith.maximumf %498, %499 : vector<16x16xf32>
    %c0_228 = arith.constant 0 : index
    %c0_229 = arith.constant 0 : index
    %501 = vector.load %arg37[%c0_228, %c0_229] : memref<32x16xf32, #tpu.memory_space<vmem>>, vector<32x16xf32>
    %cst_230 = arith.constant dense<0.000000e+00> : vector<16x16xf32>
    %502 = tpu.matmul %304, %501, %cst_230 {dimension_numbers = #tpu.dot_dimension_numbers<[1], [0], [0], [1], [0, 0, 1, 1], [], []>} : vector<16x32xf32>, vector<32x16xf32>, vector<16x16xf32> -> vector<16x16xf32>
    %c0_231 = arith.constant 0 : index
    %c0_232 = arith.constant 0 : index
    %503 = vector.load %arg38[%c0_231, %c0_232] : memref<1x16xf32, #tpu.memory_space<vmem>>, vector<1x16xf32>
    %504 = vector.broadcast %503 : vector<1x16xf32> to vector<16x16xf32>
    %505 = arith.addf %502, %504 : vector<16x16xf32>
    %c0_233 = arith.constant 0 : index
    %c0_234 = arith.constant 0 : index
    %506 = vector.load %arg39[%c0_233, %c0_234] : memref<32x16xf32, #tpu.memory_space<vmem>>, vector<16x16xf32>
    %cst_235 = arith.constant dense<0.000000e+00> : vector<16x16xf32>
    %507 = tpu.matmul %500, %506, %cst_235 {dimension_numbers = #tpu.dot_dimension_numbers<[1], [0], [0], [1], [0, 0, 1, 1], [], []>} : vector<16x16xf32>, vector<16x16xf32>, vector<16x16xf32> -> vector<16x16xf32>
    %c16_236 = arith.constant 16 : index
    %c0_237 = arith.constant 0 : index
    %508 = vector.load %arg39[%c16_236, %c0_237] : memref<32x16xf32, #tpu.memory_space<vmem>>, vector<16x16xf32>
    %cst_238 = arith.constant dense<0.000000e+00> : vector<16x16xf32>
    %509 = tpu.matmul %505, %508, %cst_238 {dimension_numbers = #tpu.dot_dimension_numbers<[1], [0], [0], [1], [0, 0, 1, 1], [], []>} : vector<16x16xf32>, vector<16x16xf32>, vector<16x16xf32> -> vector<16x16xf32>
    %510 = arith.addf %507, %509 : vector<16x16xf32>
    %c0_239 = arith.constant 0 : index
    %c0_240 = arith.constant 0 : index
    %511 = vector.load %arg40[%c0_239, %c0_240] : memref<1x16xf32, #tpu.memory_space<vmem>>, vector<1x16xf32>
    %512 = vector.broadcast %511 : vector<1x16xf32> to vector<16x16xf32>
    %513 = arith.addf %510, %512 : vector<16x16xf32>
    %c0_241 = arith.constant 0 : index
    %c0_242 = arith.constant 0 : index
    %514 = vector.load %arg2[%c0_241, %c0_242] : memref<16x32xf32, #tpu.memory_space<vmem>>, vector<16x32xf32>
    %c0_243 = arith.constant 0 : index
    %c0_244 = arith.constant 0 : index
    %515 = vector.load %arg41[%c0_243, %c0_244] : memref<32x96xf32, #tpu.memory_space<vmem>>, vector<32x96xf32>
    %cst_245 = arith.constant dense<0.000000e+00> : vector<16x96xf32>
    %516 = tpu.matmul %514, %515, %cst_245 {dimension_numbers = #tpu.dot_dimension_numbers<[1], [0], [0], [1], [0, 0, 1, 1], [], []>} : vector<16x32xf32>, vector<32x96xf32>, vector<16x96xf32> -> vector<16x96xf32>
    %c0_246 = arith.constant 0 : index
    %c0_247 = arith.constant 0 : index
    %517 = vector.load %arg42[%c0_246, %c0_247] : memref<1x96xf32, #tpu.memory_space<vmem>>, vector<1x96xf32>
    %518 = vector.broadcast %517 : vector<1x96xf32> to vector<16x96xf32>
    %519 = arith.addf %516, %518 : vector<16x96xf32>
    %520 = vector.shape_cast %519 : vector<16x96xf32> to vector<2x8x96xf32>
    %cst_248 = arith.constant 0.000000e+00 : f32
    %521 = vector.broadcast %cst_248 : f32 to vector<16x32xf32>
    %522 = vector.extract_strided_slice %520 {offsets = [0, 0, 0], sizes = [2, 8, 8], strides = [1, 1, 1]} : vector<2x8x96xf32> to vector<2x8x8xf32>
    %523 = vector.extract_strided_slice %520 {offsets = [0, 0, 32], sizes = [2, 8, 8], strides = [1, 1, 1]} : vector<2x8x96xf32> to vector<2x8x8xf32>
    %524 = vector.extract_strided_slice %520 {offsets = [0, 0, 64], sizes = [2, 8, 8], strides = [1, 1, 1]} : vector<2x8x96xf32> to vector<2x8x8xf32>
    "tpu.trace_start"() <{level = 10 : i32, message = "bqd,bkd->bqk"}> : () -> ()
    %cst_249 = arith.constant dense<0.000000e+00> : vector<2x8x8xf32>
    %525 = tpu.matmul %522, %523, %cst_249 {dimension_numbers = #tpu.dot_dimension_numbers<[2], [2], [1], [1], [0, 0, 0, 1, 1, 1], [0], [0]>} : vector<2x8x8xf32>, vector<2x8x8xf32>, vector<2x8x8xf32> -> vector<2x8x8xf32>
    "tpu.trace_stop"() : () -> ()
    %cst_250 = arith.constant 0.353553385 : f32
    %526 = vector.broadcast %cst_250 : f32 to vector<2x8x8xf32>
    %527 = arith.mulf %525, %526 : vector<2x8x8xf32>
    %cst_251 = arith.constant dense<0xFF800000> : vector<2x8xf32>
    %528 = vector.multi_reduction <maximumf>, %527, %cst_251 [2] : vector<2x8x8xf32> to vector<2x8xf32>
    %529 = vector.shape_cast %528 : vector<2x8xf32> to vector<2x8x1xf32>
    %530 = vector.broadcast %529 : vector<2x8x1xf32> to vector<2x8x8xf32>
    %531 = arith.subf %527, %530 : vector<2x8x8xf32>
    %532 = math.exp %531 : vector<2x8x8xf32>
    %cst_252 = arith.constant dense<0.000000e+00> : vector<2x8xf32>
    %533 = vector.multi_reduction <add>, %532, %cst_252 [2] : vector<2x8x8xf32> to vector<2x8xf32>
    %534 = vector.shape_cast %533 : vector<2x8xf32> to vector<2x8x1xf32>
    %535 = vector.broadcast %534 : vector<2x8x1xf32> to vector<2x8x8xf32>
    %536 = arith.divf %532, %535 : vector<2x8x8xf32>
    "tpu.trace_start"() <{level = 10 : i32, message = "bqk,bkd->bqd"}> : () -> ()
    %cst_253 = arith.constant dense<0.000000e+00> : vector<2x8x8xf32>
    %537 = tpu.matmul %536, %524, %cst_253 {dimension_numbers = #tpu.dot_dimension_numbers<[2], [1], [1], [2], [0, 0, 0, 1, 1, 2], [0], [0]>} : vector<2x8x8xf32>, vector<2x8x8xf32>, vector<2x8x8xf32> -> vector<2x8x8xf32>
    "tpu.trace_stop"() : () -> ()
    %538 = vector.shape_cast %537 : vector<2x8x8xf32> to vector<16x8xf32>
    %c0_254 = arith.constant 0 : index
    %c0_255 = arith.constant 0 : index
    %539 = vector.load %arg43[%c0_254, %c0_255] : memref<32x32xf32, #tpu.memory_space<vmem>>, vector<8x32xf32>
    %cst_256 = arith.constant dense<0.000000e+00> : vector<16x32xf32>
    %540 = tpu.matmul %538, %539, %cst_256 {dimension_numbers = #tpu.dot_dimension_numbers<[1], [0], [0], [1], [0, 0, 1, 1], [], []>} : vector<16x8xf32>, vector<8x32xf32>, vector<16x32xf32> -> vector<16x32xf32>
    %541 = arith.addf %521, %540 : vector<16x32xf32>
    %542 = vector.extract_strided_slice %520 {offsets = [0, 0, 8], sizes = [2, 8, 8], strides = [1, 1, 1]} : vector<2x8x96xf32> to vector<2x8x8xf32>
    %543 = vector.extract_strided_slice %520 {offsets = [0, 0, 40], sizes = [2, 8, 8], strides = [1, 1, 1]} : vector<2x8x96xf32> to vector<2x8x8xf32>
    %544 = vector.extract_strided_slice %520 {offsets = [0, 0, 72], sizes = [2, 8, 8], strides = [1, 1, 1]} : vector<2x8x96xf32> to vector<2x8x8xf32>
    "tpu.trace_start"() <{level = 10 : i32, message = "bqd,bkd->bqk"}> : () -> ()
    %cst_257 = arith.constant dense<0.000000e+00> : vector<2x8x8xf32>
    %545 = tpu.matmul %542, %543, %cst_257 {dimension_numbers = #tpu.dot_dimension_numbers<[2], [2], [1], [1], [0, 0, 0, 1, 1, 1], [0], [0]>} : vector<2x8x8xf32>, vector<2x8x8xf32>, vector<2x8x8xf32> -> vector<2x8x8xf32>
    "tpu.trace_stop"() : () -> ()
    %cst_258 = arith.constant 0.353553385 : f32
    %546 = vector.broadcast %cst_258 : f32 to vector<2x8x8xf32>
    %547 = arith.mulf %545, %546 : vector<2x8x8xf32>
    %cst_259 = arith.constant dense<0xFF800000> : vector<2x8xf32>
    %548 = vector.multi_reduction <maximumf>, %547, %cst_259 [2] : vector<2x8x8xf32> to vector<2x8xf32>
    %549 = vector.shape_cast %548 : vector<2x8xf32> to vector<2x8x1xf32>
    %550 = vector.broadcast %549 : vector<2x8x1xf32> to vector<2x8x8xf32>
    %551 = arith.subf %547, %550 : vector<2x8x8xf32>
    %552 = math.exp %551 : vector<2x8x8xf32>
    %cst_260 = arith.constant dense<0.000000e+00> : vector<2x8xf32>
    %553 = vector.multi_reduction <add>, %552, %cst_260 [2] : vector<2x8x8xf32> to vector<2x8xf32>
    %554 = vector.shape_cast %553 : vector<2x8xf32> to vector<2x8x1xf32>
    %555 = vector.broadcast %554 : vector<2x8x1xf32> to vector<2x8x8xf32>
    %556 = arith.divf %552, %555 : vector<2x8x8xf32>
    "tpu.trace_start"() <{level = 10 : i32, message = "bqk,bkd->bqd"}> : () -> ()
    %cst_261 = arith.constant dense<0.000000e+00> : vector<2x8x8xf32>
    %557 = tpu.matmul %556, %544, %cst_261 {dimension_numbers = #tpu.dot_dimension_numbers<[2], [1], [1], [2], [0, 0, 0, 1, 1, 2], [0], [0]>} : vector<2x8x8xf32>, vector<2x8x8xf32>, vector<2x8x8xf32> -> vector<2x8x8xf32>
    "tpu.trace_stop"() : () -> ()
    %558 = vector.shape_cast %557 : vector<2x8x8xf32> to vector<16x8xf32>
    %c8_262 = arith.constant 8 : index
    %c0_263 = arith.constant 0 : index
    %559 = vector.load %arg43[%c8_262, %c0_263] : memref<32x32xf32, #tpu.memory_space<vmem>>, vector<8x32xf32>
    %cst_264 = arith.constant dense<0.000000e+00> : vector<16x32xf32>
    %560 = tpu.matmul %558, %559, %cst_264 {dimension_numbers = #tpu.dot_dimension_numbers<[1], [0], [0], [1], [0, 0, 1, 1], [], []>} : vector<16x8xf32>, vector<8x32xf32>, vector<16x32xf32> -> vector<16x32xf32>
    %561 = arith.addf %541, %560 : vector<16x32xf32>
    %562 = vector.extract_strided_slice %520 {offsets = [0, 0, 16], sizes = [2, 8, 8], strides = [1, 1, 1]} : vector<2x8x96xf32> to vector<2x8x8xf32>
    %563 = vector.extract_strided_slice %520 {offsets = [0, 0, 48], sizes = [2, 8, 8], strides = [1, 1, 1]} : vector<2x8x96xf32> to vector<2x8x8xf32>
    %564 = vector.extract_strided_slice %520 {offsets = [0, 0, 80], sizes = [2, 8, 8], strides = [1, 1, 1]} : vector<2x8x96xf32> to vector<2x8x8xf32>
    "tpu.trace_start"() <{level = 10 : i32, message = "bqd,bkd->bqk"}> : () -> ()
    %cst_265 = arith.constant dense<0.000000e+00> : vector<2x8x8xf32>
    %565 = tpu.matmul %562, %563, %cst_265 {dimension_numbers = #tpu.dot_dimension_numbers<[2], [2], [1], [1], [0, 0, 0, 1, 1, 1], [0], [0]>} : vector<2x8x8xf32>, vector<2x8x8xf32>, vector<2x8x8xf32> -> vector<2x8x8xf32>
    "tpu.trace_stop"() : () -> ()
    %cst_266 = arith.constant 0.353553385 : f32
    %566 = vector.broadcast %cst_266 : f32 to vector<2x8x8xf32>
    %567 = arith.mulf %565, %566 : vector<2x8x8xf32>
    %cst_267 = arith.constant dense<0xFF800000> : vector<2x8xf32>
    %568 = vector.multi_reduction <maximumf>, %567, %cst_267 [2] : vector<2x8x8xf32> to vector<2x8xf32>
    %569 = vector.shape_cast %568 : vector<2x8xf32> to vector<2x8x1xf32>
    %570 = vector.broadcast %569 : vector<2x8x1xf32> to vector<2x8x8xf32>
    %571 = arith.subf %567, %570 : vector<2x8x8xf32>
    %572 = math.exp %571 : vector<2x8x8xf32>
    %cst_268 = arith.constant dense<0.000000e+00> : vector<2x8xf32>
    %573 = vector.multi_reduction <add>, %572, %cst_268 [2] : vector<2x8x8xf32> to vector<2x8xf32>
    %574 = vector.shape_cast %573 : vector<2x8xf32> to vector<2x8x1xf32>
    %575 = vector.broadcast %574 : vector<2x8x1xf32> to vector<2x8x8xf32>
    %576 = arith.divf %572, %575 : vector<2x8x8xf32>
    "tpu.trace_start"() <{level = 10 : i32, message = "bqk,bkd->bqd"}> : () -> ()
    %cst_269 = arith.constant dense<0.000000e+00> : vector<2x8x8xf32>
    %577 = tpu.matmul %576, %564, %cst_269 {dimension_numbers = #tpu.dot_dimension_numbers<[2], [1], [1], [2], [0, 0, 0, 1, 1, 2], [0], [0]>} : vector<2x8x8xf32>, vector<2x8x8xf32>, vector<2x8x8xf32> -> vector<2x8x8xf32>
    "tpu.trace_stop"() : () -> ()
    %578 = vector.shape_cast %577 : vector<2x8x8xf32> to vector<16x8xf32>
    %c16_270 = arith.constant 16 : index
    %c0_271 = arith.constant 0 : index
    %579 = vector.load %arg43[%c16_270, %c0_271] : memref<32x32xf32, #tpu.memory_space<vmem>>, vector<8x32xf32>
    %cst_272 = arith.constant dense<0.000000e+00> : vector<16x32xf32>
    %580 = tpu.matmul %578, %579, %cst_272 {dimension_numbers = #tpu.dot_dimension_numbers<[1], [0], [0], [1], [0, 0, 1, 1], [], []>} : vector<16x8xf32>, vector<8x32xf32>, vector<16x32xf32> -> vector<16x32xf32>
    %581 = arith.addf %561, %580 : vector<16x32xf32>
    %582 = vector.extract_strided_slice %520 {offsets = [0, 0, 24], sizes = [2, 8, 8], strides = [1, 1, 1]} : vector<2x8x96xf32> to vector<2x8x8xf32>
    %583 = vector.extract_strided_slice %520 {offsets = [0, 0, 56], sizes = [2, 8, 8], strides = [1, 1, 1]} : vector<2x8x96xf32> to vector<2x8x8xf32>
    %584 = vector.extract_strided_slice %520 {offsets = [0, 0, 88], sizes = [2, 8, 8], strides = [1, 1, 1]} : vector<2x8x96xf32> to vector<2x8x8xf32>
    "tpu.trace_start"() <{level = 10 : i32, message = "bqd,bkd->bqk"}> : () -> ()
    %cst_273 = arith.constant dense<0.000000e+00> : vector<2x8x8xf32>
    %585 = tpu.matmul %582, %583, %cst_273 {dimension_numbers = #tpu.dot_dimension_numbers<[2], [2], [1], [1], [0, 0, 0, 1, 1, 1], [0], [0]>} : vector<2x8x8xf32>, vector<2x8x8xf32>, vector<2x8x8xf32> -> vector<2x8x8xf32>
    "tpu.trace_stop"() : () -> ()
    %cst_274 = arith.constant 0.353553385 : f32
    %586 = vector.broadcast %cst_274 : f32 to vector<2x8x8xf32>
    %587 = arith.mulf %585, %586 : vector<2x8x8xf32>
    %cst_275 = arith.constant dense<0xFF800000> : vector<2x8xf32>
    %588 = vector.multi_reduction <maximumf>, %587, %cst_275 [2] : vector<2x8x8xf32> to vector<2x8xf32>
    %589 = vector.shape_cast %588 : vector<2x8xf32> to vector<2x8x1xf32>
    %590 = vector.broadcast %589 : vector<2x8x1xf32> to vector<2x8x8xf32>
    %591 = arith.subf %587, %590 : vector<2x8x8xf32>
    %592 = math.exp %591 : vector<2x8x8xf32>
    %cst_276 = arith.constant dense<0.000000e+00> : vector<2x8xf32>
    %593 = vector.multi_reduction <add>, %592, %cst_276 [2] : vector<2x8x8xf32> to vector<2x8xf32>
    %594 = vector.shape_cast %593 : vector<2x8xf32> to vector<2x8x1xf32>
    %595 = vector.broadcast %594 : vector<2x8x1xf32> to vector<2x8x8xf32>
    %596 = arith.divf %592, %595 : vector<2x8x8xf32>
    "tpu.trace_start"() <{level = 10 : i32, message = "bqk,bkd->bqd"}> : () -> ()
    %cst_277 = arith.constant dense<0.000000e+00> : vector<2x8x8xf32>
    %597 = tpu.matmul %596, %584, %cst_277 {dimension_numbers = #tpu.dot_dimension_numbers<[2], [1], [1], [2], [0, 0, 0, 1, 1, 2], [0], [0]>} : vector<2x8x8xf32>, vector<2x8x8xf32>, vector<2x8x8xf32> -> vector<2x8x8xf32>
    "tpu.trace_stop"() : () -> ()
    %598 = vector.shape_cast %597 : vector<2x8x8xf32> to vector<16x8xf32>
    %c24_278 = arith.constant 24 : index
    %c0_279 = arith.constant 0 : index
    %599 = vector.load %arg43[%c24_278, %c0_279] : memref<32x32xf32, #tpu.memory_space<vmem>>, vector<8x32xf32>
    %cst_280 = arith.constant dense<0.000000e+00> : vector<16x32xf32>
    %600 = tpu.matmul %598, %599, %cst_280 {dimension_numbers = #tpu.dot_dimension_numbers<[1], [0], [0], [1], [0, 0, 1, 1], [], []>} : vector<16x8xf32>, vector<8x32xf32>, vector<16x32xf32> -> vector<16x32xf32>
    %601 = arith.addf %581, %600 : vector<16x32xf32>
    %c0_281 = arith.constant 0 : index
    %c0_282 = arith.constant 0 : index
    %602 = vector.load %arg44[%c0_281, %c0_282] : memref<1x32xf32, #tpu.memory_space<vmem>>, vector<1x32xf32>
    %603 = vector.broadcast %602 : vector<1x32xf32> to vector<16x32xf32>
    %604 = arith.addf %601, %603 : vector<16x32xf32>
    %605 = arith.addf %514, %604 : vector<16x32xf32>
    %c0_283 = arith.constant 0 : index
    %c0_284 = arith.constant 0 : index
    %606 = vector.load %arg45[%c0_283, %c0_284] : memref<1x32xf32, #tpu.memory_space<vmem>>, vector<1x32xf32>
    %c0_285 = arith.constant 0 : index
    %c0_286 = arith.constant 0 : index
    %607 = vector.load %arg46[%c0_285, %c0_286] : memref<1x32xf32, #tpu.memory_space<vmem>>, vector<1x32xf32>
    %cst_287 = arith.constant dense<0.000000e+00> : vector<16xf32>
    %608 = vector.multi_reduction <add>, %605, %cst_287 [1] : vector<16x32xf32> to vector<16xf32>
    %609 = vector.shape_cast %608 : vector<16xf32> to vector<16x1xf32>
    %cst_288 = arith.constant 3.200000e+01 : f32
    %610 = vector.broadcast %cst_288 : f32 to vector<16x1xf32>
    %611 = arith.divf %609, %610 : vector<16x1xf32>
    %612 = vector.broadcast %611 : vector<16x1xf32> to vector<16x32xf32>
    %613 = arith.subf %605, %612 : vector<16x32xf32>
    %614 = arith.mulf %613, %613 : vector<16x32xf32>
    %cst_289 = arith.constant dense<0.000000e+00> : vector<16xf32>
    %615 = vector.multi_reduction <add>, %614, %cst_289 [1] : vector<16x32xf32> to vector<16xf32>
    %616 = vector.shape_cast %615 : vector<16xf32> to vector<16x1xf32>
    %cst_290 = arith.constant 3.200000e+01 : f32
    %617 = vector.broadcast %cst_290 : f32 to vector<16x1xf32>
    %618 = arith.divf %616, %617 : vector<16x1xf32>
    %619 = vector.broadcast %611 : vector<16x1xf32> to vector<16x32xf32>
    %620 = arith.subf %605, %619 : vector<16x32xf32>
    %cst_291 = arith.constant 9.99999974E-6 : f32
    %621 = vector.broadcast %cst_291 : f32 to vector<16x1xf32>
    %622 = arith.addf %618, %621 : vector<16x1xf32>
    %623 = math.rsqrt %622 : vector<16x1xf32>
    %624 = vector.broadcast %623 : vector<16x1xf32> to vector<16x32xf32>
    %625 = arith.mulf %620, %624 : vector<16x32xf32>
    %626 = vector.broadcast %606 : vector<1x32xf32> to vector<16x32xf32>
    %627 = arith.mulf %625, %626 : vector<16x32xf32>
    %628 = vector.broadcast %607 : vector<1x32xf32> to vector<16x32xf32>
    %629 = arith.addf %627, %628 : vector<16x32xf32>
    %c0_292 = arith.constant 0 : index
    %c0_293 = arith.constant 0 : index
    %630 = vector.load %arg47[%c0_292, %c0_293] : memref<32x64xf32, #tpu.memory_space<vmem>>, vector<32x64xf32>
    %cst_294 = arith.constant dense<0.000000e+00> : vector<16x64xf32>
    %631 = tpu.matmul %629, %630, %cst_294 {dimension_numbers = #tpu.dot_dimension_numbers<[1], [0], [0], [1], [0, 0, 1, 1], [], []>} : vector<16x32xf32>, vector<32x64xf32>, vector<16x64xf32> -> vector<16x64xf32>
    %c0_295 = arith.constant 0 : index
    %c0_296 = arith.constant 0 : index
    %632 = vector.load %arg48[%c0_295, %c0_296] : memref<1x64xf32, #tpu.memory_space<vmem>>, vector<1x64xf32>
    %633 = vector.broadcast %632 : vector<1x64xf32> to vector<16x64xf32>
    %634 = arith.addf %631, %633 : vector<16x64xf32>
    %cst_297 = arith.constant 0.000000e+00 : f32
    %635 = vector.broadcast %cst_297 : f32 to vector<16x64xf32>
    %636 = arith.maximumf %634, %635 : vector<16x64xf32>
    %c0_298 = arith.constant 0 : index
    %c0_299 = arith.constant 0 : index
    %637 = vector.load %arg49[%c0_298, %c0_299] : memref<64x32xf32, #tpu.memory_space<vmem>>, vector<64x32xf32>
    %cst_300 = arith.constant dense<0.000000e+00> : vector<16x32xf32>
    %638 = tpu.matmul %636, %637, %cst_300 {dimension_numbers = #tpu.dot_dimension_numbers<[1], [0], [0], [1], [0, 0, 1, 1], [], []>} : vector<16x64xf32>, vector<64x32xf32>, vector<16x32xf32> -> vector<16x32xf32>
    %c0_301 = arith.constant 0 : index
    %c0_302 = arith.constant 0 : index
    %639 = vector.load %arg50[%c0_301, %c0_302] : memref<1x32xf32, #tpu.memory_space<vmem>>, vector<1x32xf32>
    %640 = vector.broadcast %639 : vector<1x32xf32> to vector<16x32xf32>
    %641 = arith.addf %638, %640 : vector<16x32xf32>
    %642 = arith.addf %629, %641 : vector<16x32xf32>
    %c0_303 = arith.constant 0 : index
    %c0_304 = arith.constant 0 : index
    %643 = vector.load %arg51[%c0_303, %c0_304] : memref<1x32xf32, #tpu.memory_space<vmem>>, vector<1x32xf32>
    %c0_305 = arith.constant 0 : index
    %c0_306 = arith.constant 0 : index
    %644 = vector.load %arg52[%c0_305, %c0_306] : memref<1x32xf32, #tpu.memory_space<vmem>>, vector<1x32xf32>
    %cst_307 = arith.constant dense<0.000000e+00> : vector<16xf32>
    %645 = vector.multi_reduction <add>, %642, %cst_307 [1] : vector<16x32xf32> to vector<16xf32>
    %646 = vector.shape_cast %645 : vector<16xf32> to vector<16x1xf32>
    %cst_308 = arith.constant 3.200000e+01 : f32
    %647 = vector.broadcast %cst_308 : f32 to vector<16x1xf32>
    %648 = arith.divf %646, %647 : vector<16x1xf32>
    %649 = vector.broadcast %648 : vector<16x1xf32> to vector<16x32xf32>
    %650 = arith.subf %642, %649 : vector<16x32xf32>
    %651 = arith.mulf %650, %650 : vector<16x32xf32>
    %cst_309 = arith.constant dense<0.000000e+00> : vector<16xf32>
    %652 = vector.multi_reduction <add>, %651, %cst_309 [1] : vector<16x32xf32> to vector<16xf32>
    %653 = vector.shape_cast %652 : vector<16xf32> to vector<16x1xf32>
    %cst_310 = arith.constant 3.200000e+01 : f32
    %654 = vector.broadcast %cst_310 : f32 to vector<16x1xf32>
    %655 = arith.divf %653, %654 : vector<16x1xf32>
    %656 = vector.broadcast %648 : vector<16x1xf32> to vector<16x32xf32>
    %657 = arith.subf %642, %656 : vector<16x32xf32>
    %cst_311 = arith.constant 9.99999974E-6 : f32
    %658 = vector.broadcast %cst_311 : f32 to vector<16x1xf32>
    %659 = arith.addf %655, %658 : vector<16x1xf32>
    %660 = math.rsqrt %659 : vector<16x1xf32>
    %661 = vector.broadcast %660 : vector<16x1xf32> to vector<16x32xf32>
    %662 = arith.mulf %657, %661 : vector<16x32xf32>
    %663 = vector.broadcast %643 : vector<1x32xf32> to vector<16x32xf32>
    %664 = arith.mulf %662, %663 : vector<16x32xf32>
    %665 = vector.broadcast %644 : vector<1x32xf32> to vector<16x32xf32>
    %666 = arith.addf %664, %665 : vector<16x32xf32>
    %c0_312 = arith.constant 0 : index
    %c0_313 = arith.constant 0 : index
    %667 = vector.load %arg53[%c0_312, %c0_313] : memref<32x96xf32, #tpu.memory_space<vmem>>, vector<32x96xf32>
    %cst_314 = arith.constant dense<0.000000e+00> : vector<16x96xf32>
    %668 = tpu.matmul %666, %667, %cst_314 {dimension_numbers = #tpu.dot_dimension_numbers<[1], [0], [0], [1], [0, 0, 1, 1], [], []>} : vector<16x32xf32>, vector<32x96xf32>, vector<16x96xf32> -> vector<16x96xf32>
    %c0_315 = arith.constant 0 : index
    %c0_316 = arith.constant 0 : index
    %669 = vector.load %arg54[%c0_315, %c0_316] : memref<1x96xf32, #tpu.memory_space<vmem>>, vector<1x96xf32>
    %670 = vector.broadcast %669 : vector<1x96xf32> to vector<16x96xf32>
    %671 = arith.addf %668, %670 : vector<16x96xf32>
    %672 = vector.shape_cast %671 : vector<16x96xf32> to vector<2x8x96xf32>
    %cst_317 = arith.constant 0.000000e+00 : f32
    %673 = vector.broadcast %cst_317 : f32 to vector<16x32xf32>
    %674 = vector.extract_strided_slice %672 {offsets = [0, 0, 0], sizes = [2, 8, 8], strides = [1, 1, 1]} : vector<2x8x96xf32> to vector<2x8x8xf32>
    %675 = vector.extract_strided_slice %672 {offsets = [0, 0, 32], sizes = [2, 8, 8], strides = [1, 1, 1]} : vector<2x8x96xf32> to vector<2x8x8xf32>
    %676 = vector.extract_strided_slice %672 {offsets = [0, 0, 64], sizes = [2, 8, 8], strides = [1, 1, 1]} : vector<2x8x96xf32> to vector<2x8x8xf32>
    "tpu.trace_start"() <{level = 10 : i32, message = "bqd,bkd->bqk"}> : () -> ()
    %cst_318 = arith.constant dense<0.000000e+00> : vector<2x8x8xf32>
    %677 = tpu.matmul %674, %675, %cst_318 {dimension_numbers = #tpu.dot_dimension_numbers<[2], [2], [1], [1], [0, 0, 0, 1, 1, 1], [0], [0]>} : vector<2x8x8xf32>, vector<2x8x8xf32>, vector<2x8x8xf32> -> vector<2x8x8xf32>
    "tpu.trace_stop"() : () -> ()
    %cst_319 = arith.constant 0.353553385 : f32
    %678 = vector.broadcast %cst_319 : f32 to vector<2x8x8xf32>
    %679 = arith.mulf %677, %678 : vector<2x8x8xf32>
    %cst_320 = arith.constant dense<0xFF800000> : vector<2x8xf32>
    %680 = vector.multi_reduction <maximumf>, %679, %cst_320 [2] : vector<2x8x8xf32> to vector<2x8xf32>
    %681 = vector.shape_cast %680 : vector<2x8xf32> to vector<2x8x1xf32>
    %682 = vector.broadcast %681 : vector<2x8x1xf32> to vector<2x8x8xf32>
    %683 = arith.subf %679, %682 : vector<2x8x8xf32>
    %684 = math.exp %683 : vector<2x8x8xf32>
    %cst_321 = arith.constant dense<0.000000e+00> : vector<2x8xf32>
    %685 = vector.multi_reduction <add>, %684, %cst_321 [2] : vector<2x8x8xf32> to vector<2x8xf32>
    %686 = vector.shape_cast %685 : vector<2x8xf32> to vector<2x8x1xf32>
    %687 = vector.broadcast %686 : vector<2x8x1xf32> to vector<2x8x8xf32>
    %688 = arith.divf %684, %687 : vector<2x8x8xf32>
    "tpu.trace_start"() <{level = 10 : i32, message = "bqk,bkd->bqd"}> : () -> ()
    %cst_322 = arith.constant dense<0.000000e+00> : vector<2x8x8xf32>
    %689 = tpu.matmul %688, %676, %cst_322 {dimension_numbers = #tpu.dot_dimension_numbers<[2], [1], [1], [2], [0, 0, 0, 1, 1, 2], [0], [0]>} : vector<2x8x8xf32>, vector<2x8x8xf32>, vector<2x8x8xf32> -> vector<2x8x8xf32>
    "tpu.trace_stop"() : () -> ()
    %690 = vector.shape_cast %689 : vector<2x8x8xf32> to vector<16x8xf32>
    %c0_323 = arith.constant 0 : index
    %c0_324 = arith.constant 0 : index
    %691 = vector.load %arg55[%c0_323, %c0_324] : memref<32x32xf32, #tpu.memory_space<vmem>>, vector<8x32xf32>
    %cst_325 = arith.constant dense<0.000000e+00> : vector<16x32xf32>
    %692 = tpu.matmul %690, %691, %cst_325 {dimension_numbers = #tpu.dot_dimension_numbers<[1], [0], [0], [1], [0, 0, 1, 1], [], []>} : vector<16x8xf32>, vector<8x32xf32>, vector<16x32xf32> -> vector<16x32xf32>
    %693 = arith.addf %673, %692 : vector<16x32xf32>
    %694 = vector.extract_strided_slice %672 {offsets = [0, 0, 8], sizes = [2, 8, 8], strides = [1, 1, 1]} : vector<2x8x96xf32> to vector<2x8x8xf32>
    %695 = vector.extract_strided_slice %672 {offsets = [0, 0, 40], sizes = [2, 8, 8], strides = [1, 1, 1]} : vector<2x8x96xf32> to vector<2x8x8xf32>
    %696 = vector.extract_strided_slice %672 {offsets = [0, 0, 72], sizes = [2, 8, 8], strides = [1, 1, 1]} : vector<2x8x96xf32> to vector<2x8x8xf32>
    "tpu.trace_start"() <{level = 10 : i32, message = "bqd,bkd->bqk"}> : () -> ()
    %cst_326 = arith.constant dense<0.000000e+00> : vector<2x8x8xf32>
    %697 = tpu.matmul %694, %695, %cst_326 {dimension_numbers = #tpu.dot_dimension_numbers<[2], [2], [1], [1], [0, 0, 0, 1, 1, 1], [0], [0]>} : vector<2x8x8xf32>, vector<2x8x8xf32>, vector<2x8x8xf32> -> vector<2x8x8xf32>
    "tpu.trace_stop"() : () -> ()
    %cst_327 = arith.constant 0.353553385 : f32
    %698 = vector.broadcast %cst_327 : f32 to vector<2x8x8xf32>
    %699 = arith.mulf %697, %698 : vector<2x8x8xf32>
    %cst_328 = arith.constant dense<0xFF800000> : vector<2x8xf32>
    %700 = vector.multi_reduction <maximumf>, %699, %cst_328 [2] : vector<2x8x8xf32> to vector<2x8xf32>
    %701 = vector.shape_cast %700 : vector<2x8xf32> to vector<2x8x1xf32>
    %702 = vector.broadcast %701 : vector<2x8x1xf32> to vector<2x8x8xf32>
    %703 = arith.subf %699, %702 : vector<2x8x8xf32>
    %704 = math.exp %703 : vector<2x8x8xf32>
    %cst_329 = arith.constant dense<0.000000e+00> : vector<2x8xf32>
    %705 = vector.multi_reduction <add>, %704, %cst_329 [2] : vector<2x8x8xf32> to vector<2x8xf32>
    %706 = vector.shape_cast %705 : vector<2x8xf32> to vector<2x8x1xf32>
    %707 = vector.broadcast %706 : vector<2x8x1xf32> to vector<2x8x8xf32>
    %708 = arith.divf %704, %707 : vector<2x8x8xf32>
    "tpu.trace_start"() <{level = 10 : i32, message = "bqk,bkd->bqd"}> : () -> ()
    %cst_330 = arith.constant dense<0.000000e+00> : vector<2x8x8xf32>
    %709 = tpu.matmul %708, %696, %cst_330 {dimension_numbers = #tpu.dot_dimension_numbers<[2], [1], [1], [2], [0, 0, 0, 1, 1, 2], [0], [0]>} : vector<2x8x8xf32>, vector<2x8x8xf32>, vector<2x8x8xf32> -> vector<2x8x8xf32>
    "tpu.trace_stop"() : () -> ()
    %710 = vector.shape_cast %709 : vector<2x8x8xf32> to vector<16x8xf32>
    %c8_331 = arith.constant 8 : index
    %c0_332 = arith.constant 0 : index
    %711 = vector.load %arg55[%c8_331, %c0_332] : memref<32x32xf32, #tpu.memory_space<vmem>>, vector<8x32xf32>
    %cst_333 = arith.constant dense<0.000000e+00> : vector<16x32xf32>
    %712 = tpu.matmul %710, %711, %cst_333 {dimension_numbers = #tpu.dot_dimension_numbers<[1], [0], [0], [1], [0, 0, 1, 1], [], []>} : vector<16x8xf32>, vector<8x32xf32>, vector<16x32xf32> -> vector<16x32xf32>
    %713 = arith.addf %693, %712 : vector<16x32xf32>
    %714 = vector.extract_strided_slice %672 {offsets = [0, 0, 16], sizes = [2, 8, 8], strides = [1, 1, 1]} : vector<2x8x96xf32> to vector<2x8x8xf32>
    %715 = vector.extract_strided_slice %672 {offsets = [0, 0, 48], sizes = [2, 8, 8], strides = [1, 1, 1]} : vector<2x8x96xf32> to vector<2x8x8xf32>
    %716 = vector.extract_strided_slice %672 {offsets = [0, 0, 80], sizes = [2, 8, 8], strides = [1, 1, 1]} : vector<2x8x96xf32> to vector<2x8x8xf32>
    "tpu.trace_start"() <{level = 10 : i32, message = "bqd,bkd->bqk"}> : () -> ()
    %cst_334 = arith.constant dense<0.000000e+00> : vector<2x8x8xf32>
    %717 = tpu.matmul %714, %715, %cst_334 {dimension_numbers = #tpu.dot_dimension_numbers<[2], [2], [1], [1], [0, 0, 0, 1, 1, 1], [0], [0]>} : vector<2x8x8xf32>, vector<2x8x8xf32>, vector<2x8x8xf32> -> vector<2x8x8xf32>
    "tpu.trace_stop"() : () -> ()
    %cst_335 = arith.constant 0.353553385 : f32
    %718 = vector.broadcast %cst_335 : f32 to vector<2x8x8xf32>
    %719 = arith.mulf %717, %718 : vector<2x8x8xf32>
    %cst_336 = arith.constant dense<0xFF800000> : vector<2x8xf32>
    %720 = vector.multi_reduction <maximumf>, %719, %cst_336 [2] : vector<2x8x8xf32> to vector<2x8xf32>
    %721 = vector.shape_cast %720 : vector<2x8xf32> to vector<2x8x1xf32>
    %722 = vector.broadcast %721 : vector<2x8x1xf32> to vector<2x8x8xf32>
    %723 = arith.subf %719, %722 : vector<2x8x8xf32>
    %724 = math.exp %723 : vector<2x8x8xf32>
    %cst_337 = arith.constant dense<0.000000e+00> : vector<2x8xf32>
    %725 = vector.multi_reduction <add>, %724, %cst_337 [2] : vector<2x8x8xf32> to vector<2x8xf32>
    %726 = vector.shape_cast %725 : vector<2x8xf32> to vector<2x8x1xf32>
    %727 = vector.broadcast %726 : vector<2x8x1xf32> to vector<2x8x8xf32>
    %728 = arith.divf %724, %727 : vector<2x8x8xf32>
    "tpu.trace_start"() <{level = 10 : i32, message = "bqk,bkd->bqd"}> : () -> ()
    %cst_338 = arith.constant dense<0.000000e+00> : vector<2x8x8xf32>
    %729 = tpu.matmul %728, %716, %cst_338 {dimension_numbers = #tpu.dot_dimension_numbers<[2], [1], [1], [2], [0, 0, 0, 1, 1, 2], [0], [0]>} : vector<2x8x8xf32>, vector<2x8x8xf32>, vector<2x8x8xf32> -> vector<2x8x8xf32>
    "tpu.trace_stop"() : () -> ()
    %730 = vector.shape_cast %729 : vector<2x8x8xf32> to vector<16x8xf32>
    %c16_339 = arith.constant 16 : index
    %c0_340 = arith.constant 0 : index
    %731 = vector.load %arg55[%c16_339, %c0_340] : memref<32x32xf32, #tpu.memory_space<vmem>>, vector<8x32xf32>
    %cst_341 = arith.constant dense<0.000000e+00> : vector<16x32xf32>
    %732 = tpu.matmul %730, %731, %cst_341 {dimension_numbers = #tpu.dot_dimension_numbers<[1], [0], [0], [1], [0, 0, 1, 1], [], []>} : vector<16x8xf32>, vector<8x32xf32>, vector<16x32xf32> -> vector<16x32xf32>
    %733 = arith.addf %713, %732 : vector<16x32xf32>
    %734 = vector.extract_strided_slice %672 {offsets = [0, 0, 24], sizes = [2, 8, 8], strides = [1, 1, 1]} : vector<2x8x96xf32> to vector<2x8x8xf32>
    %735 = vector.extract_strided_slice %672 {offsets = [0, 0, 56], sizes = [2, 8, 8], strides = [1, 1, 1]} : vector<2x8x96xf32> to vector<2x8x8xf32>
    %736 = vector.extract_strided_slice %672 {offsets = [0, 0, 88], sizes = [2, 8, 8], strides = [1, 1, 1]} : vector<2x8x96xf32> to vector<2x8x8xf32>
    "tpu.trace_start"() <{level = 10 : i32, message = "bqd,bkd->bqk"}> : () -> ()
    %cst_342 = arith.constant dense<0.000000e+00> : vector<2x8x8xf32>
    %737 = tpu.matmul %734, %735, %cst_342 {dimension_numbers = #tpu.dot_dimension_numbers<[2], [2], [1], [1], [0, 0, 0, 1, 1, 1], [0], [0]>} : vector<2x8x8xf32>, vector<2x8x8xf32>, vector<2x8x8xf32> -> vector<2x8x8xf32>
    "tpu.trace_stop"() : () -> ()
    %cst_343 = arith.constant 0.353553385 : f32
    %738 = vector.broadcast %cst_343 : f32 to vector<2x8x8xf32>
    %739 = arith.mulf %737, %738 : vector<2x8x8xf32>
    %cst_344 = arith.constant dense<0xFF800000> : vector<2x8xf32>
    %740 = vector.multi_reduction <maximumf>, %739, %cst_344 [2] : vector<2x8x8xf32> to vector<2x8xf32>
    %741 = vector.shape_cast %740 : vector<2x8xf32> to vector<2x8x1xf32>
    %742 = vector.broadcast %741 : vector<2x8x1xf32> to vector<2x8x8xf32>
    %743 = arith.subf %739, %742 : vector<2x8x8xf32>
    %744 = math.exp %743 : vector<2x8x8xf32>
    %cst_345 = arith.constant dense<0.000000e+00> : vector<2x8xf32>
    %745 = vector.multi_reduction <add>, %744, %cst_345 [2] : vector<2x8x8xf32> to vector<2x8xf32>
    %746 = vector.shape_cast %745 : vector<2x8xf32> to vector<2x8x1xf32>
    %747 = vector.broadcast %746 : vector<2x8x1xf32> to vector<2x8x8xf32>
    %748 = arith.divf %744, %747 : vector<2x8x8xf32>
    "tpu.trace_start"() <{level = 10 : i32, message = "bqk,bkd->bqd"}> : () -> ()
    %cst_346 = arith.constant dense<0.000000e+00> : vector<2x8x8xf32>
    %749 = tpu.matmul %748, %736, %cst_346 {dimension_numbers = #tpu.dot_dimension_numbers<[2], [1], [1], [2], [0, 0, 0, 1, 1, 2], [0], [0]>} : vector<2x8x8xf32>, vector<2x8x8xf32>, vector<2x8x8xf32> -> vector<2x8x8xf32>
    "tpu.trace_stop"() : () -> ()
    %750 = vector.shape_cast %749 : vector<2x8x8xf32> to vector<16x8xf32>
    %c24_347 = arith.constant 24 : index
    %c0_348 = arith.constant 0 : index
    %751 = vector.load %arg55[%c24_347, %c0_348] : memref<32x32xf32, #tpu.memory_space<vmem>>, vector<8x32xf32>
    %cst_349 = arith.constant dense<0.000000e+00> : vector<16x32xf32>
    %752 = tpu.matmul %750, %751, %cst_349 {dimension_numbers = #tpu.dot_dimension_numbers<[1], [0], [0], [1], [0, 0, 1, 1], [], []>} : vector<16x8xf32>, vector<8x32xf32>, vector<16x32xf32> -> vector<16x32xf32>
    %753 = arith.addf %733, %752 : vector<16x32xf32>
    %c0_350 = arith.constant 0 : index
    %c0_351 = arith.constant 0 : index
    %754 = vector.load %arg56[%c0_350, %c0_351] : memref<1x32xf32, #tpu.memory_space<vmem>>, vector<1x32xf32>
    %755 = vector.broadcast %754 : vector<1x32xf32> to vector<16x32xf32>
    %756 = arith.addf %753, %755 : vector<16x32xf32>
    %757 = arith.addf %666, %756 : vector<16x32xf32>
    %c0_352 = arith.constant 0 : index
    %c0_353 = arith.constant 0 : index
    %758 = vector.load %arg57[%c0_352, %c0_353] : memref<1x32xf32, #tpu.memory_space<vmem>>, vector<1x32xf32>
    %c0_354 = arith.constant 0 : index
    %c0_355 = arith.constant 0 : index
    %759 = vector.load %arg58[%c0_354, %c0_355] : memref<1x32xf32, #tpu.memory_space<vmem>>, vector<1x32xf32>
    %cst_356 = arith.constant dense<0.000000e+00> : vector<16xf32>
    %760 = vector.multi_reduction <add>, %757, %cst_356 [1] : vector<16x32xf32> to vector<16xf32>
    %761 = vector.shape_cast %760 : vector<16xf32> to vector<16x1xf32>
    %cst_357 = arith.constant 3.200000e+01 : f32
    %762 = vector.broadcast %cst_357 : f32 to vector<16x1xf32>
    %763 = arith.divf %761, %762 : vector<16x1xf32>
    %764 = vector.broadcast %763 : vector<16x1xf32> to vector<16x32xf32>
    %765 = arith.subf %757, %764 : vector<16x32xf32>
    %766 = arith.mulf %765, %765 : vector<16x32xf32>
    %cst_358 = arith.constant dense<0.000000e+00> : vector<16xf32>
    %767 = vector.multi_reduction <add>, %766, %cst_358 [1] : vector<16x32xf32> to vector<16xf32>
    %768 = vector.shape_cast %767 : vector<16xf32> to vector<16x1xf32>
    %cst_359 = arith.constant 3.200000e+01 : f32
    %769 = vector.broadcast %cst_359 : f32 to vector<16x1xf32>
    %770 = arith.divf %768, %769 : vector<16x1xf32>
    %771 = vector.broadcast %763 : vector<16x1xf32> to vector<16x32xf32>
    %772 = arith.subf %757, %771 : vector<16x32xf32>
    %cst_360 = arith.constant 9.99999974E-6 : f32
    %773 = vector.broadcast %cst_360 : f32 to vector<16x1xf32>
    %774 = arith.addf %770, %773 : vector<16x1xf32>
    %775 = math.rsqrt %774 : vector<16x1xf32>
    %776 = vector.broadcast %775 : vector<16x1xf32> to vector<16x32xf32>
    %777 = arith.mulf %772, %776 : vector<16x32xf32>
    %778 = vector.broadcast %758 : vector<1x32xf32> to vector<16x32xf32>
    %779 = arith.mulf %777, %778 : vector<16x32xf32>
    %780 = vector.broadcast %759 : vector<1x32xf32> to vector<16x32xf32>
    %781 = arith.addf %779, %780 : vector<16x32xf32>
    %c0_361 = arith.constant 0 : index
    %c0_362 = arith.constant 0 : index
    %782 = vector.load %arg59[%c0_361, %c0_362] : memref<32x64xf32, #tpu.memory_space<vmem>>, vector<32x64xf32>
    %cst_363 = arith.constant dense<0.000000e+00> : vector<16x64xf32>
    %783 = tpu.matmul %781, %782, %cst_363 {dimension_numbers = #tpu.dot_dimension_numbers<[1], [0], [0], [1], [0, 0, 1, 1], [], []>} : vector<16x32xf32>, vector<32x64xf32>, vector<16x64xf32> -> vector<16x64xf32>
    %c0_364 = arith.constant 0 : index
    %c0_365 = arith.constant 0 : index
    %784 = vector.load %arg60[%c0_364, %c0_365] : memref<1x64xf32, #tpu.memory_space<vmem>>, vector<1x64xf32>
    %785 = vector.broadcast %784 : vector<1x64xf32> to vector<16x64xf32>
    %786 = arith.addf %783, %785 : vector<16x64xf32>
    %cst_366 = arith.constant 0.000000e+00 : f32
    %787 = vector.broadcast %cst_366 : f32 to vector<16x64xf32>
    %788 = arith.maximumf %786, %787 : vector<16x64xf32>
    %c0_367 = arith.constant 0 : index
    %c0_368 = arith.constant 0 : index
    %789 = vector.load %arg61[%c0_367, %c0_368] : memref<64x32xf32, #tpu.memory_space<vmem>>, vector<64x32xf32>
    %cst_369 = arith.constant dense<0.000000e+00> : vector<16x32xf32>
    %790 = tpu.matmul %788, %789, %cst_369 {dimension_numbers = #tpu.dot_dimension_numbers<[1], [0], [0], [1], [0, 0, 1, 1], [], []>} : vector<16x64xf32>, vector<64x32xf32>, vector<16x32xf32> -> vector<16x32xf32>
    %c0_370 = arith.constant 0 : index
    %c0_371 = arith.constant 0 : index
    %791 = vector.load %arg62[%c0_370, %c0_371] : memref<1x32xf32, #tpu.memory_space<vmem>>, vector<1x32xf32>
    %792 = vector.broadcast %791 : vector<1x32xf32> to vector<16x32xf32>
    %793 = arith.addf %790, %792 : vector<16x32xf32>
    %794 = arith.addf %781, %793 : vector<16x32xf32>
    %c0_372 = arith.constant 0 : index
    %c0_373 = arith.constant 0 : index
    %795 = vector.load %arg63[%c0_372, %c0_373] : memref<1x32xf32, #tpu.memory_space<vmem>>, vector<1x32xf32>
    %c0_374 = arith.constant 0 : index
    %c0_375 = arith.constant 0 : index
    %796 = vector.load %arg64[%c0_374, %c0_375] : memref<1x32xf32, #tpu.memory_space<vmem>>, vector<1x32xf32>
    %cst_376 = arith.constant dense<0.000000e+00> : vector<16xf32>
    %797 = vector.multi_reduction <add>, %794, %cst_376 [1] : vector<16x32xf32> to vector<16xf32>
    %798 = vector.shape_cast %797 : vector<16xf32> to vector<16x1xf32>
    %cst_377 = arith.constant 3.200000e+01 : f32
    %799 = vector.broadcast %cst_377 : f32 to vector<16x1xf32>
    %800 = arith.divf %798, %799 : vector<16x1xf32>
    %801 = vector.broadcast %800 : vector<16x1xf32> to vector<16x32xf32>
    %802 = arith.subf %794, %801 : vector<16x32xf32>
    %803 = arith.mulf %802, %802 : vector<16x32xf32>
    %cst_378 = arith.constant dense<0.000000e+00> : vector<16xf32>
    %804 = vector.multi_reduction <add>, %803, %cst_378 [1] : vector<16x32xf32> to vector<16xf32>
    %805 = vector.shape_cast %804 : vector<16xf32> to vector<16x1xf32>
    %cst_379 = arith.constant 3.200000e+01 : f32
    %806 = vector.broadcast %cst_379 : f32 to vector<16x1xf32>
    %807 = arith.divf %805, %806 : vector<16x1xf32>
    %808 = vector.broadcast %800 : vector<16x1xf32> to vector<16x32xf32>
    %809 = arith.subf %794, %808 : vector<16x32xf32>
    %cst_380 = arith.constant 9.99999974E-6 : f32
    %810 = vector.broadcast %cst_380 : f32 to vector<16x1xf32>
    %811 = arith.addf %807, %810 : vector<16x1xf32>
    %812 = math.rsqrt %811 : vector<16x1xf32>
    %813 = vector.broadcast %812 : vector<16x1xf32> to vector<16x32xf32>
    %814 = arith.mulf %809, %813 : vector<16x32xf32>
    %815 = vector.broadcast %795 : vector<1x32xf32> to vector<16x32xf32>
    %816 = arith.mulf %814, %815 : vector<16x32xf32>
    %817 = vector.broadcast %796 : vector<1x32xf32> to vector<16x32xf32>
    %818 = arith.addf %816, %817 : vector<16x32xf32>
    %cst_381 = arith.constant 0.000000e+00 : f32
    %819 = vector.broadcast %cst_381 : f32 to vector<16x16xf32>
    %820 = vector.extract_strided_slice %514 {offsets = [14, 0], sizes = [2, 32], strides = [1, 1]} : vector<16x32xf32> to vector<2x32xf32>
    %821 = vector.extract_strided_slice %514 {offsets = [0, 0], sizes = [14, 32], strides = [1, 1]} : vector<16x32xf32> to vector<14x32xf32>
    %822 = tpu.concatenate %820, %821 in 0 : vector<2x32xf32>, vector<14x32xf32> -> vector<16x32xf32>
    %cst_382 = arith.constant 0.000000e+00 : f32
    %823 = vector.shape_cast %327 : vector<16x1xi1> to vector<16x1xi1>
    %824 = vector.broadcast %823 : vector<16x1xi1> to vector<16x32xi1>
    %825 = vector.broadcast %cst_382 : f32 to vector<16x32xf32>
    %826 = arith.select %824, %822, %825 : vector<16x32xi1>, vector<16x32xf32>
    %c0_383 = arith.constant 0 : index
    %c0_384 = arith.constant 0 : index
    %c0_385 = arith.constant 0 : index
    %827 = vector.load %arg65[%c0_383, %c0_384, %c0_385] : memref<3x32x16xf32, #tpu.memory_space<vmem>>, vector<1x32x16xf32>
    %828 = vector.shape_cast %827 : vector<1x32x16xf32> to vector<32x16xf32>
    %cst_386 = arith.constant dense<0.000000e+00> : vector<16x16xf32>
    %829 = tpu.matmul %826, %828, %cst_386 {dimension_numbers = #tpu.dot_dimension_numbers<[1], [0], [0], [1], [0, 0, 1, 1], [], []>} : vector<16x32xf32>, vector<32x16xf32>, vector<16x16xf32> -> vector<16x16xf32>
    %830 = arith.addf %819, %829 : vector<16x16xf32>
    %831 = vector.extract_strided_slice %514 {offsets = [15, 0], sizes = [1, 32], strides = [1, 1]} : vector<16x32xf32> to vector<1x32xf32>
    %832 = vector.extract_strided_slice %514 {offsets = [0, 0], sizes = [15, 32], strides = [1, 1]} : vector<16x32xf32> to vector<15x32xf32>
    %833 = tpu.concatenate %831, %832 in 0 : vector<1x32xf32>, vector<15x32xf32> -> vector<16x32xf32>
    %cst_387 = arith.constant 0.000000e+00 : f32
    %834 = vector.shape_cast %357 : vector<16x1xi1> to vector<16x1xi1>
    %835 = vector.broadcast %834 : vector<16x1xi1> to vector<16x32xi1>
    %836 = vector.broadcast %cst_387 : f32 to vector<16x32xf32>
    %837 = arith.select %835, %833, %836 : vector<16x32xi1>, vector<16x32xf32>
    %c1_388 = arith.constant 1 : index
    %c0_389 = arith.constant 0 : index
    %c0_390 = arith.constant 0 : index
    %838 = vector.load %arg65[%c1_388, %c0_389, %c0_390] : memref<3x32x16xf32, #tpu.memory_space<vmem>>, vector<1x32x16xf32>
    %839 = vector.shape_cast %838 : vector<1x32x16xf32> to vector<32x16xf32>
    %cst_391 = arith.constant dense<0.000000e+00> : vector<16x16xf32>
    %840 = tpu.matmul %837, %839, %cst_391 {dimension_numbers = #tpu.dot_dimension_numbers<[1], [0], [0], [1], [0, 0, 1, 1], [], []>} : vector<16x32xf32>, vector<32x16xf32>, vector<16x16xf32> -> vector<16x16xf32>
    %841 = arith.addf %830, %840 : vector<16x16xf32>
    %c2_392 = arith.constant 2 : index
    %c0_393 = arith.constant 0 : index
    %c0_394 = arith.constant 0 : index
    %842 = vector.load %arg65[%c2_392, %c0_393, %c0_394] : memref<3x32x16xf32, #tpu.memory_space<vmem>>, vector<1x32x16xf32>
    %843 = vector.shape_cast %842 : vector<1x32x16xf32> to vector<32x16xf32>
    %cst_395 = arith.constant dense<0.000000e+00> : vector<16x16xf32>
    %844 = tpu.matmul %514, %843, %cst_395 {dimension_numbers = #tpu.dot_dimension_numbers<[1], [0], [0], [1], [0, 0, 1, 1], [], []>} : vector<16x32xf32>, vector<32x16xf32>, vector<16x16xf32> -> vector<16x16xf32>
    %845 = arith.addf %841, %844 : vector<16x16xf32>
    %c0_396 = arith.constant 0 : index
    %c0_397 = arith.constant 0 : index
    %846 = vector.load %arg66[%c0_396, %c0_397] : memref<1x16xf32, #tpu.memory_space<vmem>>, vector<1x16xf32>
    %847 = vector.broadcast %846 : vector<1x16xf32> to vector<16x16xf32>
    %848 = arith.addf %845, %847 : vector<16x16xf32>
    %cst_398 = arith.constant 0.000000e+00 : f32
    %849 = vector.broadcast %cst_398 : f32 to vector<16x16xf32>
    %850 = arith.maximumf %848, %849 : vector<16x16xf32>
    %cst_399 = arith.constant 0.000000e+00 : f32
    %851 = vector.broadcast %cst_399 : f32 to vector<16x16xf32>
    %852 = vector.extract_strided_slice %850 {offsets = [14, 0], sizes = [2, 16], strides = [1, 1]} : vector<16x16xf32> to vector<2x16xf32>
    %853 = vector.extract_strided_slice %850 {offsets = [0, 0], sizes = [14, 16], strides = [1, 1]} : vector<16x16xf32> to vector<14x16xf32>
    %854 = tpu.concatenate %852, %853 in 0 : vector<2x16xf32>, vector<14x16xf32> -> vector<16x16xf32>
    %cst_400 = arith.constant 0.000000e+00 : f32
    %855 = vector.shape_cast %327 : vector<16x1xi1> to vector<16x1xi1>
    %856 = vector.broadcast %855 : vector<16x1xi1> to vector<16x16xi1>
    %857 = vector.broadcast %cst_400 : f32 to vector<16x16xf32>
    %858 = arith.select %856, %854, %857 : vector<16x16xi1>, vector<16x16xf32>
    %c0_401 = arith.constant 0 : index
    %c0_402 = arith.constant 0 : index
    %c0_403 = arith.constant 0 : index
    %859 = vector.load %arg67[%c0_401, %c0_402, %c0_403] : memref<3x16x16xf32, #tpu.memory_space<vmem>>, vector<1x16x16xf32>
    %860 = vector.shape_cast %859 : vector<1x16x16xf32> to vector<16x16xf32>
    %cst_404 = arith.constant dense<0.000000e+00> : vector<16x16xf32>
    %861 = tpu.matmul %858, %860, %cst_404 {dimension_numbers = #tpu.dot_dimension_numbers<[1], [0], [0], [1], [0, 0, 1, 1], [], []>} : vector<16x16xf32>, vector<16x16xf32>, vector<16x16xf32> -> vector<16x16xf32>
    %862 = arith.addf %851, %861 : vector<16x16xf32>
    %863 = vector.extract_strided_slice %850 {offsets = [15, 0], sizes = [1, 16], strides = [1, 1]} : vector<16x16xf32> to vector<1x16xf32>
    %864 = vector.extract_strided_slice %850 {offsets = [0, 0], sizes = [15, 16], strides = [1, 1]} : vector<16x16xf32> to vector<15x16xf32>
    %865 = tpu.concatenate %863, %864 in 0 : vector<1x16xf32>, vector<15x16xf32> -> vector<16x16xf32>
    %cst_405 = arith.constant 0.000000e+00 : f32
    %866 = vector.shape_cast %357 : vector<16x1xi1> to vector<16x1xi1>
    %867 = vector.broadcast %866 : vector<16x1xi1> to vector<16x16xi1>
    %868 = vector.broadcast %cst_405 : f32 to vector<16x16xf32>
    %869 = arith.select %867, %865, %868 : vector<16x16xi1>, vector<16x16xf32>
    %c1_406 = arith.constant 1 : index
    %c0_407 = arith.constant 0 : index
    %c0_408 = arith.constant 0 : index
    %870 = vector.load %arg67[%c1_406, %c0_407, %c0_408] : memref<3x16x16xf32, #tpu.memory_space<vmem>>, vector<1x16x16xf32>
    %871 = vector.shape_cast %870 : vector<1x16x16xf32> to vector<16x16xf32>
    %cst_409 = arith.constant dense<0.000000e+00> : vector<16x16xf32>
    %872 = tpu.matmul %869, %871, %cst_409 {dimension_numbers = #tpu.dot_dimension_numbers<[1], [0], [0], [1], [0, 0, 1, 1], [], []>} : vector<16x16xf32>, vector<16x16xf32>, vector<16x16xf32> -> vector<16x16xf32>
    %873 = arith.addf %862, %872 : vector<16x16xf32>
    %c2_410 = arith.constant 2 : index
    %c0_411 = arith.constant 0 : index
    %c0_412 = arith.constant 0 : index
    %874 = vector.load %arg67[%c2_410, %c0_411, %c0_412] : memref<3x16x16xf32, #tpu.memory_space<vmem>>, vector<1x16x16xf32>
    %875 = vector.shape_cast %874 : vector<1x16x16xf32> to vector<16x16xf32>
    %cst_413 = arith.constant dense<0.000000e+00> : vector<16x16xf32>
    %876 = tpu.matmul %850, %875, %cst_413 {dimension_numbers = #tpu.dot_dimension_numbers<[1], [0], [0], [1], [0, 0, 1, 1], [], []>} : vector<16x16xf32>, vector<16x16xf32>, vector<16x16xf32> -> vector<16x16xf32>
    %877 = arith.addf %873, %876 : vector<16x16xf32>
    %c0_414 = arith.constant 0 : index
    %c0_415 = arith.constant 0 : index
    %878 = vector.load %arg68[%c0_414, %c0_415] : memref<1x16xf32, #tpu.memory_space<vmem>>, vector<1x16xf32>
    %879 = vector.broadcast %878 : vector<1x16xf32> to vector<16x16xf32>
    %880 = arith.addf %877, %879 : vector<16x16xf32>
    %cst_416 = arith.constant 0.000000e+00 : f32
    %881 = vector.broadcast %cst_416 : f32 to vector<16x16xf32>
    %882 = arith.maximumf %880, %881 : vector<16x16xf32>
    %c0_417 = arith.constant 0 : index
    %c0_418 = arith.constant 0 : index
    %883 = vector.load %arg69[%c0_417, %c0_418] : memref<32x16xf32, #tpu.memory_space<vmem>>, vector<32x16xf32>
    %cst_419 = arith.constant dense<0.000000e+00> : vector<16x16xf32>
    %884 = tpu.matmul %514, %883, %cst_419 {dimension_numbers = #tpu.dot_dimension_numbers<[1], [0], [0], [1], [0, 0, 1, 1], [], []>} : vector<16x32xf32>, vector<32x16xf32>, vector<16x16xf32> -> vector<16x16xf32>
    %c0_420 = arith.constant 0 : index
    %c0_421 = arith.constant 0 : index
    %885 = vector.load %arg70[%c0_420, %c0_421] : memref<1x16xf32, #tpu.memory_space<vmem>>, vector<1x16xf32>
    %886 = vector.broadcast %885 : vector<1x16xf32> to vector<16x16xf32>
    %887 = arith.addf %884, %886 : vector<16x16xf32>
    %888 = arith.addf %882, %887 : vector<16x16xf32>
    %cst_422 = arith.constant 0.000000e+00 : f32
    %889 = vector.broadcast %cst_422 : f32 to vector<16x16xf32>
    %890 = arith.maximumf %888, %889 : vector<16x16xf32>
    %cst_423 = arith.constant 0.000000e+00 : f32
    %891 = vector.broadcast %cst_423 : f32 to vector<16x16xf32>
    %892 = vector.extract_strided_slice %890 {offsets = [12, 0], sizes = [4, 16], strides = [1, 1]} : vector<16x16xf32> to vector<4x16xf32>
    %893 = vector.extract_strided_slice %890 {offsets = [0, 0], sizes = [12, 16], strides = [1, 1]} : vector<16x16xf32> to vector<12x16xf32>
    %894 = tpu.concatenate %892, %893 in 0 : vector<4x16xf32>, vector<12x16xf32> -> vector<16x16xf32>
    %cst_424 = arith.constant 0.000000e+00 : f32
    %895 = vector.shape_cast %437 : vector<16x1xi1> to vector<16x1xi1>
    %896 = vector.broadcast %895 : vector<16x1xi1> to vector<16x16xi1>
    %897 = vector.broadcast %cst_424 : f32 to vector<16x16xf32>
    %898 = arith.select %896, %894, %897 : vector<16x16xi1>, vector<16x16xf32>
    %c0_425 = arith.constant 0 : index
    %c0_426 = arith.constant 0 : index
    %c0_427 = arith.constant 0 : index
    %899 = vector.load %arg71[%c0_425, %c0_426, %c0_427] : memref<3x16x16xf32, #tpu.memory_space<vmem>>, vector<1x16x16xf32>
    %900 = vector.shape_cast %899 : vector<1x16x16xf32> to vector<16x16xf32>
    %cst_428 = arith.constant dense<0.000000e+00> : vector<16x16xf32>
    %901 = tpu.matmul %898, %900, %cst_428 {dimension_numbers = #tpu.dot_dimension_numbers<[1], [0], [0], [1], [0, 0, 1, 1], [], []>} : vector<16x16xf32>, vector<16x16xf32>, vector<16x16xf32> -> vector<16x16xf32>
    %902 = arith.addf %891, %901 : vector<16x16xf32>
    %903 = vector.extract_strided_slice %890 {offsets = [14, 0], sizes = [2, 16], strides = [1, 1]} : vector<16x16xf32> to vector<2x16xf32>
    %904 = vector.extract_strided_slice %890 {offsets = [0, 0], sizes = [14, 16], strides = [1, 1]} : vector<16x16xf32> to vector<14x16xf32>
    %905 = tpu.concatenate %903, %904 in 0 : vector<2x16xf32>, vector<14x16xf32> -> vector<16x16xf32>
    %cst_429 = arith.constant 0.000000e+00 : f32
    %906 = vector.shape_cast %327 : vector<16x1xi1> to vector<16x1xi1>
    %907 = vector.broadcast %906 : vector<16x1xi1> to vector<16x16xi1>
    %908 = vector.broadcast %cst_429 : f32 to vector<16x16xf32>
    %909 = arith.select %907, %905, %908 : vector<16x16xi1>, vector<16x16xf32>
    %c1_430 = arith.constant 1 : index
    %c0_431 = arith.constant 0 : index
    %c0_432 = arith.constant 0 : index
    %910 = vector.load %arg71[%c1_430, %c0_431, %c0_432] : memref<3x16x16xf32, #tpu.memory_space<vmem>>, vector<1x16x16xf32>
    %911 = vector.shape_cast %910 : vector<1x16x16xf32> to vector<16x16xf32>
    %cst_433 = arith.constant dense<0.000000e+00> : vector<16x16xf32>
    %912 = tpu.matmul %909, %911, %cst_433 {dimension_numbers = #tpu.dot_dimension_numbers<[1], [0], [0], [1], [0, 0, 1, 1], [], []>} : vector<16x16xf32>, vector<16x16xf32>, vector<16x16xf32> -> vector<16x16xf32>
    %913 = arith.addf %902, %912 : vector<16x16xf32>
    %c2_434 = arith.constant 2 : index
    %c0_435 = arith.constant 0 : index
    %c0_436 = arith.constant 0 : index
    %914 = vector.load %arg71[%c2_434, %c0_435, %c0_436] : memref<3x16x16xf32, #tpu.memory_space<vmem>>, vector<1x16x16xf32>
    %915 = vector.shape_cast %914 : vector<1x16x16xf32> to vector<16x16xf32>
    %cst_437 = arith.constant dense<0.000000e+00> : vector<16x16xf32>
    %916 = tpu.matmul %890, %915, %cst_437 {dimension_numbers = #tpu.dot_dimension_numbers<[1], [0], [0], [1], [0, 0, 1, 1], [], []>} : vector<16x16xf32>, vector<16x16xf32>, vector<16x16xf32> -> vector<16x16xf32>
    %917 = arith.addf %913, %916 : vector<16x16xf32>
    %c0_438 = arith.constant 0 : index
    %c0_439 = arith.constant 0 : index
    %918 = vector.load %arg72[%c0_438, %c0_439] : memref<1x16xf32, #tpu.memory_space<vmem>>, vector<1x16xf32>
    %919 = vector.broadcast %918 : vector<1x16xf32> to vector<16x16xf32>
    %920 = arith.addf %917, %919 : vector<16x16xf32>
    %cst_440 = arith.constant 0.000000e+00 : f32
    %921 = vector.broadcast %cst_440 : f32 to vector<16x16xf32>
    %922 = arith.maximumf %920, %921 : vector<16x16xf32>
    %cst_441 = arith.constant 0.000000e+00 : f32
    %923 = vector.broadcast %cst_441 : f32 to vector<16x16xf32>
    %924 = vector.extract_strided_slice %922 {offsets = [12, 0], sizes = [4, 16], strides = [1, 1]} : vector<16x16xf32> to vector<4x16xf32>
    %925 = vector.extract_strided_slice %922 {offsets = [0, 0], sizes = [12, 16], strides = [1, 1]} : vector<16x16xf32> to vector<12x16xf32>
    %926 = tpu.concatenate %924, %925 in 0 : vector<4x16xf32>, vector<12x16xf32> -> vector<16x16xf32>
    %cst_442 = arith.constant 0.000000e+00 : f32
    %927 = vector.shape_cast %437 : vector<16x1xi1> to vector<16x1xi1>
    %928 = vector.broadcast %927 : vector<16x1xi1> to vector<16x16xi1>
    %929 = vector.broadcast %cst_442 : f32 to vector<16x16xf32>
    %930 = arith.select %928, %926, %929 : vector<16x16xi1>, vector<16x16xf32>
    %c0_443 = arith.constant 0 : index
    %c0_444 = arith.constant 0 : index
    %c0_445 = arith.constant 0 : index
    %931 = vector.load %arg73[%c0_443, %c0_444, %c0_445] : memref<3x16x16xf32, #tpu.memory_space<vmem>>, vector<1x16x16xf32>
    %932 = vector.shape_cast %931 : vector<1x16x16xf32> to vector<16x16xf32>
    %cst_446 = arith.constant dense<0.000000e+00> : vector<16x16xf32>
    %933 = tpu.matmul %930, %932, %cst_446 {dimension_numbers = #tpu.dot_dimension_numbers<[1], [0], [0], [1], [0, 0, 1, 1], [], []>} : vector<16x16xf32>, vector<16x16xf32>, vector<16x16xf32> -> vector<16x16xf32>
    %934 = arith.addf %923, %933 : vector<16x16xf32>
    %935 = vector.extract_strided_slice %922 {offsets = [14, 0], sizes = [2, 16], strides = [1, 1]} : vector<16x16xf32> to vector<2x16xf32>
    %936 = vector.extract_strided_slice %922 {offsets = [0, 0], sizes = [14, 16], strides = [1, 1]} : vector<16x16xf32> to vector<14x16xf32>
    %937 = tpu.concatenate %935, %936 in 0 : vector<2x16xf32>, vector<14x16xf32> -> vector<16x16xf32>
    %cst_447 = arith.constant 0.000000e+00 : f32
    %938 = vector.shape_cast %327 : vector<16x1xi1> to vector<16x1xi1>
    %939 = vector.broadcast %938 : vector<16x1xi1> to vector<16x16xi1>
    %940 = vector.broadcast %cst_447 : f32 to vector<16x16xf32>
    %941 = arith.select %939, %937, %940 : vector<16x16xi1>, vector<16x16xf32>
    %c1_448 = arith.constant 1 : index
    %c0_449 = arith.constant 0 : index
    %c0_450 = arith.constant 0 : index
    %942 = vector.load %arg73[%c1_448, %c0_449, %c0_450] : memref<3x16x16xf32, #tpu.memory_space<vmem>>, vector<1x16x16xf32>
    %943 = vector.shape_cast %942 : vector<1x16x16xf32> to vector<16x16xf32>
    %cst_451 = arith.constant dense<0.000000e+00> : vector<16x16xf32>
    %944 = tpu.matmul %941, %943, %cst_451 {dimension_numbers = #tpu.dot_dimension_numbers<[1], [0], [0], [1], [0, 0, 1, 1], [], []>} : vector<16x16xf32>, vector<16x16xf32>, vector<16x16xf32> -> vector<16x16xf32>
    %945 = arith.addf %934, %944 : vector<16x16xf32>
    %c2_452 = arith.constant 2 : index
    %c0_453 = arith.constant 0 : index
    %c0_454 = arith.constant 0 : index
    %946 = vector.load %arg73[%c2_452, %c0_453, %c0_454] : memref<3x16x16xf32, #tpu.memory_space<vmem>>, vector<1x16x16xf32>
    %947 = vector.shape_cast %946 : vector<1x16x16xf32> to vector<16x16xf32>
    %cst_455 = arith.constant dense<0.000000e+00> : vector<16x16xf32>
    %948 = tpu.matmul %922, %947, %cst_455 {dimension_numbers = #tpu.dot_dimension_numbers<[1], [0], [0], [1], [0, 0, 1, 1], [], []>} : vector<16x16xf32>, vector<16x16xf32>, vector<16x16xf32> -> vector<16x16xf32>
    %949 = arith.addf %945, %948 : vector<16x16xf32>
    %c0_456 = arith.constant 0 : index
    %c0_457 = arith.constant 0 : index
    %950 = vector.load %arg74[%c0_456, %c0_457] : memref<1x16xf32, #tpu.memory_space<vmem>>, vector<1x16xf32>
    %951 = vector.broadcast %950 : vector<1x16xf32> to vector<16x16xf32>
    %952 = arith.addf %949, %951 : vector<16x16xf32>
    %cst_458 = arith.constant 0.000000e+00 : f32
    %953 = vector.broadcast %cst_458 : f32 to vector<16x16xf32>
    %954 = arith.maximumf %952, %953 : vector<16x16xf32>
    %955 = arith.addf %954, %890 : vector<16x16xf32>
    %cst_459 = arith.constant 0.000000e+00 : f32
    %956 = vector.broadcast %cst_459 : f32 to vector<16x16xf32>
    %957 = arith.maximumf %955, %956 : vector<16x16xf32>
    %c0_460 = arith.constant 0 : index
    %c0_461 = arith.constant 0 : index
    %958 = vector.load %arg75[%c0_460, %c0_461] : memref<32x16xf32, #tpu.memory_space<vmem>>, vector<32x16xf32>
    %cst_462 = arith.constant dense<0.000000e+00> : vector<16x16xf32>
    %959 = tpu.matmul %818, %958, %cst_462 {dimension_numbers = #tpu.dot_dimension_numbers<[1], [0], [0], [1], [0, 0, 1, 1], [], []>} : vector<16x32xf32>, vector<32x16xf32>, vector<16x16xf32> -> vector<16x16xf32>
    %c0_463 = arith.constant 0 : index
    %c0_464 = arith.constant 0 : index
    %960 = vector.load %arg76[%c0_463, %c0_464] : memref<1x16xf32, #tpu.memory_space<vmem>>, vector<1x16xf32>
    %961 = vector.broadcast %960 : vector<1x16xf32> to vector<16x16xf32>
    %962 = arith.addf %959, %961 : vector<16x16xf32>
    %c0_465 = arith.constant 0 : index
    %c0_466 = arith.constant 0 : index
    %963 = vector.load %arg77[%c0_465, %c0_466] : memref<32x16xf32, #tpu.memory_space<vmem>>, vector<16x16xf32>
    %cst_467 = arith.constant dense<0.000000e+00> : vector<16x16xf32>
    %964 = tpu.matmul %957, %963, %cst_467 {dimension_numbers = #tpu.dot_dimension_numbers<[1], [0], [0], [1], [0, 0, 1, 1], [], []>} : vector<16x16xf32>, vector<16x16xf32>, vector<16x16xf32> -> vector<16x16xf32>
    %c16_468 = arith.constant 16 : index
    %c0_469 = arith.constant 0 : index
    %965 = vector.load %arg77[%c16_468, %c0_469] : memref<32x16xf32, #tpu.memory_space<vmem>>, vector<16x16xf32>
    %cst_470 = arith.constant dense<0.000000e+00> : vector<16x16xf32>
    %966 = tpu.matmul %962, %965, %cst_470 {dimension_numbers = #tpu.dot_dimension_numbers<[1], [0], [0], [1], [0, 0, 1, 1], [], []>} : vector<16x16xf32>, vector<16x16xf32>, vector<16x16xf32> -> vector<16x16xf32>
    %967 = arith.addf %964, %966 : vector<16x16xf32>
    %c0_471 = arith.constant 0 : index
    %c0_472 = arith.constant 0 : index
    %968 = vector.load %arg78[%c0_471, %c0_472] : memref<1x16xf32, #tpu.memory_space<vmem>>, vector<1x16xf32>
    %969 = vector.broadcast %968 : vector<1x16xf32> to vector<16x16xf32>
    %970 = arith.addf %967, %969 : vector<16x16xf32>
    %971 = tpu.concatenate %513, %970 in 1 : vector<16x16xf32>, vector<16x16xf32> -> vector<16x32xf32>
    %c0_473 = arith.constant 0 : index
    %c0_474 = arith.constant 0 : index
    %972 = vector.load %arg79[%c0_473, %c0_474] : memref<16x32xf32, #tpu.memory_space<vmem>>, vector<16x32xf32>
    tpu.vector_store %arg79[%c0_473, %c0_474], %971 {strides = array<i32>} : memref<16x32xf32, #tpu.memory_space<vmem>>, vector<16x32xf32>,
    return
  }
  func.func @transform_0(%arg0: i32) -> (i32, i32) {
    %c0_i32 = arith.constant 0 : i32
    %c0_i32_0 = arith.constant 0 : i32
    %c0_i32_1 = arith.constant 0 : i32
    return %c0_i32, %c0_i32_0 : i32, i32
  }
  func.func @transform_1(%arg0: i32) -> (i32, i32) {
    %c0_i32 = arith.constant 0 : i32
    %c0_i32_0 = arith.constant 0 : i32
    %c0_i32_1 = arith.constant 0 : i32
    return %c0_i32, %c0_i32_0 : i32, i32
  }
  func.func @transform_2(%arg0: i32) -> (i32, i32) {
    %c0_i32 = arith.constant 0 : i32
    %c0_i32_0 = arith.constant 0 : i32
    %c0_i32_1 = arith.constant 0 : i32
    return %c0_i32, %c0_i32_0 : i32, i32
  }
  func.func @transform_3(%arg0: i32) -> (i32, i32) {
    %c0_i32 = arith.constant 0 : i32
    %c0_i32_0 = arith.constant 0 : i32
    %c0_i32_1 = arith.constant 0 : i32
    return %c0_i32, %c0_i32_0 : i32, i32
  }
  func.func @transform_4(%arg0: i32) -> (i32, i32) {
    %c0_i32 = arith.constant 0 : i32
    %c0_i32_0 = arith.constant 0 : i32
    %c0_i32_1 = arith.constant 0 : i32
    return %c0_i32, %c0_i32_0 : i32, i32
  }
  func.func @transform_5(%arg0: i32) -> (i32, i32) {
    %c0_i32 = arith.constant 0 : i32
    %c0_i32_0 = arith.constant 0 : i32
    %c0_i32_1 = arith.constant 0 : i32
    return %c0_i32, %c0_i32_0 : i32, i32
  }
  func.func @transform_6(%arg0: i32) -> (i32, i32) {
    %c0_i32 = arith.constant 0 : i32
    %c0_i32_0 = arith.constant 0 : i32
    %c0_i32_1 = arith.constant 0 : i32
    return %c0_i32, %c0_i32_0 : i32, i32
  }
  func.func @transform_7(%arg0: i32) -> (i32, i32) {
    %c0_i32 = arith.constant 0 : i32
    %c0_i32_0 = arith.constant 0 : i32
    %c0_i32_1 = arith.constant 0 : i32
    return %c0_i32, %c0_i32_0 : i32, i32
  }
  func.func @transform_8(%arg0: i32) -> (i32, i32) {
    %c0_i32 = arith.constant 0 : i32
    %c0_i32_0 = arith.constant 0 : i32
    %c0_i32_1 = arith.constant 0 : i32
    return %c0_i32, %c0_i32_0 : i32, i32
  }
  func.func @transform_9(%arg0: i32) -> (i32, i32) {
    %c0_i32 = arith.constant 0 : i32
    %c0_i32_0 = arith.constant 0 : i32
    %c0_i32_1 = arith.constant 0 : i32
    return %c0_i32, %c0_i32_0 : i32, i32
  }
  func.func @transform_10(%arg0: i32) -> (i32, i32) {
    %c0_i32 = arith.constant 0 : i32
    %c0_i32_0 = arith.constant 0 : i32
    %c0_i32_1 = arith.constant 0 : i32
    return %c0_i32, %c0_i32_0 : i32, i32
  }
  func.func @transform_11(%arg0: i32) -> (i32, i32) {
    %c0_i32 = arith.constant 0 : i32
    %c0_i32_0 = arith.constant 0 : i32
    %c0_i32_1 = arith.constant 0 : i32
    return %c0_i32, %c0_i32_0 : i32, i32
  }
  func.func @transform_12(%arg0: i32) -> (i32, i32) {
    %c0_i32 = arith.constant 0 : i32
    %c0_i32_0 = arith.constant 0 : i32
    %c0_i32_1 = arith.constant 0 : i32
    return %c0_i32, %c0_i32_0 : i32, i32
  }
  func.func @transform_13(%arg0: i32) -> (i32, i32) {
    %c0_i32 = arith.constant 0 : i32
    %c0_i32_0 = arith.constant 0 : i32
    %c0_i32_1 = arith.constant 0 : i32
    return %c0_i32, %c0_i32_0 : i32, i32
  }
  func.func @transform_14(%arg0: i32) -> (i32, i32) {
    %c0_i32 = arith.constant 0 : i32
    %c0_i32_0 = arith.constant 0 : i32
    %c0_i32_1 = arith.constant 0 : i32
    return %c0_i32, %c0_i32_0 : i32, i32
  }
  func.func @transform_15(%arg0: i32) -> (i32, i32) {
    %c0_i32 = arith.constant 0 : i32
    %c0_i32_0 = arith.constant 0 : i32
    %c0_i32_1 = arith.constant 0 : i32
    return %c0_i32, %c0_i32_0 : i32, i32
  }
  func.func @transform_16(%arg0: i32) -> (i32, i32) {
    %c0_i32 = arith.constant 0 : i32
    %c0_i32_0 = arith.constant 0 : i32
    %c0_i32_1 = arith.constant 0 : i32
    return %c0_i32, %c0_i32_0 : i32, i32
  }
  func.func @transform_17(%arg0: i32) -> (i32, i32) {
    %c0_i32 = arith.constant 0 : i32
    %c0_i32_0 = arith.constant 0 : i32
    %c0_i32_1 = arith.constant 0 : i32
    return %c0_i32, %c0_i32_0 : i32, i32
  }
  func.func @transform_18(%arg0: i32) -> (i32, i32) {
    %c0_i32 = arith.constant 0 : i32
    %c0_i32_0 = arith.constant 0 : i32
    %c0_i32_1 = arith.constant 0 : i32
    return %c0_i32, %c0_i32_0 : i32, i32
  }
  func.func @transform_19(%arg0: i32) -> (i32, i32) {
    %c0_i32 = arith.constant 0 : i32
    %c0_i32_0 = arith.constant 0 : i32
    %c0_i32_1 = arith.constant 0 : i32
    return %c0_i32, %c0_i32_0 : i32, i32
  }
  func.func @transform_20(%arg0: i32) -> (i32, i32) {
    %c0_i32 = arith.constant 0 : i32
    %c0_i32_0 = arith.constant 0 : i32
    %c0_i32_1 = arith.constant 0 : i32
    return %c0_i32, %c0_i32_0 : i32, i32
  }
  func.func @transform_21(%arg0: i32) -> (i32, i32) {
    %c0_i32 = arith.constant 0 : i32
    %c0_i32_0 = arith.constant 0 : i32
    %c0_i32_1 = arith.constant 0 : i32
    return %c0_i32, %c0_i32_0 : i32, i32
  }
  func.func @transform_22(%arg0: i32) -> (i32, i32) {
    %c0_i32 = arith.constant 0 : i32
    %c0_i32_0 = arith.constant 0 : i32
    %c0_i32_1 = arith.constant 0 : i32
    return %c0_i32, %c0_i32_0 : i32, i32
  }
  func.func @transform_23(%arg0: i32) -> (i32, i32) {
    %c0_i32 = arith.constant 0 : i32
    %c0_i32_0 = arith.constant 0 : i32
    %c0_i32_1 = arith.constant 0 : i32
    return %c0_i32, %c0_i32_0 : i32, i32
  }
  func.func @transform_24(%arg0: i32) -> (i32, i32) {
    %c0_i32 = arith.constant 0 : i32
    %c0_i32_0 = arith.constant 0 : i32
    %c0_i32_1 = arith.constant 0 : i32
    return %c0_i32, %c0_i32_0 : i32, i32
  }
  func.func @transform_25(%arg0: i32) -> (i32, i32) {
    %c0_i32 = arith.constant 0 : i32
    %c0_i32_0 = arith.constant 0 : i32
    %c0_i32_1 = arith.constant 0 : i32
    return %c0_i32, %c0_i32_0 : i32, i32
  }
  func.func @transform_26(%arg0: i32) -> (i32, i32, i32) {
    %c0_i32 = arith.constant 0 : i32
    %c0_i32_0 = arith.constant 0 : i32
    %c0_i32_1 = arith.constant 0 : i32
    %c0_i32_2 = arith.constant 0 : i32
    return %c0_i32, %c0_i32_0, %c0_i32_1 : i32, i32, i32
  }
  func.func @transform_27(%arg0: i32) -> (i32, i32) {
    %c0_i32 = arith.constant 0 : i32
    %c0_i32_0 = arith.constant 0 : i32
    %c0_i32_1 = arith.constant 0 : i32
    return %c0_i32, %c0_i32_0 : i32, i32
  }
  func.func @transform_28(%arg0: i32) -> (i32, i32, i32) {
    %c0_i32 = arith.constant 0 : i32
    %c0_i32_0 = arith.constant 0 : i32
    %c0_i32_1 = arith.constant 0 : i32
    %c0_i32_2 = arith.constant 0 : i32
    return %c0_i32, %c0_i32_0, %c0_i32_1 : i32, i32, i32
  }
  func.func @transform_29(%arg0: i32) -> (i32, i32) {
    %c0_i32 = arith.constant 0 : i32
    %c0_i32_0 = arith.constant 0 : i32
    %c0_i32_1 = arith.constant 0 : i32
    return %c0_i32, %c0_i32_0 : i32, i32
  }
  func.func @transform_30(%arg0: i32) -> (i32, i32) {
    %c0_i32 = arith.constant 0 : i32
    %c0_i32_0 = arith.constant 0 : i32
    %c0_i32_1 = arith.constant 0 : i32
    return %c0_i32, %c0_i32_0 : i32, i32
  }
  func.func @transform_31(%arg0: i32) -> (i32, i32) {
    %c0_i32 = arith.constant 0 : i32
    %c0_i32_0 = arith.constant 0 : i32
    %c0_i32_1 = arith.constant 0 : i32
    return %c0_i32, %c0_i32_0 : i32, i32
  }
  func.func @transform_32(%arg0: i32) -> (i32, i32, i32) {
    %c0_i32 = arith.constant 0 : i32
    %c0_i32_0 = arith.constant 0 : i32
    %c0_i32_1 = arith.constant 0 : i32
    %c0_i32_2 = arith.constant 0 : i32
    return %c0_i32, %c0_i32_0, %c0_i32_1 : i32, i32, i32
  }
  func.func @transform_33(%arg0: i32) -> (i32, i32) {
    %c0_i32 = arith.constant 0 : i32
    %c0_i32_0 = arith.constant 0 : i32
    %c0_i32_1 = arith.constant 0 : i32
    return %c0_i32, %c0_i32_0 : i32, i32
  }
  func.func @transform_34(%arg0: i32) -> (i32, i32, i32) {
    %c0_i32 = arith.constant 0 : i32
    %c0_i32_0 = arith.constant 0 : i32
    %c0_i32_1 = arith.constant 0 : i32
    %c0_i32_2 = arith.constant 0 : i32
    return %c0_i32, %c0_i32_0, %c0_i32_1 : i32, i32, i32
  }
  func.func @transform_35(%arg0: i32) -> (i32, i32) {
    %c0_i32 = arith.constant 0 : i32
    %c0_i32_0 = arith.constant 0 : i32
    %c0_i32_1 = arith.constant 0 : i32
    return %c0_i32, %c0_i32_0 : i32, i32
  }
  func.func @transform_36(%arg0: i32) -> (i32, i32) {
    %c0_i32 = arith.constant 0 : i32
    %c0_i32_0 = arith.constant 0 : i32
    %c0_i32_1 = arith.constant 0 : i32
    return %c0_i32, %c0_i32_0 : i32, i32
  }
  func.func @transform_37(%arg0: i32) -> (i32, i32) {
    %c0_i32 = arith.constant 0 : i32
    %c0_i32_0 = arith.constant 0 : i32
    %c0_i32_1 = arith.constant 0 : i32
    return %c0_i32, %c0_i32_0 : i32, i32
  }
  func.func @transform_38(%arg0: i32) -> (i32, i32) {
    %c0_i32 = arith.constant 0 : i32
    %c0_i32_0 = arith.constant 0 : i32
    %c0_i32_1 = arith.constant 0 : i32
    return %c0_i32, %c0_i32_0 : i32, i32
  }
  func.func @transform_39(%arg0: i32) -> (i32, i32) {
    %c0_i32 = arith.constant 0 : i32
    %c0_i32_0 = arith.constant 0 : i32
    %c0_i32_1 = arith.constant 0 : i32
    return %c0_i32, %c0_i32_0 : i32, i32
  }
  func.func @transform_40(%arg0: i32) -> (i32, i32) {
    %c0_i32 = arith.constant 0 : i32
    %c0_i32_0 = arith.constant 0 : i32
    %c0_i32_1 = arith.constant 0 : i32
    return %c0_i32, %c0_i32_0 : i32, i32
  }
  func.func @transform_41(%arg0: i32) -> (i32, i32) {
    %c0_i32 = arith.constant 0 : i32
    %c0_i32_0 = arith.constant 0 : i32
    %c0_i32_1 = arith.constant 0 : i32
    return %c0_i32, %c0_i32_0 : i32, i32
  }
  func.func @transform_42(%arg0: i32) -> (i32, i32) {
    %c0_i32 = arith.constant 0 : i32
    %c0_i32_0 = arith.constant 0 : i32
    %c0_i32_1 = arith.constant 0 : i32
    return %c0_i32, %c0_i32_0 : i32, i32
  }
  func.func @transform_43(%arg0: i32) -> (i32, i32) {
    %c0_i32 = arith.constant 0 : i32
    %c0_i32_0 = arith.constant 0 : i32
    %c0_i32_1 = arith.constant 0 : i32
    return %c0_i32, %c0_i32_0 : i32, i32
  }
  func.func @transform_44(%arg0: i32) -> (i32, i32) {
    %c0_i32 = arith.constant 0 : i32
    %c0_i32_0 = arith.constant 0 : i32
    %c0_i32_1 = arith.constant 0 : i32
    return %c0_i32, %c0_i32_0 : i32, i32
  }
  func.func @transform_45(%arg0: i32) -> (i32, i32) {
    %c0_i32 = arith.constant 0 : i32
    %c0_i32_0 = arith.constant 0 : i32
    %c0_i32_1 = arith.constant 0 : i32
    return %c0_i32, %c0_i32_0 : i32, i32
  }
  func.func @transform_46(%arg0: i32) -> (i32, i32) {
    %c0_i32 = arith.constant 0 : i32
    %c0_i32_0 = arith.constant 0 : i32
    %c0_i32_1 = arith.constant 0 : i32
    return %c0_i32, %c0_i32_0 : i32, i32
  }
  func.func @transform_47(%arg0: i32) -> (i32, i32) {
    %c0_i32 = arith.constant 0 : i32
    %c0_i32_0 = arith.constant 0 : i32
    %c0_i32_1 = arith.constant 0 : i32
    return %c0_i32, %c0_i32_0 : i32, i32
  }
  func.func @transform_48(%arg0: i32) -> (i32, i32) {
    %c0_i32 = arith.constant 0 : i32
    %c0_i32_0 = arith.constant 0 : i32
    %c0_i32_1 = arith.constant 0 : i32
    return %c0_i32, %c0_i32_0 : i32, i32
  }
  func.func @transform_49(%arg0: i32) -> (i32, i32) {
    %c0_i32 = arith.constant 0 : i32
    %c0_i32_0 = arith.constant 0 : i32
    %c0_i32_1 = arith.constant 0 : i32
    return %c0_i32, %c0_i32_0 : i32, i32
  }
  func.func @transform_50(%arg0: i32) -> (i32, i32) {
    %c0_i32 = arith.constant 0 : i32
    %c0_i32_0 = arith.constant 0 : i32
    %c0_i32_1 = arith.constant 0 : i32
    return %c0_i32, %c0_i32_0 : i32, i32
  }
  func.func @transform_51(%arg0: i32) -> (i32, i32) {
    %c0_i32 = arith.constant 0 : i32
    %c0_i32_0 = arith.constant 0 : i32
    %c0_i32_1 = arith.constant 0 : i32
    return %c0_i32, %c0_i32_0 : i32, i32
  }
  func.func @transform_52(%arg0: i32) -> (i32, i32) {
    %c0_i32 = arith.constant 0 : i32
    %c0_i32_0 = arith.constant 0 : i32
    %c0_i32_1 = arith.constant 0 : i32
    return %c0_i32, %c0_i32_0 : i32, i32
  }
  func.func @transform_53(%arg0: i32) -> (i32, i32) {
    %c0_i32 = arith.constant 0 : i32
    %c0_i32_0 = arith.constant 0 : i32
    %c0_i32_1 = arith.constant 0 : i32
    return %c0_i32, %c0_i32_0 : i32, i32
  }
  func.func @transform_54(%arg0: i32) -> (i32, i32) {
    %c0_i32 = arith.constant 0 : i32
    %c0_i32_0 = arith.constant 0 : i32
    %c0_i32_1 = arith.constant 0 : i32
    return %c0_i32, %c0_i32_0 : i32, i32
  }
  func.func @transform_55(%arg0: i32) -> (i32, i32) {
    %c0_i32 = arith.constant 0 : i32
    %c0_i32_0 = arith.constant 0 : i32
    %c0_i32_1 = arith.constant 0 : i32
    return %c0_i32, %c0_i32_0 : i32, i32
  }
  func.func @transform_56(%arg0: i32) -> (i32, i32) {
    %c0_i32 = arith.constant 0 : i32
    %c0_i32_0 = arith.constant 0 : i32
    %c0_i32_1 = arith.constant 0 : i32
    return %c0_i32, %c0_i32_0 : i32, i32
  }
  func.func @transform_57(%arg0: i32) -> (i32, i32) {
    %c0_i32 = arith.constant 0 : i32
    %c0_i32_0 = arith.constant 0 : i32
    %c0_i32_1 = arith.constant 0 : i32
    return %c0_i32, %c0_i32_0 : i32, i32
  }
  func.func @transform_58(%arg0: i32) -> (i32, i32) {
    %c0_i32 = arith.constant 0 : i32
    %c0_i32_0 = arith.constant 0 : i32
    %c0_i32_1 = arith.constant 0 : i32
    return %c0_i32, %c0_i32_0 : i32, i32
  }
  func.func @transform_59(%arg0: i32) -> (i32, i32) {
    %c0_i32 = arith.constant 0 : i32
    %c0_i32_0 = arith.constant 0 : i32
    %c0_i32_1 = arith.constant 0 : i32
    return %c0_i32, %c0_i32_0 : i32, i32
  }
  func.func @transform_60(%arg0: i32) -> (i32, i32) {
    %c0_i32 = arith.constant 0 : i32
    %c0_i32_0 = arith.constant 0 : i32
    %c0_i32_1 = arith.constant 0 : i32
    return %c0_i32, %c0_i32_0 : i32, i32
  }
  func.func @transform_61(%arg0: i32) -> (i32, i32) {
    %c0_i32 = arith.constant 0 : i32
    %c0_i32_0 = arith.constant 0 : i32
    %c0_i32_1 = arith.constant 0 : i32
    return %c0_i32, %c0_i32_0 : i32, i32
  }
  func.func @transform_62(%arg0: i32) -> (i32, i32) {
    %c0_i32 = arith.constant 0 : i32
    %c0_i32_0 = arith.constant 0 : i32
    %c0_i32_1 = arith.constant 0 : i32
    return %c0_i32, %c0_i32_0 : i32, i32
  }
  func.func @transform_63(%arg0: i32) -> (i32, i32) {
    %c0_i32 = arith.constant 0 : i32
    %c0_i32_0 = arith.constant 0 : i32
    %c0_i32_1 = arith.constant 0 : i32
    return %c0_i32, %c0_i32_0 : i32, i32
  }
  func.func @transform_64(%arg0: i32) -> (i32, i32, i32) {
    %c0_i32 = arith.constant 0 : i32
    %c0_i32_0 = arith.constant 0 : i32
    %c0_i32_1 = arith.constant 0 : i32
    %c0_i32_2 = arith.constant 0 : i32
    return %c0_i32, %c0_i32_0, %c0_i32_1 : i32, i32, i32
  }
  func.func @transform_65(%arg0: i32) -> (i32, i32) {
    %c0_i32 = arith.constant 0 : i32
    %c0_i32_0 = arith.constant 0 : i32
    %c0_i32_1 = arith.constant 0 : i32
    return %c0_i32, %c0_i32_0 : i32, i32
  }
  func.func @transform_66(%arg0: i32) -> (i32, i32, i32) {
    %c0_i32 = arith.constant 0 : i32
    %c0_i32_0 = arith.constant 0 : i32
    %c0_i32_1 = arith.constant 0 : i32
    %c0_i32_2 = arith.constant 0 : i32
    return %c0_i32, %c0_i32_0, %c0_i32_1 : i32, i32, i32
  }
  func.func @transform_67(%arg0: i32) -> (i32, i32) {
    %c0_i32 = arith.constant 0 : i32
    %c0_i32_0 = arith.constant 0 : i32
    %c0_i32_1 = arith.constant 0 : i32
    return %c0_i32, %c0_i32_0 : i32, i32
  }
  func.func @transform_68(%arg0: i32) -> (i32, i32) {
    %c0_i32 = arith.constant 0 : i32
    %c0_i32_0 = arith.constant 0 : i32
    %c0_i32_1 = arith.constant 0 : i32
    return %c0_i32, %c0_i32_0 : i32, i32
  }
  func.func @transform_69(%arg0: i32) -> (i32, i32) {
    %c0_i32 = arith.constant 0 : i32
    %c0_i32_0 = arith.constant 0 : i32
    %c0_i32_1 = arith.constant 0 : i32
    return %c0_i32, %c0_i32_0 : i32, i32
  }
  func.func @transform_70(%arg0: i32) -> (i32, i32, i32) {
    %c0_i32 = arith.constant 0 : i32
    %c0_i32_0 = arith.constant 0 : i32
    %c0_i32_1 = arith.constant 0 : i32
    %c0_i32_2 = arith.constant 0 : i32
    return %c0_i32, %c0_i32_0, %c0_i32_1 : i32, i32, i32
  }
  func.func @transform_71(%arg0: i32) -> (i32, i32) {
    %c0_i32 = arith.constant 0 : i32
    %c0_i32_0 = arith.constant 0 : i32
    %c0_i32_1 = arith.constant 0 : i32
    return %c0_i32, %c0_i32_0 : i32, i32
  }
  func.func @transform_72(%arg0: i32) -> (i32, i32, i32) {
    %c0_i32 = arith.constant 0 : i32
    %c0_i32_0 = arith.constant 0 : i32
    %c0_i32_1 = arith.constant 0 : i32
    %c0_i32_2 = arith.constant 0 : i32
    return %c0_i32, %c0_i32_0, %c0_i32_1 : i32, i32, i32
  }
  func.func @transform_73(%arg0: i32) -> (i32, i32) {
    %c0_i32 = arith.constant 0 : i32
    %c0_i32_0 = arith.constant 0 : i32
    %c0_i32_1 = arith.constant 0 : i32
    return %c0_i32, %c0_i32_0 : i32, i32
  }
  func.func @transform_74(%arg0: i32) -> (i32, i32) {
    %c0_i32 = arith.constant 0 : i32
    %c0_i32_0 = arith.constant 0 : i32
    %c0_i32_1 = arith.constant 0 : i32
    return %c0_i32, %c0_i32_0 : i32, i32
  }
  func.func @transform_75(%arg0: i32) -> (i32, i32) {
    %c0_i32 = arith.constant 0 : i32
    %c0_i32_0 = arith.constant 0 : i32
    %c0_i32_1 = arith.constant 0 : i32
    return %c0_i32, %c0_i32_0 : i32, i32
  }
  func.func @transform_76(%arg0: i32) -> (i32, i32) {
    %c0_i32 = arith.constant 0 : i32
    %c0_i32_0 = arith.constant 0 : i32
    %c0_i32_1 = arith.constant 0 : i32
    return %c0_i32, %c0_i32_0 : i32, i32
  }
  func.func @transform_77(%arg0: i32) -> (i32, i32) {
    %c0_i32 = arith.constant 0 : i32
    %c0_i32_0 = arith.constant 0 : i32
    %c0_i32_1 = arith.constant 0 : i32
    return %c0_i32, %c0_i32_0 : i32, i32
  }
  func.func @transform_78(%arg0: i32) -> (i32, i32) {
    %c0_i32 = arith.constant 0 : i32
    %c0_i32_0 = arith.constant 0 : i32
    %c0_i32_1 = arith.constant 0 : i32
    return %c0_i32, %c0_i32_0 : i32, i32
  }
}

</mosaic_0001>

<bundles_post_ra>
// kernel: cross_tbert_forward.1
= control target key start
LH: loop header
LB: loop body
LE: loop exit
PB: predicated region body
PF: predicated region fallthrough
CT: control target
= control target key end

     0   :  { %s14669_s6 = smov 1   ;;  %s14670_s10 = smov 2   ;;  %s16421_s0 = inlined_call_operand.smem [shape: u32[79], index: -1, kind: input, shape index: {}] }
   0x1   :  { %s14806_s5 = sld [smem:[%s16421_s0]]   ;;  %s14671_s14 = smov 3  }
   0x2   :  { %s14811_s9 = sld [smem:[%s16421_s0 + %s14669_s6]]   ;;  %s14672_s18 = smov 4  }
   0x3   :  { %s14816_s13 = sld [smem:[%s16421_s0 + %s14670_s10]]   ;;  %s14673_s22 = smov 5  }
   0x4   :  { %s14821_s17 = sld [smem:[%s16421_s0 + %s14671_s14]]   ;;  %s14674_s26 = smov 6  }
   0x5   :  { %s14826_s21 = sld [smem:[%s16421_s0 + %s14672_s18]]   ;;  %s14675_s30 = smov 7  }
   0x6   :  { %s14831_s25 = sld [smem:[%s16421_s0 + %s14673_s22]]   ;;  %s14676_s4 = smov 8  }
   0x7   :  { %16453 = sst [smem:[#allocation77_spill]] %s14806_s5  ;;  %s14677_s10 = smov 9  }
   0x8   :  { %16454 = sst [smem:[#allocation78_spill]] %s14811_s9  ;;  %s14678_s15 = smov 10  }
   0x9   :  { %16455 = sst [smem:[#allocation79_spill]] %s14816_s13  ;;  %s14679_s20 = smov 11  }
   0xa   :  { %16456 = sst [smem:[#allocation80_spill]] %s14821_s17  ;;  %s14681_s1 = smov 13  }
   0xb   :  { %16457 = sst [smem:[#allocation81_spill]] %s14826_s21  ;;  %s14682_s7 = smov 14  }
   0xc   :  { %16458 = sst [smem:[#allocation82_spill]] %s14831_s25  ;;  %s14684_s22 = smov 16  }
   0xd   :  { %s14836_s29 = sld [smem:[%s16421_s0 + %s14674_s26]]   ;;  %s14680_s26 = smov 12  }
   0xe   :  { %s14841_s3 = sld [smem:[%s16421_s0 + %s14675_s30]]   ;;  %s14685_s28 = smov 17  }
   0xf   :  { %s14846_s8 = sld [smem:[%s16421_s0 + %s14676_s4]]  }
  0x10   :  { %s14851_s14 = sld [smem:[%s16421_s0 + %s14677_s10]]  }
  0x11   :  { %s14856_s19 = sld [smem:[%s16421_s0 + %s14678_s15]]   ;;  %s14683_s15 = smov 15  }
  0x12   :  { %s14861_s24 = sld [smem:[%s16421_s0 + %s14679_s20]]  }
  0x13   :  { %16459 = sst [smem:[#allocation83_spill]] %s14836_s29 }
  0x14   :  { %16460 = sst [smem:[#allocation84_spill]] %s14841_s3 }
  0x15   :  { %16461 = sst [smem:[#allocation85_spill]] %s14846_s8 }
  0x16   :  { %16462 = sst [smem:[#allocation86_spill]] %s14851_s14 }
  0x17   :  { %16463 = sst [smem:[#allocation87_spill]] %s14856_s19 }
  0x18   :  { %16464 = sst [smem:[#allocation88_spill]] %s14861_s24 }
  0x19   :  { %s14866_s30 = sld [smem:[%s16421_s0 + %s14680_s26]]  }
  0x1a   :  { %s14871_s6 = sld [smem:[%s16421_s0 + %s14681_s1]]  }
  0x1b   :  { %s14876_s12 = sld [smem:[%s16421_s0 + %s14682_s7]]   ;;  %s14686_s7 = smov 18  }
  0x1c   :  { %s14881_s20 = sld [smem:[%s16421_s0 + %s14683_s15]]   ;;  %s14687_s15 = smov 19  }
  0x1d   :  { %s14886_s27 = sld [smem:[%s16421_s0 + %s14684_s22]]   ;;  %s14688_s22 = smov 20  }
  0x1e   :  { %s14891_s4 = sld [smem:[%s16421_s0 + %s14685_s28]]   ;;  %s14689_s28 = smov 21  }
  0x1f   :  { %16465 = sst [smem:[#allocation89_spill]] %s14866_s30 }
  0x20   :  { %16466 = sst [smem:[#allocation90_spill]] %s14871_s6 }
  0x21   :  { %16467 = sst [smem:[#allocation91_spill]] %s14876_s12 }
  0x22   :  { %16468 = sst [smem:[#allocation92_spill]] %s14881_s20 }
  0x23   :  { %16469 = sst [smem:[#allocation93_spill]] %s14886_s27 }
  0x24   :  { %16470 = sst [smem:[#allocation94_spill]] %s14891_s4 }
  0x25   :  { %s14896_s9 = sld [smem:[%s16421_s0 + %s14686_s7]]   ;;  %s14690_s7 = smov 22  }
  0x26   :  { %s14901_s20 = sld [smem:[%s16421_s0 + %s14687_s15]]   ;;  %s14691_s15 = smov 23  }
  0x27   :  { %s14906_s27 = sld [smem:[%s16421_s0 + %s14688_s22]]   ;;  %s14692_s22 = smov 24  }
  0x28   :  { %s14911_s6 = sld [smem:[%s16421_s0 + %s14689_s28]]   ;;  %s14693_s28 = smov 25  }
  0x29   :  { %s14916_s30 = sld [smem:[%s16421_s0 + %s14690_s7]]   ;;  %s14694_s7 = smov 26  }
  0x2a   :  { %s14921_s12 = sld [smem:[%s16421_s0 + %s14691_s15]]   ;;  %s14695_s15 = smov 27  }
  0x2b   :  { %s14931_s24 = sld [smem:[%s16421_s0 + %s14693_s28]]   ;;  %s14697_s28 = smov 29  }
  0x2c   :  { %16471 = sst [smem:[#allocation95_spill]] %s14901_s20 }
  0x2d   :  { %16472 = sst [smem:[#allocation96_spill]] %s14906_s27 }
  0x2e   :  { %s14926_s27 = sld [smem:[%s16421_s0 + %s14692_s22]]   ;;  %s14696_s22 = smov 28  }
  0x2f   :  { %16473 = sst [smem:[#allocation97_spill]] %s14916_s30 }
  0x30   :  { %16474 = sst [smem:[#allocation98_spill]] %s14921_s12 }
  0x31   :  { %16475 = sst [smem:[#allocation99_spill]] %s14931_s24 }
  0x32   :  { %s14936_s30 = sld [smem:[%s16421_s0 + %s14694_s7]]   ;;  %s14698_s7 = smov 30  }
  0x33   :  { %s14941_s14 = sld [smem:[%s16421_s0 + %s14695_s15]]   ;;  %s14699_s15 = smov 31  }
  0x34   :  { %s14946_s3 = sld [smem:[%s16421_s0 + %s14696_s22]]   ;;  %s14700_s22 = smov 32  }
  0x35   :  { %s14951_s29 = sld [smem:[%s16421_s0 + %s14697_s28]]   ;;  %s14701_s28 = smov 33  }
  0x36   :  { %s14961_s19 = sld [smem:[%s16421_s0 + %s14699_s15]]   ;;  %s14703_s15 = smov 35  }
  0x37   :  { %s14971_s8 = sld [smem:[%s16421_s0 + %s14701_s28]]   ;;  %s14705_s28 = smov 37  }
  0x38   :  { %16476 = sst [smem:[#allocation100_spill]] %s14936_s30 }
  0x39   :  { %s14956_s30 = sld [smem:[%s16421_s0 + %s14698_s7]]   ;;  %s14702_s7 = smov 34  }
  0x3a   :  { %16477 = sst [smem:[#allocation101_spill]] %s14946_s3 }
  0x3b   :  { %16478 = sst [smem:[#allocation102_spill]] %s14951_s29 }
  0x3c   :  { %s14966_s3 = sld [smem:[%s16421_s0 + %s14700_s22]]   ;;  %s14704_s22 = smov 36  }
  0x3d   :  { %16481 = sst [smem:[#allocation105_spill]] %s14971_s8 }
  0x3e   :  { %s14981_s25 = sld [smem:[%s16421_s0 + %s14703_s15]]   ;;  %s14707_s15 = smov 39  }
  0x3f   :  { %16479 = sst [smem:[#allocation103_spill]] %s14956_s30 }
  0x40   :  { %s14976_s30 = sld [smem:[%s16421_s0 + %s14702_s7]]   ;;  %s14706_s7 = smov 38  }
  0x41   :  { %s14991_s21 = sld [smem:[%s16421_s0 + %s14705_s28]]   ;;  %s14709_s28 = smov 41  }
  0x42   :  { %16480 = sst [smem:[#allocation104_spill]] %s14966_s3 }
  0x43   :  { %s14986_s3 = sld [smem:[%s16421_s0 + %s14704_s22]]   ;;  %s14708_s22 = smov 40  }
  0x44   :  { %s15001_s17 = sld [smem:[%s16421_s0 + %s14707_s15]]   ;;  %s14711_s15 = smov 43  }
  0x45   :  { %s15011_s5 = sld [smem:[%s16421_s0 + %s14709_s28]]   ;;  %s14713_s28 = smov 45  }
  0x46   :  { %16482 = sst [smem:[#allocation106_spill]] %s14976_s30 }
  0x47   :  { %16484 = sst [smem:[#allocation108_spill]] %s14991_s21 }
  0x48   :  { %s14996_s30 = sld [smem:[%s16421_s0 + %s14706_s7]]   ;;  %s14710_s7 = smov 42  }
  0x49   :  { %16483 = sst [smem:[#allocation107_spill]] %s14986_s3 }
  0x4a   :  { %s15006_s3 = sld [smem:[%s16421_s0 + %s14708_s22]]   ;;  %s14712_s22 = smov 44  }
  0x4b   :  { %16487 = sst [smem:[#allocation111_spill]] %s15011_s5 }
  0x4c   :  { %s15021_s13 = sld [smem:[%s16421_s0 + %s14711_s15]]   ;;  %s14715_s15 = smov 47  }
  0x4d   :  { %s15031_s5 = sld [smem:[%s16421_s0 + %s14713_s28]]   ;;  %s14717_s28 = smov 49  }
  0x4e   :  { %16485 = sst [smem:[#allocation109_spill]] %s14996_s30 }
  0x4f   :  { %s15016_s30 = sld [smem:[%s16421_s0 + %s14710_s7]]   ;;  %s14714_s7 = smov 46  }
  0x50   :  { %16486 = sst [smem:[#allocation110_spill]] %s15006_s3 }
  0x51   :  { %s15026_s3 = sld [smem:[%s16421_s0 + %s14712_s22]]   ;;  %s14716_s22 = smov 48  }
  0x52   :  { %s15041_s21 = sld [smem:[%s16421_s0 + %s14715_s15]]   ;;  %s14719_s15 = smov 51  }
  0x53   :  { %s15051_s8 = sld [smem:[%s16421_s0 + %s14717_s28]]   ;;  %s14721_s28 = smov 53  }
  0x54   :  { %s15071_s29 = sld [smem:[%s16421_s0 + %s14721_s28]]   ;;  %s14725_s28 = smov 57  }
  0x55   :  { %16488 = sst [smem:[#allocation112_spill]] %s15016_s30 }
  0x56   :  { %s15036_s30 = sld [smem:[%s16421_s0 + %s14714_s7]]   ;;  %s14718_s7 = smov 50  }
  0x57   :  { %16489 = sst [smem:[#allocation113_spill]] %s15026_s3 }
  0x58   :  { %16491 = sst [smem:[#allocation115_spill]] %s15041_s21 }
  0x59   :  { %s15046_s3 = sld [smem:[%s16421_s0 + %s14716_s22]]   ;;  %s14720_s22 = smov 52  }
  0x5a   :  { %s15061_s21 = sld [smem:[%s16421_s0 + %s14719_s15]]   ;;  %s14723_s15 = smov 55  }
  0x5b   :  { %16495 = sst [smem:[#allocation119_spill]] %s15071_s29 }
  0x5c   :  { %16490 = sst [smem:[#allocation114_spill]] %s15036_s30 }
  0x5d   :  { %s15056_s30 = sld [smem:[%s16421_s0 + %s14718_s7]]   ;;  %s14722_s7 = smov 54  }
  0x5e   :  { %s15081_s24 = sld [smem:[%s16421_s0 + %s14723_s15]]   ;;  %s14727_s15 = smov 59  }
  0x5f   :  { %16492 = sst [smem:[#allocation116_spill]] %s15046_s3 }
  0x60   :  { %s15066_s3 = sld [smem:[%s16421_s0 + %s14720_s22]]   ;;  %s14724_s22 = smov 56  }
  0x61   :  { %s15091_s29 = sld [smem:[%s16421_s0 + %s14725_s28]]   ;;  %s14729_s28 = smov 61  }
  0x62   :  { %s15101_s12 = sld [smem:[%s16421_s0 + %s14727_s15]]   ;;  %s14731_s15 = smov 63  }
  0x63   :  { %16493 = sst [smem:[#allocation117_spill]] %s15056_s30 }
  0x64   :  { %s15076_s30 = sld [smem:[%s16421_s0 + %s14722_s7]]   ;;  %s14726_s7 = smov 58  }
  0x65   :  { %s15111_s20 = sld [smem:[%s16421_s0 + %s14729_s28]]   ;;  %s14733_s28 = smov 65  }
  0x66   :  { %16494 = sst [smem:[#allocation118_spill]] %s15066_s3 }
  0x67   :  { %s15086_s3 = sld [smem:[%s16421_s0 + %s14724_s22]]   ;;  %s14728_s22 = smov 60  }
  0x68   :  { %16499 = sst [smem:[#allocation123_spill]] %s15101_s12 }
  0x69   :  { %s15121_s12 = sld [smem:[%s16421_s0 + %s14731_s15]]   ;;  %s14735_s15 = smov 67  }
  0x6a   :  { %16496 = sst [smem:[#allocation120_spill]] %s15076_s30 }
  0x6b   :  { %s15096_s30 = sld [smem:[%s16421_s0 + %s14726_s7]]   ;;  %s14730_s7 = smov 62  }
  0x6c   :  { %s15131_s4 = sld [smem:[%s16421_s0 + %s14733_s28]]   ;;  %s14737_s28 = smov 69  }
  0x6d   :  { %16497 = sst [smem:[#allocation121_spill]] %s15086_s3 }
  0x6e   :  { %s15106_s3 = sld [smem:[%s16421_s0 + %s14728_s22]]   ;;  %s14732_s22 = smov 64  }
  0x6f   :  { %16502 = sst [smem:[#allocation126_spill]] %s15121_s12 }
  0x70   :  { %s15141_s12 = sld [smem:[%s16421_s0 + %s14735_s15]]   ;;  %s14739_s15 = smov 71  }
  0x71   :  { %16498 = sst [smem:[#allocation122_spill]] %s15096_s30 }
  0x72   :  { %s15116_s30 = sld [smem:[%s16421_s0 + %s14730_s7]]   ;;  %s14734_s7 = smov 66  }
  0x73   :  { %16504 = sst [smem:[#allocation128_spill]] %s15131_s4 }
  0x74   :  { %16500 = sst [smem:[#allocation124_spill]] %s15106_s3 }
  0x75   :  { %s15126_s3 = sld [smem:[%s16421_s0 + %s14732_s22]]   ;;  %s14736_s22 = smov 68  }
  0x76   :  { %16506 = sst [smem:[#allocation130_spill]] %s15141_s12 }
  0x77   :  { %s15151_s4 = sld [smem:[%s16421_s0 + %s14737_s28]]   ;;  %s14741_s28 = smov 73  }
  0x78   :  { %16501 = sst [smem:[#allocation125_spill]] %s15116_s30 }
  0x79   :  { %s15136_s30 = sld [smem:[%s16421_s0 + %s14734_s7]]   ;;  %s14738_s7 = smov 70  }
  0x7a   :  { %s15161_s12 = sld [smem:[%s16421_s0 + %s14739_s15]]   ;;  %s14743_s15 = smov 75  }
  0x7b   :  { %16503 = sst [smem:[#allocation127_spill]] %s15126_s3 }
  0x7c   :  { %s15146_s3 = sld [smem:[%s16421_s0 + %s14736_s22]]   ;;  %s14740_s22 = smov 72  }
  0x7d   :  { %16508 = sst [smem:[#allocation132_spill]] %s15151_s4 }
  0x7e   :  { %s15171_s4 = sld [smem:[%s16421_s0 + %s14741_s28]]   ;;  %s14745_s28 = smov 77  }
  0x7f   :  { %16505 = sst [smem:[#allocation129_spill]] %s15136_s30 }
  0x80   :  { %s15156_s30 = sld [smem:[%s16421_s0 + %s14738_s7]]   ;;  %s14742_s7 = smov 74  }
  0x81   :  { %16510 = sst [smem:[#allocation134_spill]] %s15161_s12 }
  0x82   :  { %16507 = sst [smem:[#allocation131_spill]] %s15146_s3 }
  0x83   :  { %s15166_s3 = sld [smem:[%s16421_s0 + %s14740_s22]]   ;;  %s14744_s22 = smov 76  }
  0x84   :  { %16512 = sst [smem:[#allocation136_spill]] %s15171_s4 }
  0x85   :  { %s15181_s12 = sld [smem:[%s16421_s0 + %s14743_s15]]  }
  0x86   :  { %16509 = sst [smem:[#allocation133_spill]] %s15156_s30 }
  0x87   :  { %s15176_s30 = sld [smem:[%s16421_s0 + %s14742_s7]]   ;;  %s14746_s7 = smov 78  }
  0x88   :  { %s15191_s4 = sld [smem:[%s16421_s0 + %s14745_s28]]  }
  0x89   :  { %16511 = sst [smem:[#allocation135_spill]] %s15166_s3 }
  0x8a   :  { %s15186_s3 = sld [smem:[%s16421_s0 + %s14744_s22]]  }
  0x8d   :  { %16513 = sst [smem:[#allocation137_spill]] %s15176_s30 }
  0x8e   :  { %s15196_s30 = sld [smem:[%s16421_s0 + %s14746_s7]]  }
  0x8f   :  { %162 = vsyncpa [#allocation3], 0 }
  0x90   :  { %163 = vsyncpa [#allocation5], 0 }
  0x91   :  { %164 = vsyncpa [#allocation8], 0 }
  0x92   :  { %165 = vsyncpa [#allocation11], 0 }
  0x93   :  { %166 = vsyncpa [#allocation14], 0 }
  0x94   :  { %167 = vsyncpa [#allocation17], 0 }
  0x95   :  { %168 = vsyncpa [#allocation20], 0 }
  0x96   :  { %169 = vsyncpa [#allocation23], 0 }
  0x97   :  { %170 = vsyncpa [#allocation26], 0 }
  0x98   :  { %171 = vsyncpa [#allocation29], 0 }
  0x99   :  { %172 = vsyncpa [#allocation32], 0 }
  0x9a   :  { %173 = vsyncpa [#allocation35], 0 }
  0x9b   :  { %174 = vsyncpa [#allocation38], 0 }
  0x9c   :  { %175 = vsyncpa [#allocation41], 0 }
  0x9d   :  { %176 = vsyncpa [#allocation44], 0 }
  0x9e   :  { %177 = vsyncpa [#allocation47], 0 }
  0x9f   :  { %178 = vsyncpa [#allocation50], 0 }
  0xa0   :  { %179 = vsyncpa [#allocation53], 0 }
  0xa1   :  { %180 = vsyncpa [#allocation56], 0  ;;  %s14747_s0 = smov [#allocation4]   ;;  %s14748_s16 = smov [#allocation7]  }
  0xa2   :  { %s231_s15 = sshll.u32 %s14747_s0, 4  ;;  %s253_s18 = sshll.u32 %s14748_s16, 4  ;;  %s232_s15 = int_to_ptr.vmem [resolvable:$true] %s231_s15  ;;  %s254_s18 = int_to_ptr.vmem [resolvable:$true] %s253_s18 }
  0xa3   :  { %s13899_s22 = scalar_lea.vmem %s232_s15, 16  ;;  %s13903_s23 = scalar_lea.vmem %s232_s15, 32 }
  0xa4   :  { %p13900_p0 = scmp.ne.s32.totalorder %s232_s15, %s13899_s22  ;;  %p13904_p1 = scmp.lt.s32.totalorder %s232_s15, %s232_s15 }
  0xa5   :  { %p13905_p2 = scmp.lt.s32.totalorder %s13903_s23, %s13899_s22 }
  0xa7   :  { %p13906_p3 = por %p13905_p2, %p13904_p1 }
  0xa9   :  { %p13907_p4 = pnand %p13906_p3, %p13900_p0 }
  0xab   :  { %13910 = shalt.err (!%p13907_p4)
}
  0xac   :  { %234 = dma.hbm_to_vmem [thread:$0]  %s14896_s9, 16, %s232_s15, [#allocation5]  }
  0xad   :  { %s13919_s26 = scalar_lea.vmem %s254_s18, 16  ;;  %s13923_s28 = scalar_lea.vmem %s254_s18, 32 }
  0xae   :  { %p13920_p5 = scmp.ne.s32.totalorder %s254_s18, %s13919_s26  ;;  %p13924_p6 = scmp.lt.s32.totalorder %s254_s18, %s254_s18 }
  0xaf   :  { %p13925_p7 = scmp.lt.s32.totalorder %s13923_s28, %s13919_s26 }
  0xb1   :  { %p13926_p8 = por %p13925_p7, %p13924_p6 }
  0xb3   :  { %p13927_p9 = pnand %p13926_p8, %p13920_p5 }
  0xb5   :  { %13930 = shalt.err (!%p13927_p9)
}
  0xb6   :  { %256 = dma.hbm_to_vmem [thread:$0]  %s14911_s6, 16, %s254_s18, [#allocation8]  }
  0xb7   :  { %s14749_s1 = smov [#allocation10]   ;;  %s14750_s7 = smov [#allocation13]  }
  0xb8   :  { %s275_s2 = sshll.u32 %s14749_s1, 4  ;;  %s297_s10 = sshll.u32 %s14750_s7, 4  ;;  %s276_s2 = int_to_ptr.vmem [resolvable:$true] %s275_s2  ;;  %s298_s10 = int_to_ptr.vmem [resolvable:$true] %s297_s10 }
  0xb9   :  { %s13939_s11 = scalar_lea.vmem %s276_s2, 16  ;;  %s13943_s0 = scalar_lea.vmem %s276_s2, 32 }
  0xba   :  { %p13940_p10 = scmp.ne.s32.totalorder %s276_s2, %s13939_s11  ;;  %p13944_p11 = scmp.lt.s32.totalorder %s276_s2, %s276_s2 }
  0xbb   :  { %p13945_p12 = scmp.lt.s32.totalorder %s13943_s0, %s13939_s11 }
  0xbd   :  { %p13946_p13 = por %p13945_p12, %p13944_p11 }
  0xbf   :  { %p13947_p0 = pnand %p13946_p13, %p13940_p10 }
  0xc1   :  { %13950 = shalt.err (!%p13947_p0)
}
  0xc2   :  { %278 = dma.hbm_to_vmem [thread:$0]  %s14926_s27, 16, %s276_s2, [#allocation11]  }
  0xc3   :  { %s13959_s9 = scalar_lea.vmem %s298_s10, 16  ;;  %s13963_s15 = scalar_lea.vmem %s298_s10, 32 }
  0xc4   :  { %p13960_p1 = scmp.ne.s32.totalorder %s298_s10, %s13959_s9  ;;  %p13964_p2 = scmp.lt.s32.totalorder %s298_s10, %s298_s10 }
  0xc5   :  { %p13965_p3 = scmp.lt.s32.totalorder %s13963_s15, %s13959_s9 }
  0xc7   :  { %p13966_p4 = por %p13965_p3, %p13964_p2 }
  0xc9   :  { %p13967_p5 = pnand %p13966_p4, %p13960_p1 }
  0xcb   :  { %13970 = shalt.err (!%p13967_p5)
}
  0xcc   :  { %300 = dma.hbm_to_vmem [thread:$0]  %s14941_s14, 16, %s298_s10, [#allocation14]  }
  0xcd   :  { %s14751_s6 = smov [#allocation16]   ;;  %s14752_s18 = smov [#allocation19]  }
  0xce   :  { %s321_s16 = sshll.u32 %s14751_s6, 4  ;;  %s345_s22 = sshll.u32 %s14752_s18, 4  ;;  %s322_s16 = int_to_ptr.vmem [resolvable:$true] %s321_s16  ;;  %s346_s22 = int_to_ptr.vmem [resolvable:$true] %s345_s22 }
  0xcf   :  { %s13979_s23 = scalar_lea.vmem %s322_s16, 16  ;;  %s13983_s26 = scalar_lea.vmem %s322_s16, 32 }
  0xd0   :  { %p13980_p6 = scmp.ne.s32.totalorder %s322_s16, %s13979_s23  ;;  %p13984_p7 = scmp.lt.s32.totalorder %s322_s16, %s322_s16 }
  0xd1   :  { %p13985_p8 = scmp.lt.s32.totalorder %s13983_s26, %s13979_s23 }
  0xd3   :  { %p13986_p9 = por %p13985_p8, %p13984_p7 }
  0xd5   :  { %p13987_p10 = pnand %p13986_p9, %p13980_p6 }
  0xd7   :  { %13990 = shalt.err (!%p13987_p10)
}
  0xd8   :  { %324 = dma.hbm_to_vmem [thread:$0]  %s14961_s19, 16, %s322_s16, [#allocation17]  }
  0xd9   :  { %s13999_s27 = scalar_lea.vmem %s346_s22, 16  ;;  %s14003_s28 = scalar_lea.vmem %s346_s22, 32 }
  0xda   :  { %p14000_p11 = scmp.ne.s32.totalorder %s346_s22, %s13999_s27  ;;  %p14004_p12 = scmp.lt.s32.totalorder %s346_s22, %s346_s22 }
  0xdb   :  { %p14005_p13 = scmp.lt.s32.totalorder %s14003_s28, %s13999_s27 }
  0xdd   :  { %p14006_p0 = por %p14005_p13, %p14004_p12 }
  0xdf   :  { %p14007_p1 = pnand %p14006_p0, %p14000_p11 }
  0xe1   :  { %14010 = shalt.err (!%p14007_p1)
}
  0xe2   :  { %348 = dma.hbm_to_vmem [thread:$0]  %s14981_s25, 16, %s346_s22, [#allocation20]  }
  0xe3   :  { %s14753_s14 = smov [#allocation22]   ;;  %s14754_s2 = smov [#allocation25]  }
  0xe4   :  { %s369_s1 = sshll.u32 %s14753_s14, 4  ;;  %s393_s7 = sshll.u32 %s14754_s2, 4  ;;  %s370_s1 = int_to_ptr.vmem [resolvable:$true] %s369_s1  ;;  %s394_s7 = int_to_ptr.vmem [resolvable:$true] %s393_s7 }
  0xe5   :  { %s14019_s10 = scalar_lea.vmem %s370_s1, 16  ;;  %s14023_s11 = scalar_lea.vmem %s370_s1, 32 }
  0xe6   :  { %p14020_p2 = scmp.ne.s32.totalorder %s370_s1, %s14019_s10  ;;  %p14024_p3 = scmp.lt.s32.totalorder %s370_s1, %s370_s1 }
  0xe7   :  { %p14025_p4 = scmp.lt.s32.totalorder %s14023_s11, %s14019_s10 }
  0xe9   :  { %p14026_p5 = por %p14025_p4, %p14024_p3 }
  0xeb   :  { %p14027_p6 = pnand %p14026_p5, %p14020_p2 }
  0xed   :  { %14030 = shalt.err (!%p14027_p6)
}
  0xee   :  { %372 = dma.hbm_to_vmem [thread:$0]  %s15001_s17, 16, %s370_s1, [#allocation23]  }
  0xef   :  { %s14039_s19 = scalar_lea.vmem %s394_s7, 16  ;;  %s14043_s0 = scalar_lea.vmem %s394_s7, 32 }
  0xf0   :  { %p14040_p7 = scmp.ne.s32.totalorder %s394_s7, %s14039_s19  ;;  %p14044_p8 = scmp.lt.s32.totalorder %s394_s7, %s394_s7 }
  0xf1   :  { %p14045_p9 = scmp.lt.s32.totalorder %s14043_s0, %s14039_s19 }
  0xf3   :  { %p14046_p10 = por %p14045_p9, %p14044_p8 }
  0xf5   :  { %p14047_p11 = pnand %p14046_p10, %p14040_p7 }
  0xf7   :  { %14050 = shalt.err (!%p14047_p11)
}
  0xf8   :  { %396 = dma.hbm_to_vmem [thread:$0]  %s15021_s13, 16, %s394_s7, [#allocation26]  }
  0xf9   :  { %s14755_s25 = smov [#allocation28]   ;;  %s14756_s15 = smov [#allocation31]  }
  0xfa   :  { %s413_s9 = sshll.u32 %s14755_s25, 4  ;;  %s437_s6 = sshll.u32 %s14756_s15, 4  ;;  %s414_s9 = int_to_ptr.vmem [resolvable:$true] %s413_s9  ;;  %s438_s6 = int_to_ptr.vmem [resolvable:$true] %s437_s6 }
  0xfb   :  { %s14059_s16 = scalar_lea.vmem %s414_s9, 16  ;;  %s14063_s18 = scalar_lea.vmem %s414_s9, 32 }
  0xfc   :  { %p14060_p12 = scmp.ne.s32.totalorder %s414_s9, %s14059_s16  ;;  %p14064_p13 = scmp.lt.s32.totalorder %s414_s9, %s414_s9 }
  0xfd   :  { %p14065_p0 = scmp.lt.s32.totalorder %s14063_s18, %s14059_s16 }
  0xff   :  { %p14066_p1 = por %p14065_p0, %p14064_p13 }
 0x101   :  { %p14067_p2 = pnand %p14066_p1, %p14060_p12 }
 0x103   :  { %14070 = shalt.err (!%p14067_p2)
}
 0x104   :  { %416 = dma.hbm_to_vmem [thread:$0]  %s15031_s5, 16, %s414_s9, [#allocation29]  }
 0x105   :  { %s14079_s17 = scalar_lea.vmem %s438_s6, 16  ;;  %s14083_s22 = scalar_lea.vmem %s438_s6, 32 }
 0x106   :  { %p14080_p3 = scmp.ne.s32.totalorder %s438_s6, %s14079_s17  ;;  %p14084_p4 = scmp.lt.s32.totalorder %s438_s6, %s438_s6 }
 0x107   :  { %p14085_p5 = scmp.lt.s32.totalorder %s14083_s22, %s14079_s17 }
 0x109   :  { %p14086_p6 = por %p14085_p5, %p14084_p4 }
 0x10b   :  { %p14087_p7 = pnand %p14086_p6, %p14080_p3 }
 0x10d   :  { %14090 = shalt.err (!%p14087_p7)
}
 0x10e   :  { %440 = dma.hbm_to_vmem [thread:$0]  %s15051_s8, 16, %s438_s6, [#allocation32]  }
 0x10f   :  { %s14757_s13 = smov [#allocation34]   ;;  %s14758_s26 = smov [#allocation37]  }
 0x110   :  { %s457_s23 = sshll.u32 %s14757_s13, 4  ;;  %s481_s27 = sshll.u32 %s14758_s26, 4  ;;  %s458_s23 = int_to_ptr.vmem [resolvable:$true] %s457_s23  ;;  %s482_s27 = int_to_ptr.vmem [resolvable:$true] %s481_s27 }
 0x111   :  { %s14099_s28 = scalar_lea.vmem %s458_s23, 16  ;;  %s14103_s14 = scalar_lea.vmem %s458_s23, 32 }
 0x112   :  { %p14100_p8 = scmp.ne.s32.totalorder %s458_s23, %s14099_s28  ;;  %p14104_p9 = scmp.lt.s32.totalorder %s458_s23, %s458_s23 }
 0x113   :  { %p14105_p10 = scmp.lt.s32.totalorder %s14103_s14, %s14099_s28 }
 0x115   :  { %p14106_p11 = por %p14105_p10, %p14104_p9 }
 0x117   :  { %p14107_p12 = pnand %p14106_p11, %p14100_p8 }
 0x119   :  { %14110 = shalt.err (!%p14107_p12)
}
 0x11a   :  { %460 = dma.hbm_to_vmem [thread:$0]  %s15061_s21, 16, %s458_s23, [#allocation35]  }
 0x11b   :  { %s14119_s5 = scalar_lea.vmem %s482_s27, 16  ;;  %s14123_s1 = scalar_lea.vmem %s482_s27, 32 }
 0x11c   :  { %p14120_p13 = scmp.ne.s32.totalorder %s482_s27, %s14119_s5  ;;  %p14124_p0 = scmp.lt.s32.totalorder %s482_s27, %s482_s27 }
 0x11d   :  { %p14125_p1 = scmp.lt.s32.totalorder %s14123_s1, %s14119_s5 }
 0x11f   :  { %p14126_p2 = por %p14125_p1, %p14124_p0 }
 0x121   :  { %p14127_p3 = pnand %p14126_p2, %p14120_p13 }
 0x123   :  { %14130 = shalt.err (!%p14127_p3)
}
 0x124   :  { %484 = dma.hbm_to_vmem [thread:$0]  %s15081_s24, 16, %s482_s27, [#allocation38]  }
 0x125   :  { %s14759_s8 = smov [#allocation40]   ;;  %s14760_s7 = smov [#allocation43]  }
 0x126   :  { %s501_s2 = sshll.u32 %s14759_s8, 4  ;;  %s525_s10 = sshll.u32 %s14760_s7, 4  ;;  %s502_s2 = int_to_ptr.vmem [resolvable:$true] %s501_s2  ;;  %s526_s10 = int_to_ptr.vmem [resolvable:$true] %s525_s10 }
 0x127   :  { %s14139_s11 = scalar_lea.vmem %s502_s2, 16  ;;  %s14143_s19 = scalar_lea.vmem %s502_s2, 32 }
 0x128   :  { %p14140_p4 = scmp.ne.s32.totalorder %s502_s2, %s14139_s11  ;;  %p14144_p5 = scmp.lt.s32.totalorder %s502_s2, %s502_s2 }
 0x129   :  { %p14145_p6 = scmp.lt.s32.totalorder %s14143_s19, %s14139_s11 }
 0x12b   :  { %p14146_p7 = por %p14145_p6, %p14144_p5 }
 0x12d   :  { %p14147_p8 = pnand %p14146_p7, %p14140_p4 }
 0x12f   :  { %14150 = shalt.err (!%p14147_p8)
}
 0x130   :  { %504 = dma.hbm_to_vmem [thread:$0]  %s15091_s29, 16, %s502_s2, [#allocation41]  }
 0x131   :  { %s14159_s21 = scalar_lea.vmem %s526_s10, 16  ;;  %s14163_s0 = scalar_lea.vmem %s526_s10, 32 }
 0x132   :  { %p14160_p9 = scmp.ne.s32.totalorder %s526_s10, %s14159_s21  ;;  %p14164_p10 = scmp.lt.s32.totalorder %s526_s10, %s526_s10 }
 0x133   :  { %p14165_p11 = scmp.lt.s32.totalorder %s14163_s0, %s14159_s21 }
 0x135   :  { %p14166_p12 = por %p14165_p11, %p14164_p10 }
 0x137   :  { %p14167_p13 = pnand %p14166_p12, %p14160_p9 }
 0x139   :  { %14170 = shalt.err (!%p14167_p13)
}
 0x13a   :  { %528 = dma.hbm_to_vmem [thread:$0]  %s15111_s20, 16, %s526_s10, [#allocation44]  }
 0x13b   :  { %s14761_s24 = smov [#allocation46]   ;;  %s14762_s9 = smov [#allocation49]  }
 0x13c   :  { %s545_s25 = sshll.u32 %s14761_s24, 4  ;;  %s569_s15 = sshll.u32 %s14762_s9, 4  ;;  %s546_s25 = int_to_ptr.vmem [resolvable:$true] %s545_s25  ;;  %s570_s15 = int_to_ptr.vmem [resolvable:$true] %s569_s15 }
 0x13d   :  { %s14179_s6 = scalar_lea.vmem %s546_s25, 16  ;;  %s14183_s16 = scalar_lea.vmem %s546_s25, 32 }
 0x13e   :  { %p14180_p0 = scmp.ne.s32.totalorder %s546_s25, %s14179_s6  ;;  %p14184_p1 = scmp.lt.s32.totalorder %s546_s25, %s546_s25 }
 0x13f   :  { %p14185_p2 = scmp.lt.s32.totalorder %s14183_s16, %s14179_s6 }
 0x141   :  { %p14186_p3 = por %p14185_p2, %p14184_p1 }
 0x143   :  { %p14187_p4 = pnand %p14186_p3, %p14180_p0 }
 0x145   :  { %14190 = shalt.err (!%p14187_p4)
}
 0x146   :  { %s16514_s29 = sld [smem:[#allocation126_spill]]  ;;  %s14199_s18 = scalar_lea.vmem %s570_s15, 16 }
 0x147   :  { %p14200_p5 = scmp.ne.s32.totalorder %s570_s15, %s14199_s18  ;;  %s14203_s17 = scalar_lea.vmem %s570_s15, 32 }
 0x148   :  { %p14204_p6 = scmp.lt.s32.totalorder %s570_s15, %s570_s15  ;;  %p14205_p7 = scmp.lt.s32.totalorder %s14203_s17, %s14199_s18 }
 0x14a   :  { %p14206_p8 = por %p14205_p7, %p14204_p6 }
 0x14c   :  { %548 = dma.hbm_to_vmem [thread:$0]  %s16514_s29, 16, %s546_s25, [#allocation47]  }
 0x14d   :  { %p14207_p9 = pnand %p14206_p8, %p14200_p5 }
 0x14f   :  { %14210 = shalt.err (!%p14207_p9)
}
 0x150   :  { %s16515_s20 = sld [smem:[#allocation130_spill]]  ;;  %s14763_s22 = smov [#allocation52]  }
 0x151   :  { %s593_s13 = sshll.u32 %s14763_s22, 4  ;;  %s14764_s23 = smov [#allocation55]   ;;  %s594_s13 = int_to_ptr.vmem [resolvable:$true] %s593_s13 }
 0x152   :  { %s617_s26 = sshll.u32 %s14764_s23, 4  ;;  %s14219_s27 = scalar_lea.vmem %s594_s13, 16  ;;  %s618_s26 = int_to_ptr.vmem [resolvable:$true] %s617_s26 }
 0x153   :  { %p14220_p10 = scmp.ne.s32.totalorder %s594_s13, %s14219_s27  ;;  %s14223_s28 = scalar_lea.vmem %s594_s13, 32 }
 0x154   :  { %p14224_p11 = scmp.lt.s32.totalorder %s594_s13, %s594_s13  ;;  %p14225_p12 = scmp.lt.s32.totalorder %s14223_s28, %s14219_s27 }
 0x156   :  { %572 = dma.hbm_to_vmem [thread:$0]  %s16515_s20, 16, %s570_s15, [#allocation50]  }
 0x157   :  { %p14226_p13 = por %p14225_p12, %p14224_p11 }
 0x159   :  { %p14227_p0 = pnand %p14226_p13, %p14220_p10 }
 0x15b   :  { %14230 = shalt.err (!%p14227_p0)
}
 0x15c   :  { %s16516_s14 = sld [smem:[#allocation134_spill]]  ;;  %s14239_s5 = scalar_lea.vmem %s618_s26, 16 }
 0x15d   :  { %p14240_p1 = scmp.ne.s32.totalorder %s618_s26, %s14239_s5  ;;  %s14243_s1 = scalar_lea.vmem %s618_s26, 32 }
 0x15e   :  { %p14244_p2 = scmp.lt.s32.totalorder %s618_s26, %s618_s26  ;;  %p14245_p3 = scmp.lt.s32.totalorder %s14243_s1, %s14239_s5 }
 0x160   :  { %p14246_p4 = por %p14245_p3, %p14244_p2 }
 0x162   :  { %596 = dma.hbm_to_vmem [thread:$0]  %s16516_s14, 16, %s594_s13, [#allocation53]  }
 0x163   :  { %p14247_p5 = pnand %p14246_p4, %p14240_p1 }
 0x165   :  { %14250 = shalt.err (!%p14247_p5)
}
 0x166   :  { %620 = dma.hbm_to_vmem [thread:$0]  %s15181_s12, 16, %s618_s26, [#allocation56]  }
 0x167   :  { %s14765_s8 = smov [#allocation2]   ;;  %s14766_s7 = smov [#allocation6]  }
 0x168   :  { %s221_s2 = sshll.u32 %s14765_s8, 4  ;;  %s241_s10 = sshll.u32 %s14766_s7, 4  ;;  %s222_s2 = int_to_ptr.vmem [resolvable:$true] %s221_s2  ;;  %s242_s10 = int_to_ptr.vmem [resolvable:$true] %s241_s10 }
 0x169   :  { %s14259_s11 = scalar_lea.vmem %s222_s2, 16  ;;  %s14263_s19 = scalar_lea.vmem %s222_s2, 32 }
 0x16a   :  { %p14260_p6 = scmp.ne.s32.totalorder %s222_s2, %s14259_s11  ;;  %p14264_p7 = scmp.lt.s32.totalorder %s222_s2, %s222_s2 }
 0x16b   :  { %p14265_p8 = scmp.lt.s32.totalorder %s14263_s19, %s14259_s11 }
 0x16d   :  { %p14266_p9 = por %p14265_p8, %p14264_p7 }
 0x16f   :  { %p14267_p10 = pnand %p14266_p9, %p14260_p6 }
 0x171   :  { %14270 = shalt.err (!%p14267_p10)
}
 0x172   :  { %s16517_s21 = sld [smem:[#allocation94_spill]]  ;;  %s14279_s0 = scalar_lea.vmem %s242_s10, 16 }
 0x173   :  { %p14280_p11 = scmp.ne.s32.totalorder %s242_s10, %s14279_s0  ;;  %s14283_s24 = scalar_lea.vmem %s242_s10, 32 }
 0x174   :  { %p14284_p12 = scmp.lt.s32.totalorder %s242_s10, %s242_s10  ;;  %p14285_p13 = scmp.lt.s32.totalorder %s14283_s24, %s14279_s0 }
 0x176   :  { %p14286_p0 = por %p14285_p13, %p14284_p12 }
 0x178   :  { %224 = dma.hbm_to_vmem [thread:$0]  %s16517_s21, 16, %s222_s2, [#allocation3]  }
 0x179   :  { %p14287_p1 = pnand %p14286_p0, %p14280_p11 }
 0x17b   :  { %14290 = shalt.err (!%p14287_p1)
}
 0x17c   :  { %s16518_s12 = sld [smem:[#allocation95_spill]]  ;;  %s14767_s25 = smov [#allocation9]  }
 0x17d   :  { %s265_s9 = sshll.u32 %s14767_s25, 4  ;;  %s14768_s15 = smov [#allocation12]   ;;  %s266_s9 = int_to_ptr.vmem [resolvable:$true] %s265_s9 }
 0x17e   :  { %s285_s6 = sshll.u32 %s14768_s15, 4  ;;  %s14299_s16 = scalar_lea.vmem %s266_s9, 16  ;;  %s286_s6 = int_to_ptr.vmem [resolvable:$true] %s285_s6 }
 0x17f   :  { %p14300_p2 = scmp.ne.s32.totalorder %s266_s9, %s14299_s16  ;;  %s14303_s29 = scalar_lea.vmem %s266_s9, 32 }
 0x180   :  { %p14304_p3 = scmp.lt.s32.totalorder %s266_s9, %s266_s9  ;;  %p14305_p4 = scmp.lt.s32.totalorder %s14303_s29, %s14299_s16 }
 0x182   :  { %244 = dma.hbm_to_vmem [thread:$0]  %s16518_s12, 16, %s242_s10, [#allocation5]  }
 0x183   :  { %p14306_p5 = por %p14305_p4, %p14304_p3 }
 0x185   :  { %p14307_p6 = pnand %p14306_p5, %p14300_p2 }
 0x187   :  { %14310 = shalt.err (!%p14307_p6)
}
 0x188   :  { %s16519_s18 = sld [smem:[#allocation98_spill]]  ;;  %s14319_s17 = scalar_lea.vmem %s286_s6, 16 }
 0x189   :  { %p14320_p7 = scmp.ne.s32.totalorder %s286_s6, %s14319_s17  ;;  %s14323_s20 = scalar_lea.vmem %s286_s6, 32 }
 0x18a   :  { %p14324_p8 = scmp.lt.s32.totalorder %s286_s6, %s286_s6  ;;  %p14325_p9 = scmp.lt.s32.totalorder %s14323_s20, %s14319_s17 }
 0x18c   :  { %p14326_p10 = por %p14325_p9, %p14324_p8 }
 0x18e   :  { %268 = dma.hbm_to_vmem [thread:$0]  %s16519_s18, 16, %s266_s9, [#allocation8]  }
 0x18f   :  { %p14327_p11 = pnand %p14326_p10, %p14320_p7 }
 0x191   :  { %14330 = shalt.err (!%p14327_p11)
}
 0x192   :  { %s16520_s22 = sld [smem:[#allocation99_spill]]  ;;  %s14769_s13 = smov [#allocation15]  }
 0x193   :  { %s309_s23 = sshll.u32 %s14769_s13, 4  ;;  %s14770_s26 = smov [#allocation18]   ;;  %s310_s23 = int_to_ptr.vmem [resolvable:$true] %s309_s23 }
 0x194   :  { %s333_s27 = sshll.u32 %s14770_s26, 4  ;;  %s14339_s28 = scalar_lea.vmem %s310_s23, 16  ;;  %s334_s27 = int_to_ptr.vmem [resolvable:$true] %s333_s27 }
 0x195   :  { %p14340_p12 = scmp.ne.s32.totalorder %s310_s23, %s14339_s28  ;;  %s14343_s14 = scalar_lea.vmem %s310_s23, 32 }
 0x196   :  { %p14344_p13 = scmp.lt.s32.totalorder %s310_s23, %s310_s23  ;;  %p14345_p0 = scmp.lt.s32.totalorder %s14343_s14, %s14339_s28 }
 0x198   :  { %288 = dma.hbm_to_vmem [thread:$0]  %s16520_s22, 16, %s286_s6, [#allocation11]  }
 0x199   :  { %p14346_p1 = por %p14345_p0, %p14344_p13 }
 0x19b   :  { %p14347_p2 = pnand %p14346_p1, %p14340_p12 }
 0x19d   :  { %14350 = shalt.err (!%p14347_p2)
}
 0x19e   :  { %s16521_s5 = sld [smem:[#allocation102_spill]]  ;;  %s14359_s1 = scalar_lea.vmem %s334_s27, 16 }
 0x19f   :  { %p14360_p3 = scmp.ne.s32.totalorder %s334_s27, %s14359_s1  ;;  %s14363_s8 = scalar_lea.vmem %s334_s27, 32 }
 0x1a0   :  { %p14364_p4 = scmp.lt.s32.totalorder %s334_s27, %s334_s27  ;;  %p14365_p5 = scmp.lt.s32.totalorder %s14363_s8, %s14359_s1 }
 0x1a2   :  { %p14366_p6 = por %p14365_p5, %p14364_p4 }
 0x1a4   :  { %312 = dma.hbm_to_vmem [thread:$0]  %s16521_s5, 16, %s310_s23, [#allocation14]  }
 0x1a5   :  { %p14367_p7 = pnand %p14366_p6, %p14360_p3 }
 0x1a7   :  { %14370 = shalt.err (!%p14367_p7)
}
 0x1a8   :  { %s16522_s2 = sld [smem:[#allocation105_spill]]  ;;  %s14771_s7 = smov [#allocation21]  }
 0x1a9   :  { %s357_s10 = sshll.u32 %s14771_s7, 4  ;;  %s14772_s11 = smov [#allocation24]   ;;  %s358_s10 = int_to_ptr.vmem [resolvable:$true] %s357_s10 }
 0x1aa   :  { %s381_s19 = sshll.u32 %s14772_s11, 4  ;;  %s14379_s21 = scalar_lea.vmem %s358_s10, 16  ;;  %s382_s19 = int_to_ptr.vmem [resolvable:$true] %s381_s19 }
 0x1ab   :  { %p14380_p8 = scmp.ne.s32.totalorder %s358_s10, %s14379_s21  ;;  %s14383_s0 = scalar_lea.vmem %s358_s10, 32 }
 0x1ac   :  { %p14384_p9 = scmp.lt.s32.totalorder %s358_s10, %s358_s10  ;;  %p14385_p10 = scmp.lt.s32.totalorder %s14383_s0, %s14379_s21 }
 0x1ae   :  { %336 = dma.hbm_to_vmem [thread:$0]  %s16522_s2, 16, %s334_s27, [#allocation17]  }
 0x1af   :  { %p14386_p11 = por %p14385_p10, %p14384_p9 }
 0x1b1   :  { %p14387_p12 = pnand %p14386_p11, %p14380_p8 }
 0x1b3   :  { %14390 = shalt.err (!%p14387_p12)
}
 0x1b4   :  { %s16523_s24 = sld [smem:[#allocation108_spill]]  ;;  %s14399_s12 = scalar_lea.vmem %s382_s19, 16 }
 0x1b5   :  { %p14400_p13 = scmp.ne.s32.totalorder %s382_s19, %s14399_s12  ;;  %s14403_s25 = scalar_lea.vmem %s382_s19, 32 }
 0x1b6   :  { %p14404_p0 = scmp.lt.s32.totalorder %s382_s19, %s382_s19  ;;  %p14405_p1 = scmp.lt.s32.totalorder %s14403_s25, %s14399_s12 }
 0x1b8   :  { %p14406_p2 = por %p14405_p1, %p14404_p0 }
 0x1ba   :  { %360 = dma.hbm_to_vmem [thread:$0]  %s16523_s24, 16, %s358_s10, [#allocation20]  }
 0x1bb   :  { %p14407_p3 = pnand %p14406_p2, %p14400_p13 }
 0x1bd   :  { %14410 = shalt.err (!%p14407_p3)
}
 0x1be   :  { %s16524_s9 = sld [smem:[#allocation111_spill]]  ;;  %s14773_s15 = smov [#allocation27]  }
 0x1bf   :  { %s403_s6 = sshll.u32 %s14773_s15, 4  ;;  %s14774_s16 = smov [#allocation30]   ;;  %s404_s6 = int_to_ptr.vmem [resolvable:$true] %s403_s6 }
 0x1c0   :  { %s425_s29 = sshll.u32 %s14774_s16, 4  ;;  %s14419_s18 = scalar_lea.vmem %s404_s6, 16  ;;  %s426_s29 = int_to_ptr.vmem [resolvable:$true] %s425_s29 }
 0x1c1   :  { %p14420_p4 = scmp.ne.s32.totalorder %s404_s6, %s14419_s18  ;;  %s14423_s17 = scalar_lea.vmem %s404_s6, 32 }
 0x1c2   :  { %p14424_p5 = scmp.lt.s32.totalorder %s404_s6, %s404_s6  ;;  %p14425_p6 = scmp.lt.s32.totalorder %s14423_s17, %s14419_s18 }
 0x1c4   :  { %384 = dma.hbm_to_vmem [thread:$0]  %s16524_s9, 16, %s382_s19, [#allocation23]  }
 0x1c5   :  { %p14426_p7 = por %p14425_p6, %p14424_p5 }
 0x1c7   :  { %p14427_p8 = pnand %p14426_p7, %p14420_p4 }
 0x1c9   :  { %14430 = shalt.err (!%p14427_p8)
}
 0x1ca   :  { %s16525_s20 = sld [smem:[#allocation113_spill]]  ;;  %s14439_s22 = scalar_lea.vmem %s426_s29, 16 }
 0x1cb   :  { %p14440_p9 = scmp.ne.s32.totalorder %s426_s29, %s14439_s22  ;;  %s14443_s13 = scalar_lea.vmem %s426_s29, 32 }
 0x1cc   :  { %p14444_p10 = scmp.lt.s32.totalorder %s426_s29, %s426_s29  ;;  %p14445_p11 = scmp.lt.s32.totalorder %s14443_s13, %s14439_s22 }
 0x1ce   :  { %p14446_p12 = por %p14445_p11, %p14444_p10 }
 0x1d0   :  { %406 = dma.hbm_to_vmem [thread:$0]  %s16525_s20, 16, %s404_s6, [#allocation26]  }
 0x1d1   :  { %p14447_p13 = pnand %p14446_p12, %p14440_p9 }
 0x1d3   :  { %14450 = shalt.err (!%p14447_p13)
}
 0x1d4   :  { %s16526_s23 = sld [smem:[#allocation115_spill]]  ;;  %s14775_s26 = smov [#allocation33]  }
 0x1d5   :  { %s447_s27 = sshll.u32 %s14775_s26, 4  ;;  %s14776_s28 = smov [#allocation36]   ;;  %s448_s27 = int_to_ptr.vmem [resolvable:$true] %s447_s27 }
 0x1d6   :  { %s469_s14 = sshll.u32 %s14776_s28, 4  ;;  %s14459_s5 = scalar_lea.vmem %s448_s27, 16  ;;  %s470_s14 = int_to_ptr.vmem [resolvable:$true] %s469_s14 }
 0x1d7   :  { %p14460_p0 = scmp.ne.s32.totalorder %s448_s27, %s14459_s5  ;;  %s14463_s1 = scalar_lea.vmem %s448_s27, 32 }
 0x1d8   :  { %p14464_p1 = scmp.lt.s32.totalorder %s448_s27, %s448_s27  ;;  %p14465_p2 = scmp.lt.s32.totalorder %s14463_s1, %s14459_s5 }
 0x1da   :  { %428 = dma.hbm_to_vmem [thread:$0]  %s16526_s23, 16, %s426_s29, [#allocation29]  }
 0x1db   :  { %p14466_p3 = por %p14465_p2, %p14464_p1 }
 0x1dd   :  { %p14467_p4 = pnand %p14466_p3, %p14460_p0 }
 0x1df   :  { %14470 = shalt.err (!%p14467_p4)
}
 0x1e0   :  { %s16527_s8 = sld [smem:[#allocation117_spill]]  ;;  %s14479_s2 = scalar_lea.vmem %s470_s14, 16 }
 0x1e1   :  { %p14480_p5 = scmp.ne.s32.totalorder %s470_s14, %s14479_s2  ;;  %s14483_s7 = scalar_lea.vmem %s470_s14, 32 }
 0x1e2   :  { %p14484_p6 = scmp.lt.s32.totalorder %s470_s14, %s470_s14  ;;  %p14485_p7 = scmp.lt.s32.totalorder %s14483_s7, %s14479_s2 }
 0x1e4   :  { %p14486_p8 = por %p14485_p7, %p14484_p6 }
 0x1e6   :  { %450 = dma.hbm_to_vmem [thread:$0]  %s16527_s8, 16, %s448_s27, [#allocation32]  }
 0x1e7   :  { %p14487_p9 = pnand %p14486_p8, %p14480_p5 }
 0x1e9   :  { %14490 = shalt.err (!%p14487_p9)
}
 0x1ea   :  { %s16528_s10 = sld [smem:[#allocation119_spill]]  ;;  %s14777_s11 = smov [#allocation39]  }
 0x1eb   :  { %s491_s19 = sshll.u32 %s14777_s11, 4  ;;  %s14778_s21 = smov [#allocation42]   ;;  %s492_s19 = int_to_ptr.vmem [resolvable:$true] %s491_s19 }
 0x1ec   :  { %s513_s0 = sshll.u32 %s14778_s21, 4  ;;  %s14499_s24 = scalar_lea.vmem %s492_s19, 16  ;;  %s514_s0 = int_to_ptr.vmem [resolvable:$true] %s513_s0 }
 0x1ed   :  { %p14500_p10 = scmp.ne.s32.totalorder %s492_s19, %s14499_s24  ;;  %s14503_s12 = scalar_lea.vmem %s492_s19, 32 }
 0x1ee   :  { %p14504_p11 = scmp.lt.s32.totalorder %s492_s19, %s492_s19  ;;  %p14505_p12 = scmp.lt.s32.totalorder %s14503_s12, %s14499_s24 }
 0x1f0   :  { %472 = dma.hbm_to_vmem [thread:$0]  %s16528_s10, 16, %s470_s14, [#allocation35]  }
 0x1f1   :  { %p14506_p13 = por %p14505_p12, %p14504_p11 }
 0x1f3   :  { %p14507_p0 = pnand %p14506_p13, %p14500_p10 }
 0x1f5   :  { %14510 = shalt.err (!%p14507_p0)
}
 0x1f6   :  { %s16529_s25 = sld [smem:[#allocation121_spill]]  ;;  %s14519_s9 = scalar_lea.vmem %s514_s0, 16 }
 0x1f7   :  { %p14520_p1 = scmp.ne.s32.totalorder %s514_s0, %s14519_s9  ;;  %s14523_s15 = scalar_lea.vmem %s514_s0, 32 }
 0x1f8   :  { %p14524_p2 = scmp.lt.s32.totalorder %s514_s0, %s514_s0  ;;  %p14525_p3 = scmp.lt.s32.totalorder %s14523_s15, %s14519_s9 }
 0x1fa   :  { %p14526_p4 = por %p14525_p3, %p14524_p2 }
 0x1fc   :  { %494 = dma.hbm_to_vmem [thread:$0]  %s16529_s25, 16, %s492_s19, [#allocation38]  }
 0x1fd   :  { %p14527_p5 = pnand %p14526_p4, %p14520_p1 }
 0x1ff   :  { %14530 = shalt.err (!%p14527_p5)
}
 0x200   :  { %s16530_s6 = sld [smem:[#allocation123_spill]]  ;;  %s14779_s16 = smov [#allocation45]  }
 0x201   :  { %s535_s29 = sshll.u32 %s14779_s16, 4  ;;  %s14780_s18 = smov [#allocation48]   ;;  %s536_s29 = int_to_ptr.vmem [resolvable:$true] %s535_s29 }
 0x202   :  { %s557_s17 = sshll.u32 %s14780_s18, 4  ;;  %s14539_s20 = scalar_lea.vmem %s536_s29, 16  ;;  %s558_s17 = int_to_ptr.vmem [resolvable:$true] %s557_s17 }
 0x203   :  { %p14540_p6 = scmp.ne.s32.totalorder %s536_s29, %s14539_s20  ;;  %s14543_s22 = scalar_lea.vmem %s536_s29, 32 }
 0x204   :  { %p14544_p7 = scmp.lt.s32.totalorder %s536_s29, %s536_s29  ;;  %p14545_p8 = scmp.lt.s32.totalorder %s14543_s22, %s14539_s20 }
 0x206   :  { %516 = dma.hbm_to_vmem [thread:$0]  %s16530_s6, 16, %s514_s0, [#allocation41]  }
 0x207   :  { %p14546_p9 = por %p14545_p8, %p14544_p7 }
 0x209   :  { %p14547_p10 = pnand %p14546_p9, %p14540_p6 }
 0x20b   :  { %14550 = shalt.err (!%p14547_p10)
}
 0x20c   :  { %s16531_s13 = sld [smem:[#allocation125_spill]]  ;;  %s14559_s23 = scalar_lea.vmem %s558_s17, 16 }
 0x20d   :  { %p14560_p11 = scmp.ne.s32.totalorder %s558_s17, %s14559_s23  ;;  %s14563_s26 = scalar_lea.vmem %s558_s17, 32 }
 0x20e   :  { %p14564_p12 = scmp.lt.s32.totalorder %s558_s17, %s558_s17  ;;  %p14565_p13 = scmp.lt.s32.totalorder %s14563_s26, %s14559_s23 }
 0x210   :  { %p14566_p0 = por %p14565_p13, %p14564_p12 }
 0x212   :  { %538 = dma.hbm_to_vmem [thread:$0]  %s16531_s13, 16, %s536_s29, [#allocation44]  }
 0x213   :  { %p14567_p1 = pnand %p14566_p0, %p14560_p11 }
 0x215   :  { %14570 = shalt.err (!%p14567_p1)
}
 0x216   :  { %s16532_s27 = sld [smem:[#allocation128_spill]]  ;;  %s14781_s28 = smov [#allocation51]  }
 0x217   :  { %s581_s14 = sshll.u32 %s14781_s28, 4  ;;  %s14782_s5 = smov [#allocation54]   ;;  %s582_s14 = int_to_ptr.vmem [resolvable:$true] %s581_s14 }
 0x218   :  { %s605_s1 = sshll.u32 %s14782_s5, 4  ;;  %s14579_s8 = scalar_lea.vmem %s582_s14, 16  ;;  %s606_s1 = int_to_ptr.vmem [resolvable:$true] %s605_s1 }
 0x219   :  { %p14580_p2 = scmp.ne.s32.totalorder %s582_s14, %s14579_s8  ;;  %s14583_s2 = scalar_lea.vmem %s582_s14, 32 }
 0x21a   :  { %p14584_p3 = scmp.lt.s32.totalorder %s582_s14, %s582_s14  ;;  %p14585_p4 = scmp.lt.s32.totalorder %s14583_s2, %s14579_s8 }
 0x21c   :  { %560 = dma.hbm_to_vmem [thread:$0]  %s16532_s27, 16, %s558_s17, [#allocation47]  }
 0x21d   :  { %p14586_p5 = por %p14585_p4, %p14584_p3 }
 0x21f   :  { %p14587_p6 = pnand %p14586_p5, %p14580_p2 }
 0x221   :  { %14590 = shalt.err (!%p14587_p6)
}
 0x222   :  { %s16533_s7 = sld [smem:[#allocation132_spill]]  ;;  %s14599_s10 = scalar_lea.vmem %s606_s1, 16 }
 0x223   :  { %p14600_p7 = scmp.ne.s32.totalorder %s606_s1, %s14599_s10  ;;  %s14603_s11 = scalar_lea.vmem %s606_s1, 32 }
 0x224   :  { %p14604_p8 = scmp.lt.s32.totalorder %s606_s1, %s606_s1  ;;  %p14605_p9 = scmp.lt.s32.totalorder %s14603_s11, %s14599_s10 }
 0x226   :  { %p14606_p10 = por %p14605_p9, %p14604_p8 }
 0x228   :  { %584 = dma.hbm_to_vmem [thread:$0]  %s16533_s7, 16, %s582_s14, [#allocation50]  }
 0x229   :  { %p14607_p11 = pnand %p14606_p10, %p14600_p7 }
 0x22b   :  { %14610 = shalt.err (!%p14607_p11)
}
 0x22c   :  { %s16534_s19 = sld [smem:[#allocation136_spill]]  ;;  %s14783_s21 = smov [#allocation57]  }
 0x22d   :  { %s629_s0 = sshll.u32 %s14783_s21, 4  ;;  %s630_s0 = int_to_ptr.vmem [resolvable:$true] %s629_s0 }
 0x22e   :  { %s14619_s24 = scalar_lea.vmem %s630_s0, 16  ;;  %s14623_s12 = scalar_lea.vmem %s630_s0, 32 }
 0x22f   :  { %p14620_p12 = scmp.ne.s32.totalorder %s630_s0, %s14619_s24  ;;  %p14624_p13 = scmp.lt.s32.totalorder %s630_s0, %s630_s0 }
 0x230   :  { %p14625_p0 = scmp.lt.s32.totalorder %s14623_s12, %s14619_s24 }
 0x232   :  { %608 = dma.hbm_to_vmem [thread:$0]  %s16534_s19, 16, %s606_s1, [#allocation53]  }
 0x233   :  { %p14626_p1 = por %p14625_p0, %p14624_p13 }
 0x235   :  { %p14627_p2 = pnand %p14626_p1, %p14620_p12 }
 0x237   :  { %14630 = shalt.err (!%p14627_p2)
}
 0x238   :  { %632 = dma.hbm_to_vmem [thread:$0]  %s15191_s4, 16, %s630_s0, [#allocation56]  }
 0x239   :  { %14631 = dma.done.wait [#allocation3], 16  }
 0x23a   :  { %14632 = vsyncadd [#allocation3], 4294967280 }
 0x23b   :  { %14633 = dma.done.wait [#allocation5], 32  }
 0x23c   :  { %14634 = vsyncadd [#allocation5], 4294967264 }
 0x23d   :  { %14635 = dma.done.wait [#allocation8], 32  }
 0x23e   :  { %14636 = vsyncadd [#allocation8], 4294967264 }
 0x23f   :  { %14637 = dma.done.wait [#allocation11], 32  }
 0x240   :  { %14638 = vsyncadd [#allocation11], 4294967264 }
 0x241   :  { %14639 = dma.done.wait [#allocation14], 32  }
 0x242   :  { %14640 = vsyncadd [#allocation14], 4294967264 }
 0x243   :  { %14641 = dma.done.wait [#allocation17], 32  }
 0x244   :  { %14642 = vsyncadd [#allocation17], 4294967264 }
 0x245   :  { %14643 = dma.done.wait [#allocation20], 32  }
 0x246   :  { %14644 = vsyncadd [#allocation20], 4294967264 }
 0x247   :  { %14645 = dma.done.wait [#allocation23], 32  }
 0x248   :  { %14646 = vsyncadd [#allocation23], 4294967264 }
 0x249   :  { %14647 = dma.done.wait [#allocation26], 32  }
 0x24a   :  { %14648 = vsyncadd [#allocation26], 4294967264 }
 0x24b   :  { %14649 = dma.done.wait [#allocation29], 32  }
 0x24c   :  { %14650 = vsyncadd [#allocation29], 4294967264 }
 0x24d   :  { %14651 = dma.done.wait [#allocation32], 32  }
 0x24e   :  { %14652 = vsyncadd [#allocation32], 4294967264 }
 0x24f   :  { %14653 = dma.done.wait [#allocation35], 32  }
 0x250   :  { %14654 = vsyncadd [#allocation35], 4294967264 }
 0x251   :  { %14655 = dma.done.wait [#allocation38], 32  }
 0x252   :  { %14656 = vsyncadd [#allocation38], 4294967264 }
 0x253   :  { %14657 = dma.done.wait [#allocation41], 32  }
 0x254   :  { %14658 = vsyncadd [#allocation41], 4294967264 }
 0x255   :  { %14659 = dma.done.wait [#allocation44], 32  }
 0x256   :  { %14660 = vsyncadd [#allocation44], 4294967264 }
 0x257   :  { %14661 = dma.done.wait [#allocation47], 32  }
 0x258   :  { %14662 = vsyncadd [#allocation47], 4294967264 }
 0x259   :  { %14663 = dma.done.wait [#allocation50], 32  }
 0x25a   :  { %14664 = vsyncadd [#allocation50], 4294967264 }
 0x25b   :  { %14665 = dma.done.wait [#allocation53], 32  }
 0x25c   :  { %14666 = vsyncadd [#allocation53], 4294967264 }
 0x25d   :  { %14667 = dma.done.wait [#allocation56], 32  }
 0x25e   :  { %14668 = vsyncadd [#allocation56], 4294967264  ;;  %s16535_s4 = sld [smem:[#allocation79_spill]]  ;;  %vm757_vm0 = vcmask 261120   ;;  %v14784_v6 = vmov 0.0   ;;  %vm14785_vm1 = vmmov 0  }
 0x25f   :  { %s16536_s25 = sld [smem:[#allocation77_spill]]  ;;  %12781 = vmatprep.subr.mxu1 %v14784_v6  ;;  %12783 = vmatprep.mubr.msk.f32.mxu1 %vm14785_vm1, %v14784_v6  ;;  %s14786_s15 = smov 96   ;;  %vm842_vm2 = vcmask 64512   ;;  %vm2663_vm3 = vcmask 523264   ;;  %vm4881_vm4 = vcmask 1040384   ;;  %vm4834_vm9 = vcmask 1041408  }
 0x260   :  { %s16537_s9 = sld [smem:[#allocation80_spill]]  ;;  %s14787_s6 = smov 64   ;;  %vm5180_vm10 = vcmask 130048   ;;  %vm5532_vm11 = vcmask 1043456  }
 0x261   :  { %s14788_s16 = smov 88   ;;  %s14789_s29 = smov 120  }
 0x262   :  { %s14790_s18 = smov 56   ;;  %s14791_s17 = smov 112  }
 0x263   :  { %s16538_s20 = sld [smem:[#allocation81_spill]]  ;;  %s14792_s22 = smov 80  }
 0x264   :  { %v749_v0 = vld [vmem:[%s16535_s4 + $0x18] sm:$0xff]  ;;  %v748_v1 = vld [vmem:[%s16535_s4 + $0x10] sm:$0xff]  ;;  %v747_v3 = vld [vmem:[%s16535_s4 + $0x8] sm:$0xff]  ;;  %s14793_s13 = smov 48   ;;  %s14794_s23 = smov 72  }
 0x265   :  { %12770 = vmatprep.subr.mxu0 %v749_v0  ;;  %v15238_v2 = vld [vmem:[%s16536_s25] sm:$0xff]  ;;  %v15245_v5 = vld [vmem:[%s16536_s25 + $0x8] sm:$0xff]  ;;  %s14795_s26 = smov 104   ;;  %s14796_s27 = smov 40  }
 0x266   :  { %12771 = vmatpush3.msra.mxu0 %v749_v0  ;;  %12778 = vmatprep.mubr.msk.f32.mxu0 %vm757_vm0, %v15238_v2  ;;  %v746_v4 = vld [vmem:[%s16535_s4] sm:$0xff]  ;;  %s16539_s28 = sld [smem:[#allocation82_spill]] }
 0x267   :  { %12772 = vmatprep.subr.mxu0 %v748_v1  ;;  %v12056_v8 = vld [vmem:[%s16537_s9] ss:$0 sm:$0xff]  ;;  %s16540_s14 = sld [smem:[#allocation85_spill]] }
 0x268   :  { %12773 = vmatpush3.msra.mxu0 %v748_v1  ;;  %s16541_s5 = sld [smem:[#allocation87_spill]] }
 0x269   :  { %12774 = vmatprep.subr.mxu0 %v747_v3  ;;  %s16542_s1 = sld [smem:[#allocation83_spill]] }
 0x26a   :  { %12775 = vmatpush3.msra.mxu0 %v747_v3  ;;  %s16543_s8 = sld [smem:[#allocation84_spill]] }
 0x26b   :  { %12776 = vmatprep.subr.mxu0 %v746_v4  ;;  %s16544_s2 = sld [smem:[#allocation86_spill]] }
 0x26c   :  { %12777 = vmatpush3.msra.mxu0 %v746_v4  ;;  %v1170_v4 = vld [vmem:[%s16538_s20] sm:$0xff]  ;;  %s16545_s7 = sld [smem:[#allocation88_spill]] }
 0x26d   :  { %12779 = vmatmul.mubr.msk.f32.vlgmr.msra.gmra.mxu0 %vm757_vm0, %v15245_v5  ;;  %12791 = vmatprep.subr.mxu0 %v14784_v6  ;;  %s16546_s10 = sld [smem:[#allocation91_spill]] }
 0x26e   :  { %12793 = vmatprep.mubr.msk.f32.mxu0 %vm14785_vm1, %v14784_v6  ;;  %s16547_s11 = sld [smem:[#allocation89_spill]] }
 0x26f   :  { %s16548_s19 = sld [smem:[#allocation90_spill]] }
 0x270   :  { %s16549_s21 = sld [smem:[#allocation92_spill]] }
 0x271   :  { %s16550_s0 = sld [smem:[#allocation93_spill]] }
 0x272   :  { %s16551_s24 = sld [smem:[#allocation96_spill]] }
 0x273   :  { %s16552_s12 = sld [smem:[#allocation100_spill]] }
 0x274   :  { %s16553_s4 = sld [smem:[#allocation97_spill]] }
 0x275   :  { %s16555_s9 = sld [smem:[#allocation103_spill]] }
 0x32d   :  { %v12780_v7 = vpop.f32.mrf.mxu0 }
 0x32e   :  { %v15260_v11 = vadd.f32 %v12780_v7, %v12056_v8 }
 0x32f   :  { %v830_v9 = vpop.f32.mrf.mxu0 }
 0x330   :  { %v15256_v10 = vadd.f32 %v12056_v8, %v830_v9 }
 0x332   :  { %840 = vrot.lane.b32.xlu0 %v15256_v10, %s14786_s15 }
 0x336   :  { %918 = vrot.lane.b32.xlu0 %v15260_v11, %s14786_s15 }
 0x3a4   :  { %v841_v12 = vpop.permute.xlu0 %840 }
 0x3a5   :  { %12782 = vmatpush3.xpose.msk.msra.mxu1 %vm842_vm2, %v841_v12 }
 0x3a6   :  { %12786 = vmatprep.subr.mxu1 %v14784_v6 }
 0x3a8   :  { %12784 = vmatmul.mubr.msk.f32.vlgmr.msra.gmra.mxu1 %vm842_vm2, %v15256_v10  ;;  %v919_v13 = vpop.permute.xlu0 %918 }
 0x3a9   :  { %12787 = vmatpush3.xpose.msk.msra.mxu1 %vm842_vm2, %v919_v13  ;;  %12788 = vmatprep.mubr.msk.f32.mxu1 %vm14785_vm1, %v14784_v6 }
 0x3aa   :  { %12796 = vmatprep.subr.mxu1 %v14784_v6 }
 0x3ac   :  { %12789 = vmatmul.mubr.msk.f32.vlgmr.msra.gmra.mxu1 %vm842_vm2, %v15260_v11 }
 0x3ad   :  { %12798 = vmatprep.mubr.msk.f32.mxu1 %vm14785_vm1, %v14784_v6 }
 0x468   :  { %v913_v14 = vpop.f32.mrf.mxu1 }
 0x469   :  { %v994_v15 = vmul.f32 0.35355338, %v913_v14 }
 0x46a   :  { %v12785_v16 = vpop.f32.mrf.mxu1 }
 0x46b   :  { %v996_v17 = vsel %vm842_vm2, %v994_v15, -inf }
 0x46c   :  { %997 = vmax.xlane.f32.xlu1 %v996_v17  ;;  %v990_v18 = vpop.f32.mrf.mxu1 }
 0x46d   :  { %v995_v19 = vmul.f32 0.35355338, %v990_v18 }
 0x46e   :  { %v12790_v20 = vpop.f32.mrf.mxu1 }
 0x46f   :  { %v999_v21 = vsel %vm842_vm2, %v995_v19, -inf }
 0x470   :  { %1000 = vmax.xlane.f32.xlu1 %v999_v21 }
 0x481   :  { %1018 = vrot.lane.b32.xlu1 %v15256_v10, %s14787_s6 }
 0x485   :  { %1094 = vrot.lane.b32.xlu1 %v15260_v11, %s14787_s6 }
 0x489   :  { %1173 = vrot.lane.b32.xlu1 %v15256_v10, %s14788_s16 }
 0x48d   :  { %1251 = vrot.lane.b32.xlu1 %v15260_v11, %s14788_s16 }
 0x4f5   :  { %v998_v22 = vpop.xlane.xlu1 %997 }
 0x4f6   :  { %v1002_v23 = vsub.f32 %v994_v15, %v998_v22 }
 0x4f8   :  { %v1004_v24 = vmul.f32 1.442695, %v1002_v23 }
 0x4f9   :  { %v1001_v25 = vpop.xlane.xlu1 %1000 }
 0x4fa   :  { %13727 = vpow2.f32 %v1004_v24  ;;  %v1003_v26 = vsub.f32 %v995_v19, %v1001_v25  ;;  %v1503_v19 = vld [vmem:[%s16538_s20 + $0x8] sm:$0xff] }
 0x4fc   :  { %v1006_v27 = vmul.f32 1.442695, %v1003_v26 }
 0x4fd   :  { %v1019_v28 = vpop.permute.xlu1 %1018 }
 0x4fe   :  { %13729 = vpow2.f32 %v1006_v27  ;;  %12792 = vmatpush3.msra.mxu0 %v1019_v28 }
 0x4ff   :  { %12801 = vmatprep.subr.mxu0 %v14784_v6 }
 0x501   :  { %v1095_v29 = vpop.permute.xlu1 %1094 }
 0x502   :  { %12797 = vmatpush3.msra.mxu1 %v1095_v29 }
 0x503   :  { %12806 = vmatprep.subr.mxu1 %v14784_v6 }
 0x505   :  { %v1174_v34 = vpop.permute.xlu1 %1173 }
 0x507   :  { %v13728_v30 = vpop.eup %13727 }
 0x508   :  { %v1008_v31 = vsel %vm842_vm2, %v13728_v30, 0.0 }
 0x509   :  { %1009 = vadd.xlane.f32.xlu0 %v1008_v31  ;;  %v1252_v35 = vpop.permute.xlu1 %1251 }
 0x50b   :  { %v13730_v32 = vpop.eup %13729 }
 0x50c   :  { %v1011_v33 = vsel %vm842_vm2, %v13730_v32, 0.0 }
 0x50d   :  { %1012 = vadd.xlane.f32.xlu1 %v1011_v33 }
 0x51e   :  { %1249 = vrot.lane.b32.xlu1 %v15260_v11, %s14789_s29 }
 0x51f   :  { %1171 = vrot.lane.b32.xlu0 %v15256_v10, %s14789_s29 }
 0x592   :  { %v1010_v36 = vpop.xlane.xlu0 %1009 }
 0x593   :  { %13731 = vrcp.f32 %v1010_v36 }
 0x596   :  { %v1013_v37 = vpop.xlane.xlu1 %1012  ;;  %v1172_v42 = vpop.permute.xlu0 %1171 }
 0x597   :  { %13733 = vrcp.f32 %v1013_v37 }
 0x59a   :  { %v1250_v43 = vpop.permute.xlu1 %1249 }
 0x5a0   :  { %v13732_v38 = vpop.eup %13731 }
 0x5a1   :  { %v1015_v39 = vmul.f32 %v13732_v38, %v13728_v30 }
 0x5a3   :  { %12794 = vmatmul.mubr.msk.f32.vlgmr.msra.gmra.mxu0 %vm842_vm2, %v1015_v39 }
 0x5a4   :  { %v13734_v40 = vpop.eup %13733  ;;  %12802 = vmatpush3.xpose.msk.msra.mxu0 %vm842_vm2, %v1174_v34  ;;  %12803 = vmatprep.mubr.msk.f32.mxu0 %vm14785_vm1, %v14784_v6 }
 0x5a5   :  { %v1017_v41 = vmul.f32 %v13734_v40, %v13730_v32  ;;  %12811 = vmatprep.subr.mxu0 %v14784_v6 }
 0x5a7   :  { %12799 = vmatmul.mubr.msk.f32.vlgmr.msra.gmra.mxu1 %vm842_vm2, %v1017_v41  ;;  %12804 = vmatmul.mubr.msk.f32.vlgmr.msra.gmra.mxu0 %vm842_vm2, %v1172_v42 }
 0x5a8   :  { %12807 = vmatpush3.xpose.msk.msra.mxu1 %vm842_vm2, %v1252_v35  ;;  %12808 = vmatprep.mubr.msk.f32.mxu1 %vm14785_vm1, %v14784_v6 }
 0x5a9   :  { %12816 = vmatprep.subr.mxu1 %v14784_v6  ;;  %12813 = vmatprep.mubr.msk.f32.mxu0 %vm14785_vm1, %v14784_v6 }
 0x5ab   :  { %12809 = vmatmul.mubr.msk.f32.vlgmr.msra.gmra.mxu1 %vm842_vm2, %v1250_v43 }
 0x5ac   :  { %12818 = vmatprep.mubr.msk.f32.mxu1 %vm14785_vm1, %v14784_v6 }
 0x663   :  { %v1090_v44 = vpop.f32.mrf.mxu0 }
 0x665   :  { %v12795_v45 = vpop.f32.mrf.mxu0 }
 0x667   :  { %v1166_v46 = vpop.f32.mrf.mxu1  ;;  %v1245_v47 = vpop.f32.mrf.mxu0 }
 0x668   :  { %v1327_v48 = vmul.f32 0.35355338, %v1245_v47 }
 0x669   :  { %v12800_v49 = vpop.f32.mrf.mxu1  ;;  %v12805_v50 = vpop.f32.mrf.mxu0 }
 0x66a   :  { %v1329_v51 = vsel %vm842_vm2, %v1327_v48, -inf }
 0x66b   :  { %v1323_v52 = vpop.f32.mrf.mxu1  ;;  %1330 = vmax.xlane.f32.xlu1 %v1329_v51 }
 0x66c   :  { %v1328_v53 = vmul.f32 0.35355338, %v1323_v52 }
 0x66d   :  { %v12810_v54 = vpop.f32.mrf.mxu1 }
 0x66e   :  { %v1332_v55 = vsel %vm842_vm2, %v1328_v53, -inf }
 0x66f   :  { %1333 = vmax.xlane.f32.xlu0 %v1332_v55 }
 0x685   :  { %1427 = vrot.lane.b32.xlu0 %v15260_v11, %s14790_s18 }
 0x689   :  { %1666 = vrot.lane.b32.xlu0 %v15256_v10, %s14791_s17 }
 0x6f4   :  { %v1331_v56 = vpop.xlane.xlu1 %1330 }
 0x6f5   :  { %v1335_v57 = vsub.f32 %v1327_v48, %v1331_v56 }
 0x6f7   :  { %v1337_v58 = vmul.f32 1.442695, %v1335_v57  ;;  %v1998_v57 = vld [vmem:[%s16538_s20 + $0x10] sm:$0xff] }
 0x6f8   :  { %v1334_v59 = vpop.xlane.xlu0 %1333 }
 0x6f9   :  { %13735 = vpow2.f32 %v1337_v58  ;;  %v1336_v60 = vsub.f32 %v1328_v53, %v1334_v59 }
 0x6fb   :  { %v1339_v61 = vmul.f32 1.442695, %v1336_v60 }
 0x6fc   :  { %v1428_v62 = vpop.permute.xlu0 %1427 }
 0x6fd   :  { %13737 = vpow2.f32 %v1339_v61  ;;  %12817 = vmatpush3.msra.mxu1 %v1428_v62 }
 0x6fe   :  { %12826 = vmatprep.subr.mxu1 %v1170_v4 }
 0x700   :  { %v1667_v24 = vpop.permute.xlu0 %1666 }
 0x706   :  { %v13736_v63 = vpop.eup %13735 }
 0x707   :  { %v1341_v0 = vsel %vm842_vm2, %v13736_v63, 0.0 }
 0x708   :  { %1342 = vadd.xlane.f32.xlu1 %v1341_v0 }
 0x70a   :  { %v13738_v1 = vpop.eup %13737 }
 0x70b   :  { %v1344_v3 = vsel %vm842_vm2, %v13738_v1, 0.0 }
 0x70c   :  { %1345 = vadd.xlane.f32.xlu1 %v1344_v3 }
 0x71d   :  { %1351 = vrot.lane.b32.xlu1 %v15256_v10, %s14790_s18 }
 0x721   :  { %1668 = vrot.lane.b32.xlu1 %v15256_v10, %s14792_s22 }
 0x725   :  { %1746 = vrot.lane.b32.xlu1 %v15260_v11, %s14792_s22 }
 0x729   :  { %1744 = vrot.lane.b32.xlu1 %v15260_v11, %s14791_s17 }
 0x791   :  { %v1343_v7 = vpop.xlane.xlu1 %1342 }
 0x792   :  { %13739 = vrcp.f32 %v1343_v7 }
 0x795   :  { %v1346_v8 = vpop.xlane.xlu1 %1345 }
 0x796   :  { %13741 = vrcp.f32 %v1346_v8 }
 0x799   :  { %v1352_v9 = vpop.permute.xlu1 %1351 }
 0x79a   :  { %12812 = vmatpush3.msra.mxu0 %v1352_v9 }
 0x79b   :  { %12821 = vmatprep.subr.mxu0 %v1503_v19 }
 0x79d   :  { %v1669_v14 = vpop.permute.xlu1 %1668 }
 0x79f   :  { %v13740_v12 = vpop.eup %13739 }
 0x7a0   :  { %v1348_v13 = vmul.f32 %v13740_v12, %v13736_v63 }
 0x7a1   :  { %v1747_v17 = vpop.permute.xlu1 %1746 }
 0x7a2   :  { %12814 = vmatmul.mubr.msk.f32.vlgmr.msra.gmra.mxu0 %vm842_vm2, %v1348_v13 }
 0x7a3   :  { %v13742_v15 = vpop.eup %13741  ;;  %12822 = vmatpush3.msra.mxu0 %v1503_v19 }
 0x7a4   :  { %v1350_v16 = vmul.f32 %v13742_v15, %v13738_v1  ;;  %12831 = vmatprep.subr.mxu0 %v14784_v6 }
 0x7a5   :  { %v1745_v18 = vpop.permute.xlu1 %1744 }
 0x7a6   :  { %12819 = vmatmul.mubr.msk.f32.vlgmr.msra.gmra.mxu1 %vm842_vm2, %v1350_v16 }
 0x7a7   :  { %12828 = vmatprep.mubr.msk.f32.mxu1 %vm842_vm2, %v1090_v44  ;;  %12827 = vmatpush3.msra.mxu1 %v1170_v4 }
 0x7a8   :  { %12836 = vmatprep.subr.mxu1 %v14784_v6 }
 0x7aa   :  { %12829 = vmatmul.mubr.msk.f32.vlgmr.msra.gmra.mxu1 %vm842_vm2, %v1166_v46 }
 0x7ab   :  { %12837 = vmatpush3.xpose.msk.msra.mxu1 %vm842_vm2, %v1747_v17  ;;  %12838 = vmatprep.mubr.msk.f32.mxu1 %vm14785_vm1, %v14784_v6 }
 0x7ac   :  { %12846 = vmatprep.subr.mxu1 %v14784_v6 }
 0x7ae   :  { %12839 = vmatmul.mubr.msk.f32.vlgmr.msra.gmra.mxu1 %vm842_vm2, %v1745_v18 }
 0x7af   :  { %12848 = vmatprep.mubr.msk.f32.mxu1 %vm14785_vm1, %v14784_v6 }
 0x862   :  { %v1423_v20 = vpop.f32.mrf.mxu0 }
 0x863   :  { %12823 = vmatprep.mubr.msk.f32.mxu0 %vm842_vm2, %v1423_v20 }
 0x864   :  { %v12815_v21 = vpop.f32.mrf.mxu0 }
 0x866   :  { %v1499_v22 = vpop.f32.mrf.mxu1 }
 0x867   :  { %12824 = vmatmul.mubr.msk.f32.vlgmr.msra.gmra.mxu0 %vm842_vm2, %v1499_v22 }
 0x868   :  { %12832 = vmatpush3.xpose.msk.msra.mxu0 %vm842_vm2, %v1669_v14  ;;  %v12820_v23 = vpop.f32.mrf.mxu1  ;;  %12833 = vmatprep.mubr.msk.f32.mxu0 %vm14785_vm1, %v14784_v6 }
 0x869   :  { %12841 = vmatprep.subr.mxu0 %v14784_v6 }
 0x86a   :  { %v15347_v25 = vpop.f32.mrf.mxu1 }
 0x86b   :  { %12834 = vmatmul.mubr.msk.f32.vlgmr.msra.gmra.mxu0 %vm842_vm2, %v1667_v24 }
 0x86c   :  { %v15350_v26 = vpop.f32.mrf.mxu1  ;;  %12843 = vmatprep.mubr.msk.f32.mxu0 %vm14785_vm1, %v14784_v6 }
 0x86e   :  { %v1818_v27 = vpop.f32.mrf.mxu1 }
 0x86f   :  { %v1823_v28 = vmul.f32 0.35355338, %v1818_v27 }
 0x870   :  { %v12840_v29 = vpop.f32.mrf.mxu1 }
 0x871   :  { %v1827_v30 = vsel %vm842_vm2, %v1823_v28, -inf }
 0x872   :  { %1828 = vmax.xlane.f32.xlu1 %v1827_v30 }
 0x883   :  { %1846 = vrot.lane.b32.xlu1 %v15256_v10, %s14793_s13 }
 0x887   :  { %2084 = vrot.lane.b32.xlu1 %v15256_v10, %s14794_s23 }
 0x88b   :  { %2162 = vrot.lane.b32.xlu1 %v15260_v11, %s14794_s23 }
 0x88f   :  { %2160 = vrot.lane.b32.xlu1 %v15260_v11, %s14795_s26 }
 0x8fb   :  { %v1829_v31 = vpop.xlane.xlu1 %1828 }
 0x8fc   :  { %v1831_v33 = vsub.f32 %v1823_v28, %v1829_v31 }
 0x8fe   :  { %v1834_v34 = vmul.f32 1.442695, %v1831_v33 }
 0x8ff   :  { %v1847_v32 = vpop.permute.xlu1 %1846 }
 0x900   :  { %12842 = vmatpush3.msra.mxu0 %v1847_v32  ;;  %13743 = vpow2.f32 %v1834_v34 }
 0x901   :  { %12851 = vmatprep.subr.mxu0 %v1998_v57 }
 0x903   :  { %v2085_v53 = vpop.permute.xlu1 %2084 }
 0x907   :  { %v2163_v0 = vpop.permute.xlu1 %2162 }
 0x90b   :  { %v2161_v4 = vpop.permute.xlu1 %2160 }
 0x90d   :  { %v13744_v41 = vpop.eup %13743 }
 0x90e   :  { %v1839_v42 = vsel %vm842_vm2, %v13744_v41, 0.0 }
 0x927   :  { %v15363_v35 = vpop.f32.mrf.mxu0 }
 0x928   :  { %v1663_v14 = vadd.f32 %v15347_v25, %v15363_v35 }
 0x929   :  { %v15365_v36 = vpop.f32.mrf.mxu0 }
 0x92b   :  { %v1740_v37 = vpop.f32.mrf.mxu0 }
 0x92c   :  { %v1822_v38 = vmul.f32 0.35355338, %v1740_v37 }
 0x92d   :  { %v12835_v39 = vpop.f32.mrf.mxu0 }
 0x92e   :  { %v1824_v40 = vsel %vm842_vm2, %v1822_v38, -inf }
 0x92f   :  { %1825 = vmax.xlane.f32.xlu0 %v1824_v40  ;;  %v1658_v40 = vadd.f32 %v15350_v26, %v15365_v36 }
 0x933   :  { %1840 = vadd.xlane.f32.xlu0 %v1839_v42  ;;  %v12091_v42 = vld [vmem:[%s16539_s28] ss:$0 sm:$0xff]  ;;  %s16557_s28 = sld [smem:[#allocation106_spill]] }
 0x9b8   :  { %v1826_v43 = vpop.xlane.xlu0 %1825 }
 0x9b9   :  { %v1830_v44 = vsub.f32 %v1822_v38, %v1826_v43 }
 0x9bb   :  { %v1832_v45 = vmul.f32 1.442695, %v1830_v44 }
 0x9bc   :  { %v1841_v48 = vpop.xlane.xlu0 %1840 }
 0x9bd   :  { %13745 = vpow2.f32 %v1832_v45 }
 0x9be   :  { %13747 = vrcp.f32 %v1841_v48 }
 0x9ca   :  { %v13746_v46 = vpop.eup %13745 }
 0x9cb   :  { %v1836_v47 = vsel %vm842_vm2, %v13746_v46, 0.0  ;;  %v13748_v50 = vpop.eup %13747 }
 0x9cc   :  { %1837 = vadd.xlane.f32.xlu0 %v1836_v47  ;;  %v1845_v52 = vmul.f32 %v13748_v50, %v13744_v41 }
 0x9e2   :  { %1922 = vrot.lane.b32.xlu0 %v15260_v11, %s14793_s13 }
 0x9e6   :  { %2082 = vrot.lane.b32.xlu0 %v15256_v10, %s14795_s26 }
 0xa55   :  { %v1838_v49 = vpop.xlane.xlu0 %1837 }
 0xa56   :  { %13749 = vrcp.f32 %v1838_v49 }
 0xa59   :  { %v1923_v51 = vpop.permute.xlu0 %1922 }
 0xa5a   :  { %12847 = vmatpush3.msra.mxu1 %v1923_v51 }
 0xa5b   :  { %12849 = vmatmul.mubr.msk.f32.vlgmr.msra.gmra.mxu1 %vm842_vm2, %v1845_v52  ;;  %12856 = vmatprep.subr.mxu1 %v14784_v6 }
 0xa5c   :  { %12857 = vmatpush3.xpose.msk.msra.mxu1 %vm842_vm2, %v2085_v53  ;;  %12858 = vmatprep.mubr.msk.f32.mxu1 %vm14785_vm1, %v14784_v6 }
 0xa5d   :  { %v2083_v54 = vpop.permute.xlu0 %2082  ;;  %12866 = vmatprep.subr.mxu1 %v14784_v6 }
 0xa5f   :  { %12859 = vmatmul.mubr.msk.f32.vlgmr.msra.gmra.mxu1 %vm842_vm2, %v2083_v54 }
 0xa60   :  { %12868 = vmatprep.mubr.msk.f32.mxu1 %vm14785_vm1, %v14784_v6 }
 0xa63   :  { %v13750_v55 = vpop.eup %13749 }
 0xa64   :  { %v1843_v56 = vmul.f32 %v13750_v55, %v13746_v46 }
 0xa66   :  { %12844 = vmatmul.mubr.msk.f32.vlgmr.msra.gmra.mxu0 %vm842_vm2, %v1843_v56 }
 0xa67   :  { %12852 = vmatpush3.msra.mxu0 %v1998_v57 }
 0xa68   :  { %12861 = vmatprep.subr.mxu0 %v14784_v6 }
 0xb1b   :  { %v1994_v58 = vpop.f32.mrf.mxu1 }
 0xb1d   :  { %v12850_v59 = vpop.f32.mrf.mxu1 }
 0xb1e   :  { %v2557_v59 = vld [vmem:[%s16540_s14 + $0x18] sm:$0xff] }
 0xb1f   :  { %v2156_v60 = vpop.f32.mrf.mxu1 }
 0xb20   :  { %v2238_v61 = vmul.f32 0.35355338, %v2156_v60  ;;  %v2556_v60 = vld [vmem:[%s16540_s14 + $0x10] sm:$0xff] }
 0xb21   :  { %v12860_v62 = vpop.f32.mrf.mxu1 }
 0xb22   :  { %v2240_v63 = vsel %vm842_vm2, %v2238_v61, -inf  ;;  %v2554_v62 = vld [vmem:[%s16540_s14] sm:$0xff] }
 0xb23   :  { %2241 = vmax.xlane.f32.xlu0 %v2240_v63  ;;  %v2655_v63 = vld [vmem:[%s16541_s5 + $0x38] sm:$0xff] }
 0xb26   :  { %v1918_v1 = vpop.f32.mrf.mxu0 }
 0xb27   :  { %12853 = vmatprep.mubr.msk.f32.mxu0 %vm842_vm2, %v1918_v1  ;;  %v2653_v1 = vld [vmem:[%s16541_s5 + $0x28] sm:$0xff] }
 0xb28   :  { %v12845_v3 = vpop.f32.mrf.mxu0  ;;  %12854 = vmatmul.mubr.msk.f32.vlgmr.msra.gmra.mxu0 %vm842_vm2, %v1994_v58 }
 0xb29   :  { %12862 = vmatpush3.xpose.msk.msra.mxu0 %vm842_vm2, %v2163_v0  ;;  %12863 = vmatprep.mubr.msk.f32.mxu0 %vm14785_vm1, %v14784_v6  ;;  %v2654_v0 = vld [vmem:[%s16541_s5 + $0x30] sm:$0xff]  ;;  %v2652_v3 = vld [vmem:[%s16541_s5 + $0x20] sm:$0xff] }
 0xb2a   :  { %12871 = vmatprep.subr.mxu0 %v14784_v6 }
 0xb2c   :  { %12864 = vmatmul.mubr.msk.f32.vlgmr.msra.gmra.mxu0 %vm842_vm2, %v2161_v4 }
 0xb2d   :  { %12873 = vmatprep.mubr.msk.f32.mxu0 %vm14785_vm1, %v14784_v6 }
 0xbac   :  { %v2242_v7 = vpop.xlane.xlu0 %2241 }
 0xbad   :  { %v2246_v8 = vsub.f32 %v2238_v61, %v2242_v7  ;;  %v2555_v61 = vld [vmem:[%s16540_s14 + $0x8] sm:$0xff]  ;;  %s16558_s14 = sld [smem:[#allocation107_spill]] }
 0xbaf   :  { %v2248_v9 = vmul.f32 1.442695, %v2246_v8 }
 0xbb1   :  { %13751 = vpow2.f32 %v2248_v9 }
 0xbbe   :  { %v13752_v12 = vpop.eup %13751 }
 0xbbf   :  { %v2252_v13 = vsel %vm842_vm2, %v13752_v12, 0.0 }
 0xbc0   :  { %2253 = vadd.xlane.f32.xlu0 %v2252_v13 }
 0xbe8   :  { %v12855_v15 = vpop.f32.mrf.mxu0 }
 0xbe9   :  { %v2081_v16 = vadd.f32 %v12855_v15, %v1663_v14  ;;  %v12092_v15 = vld [vmem:[%s16542_s1] ss:$0 sm:$0xff]  ;;  %s16560_s1 = sld [smem:[#allocation78_spill]] }
 0xbea   :  { %v2071_v17 = vpop.f32.mrf.mxu0 }
 0xbeb   :  { %v2080_v43 = vadd.f32 %v2071_v17, %v1658_v40 }
 0xbec   :  { %v2234_v18 = vpop.f32.mrf.mxu0 }
 0xbed   :  { %v2239_v19 = vmul.f32 0.35355338, %v2234_v18 }
 0xbee   :  { %v12865_v20 = vpop.f32.mrf.mxu0 }
 0xbef   :  { %v2243_v21 = vsel %vm842_vm2, %v2239_v19, -inf  ;;  %v12093_v20 = vld [vmem:[%s16543_s8] ss:$0 sm:$0xff]  ;;  %s16561_s8 = sld [smem:[#allocation109_spill]] }
 0xbf0   :  { %2244 = vmax.xlane.f32.xlu1 %v2243_v21 }
 0xc01   :  { %2262 = vrot.lane.b32.xlu1 %v15256_v10, %s14796_s27  ;;  %v2414_v10 = vld [vmem:[%s16538_s20 + $0x18] sm:$0xff]  ;;  %s16556_s20 = sld [smem:[#allocation104_spill]] }
 0xc49   :  { %v2254_v22 = vpop.xlane.xlu0 %2253 }
 0xc4a   :  { %13753 = vrcp.f32 %v2254_v22 }
 0xc57   :  { %v13754_v24 = vpop.eup %13753 }
 0xc58   :  { %v2259_v29 = vmul.f32 %v13754_v24, %v13752_v12  ;;  %v2651_v24 = vld [vmem:[%s16541_s5 + $0x18] sm:$0xff] }
 0xc79   :  { %v2245_v23 = vpop.xlane.xlu1 %2244 }
 0xc7a   :  { %v2247_v27 = vsub.f32 %v2239_v19, %v2245_v23 }
 0xc7c   :  { %v2250_v25 = vmul.f32 1.442695, %v2247_v27  ;;  %v2650_v27 = vld [vmem:[%s16541_s5 + $0x10] sm:$0xff] }
 0xc7d   :  { %v2263_v28 = vpop.permute.xlu1 %2262 }
 0xc7e   :  { %13755 = vpow2.f32 %v2250_v25  ;;  %12867 = vmatpush3.msra.mxu1 %v2263_v28  ;;  %v2649_v25 = vld [vmem:[%s16541_s5 + $0x8] sm:$0xff]  ;;  %v2648_v28 = vld [vmem:[%s16541_s5] sm:$0xff]  ;;  %s16559_s5 = sld [smem:[#allocation110_spill]] }
 0xc7f   :  { %12869 = vmatmul.mubr.msk.f32.vlgmr.msra.gmra.mxu1 %vm842_vm2, %v2259_v29  ;;  %12876 = vmatprep.subr.mxu1 %v2414_v10  ;;  %v12094_v29 = vld [vmem:[%s16544_s2] ss:$0 sm:$0xff]  ;;  %s16562_s2 = sld [smem:[#allocation112_spill]] }
 0xc80   :  { %12877 = vmatpush3.msra.mxu1 %v2414_v10 }
 0xc81   :  { %12892 = vmatprep.subr.mxu1 %v2655_v63 }
 0xc8b   :  { %v13756_v30 = vpop.eup %13755 }
 0xc8c   :  { %v2255_v31 = vsel %vm842_vm2, %v13756_v30, 0.0 }
 0xc8d   :  { %2256 = vadd.xlane.f32.xlu0 %v2255_v31 }
 0xca3   :  { %2338 = vrot.lane.b32.xlu0 %v15260_v11, %s14796_s27 }
 0xd16   :  { %v2257_v32 = vpop.xlane.xlu0 %2256 }
 0xd17   :  { %13757 = vrcp.f32 %v2257_v32 }
 0xd1a   :  { %v2339_v33 = vpop.permute.xlu0 %2338 }
 0xd1b   :  { %12872 = vmatpush3.msra.mxu0 %v2339_v33 }
 0xd1c   :  { %12881 = vmatprep.subr.mxu0 %v2557_v59 }
 0xd24   :  { %v13758_v34 = vpop.eup %13757 }
 0xd25   :  { %v2261_v35 = vmul.f32 %v13758_v34, %v13756_v30 }
 0xd27   :  { %12874 = vmatmul.mubr.msk.f32.vlgmr.msra.gmra.mxu0 %vm842_vm2, %v2261_v35  ;;  %v12097_v35 = vld [vmem:[%s16545_s7] ss:$0 sm:$0xff]  ;;  %s16563_s7 = sld [smem:[#allocation114_spill]] }
 0xd28   :  { %12882 = vmatpush3.msra.mxu0 %v2557_v59 }
 0xd29   :  { %12883 = vmatprep.subr.mxu0 %v2556_v60 }
 0xd2a   :  { %12884 = vmatpush3.msra.mxu0 %v2556_v60 }
 0xd2b   :  { %12885 = vmatprep.subr.mxu0 %v2555_v61 }
 0xd2c   :  { %12886 = vmatpush3.msra.mxu0 %v2555_v61  ;;  %v12100_v61 = vld [vmem:[%s16547_s11] ss:$0 sm:$0xff]  ;;  %s16565_s11 = sld [smem:[#allocation118_spill]] }
 0xd2d   :  { %12887 = vmatprep.subr.mxu0 %v2554_v62 }
 0xd2e   :  { %12888 = vmatpush3.msra.mxu0 %v2554_v62 }
 0xd3f   :  { %v2334_v37 = vpop.f32.mrf.mxu1 }
 0xd40   :  { %12878 = vmatprep.mubr.msk.f32.mxu1 %vm842_vm2, %v2334_v37 }
 0xd41   :  { %v12870_v38 = vpop.f32.mrf.mxu1 }
 0xde7   :  { %v2410_v39 = vpop.f32.mrf.mxu0 }
 0xde8   :  { %12879 = vmatmul.mubr.msk.f32.vlgmr.msra.gmra.mxu1 %vm842_vm2, %v2410_v39 }
 0xde9   :  { %v12875_v11 = vpop.f32.mrf.mxu0  ;;  %12893 = vmatpush3.msra.mxu1 %v2655_v63 }
 0xdea   :  { %12894 = vmatprep.subr.mxu1 %v2654_v0 }
 0xdeb   :  { %12895 = vmatpush3.msra.mxu1 %v2654_v0 }
 0xdec   :  { %12896 = vmatprep.subr.mxu1 %v2653_v1 }
 0xded   :  { %12897 = vmatpush3.msra.mxu1 %v2653_v1 }
 0xdee   :  { %12898 = vmatprep.subr.mxu1 %v2652_v3 }
 0xdef   :  { %12899 = vmatpush3.msra.mxu1 %v2652_v3  ;;  %v12101_v3 = vld [vmem:[%s16548_s19] ss:$0 sm:$0xff] }
 0xdf0   :  { %12900 = vmatprep.subr.mxu1 %v2651_v24 }
 0xdf1   :  { %12901 = vmatpush3.msra.mxu1 %v2651_v24 }
 0xdf2   :  { %12902 = vmatprep.subr.mxu1 %v2650_v27 }
 0xdf3   :  { %12903 = vmatpush3.msra.mxu1 %v2650_v27 }
 0xdf4   :  { %12904 = vmatprep.subr.mxu1 %v2649_v25 }
 0xdf5   :  { %12905 = vmatpush3.msra.mxu1 %v2649_v25 }
 0xdf6   :  { %12906 = vmatprep.subr.mxu1 %v2648_v28 }
 0xdf7   :  { %12907 = vmatpush3.msra.mxu1 %v2648_v28 }
 0xdf8   :  { %12927 = vmatprep.subr.mxu1 %v14784_v6 }
 0xea8   :  { %v12880_v41 = vpop.f32.mrf.mxu1 }
 0xea9   :  { %v2497_v44 = vadd.f32 %v12880_v41, %v2081_v16 }
 0xeaa   :  { %v2487_v45 = vpop.f32.mrf.mxu1 }
 0xeab   :  { %v2506_v46 = vadd.f32 %v12091_v42, %v2497_v44  ;;  %v2496_v47 = vadd.f32 %v2487_v45, %v2080_v43 }
 0xead   :  { %v2505_v48 = vadd.f32 %v12091_v42, %v2496_v47  ;;  %v2508_v49 = vadd.f32 %v2506_v46, %v15245_v5 }
 0xeaf   :  { %v2514_v50 = vsel %vm757_vm0, %v2508_v49, 0.0  ;;  %v2507_v51 = vadd.f32 %v2505_v48, %v15238_v2 }
 0xeb0   :  { %2515 = vadd.xlane.f32.xlu0 %v2514_v50 }
 0xeb1   :  { %v2511_v52 = vsel %vm757_vm0, %v2507_v51, 0.0 }
 0xeb2   :  { %2512 = vadd.xlane.f32.xlu1 %v2511_v52 }
 0xf39   :  { %v2516_v26 = vpop.xlane.xlu0 %2515 }
 0xf3a   :  { %v2519_v36 = vmul.f32 0.03125, %v2516_v26 }
 0xf3b   :  { %v2513_v53 = vpop.xlane.xlu1 %2512 }
 0xf3c   :  { %v2521_v54 = vsub.f32 %v2508_v49, %v2519_v36  ;;  %v2518_v55 = vmul.f32 0.03125, %v2513_v53  ;;  %v2794_v36 = vld [vmem:[%s16546_s10 + $0x18] sm:$0xff]  ;;  %v2793_v53 = vld [vmem:[%s16546_s10 + $0x10] sm:$0xff] }
 0xf3d   :  { %12911 = vmatprep.subr.mxu0 %v2794_v36 }
 0xf3e   :  { %v2520_v56 = vsub.f32 %v2507_v51, %v2518_v55  ;;  %v2523_v57 = vmul.f32 %v2521_v54, %v2521_v54  ;;  %v2791_v55 = vld [vmem:[%s16546_s10] sm:$0xff] }
 0xf40   :  { %v2527_v5 = vsel %vm757_vm0, %v2523_v57, 0.0  ;;  %v2522_v58 = vmul.f32 %v2520_v56, %v2520_v56 }
 0xf41   :  { %2528 = vadd.xlane.f32.xlu0 %v2527_v5 }
 0xf42   :  { %v2524_v2 = vsel %vm757_vm0, %v2522_v58, 0.0 }
 0xf43   :  { %2525 = vadd.xlane.f32.xlu1 %v2524_v2 }
 0xfca   :  { %v2529_v4 = vpop.xlane.xlu0 %2528 }
 0xfcb   :  { %v2531_v7 = vmul.f32 0.03125, %v2529_v4 }
 0xfcc   :  { %v2526_v8 = vpop.xlane.xlu1 %2525 }
 0xfcd   :  { %v2533_v9 = vadd.f32 1e-05, %v2531_v7  ;;  %v2530_v12 = vmul.f32 0.03125, %v2526_v8 }
 0xfcf   :  { %13759 = vrsqrt.f32 %v2533_v9  ;;  %v2532_v13 = vadd.f32 1e-05, %v2530_v12  ;;  %v12102_v9 = vld [vmem:[%s16549_s21] ss:$0 sm:$0xff] }
 0xfd1   :  { %13761 = vrsqrt.f32 %v2532_v13 }
 0xfdc   :  { %v13760_v14 = vpop.eup %13759 }
 0xfdd   :  { %v2537_v16 = vmul.f32 %v13760_v14, %v2521_v54  ;;  %v2792_v54 = vld [vmem:[%s16546_s10 + $0x8] sm:$0xff]  ;;  %s16564_s10 = sld [smem:[#allocation116_spill]] }
 0xfde   :  { %v13762_v17 = vpop.eup %13761 }
 0xfdf   :  { %v2536_v18 = vmul.f32 %v13762_v17, %v2520_v56  ;;  %v2545_v19 = vmul.f32 %v12092_v15, %v2537_v16 }
 0xfe1   :  { %v2544_v21 = vmul.f32 %v12092_v15, %v2536_v18  ;;  %v2553_v23 = vadd.f32 %v12093_v20, %v2545_v19 }
 0xfe3   :  { %v2552_v22 = vadd.f32 %v12093_v20, %v2544_v21 }
 0xfe5   :  { %12889 = vmatprep.mubr.msk.f32.mxu0 %vm757_vm0, %v2552_v22 }
 0xfe6   :  { %12890 = vmatmul.mubr.msk.f32.vlgmr.msra.gmra.mxu0 %vm757_vm0, %v2553_v23 }
 0xfe7   :  { %12912 = vmatpush3.msra.mxu0 %v2794_v36 }
 0xfe8   :  { %12913 = vmatprep.subr.mxu0 %v2793_v53 }
 0xfe9   :  { %12914 = vmatpush3.msra.mxu0 %v2793_v53 }
 0xfea   :  { %12915 = vmatprep.subr.mxu0 %v2792_v54 }
 0xfeb   :  { %12916 = vmatpush3.msra.mxu0 %v2792_v54 }
 0xfec   :  { %12917 = vmatprep.subr.mxu0 %v2791_v55 }
 0xfed   :  { %12918 = vmatpush3.msra.mxu0 %v2791_v55 }
 0xfee   :  { %12922 = vmatprep.subr.mxu0 %v14784_v6 }
0x10a6   :  { %v12891_v30 = vpop.f32.mrf.mxu0 }
0x10a7   :  { %v2643_v31 = vadd.f32 %v12891_v30, %v12094_v29 }
0x10a8   :  { %v2637_v10 = vpop.f32.mrf.mxu0 }
0x10a9   :  { %v2638_v32 = vadd.f32 %v12094_v29, %v2637_v10  ;;  %v2647_v34 = vmax.f32 %v2643_v31, 0.0 }
0x10ab   :  { %v2646_v33 = vmax.f32 %v2638_v32, 0.0 }
0x10ad   :  { %12908 = vmatprep.mubr.msk.f32.mxu1 %vm2663_vm3, %v2646_v33 }
0x10ae   :  { %12909 = vmatmul.mubr.msk.f32.vlgmr.msra.gmra.mxu1 %vm2663_vm3, %v2647_v34 }
0x10af   :  { %12929 = vmatprep.mubr.msk.f32.mxu1 %vm14785_vm1, %v14784_v6 }
0x116e   :  { %v12910_v37 = vpop.f32.mrf.mxu1 }
0x116f   :  { %v2742_v38 = vadd.f32 %v12910_v37, %v12097_v35 }
0x1170   :  { %v2736_v39 = vpop.f32.mrf.mxu1 }
0x1171   :  { %v2737_v11 = vadd.f32 %v12097_v35, %v2736_v39  ;;  %v2746_v40 = vadd.f32 %v2742_v38, %v2553_v23 }
0x1173   :  { %v2752_v41 = vsel %vm757_vm0, %v2746_v40, 0.0  ;;  %v2745_v42 = vadd.f32 %v2737_v11, %v2552_v22 }
0x1174   :  { %2753 = vadd.xlane.f32.xlu0 %v2752_v41 }
0x1175   :  { %v2749_v43 = vsel %vm757_vm0, %v2745_v42, 0.0 }
0x1176   :  { %2750 = vadd.xlane.f32.xlu1 %v2749_v43 }
0x11fd   :  { %v2754_v44 = vpop.xlane.xlu0 %2753 }
0x11fe   :  { %v2756_v45 = vmul.f32 0.03125, %v2754_v44 }
0x11ff   :  { %v2751_v46 = vpop.xlane.xlu1 %2750 }
0x1200   :  { %v2758_v47 = vsub.f32 %v2746_v40, %v2756_v45  ;;  %v2755_v48 = vmul.f32 0.03125, %v2751_v46 }
0x1202   :  { %v2757_v49 = vsub.f32 %v2745_v42, %v2755_v48  ;;  %v2760_v50 = vmul.f32 %v2758_v47, %v2758_v47 }
0x1204   :  { %v2764_v51 = vsel %vm757_vm0, %v2760_v50, 0.0  ;;  %v2759_v52 = vmul.f32 %v2757_v49, %v2757_v49 }
0x1205   :  { %2765 = vadd.xlane.f32.xlu0 %v2764_v51 }
0x1206   :  { %v2761_v26 = vsel %vm757_vm0, %v2759_v52, 0.0 }
0x1207   :  { %2762 = vadd.xlane.f32.xlu1 %v2761_v26 }
0x128e   :  { %v2766_v56 = vpop.xlane.xlu0 %2765 }
0x128f   :  { %v2768_v57 = vmul.f32 0.03125, %v2766_v56 }
0x1290   :  { %v2763_v5 = vpop.xlane.xlu1 %2762 }
0x1291   :  { %v2770_v58 = vadd.f32 1e-05, %v2768_v57  ;;  %v2767_v2 = vmul.f32 0.03125, %v2763_v5 }
0x1293   :  { %13763 = vrsqrt.f32 %v2770_v58  ;;  %v2769_v59 = vadd.f32 1e-05, %v2767_v2 }
0x1295   :  { %13765 = vrsqrt.f32 %v2769_v59 }
0x12a0   :  { %v13764_v60 = vpop.eup %13763 }
0x12a1   :  { %v2774_v62 = vmul.f32 %v13764_v60, %v2758_v47 }
0x12a2   :  { %v13766_v63 = vpop.eup %13765 }
0x12a3   :  { %v2773_v0 = vmul.f32 %v13766_v63, %v2757_v49  ;;  %v2782_v1 = vmul.f32 %v12100_v61, %v2774_v62 }
0x12a5   :  { %v2781_v4 = vmul.f32 %v12100_v61, %v2773_v0  ;;  %v15455_v8 = vadd.f32 %v12101_v3, %v2782_v1 }
0x12a7   :  { %v15453_v7 = vadd.f32 %v12101_v3, %v2781_v4 }
0x12a9   :  { %12919 = vmatprep.mubr.msk.f32.mxu0 %vm757_vm0, %v15453_v7 }
0x12aa   :  { %12920 = vmatmul.mubr.msk.f32.vlgmr.msra.gmra.mxu0 %vm757_vm0, %v15455_v8 }
0x12ab   :  { %12924 = vmatprep.mubr.msk.f32.mxu0 %vm14785_vm1, %v14784_v6 }
0x136a   :  { %v12921_v12 = vpop.f32.mrf.mxu0 }
0x136b   :  { %v15464_v13 = vadd.f32 %v12921_v12, %v12102_v9  ;;  %v3213_v12 = vld [vmem:[%s16550_s0] sm:$0xff] }
0x136c   :  { %v2874_v14 = vpop.f32.mrf.mxu0 }
0x136d   :  { %v15466_v15 = vadd.f32 %v12102_v9, %v2874_v14  ;;  %2961 = vrot.lane.b32.xlu0 %v15464_v13, %s14786_s15 }
0x136f   :  { %2884 = vrot.lane.b32.xlu1 %v15466_v15, %s14786_s15 }
0x13df   :  { %v2962_v16 = vpop.permute.xlu0 %2961 }
0x13e0   :  { %12928 = vmatpush3.xpose.msk.msra.mxu1 %vm842_vm2, %v2962_v16 }
0x13e1   :  { %v2885_v17 = vpop.permute.xlu1 %2884  ;;  %12937 = vmatprep.subr.mxu1 %v14784_v6 }
0x13e2   :  { %12923 = vmatpush3.xpose.msk.msra.mxu0 %vm842_vm2, %v2885_v17 }
0x13e3   :  { %12930 = vmatmul.mubr.msk.f32.vlgmr.msra.gmra.mxu1 %vm842_vm2, %v15464_v13  ;;  %12932 = vmatprep.subr.mxu0 %v14784_v6 }
0x13e4   :  { %12939 = vmatprep.mubr.msk.f32.mxu1 %vm14785_vm1, %v14784_v6 }
0x13e5   :  { %12925 = vmatmul.mubr.msk.f32.vlgmr.msra.gmra.mxu0 %vm842_vm2, %v15466_v15 }
0x13e6   :  { %12934 = vmatprep.mubr.msk.f32.mxu0 %vm14785_vm1, %v14784_v6 }
0x14a3   :  { %v3033_v18 = vpop.f32.mrf.mxu1 }
0x14a4   :  { %v3038_v19 = vmul.f32 0.35355338, %v3033_v18 }
0x14a5   :  { %v2956_v20 = vpop.f32.mrf.mxu0  ;;  %v12931_v21 = vpop.f32.mrf.mxu1 }
0x14a6   :  { %v3037_v22 = vmul.f32 0.35355338, %v2956_v20  ;;  %v3042_v23 = vsel %vm842_vm2, %v3038_v19, -inf }
0x14a7   :  { %3043 = vmax.xlane.f32.xlu0 %v3042_v23  ;;  %v12926_v24 = vpop.f32.mrf.mxu0  ;;  %v3546_v23 = vld [vmem:[%s16550_s0 + $0x8] sm:$0xff] }
0x14a8   :  { %v3039_v27 = vsel %vm842_vm2, %v3037_v22, -inf }
0x14a9   :  { %3040 = vmax.xlane.f32.xlu1 %v3039_v27 }
0x14ba   :  { %3061 = vrot.lane.b32.xlu1 %v15466_v15, %s14787_s6 }
0x14bd   :  { %3137 = vrot.lane.b32.xlu0 %v15464_v13, %s14787_s6 }
0x14be   :  { %3216 = vrot.lane.b32.xlu1 %v15466_v15, %s14788_s16 }
0x14c2   :  { %3294 = vrot.lane.b32.xlu1 %v15464_v13, %s14788_s16 }
0x1530   :  { %v3044_v25 = vpop.xlane.xlu0 %3043 }
0x1531   :  { %v3046_v28 = vsub.f32 %v3038_v19, %v3044_v25 }
0x1532   :  { %v3041_v29 = vpop.xlane.xlu1 %3040 }
0x1533   :  { %v3049_v30 = vmul.f32 1.442695, %v3046_v28  ;;  %v3045_v31 = vsub.f32 %v3037_v22, %v3041_v29 }
0x1534   :  { %v3138_v10 = vpop.permute.xlu0 %3137 }
0x1535   :  { %13767 = vpow2.f32 %v3049_v30  ;;  %v3047_v32 = vmul.f32 1.442695, %v3045_v31  ;;  %12938 = vmatpush3.msra.mxu1 %v3138_v10 }
0x1536   :  { %v3062_v33 = vpop.permute.xlu1 %3061  ;;  %12947 = vmatprep.subr.mxu1 %v14784_v6 }
0x1537   :  { %13769 = vpow2.f32 %v3047_v32  ;;  %12933 = vmatpush3.msra.mxu0 %v3062_v33 }
0x1538   :  { %12942 = vmatprep.subr.mxu0 %v14784_v6 }
0x153a   :  { %v3217_v39 = vpop.permute.xlu1 %3216 }
0x153e   :  { %v3295_v11 = vpop.permute.xlu1 %3294 }
0x1542   :  { %v13768_v34 = vpop.eup %13767 }
0x1543   :  { %v3054_v35 = vsel %vm842_vm2, %v13768_v34, 0.0 }
0x1544   :  { %v13770_v37 = vpop.eup %13769  ;;  %3055 = vadd.xlane.f32.xlu0 %v3054_v35 }
0x1545   :  { %v3051_v38 = vsel %vm842_vm2, %v13770_v37, 0.0 }
0x1546   :  { %3052 = vadd.xlane.f32.xlu1 %v3051_v38 }
0x1557   :  { %3292 = vrot.lane.b32.xlu1 %v15464_v13, %s14789_s29 }
0x155a   :  { %3214 = vrot.lane.b32.xlu0 %v15466_v15, %s14789_s29 }
0x15cd   :  { %v3056_v40 = vpop.xlane.xlu0 %3055 }
0x15ce   :  { %13771 = vrcp.f32 %v3056_v40 }
0x15cf   :  { %v3053_v41 = vpop.xlane.xlu1 %3052 }
0x15d0   :  { %13773 = vrcp.f32 %v3053_v41 }
0x15d1   :  { %v3215_v47 = vpop.permute.xlu0 %3214 }
0x15d3   :  { %v3293_v46 = vpop.permute.xlu1 %3292 }
0x15db   :  { %v13772_v42 = vpop.eup %13771 }
0x15dc   :  { %v3060_v43 = vmul.f32 %v13772_v42, %v13768_v34 }
0x15dd   :  { %v13774_v44 = vpop.eup %13773 }
0x15de   :  { %12940 = vmatmul.mubr.msk.f32.vlgmr.msra.gmra.mxu1 %vm842_vm2, %v3060_v43  ;;  %v3058_v45 = vmul.f32 %v13774_v44, %v13770_v37 }
0x15df   :  { %12948 = vmatpush3.xpose.msk.msra.mxu1 %vm842_vm2, %v3295_v11  ;;  %12949 = vmatprep.mubr.msk.f32.mxu1 %vm14785_vm1, %v14784_v6 }
0x15e0   :  { %12935 = vmatmul.mubr.msk.f32.vlgmr.msra.gmra.mxu0 %vm842_vm2, %v3058_v45  ;;  %12957 = vmatprep.subr.mxu1 %v14784_v6 }
0x15e1   :  { %12943 = vmatpush3.xpose.msk.msra.mxu0 %vm842_vm2, %v3217_v39  ;;  %12944 = vmatprep.mubr.msk.f32.mxu0 %vm14785_vm1, %v14784_v6 }
0x15e2   :  { %12950 = vmatmul.mubr.msk.f32.vlgmr.msra.gmra.mxu1 %vm842_vm2, %v3293_v46  ;;  %12952 = vmatprep.subr.mxu0 %v14784_v6 }
0x15e3   :  { %12959 = vmatprep.mubr.msk.f32.mxu1 %vm14785_vm1, %v14784_v6 }
0x15e4   :  { %12945 = vmatmul.mubr.msk.f32.vlgmr.msra.gmra.mxu0 %vm842_vm2, %v3215_v47 }
0x15e5   :  { %12954 = vmatprep.mubr.msk.f32.mxu0 %vm14785_vm1, %v14784_v6 }
0x169e   :  { %v3209_v48 = vpop.f32.mrf.mxu1 }
0x16a0   :  { %v3133_v49 = vpop.f32.mrf.mxu0  ;;  %v12941_v50 = vpop.f32.mrf.mxu1 }
0x16a2   :  { %v12936_v51 = vpop.f32.mrf.mxu0  ;;  %v3366_v52 = vpop.f32.mrf.mxu1 }
0x16a3   :  { %v3371_v26 = vmul.f32 0.35355338, %v3366_v52 }
0x16a4   :  { %v3288_v36 = vpop.f32.mrf.mxu0  ;;  %v12951_v53 = vpop.f32.mrf.mxu1 }
0x16a5   :  { %v3370_v54 = vmul.f32 0.35355338, %v3288_v36  ;;  %v3375_v55 = vsel %vm842_vm2, %v3371_v26, -inf }
0x16a6   :  { %3376 = vmax.xlane.f32.xlu1 %v3375_v55  ;;  %v12946_v56 = vpop.f32.mrf.mxu0 }
0x16a7   :  { %v3372_v57 = vsel %vm842_vm2, %v3370_v54, -inf }
0x16a8   :  { %3373 = vmax.xlane.f32.xlu0 %v3372_v57 }
0x16b7   :  { %3394 = vrot.lane.b32.xlu1 %v15466_v15, %s14790_s18 }
0x16bb   :  { %3711 = vrot.lane.b32.xlu1 %v15466_v15, %s14792_s22 }
0x16bf   :  { %3789 = vrot.lane.b32.xlu1 %v15464_v13, %s14792_s22 }
0x16c3   :  { %3787 = vrot.lane.b32.xlu1 %v15464_v13, %s14791_s17 }
0x172f   :  { %v3377_v5 = vpop.xlane.xlu1 %3376 }
0x1730   :  { %v3379_v58 = vsub.f32 %v3371_v26, %v3377_v5 }
0x1731   :  { %v3374_v2 = vpop.xlane.xlu0 %3373 }
0x1732   :  { %v3382_v59 = vmul.f32 1.442695, %v3379_v58  ;;  %v3378_v60 = vsub.f32 %v3370_v54, %v3374_v2  ;;  %v4041_v58 = vld [vmem:[%s16550_s0 + $0x10] sm:$0xff] }
0x1733   :  { %v3395_v61 = vpop.permute.xlu1 %3394 }
0x1734   :  { %13775 = vpow2.f32 %v3382_v59  ;;  %v3380_v62 = vmul.f32 1.442695, %v3378_v60  ;;  %12953 = vmatpush3.msra.mxu0 %v3395_v61 }
0x1735   :  { %12962 = vmatprep.subr.mxu0 %v3546_v23 }
0x1736   :  { %13777 = vpow2.f32 %v3380_v62 }
0x1737   :  { %v3712_v16 = vpop.permute.xlu1 %3711 }
0x173b   :  { %v3790_v20 = vpop.permute.xlu1 %3789 }
0x173f   :  { %v3788_v22 = vpop.permute.xlu1 %3787 }
0x1741   :  { %v13776_v63 = vpop.eup %13775 }
0x1742   :  { %v3387_v0 = vsel %vm842_vm2, %v13776_v63, 0.0 }
0x1743   :  { %v13778_v1 = vpop.eup %13777  ;;  %3388 = vadd.xlane.f32.xlu0 %v3387_v0 }
0x1744   :  { %v3384_v3 = vsel %vm842_vm2, %v13778_v1, 0.0 }
0x1747   :  { %3385 = vadd.xlane.f32.xlu0 %v3384_v3 }
0x175d   :  { %3470 = vrot.lane.b32.xlu0 %v15464_v13, %s14790_s18 }
0x1761   :  { %3709 = vrot.lane.b32.xlu0 %v15466_v15, %s14791_s17 }
0x17cc   :  { %v3389_v4 = vpop.xlane.xlu0 %3388 }
0x17cd   :  { %13779 = vrcp.f32 %v3389_v4 }
0x17d0   :  { %v3386_v9 = vpop.xlane.xlu0 %3385 }
0x17d1   :  { %13781 = vrcp.f32 %v3386_v9 }
0x17d4   :  { %v3471_v14 = vpop.permute.xlu0 %3470 }
0x17d5   :  { %12958 = vmatpush3.msra.mxu1 %v3471_v14 }
0x17d6   :  { %12967 = vmatprep.subr.mxu1 %v3213_v12 }
0x17d8   :  { %v3710_v10 = vpop.permute.xlu0 %3709 }
0x17da   :  { %v13780_v17 = vpop.eup %13779 }
0x17db   :  { %v3393_v18 = vmul.f32 %v13780_v17, %v13776_v63 }
0x17dd   :  { %12960 = vmatmul.mubr.msk.f32.vlgmr.msra.gmra.mxu1 %vm842_vm2, %v3393_v18 }
0x17de   :  { %v13782_v19 = vpop.eup %13781  ;;  %12969 = vmatprep.mubr.msk.f32.mxu1 %vm842_vm2, %v3133_v49  ;;  %12968 = vmatpush3.msra.mxu1 %v3213_v12 }
0x17df   :  { %12977 = vmatprep.subr.mxu1 %v14784_v6  ;;  %v3391_v21 = vmul.f32 %v13782_v19, %v13778_v1 }
0x17e1   :  { %12955 = vmatmul.mubr.msk.f32.vlgmr.msra.gmra.mxu0 %vm842_vm2, %v3391_v21  ;;  %12970 = vmatmul.mubr.msk.f32.vlgmr.msra.gmra.mxu1 %vm842_vm2, %v3209_v48 }
0x17e2   :  { %12978 = vmatpush3.xpose.msk.msra.mxu1 %vm842_vm2, %v3790_v20  ;;  %12979 = vmatprep.mubr.msk.f32.mxu1 %vm14785_vm1, %v14784_v6 }
0x17e3   :  { %12987 = vmatprep.subr.mxu1 %v14784_v6  ;;  %12963 = vmatpush3.msra.mxu0 %v3546_v23 }
0x17e4   :  { %12972 = vmatprep.subr.mxu0 %v14784_v6 }
0x17e5   :  { %12980 = vmatmul.mubr.msk.f32.vlgmr.msra.gmra.mxu1 %vm842_vm2, %v3788_v22 }
0x17e6   :  { %12989 = vmatprep.mubr.msk.f32.mxu1 %vm14785_vm1, %v14784_v6 }
0x189d   :  { %v3542_v24 = vpop.f32.mrf.mxu1 }
0x189f   :  { %v12961_v27 = vpop.f32.mrf.mxu1 }
0x18a1   :  { %v3466_v25 = vpop.f32.mrf.mxu0  ;;  %v15549_v28 = vpop.f32.mrf.mxu1 }
0x18a2   :  { %12964 = vmatprep.mubr.msk.f32.mxu0 %vm842_vm2, %v3466_v25 }
0x18a3   :  { %v12956_v29 = vpop.f32.mrf.mxu0  ;;  %12965 = vmatmul.mubr.msk.f32.vlgmr.msra.gmra.mxu0 %vm842_vm2, %v3542_v24  ;;  %v15553_v30 = vpop.f32.mrf.mxu1 }
0x18a4   :  { %12973 = vmatpush3.xpose.msk.msra.mxu0 %vm842_vm2, %v3712_v16  ;;  %12974 = vmatprep.mubr.msk.f32.mxu0 %vm14785_vm1, %v14784_v6 }
0x18a5   :  { %v3861_v31 = vpop.f32.mrf.mxu1  ;;  %12982 = vmatprep.subr.mxu0 %v14784_v6 }
0x18a6   :  { %v3866_v32 = vmul.f32 0.35355338, %v3861_v31 }
0x18a7   :  { %12975 = vmatmul.mubr.msk.f32.vlgmr.msra.gmra.mxu0 %vm842_vm2, %v3710_v10  ;;  %v12981_v33 = vpop.f32.mrf.mxu1 }
0x18a8   :  { %v3870_v34 = vsel %vm842_vm2, %v3866_v32, -inf  ;;  %12984 = vmatprep.mubr.msk.f32.mxu0 %vm14785_vm1, %v14784_v6 }
0x18a9   :  { %3871 = vmax.xlane.f32.xlu1 %v3870_v34 }
0x18ba   :  { %3889 = vrot.lane.b32.xlu1 %v15466_v15, %s14793_s13 }
0x18be   :  { %4127 = vrot.lane.b32.xlu1 %v15466_v15, %s14794_s23 }
0x18c2   :  { %4205 = vrot.lane.b32.xlu1 %v15464_v13, %s14794_s23 }
0x18c6   :  { %4203 = vrot.lane.b32.xlu1 %v15464_v13, %s14795_s26 }
0x1932   :  { %v3872_v35 = vpop.xlane.xlu1 %3871 }
0x1933   :  { %v3874_v38 = vsub.f32 %v3866_v32, %v3872_v35 }
0x1935   :  { %v3877_v39 = vmul.f32 1.442695, %v3874_v38 }
0x1936   :  { %v3890_v37 = vpop.permute.xlu1 %3889 }
0x1937   :  { %12983 = vmatpush3.msra.mxu0 %v3890_v37  ;;  %13783 = vpow2.f32 %v3877_v39 }
0x1938   :  { %12992 = vmatprep.subr.mxu0 %v4041_v58 }
0x193a   :  { %v4128_v55 = vpop.permute.xlu1 %4127 }
0x193e   :  { %v4206_v0 = vpop.permute.xlu1 %4205 }
0x1942   :  { %v4204_v4 = vpop.permute.xlu1 %4203 }
0x1944   :  { %v13784_v45 = vpop.eup %13783 }
0x1945   :  { %v3882_v46 = vsel %vm842_vm2, %v13784_v45, 0.0 }
0x1963   :  { %v15571_v11 = vpop.f32.mrf.mxu0 }
0x1964   :  { %v3706_v18 = vadd.f32 %v15549_v28, %v15571_v11 }
0x1965   :  { %v15573_v40 = vpop.f32.mrf.mxu0 }
0x1966   :  { %v3701_v20 = vadd.f32 %v15553_v30, %v15573_v40 }
0x1967   :  { %v3783_v41 = vpop.f32.mrf.mxu0 }
0x1968   :  { %v3865_v42 = vmul.f32 0.35355338, %v3783_v41 }
0x1969   :  { %v12976_v43 = vpop.f32.mrf.mxu0 }
0x196a   :  { %v3867_v44 = vsel %vm842_vm2, %v3865_v42, -inf }
0x196b   :  { %3868 = vmax.xlane.f32.xlu0 %v3867_v44 }
0x196f   :  { %3883 = vadd.xlane.f32.xlu0 %v3882_v46 }
0x19f4   :  { %v3869_v47 = vpop.xlane.xlu0 %3868 }
0x19f5   :  { %v3873_v48 = vsub.f32 %v3865_v42, %v3869_v47 }
0x19f7   :  { %v3875_v49 = vmul.f32 1.442695, %v3873_v48 }
0x19f8   :  { %v3884_v52 = vpop.xlane.xlu0 %3883 }
0x19f9   :  { %13785 = vpow2.f32 %v3875_v49 }
0x19fa   :  { %13787 = vrcp.f32 %v3884_v52 }
0x1a06   :  { %v13786_v50 = vpop.eup %13785 }
0x1a07   :  { %v3879_v51 = vsel %vm842_vm2, %v13786_v50, 0.0  ;;  %v13788_v36 = vpop.eup %13787 }
0x1a08   :  { %3880 = vadd.xlane.f32.xlu0 %v3879_v51  ;;  %v3888_v54 = vmul.f32 %v13788_v36, %v13784_v45  ;;  %v12137_v45 = vld [vmem:[#allocation2] ss:$0 sm:$0xff] }
0x1a1e   :  { %3965 = vrot.lane.b32.xlu0 %v15464_v13, %s14793_s13 }
0x1a22   :  { %4125 = vrot.lane.b32.xlu0 %v15466_v15, %s14795_s26 }
0x1a91   :  { %v3881_v26 = vpop.xlane.xlu0 %3880 }
0x1a92   :  { %13789 = vrcp.f32 %v3881_v26 }
0x1a95   :  { %v3966_v53 = vpop.permute.xlu0 %3965 }
0x1a96   :  { %12988 = vmatpush3.msra.mxu1 %v3966_v53 }
0x1a97   :  { %12990 = vmatmul.mubr.msk.f32.vlgmr.msra.gmra.mxu1 %vm842_vm2, %v3888_v54  ;;  %12997 = vmatprep.subr.mxu1 %v14784_v6 }
0x1a98   :  { %12998 = vmatpush3.xpose.msk.msra.mxu1 %vm842_vm2, %v4128_v55  ;;  %12999 = vmatprep.mubr.msk.f32.mxu1 %vm14785_vm1, %v14784_v6 }
0x1a99   :  { %v4126_v56 = vpop.permute.xlu0 %4125  ;;  %13007 = vmatprep.subr.mxu1 %v14784_v6 }
0x1a9b   :  { %13000 = vmatmul.mubr.msk.f32.vlgmr.msra.gmra.mxu1 %vm842_vm2, %v4126_v56 }
0x1a9c   :  { %13009 = vmatprep.mubr.msk.f32.mxu1 %vm14785_vm1, %v14784_v6 }
0x1a9f   :  { %v13790_v57 = vpop.eup %13789 }
0x1aa0   :  { %v3886_v5 = vmul.f32 %v13790_v57, %v13786_v50 }
0x1aa2   :  { %12985 = vmatmul.mubr.msk.f32.vlgmr.msra.gmra.mxu0 %vm842_vm2, %v3886_v5 }
0x1aa3   :  { %12993 = vmatpush3.msra.mxu0 %v4041_v58 }
0x1aa4   :  { %13002 = vmatprep.subr.mxu0 %v14784_v6 }
0x1b57   :  { %v4037_v2 = vpop.f32.mrf.mxu1 }
0x1b59   :  { %v12991_v59 = vpop.f32.mrf.mxu1 }
0x1b5a   :  { %v4599_v59 = vld [vmem:[%s16551_s24 + $0x18] sm:$0xff] }
0x1b5b   :  { %v4199_v60 = vpop.f32.mrf.mxu1 }
0x1b5c   :  { %v4281_v61 = vmul.f32 0.35355338, %v4199_v60  ;;  %v4598_v60 = vld [vmem:[%s16551_s24 + $0x10] sm:$0xff] }
0x1b5d   :  { %v13001_v62 = vpop.f32.mrf.mxu1 }
0x1b5e   :  { %v4283_v63 = vsel %vm842_vm2, %v4281_v61, -inf  ;;  %v4596_v62 = vld [vmem:[%s16551_s24] sm:$0xff] }
0x1b5f   :  { %4284 = vmax.xlane.f32.xlu0 %v4283_v63  ;;  %v12151_v63 = vld [vmem:[%s16552_s12 + $0x38] sm:$0xff] }
0x1b62   :  { %v3961_v1 = vpop.f32.mrf.mxu0 }
0x1b63   :  { %12994 = vmatprep.mubr.msk.f32.mxu0 %vm842_vm2, %v3961_v1  ;;  %v4696_v1 = vld [vmem:[%s16553_s4 + $0x30] sm:$0xff] }
0x1b64   :  { %v12986_v3 = vpop.f32.mrf.mxu0  ;;  %12995 = vmatmul.mubr.msk.f32.vlgmr.msra.gmra.mxu0 %vm842_vm2, %v4037_v2 }
0x1b65   :  { %13003 = vmatpush3.xpose.msk.msra.mxu0 %vm842_vm2, %v4206_v0  ;;  %13004 = vmatprep.mubr.msk.f32.mxu0 %vm14785_vm1, %v14784_v6  ;;  %v4697_v0 = vld [vmem:[%s16553_s4 + $0x38] sm:$0xff]  ;;  %v4695_v3 = vld [vmem:[%s16553_s4 + $0x28] sm:$0xff] }
0x1b66   :  { %13012 = vmatprep.subr.mxu0 %v14784_v6 }
0x1b68   :  { %13005 = vmatmul.mubr.msk.f32.vlgmr.msra.gmra.mxu0 %vm842_vm2, %v4204_v4  ;;  %v4694_v4 = vld [vmem:[%s16553_s4 + $0x20] sm:$0xff] }
0x1b69   :  { %13014 = vmatprep.mubr.msk.f32.mxu0 %vm14785_vm1, %v14784_v6 }
0x1be8   :  { %v4285_v9 = vpop.xlane.xlu0 %4284 }
0x1be9   :  { %v4289_v12 = vsub.f32 %v4281_v61, %v4285_v9  ;;  %v4597_v61 = vld [vmem:[%s16551_s24 + $0x8] sm:$0xff]  ;;  %v4693_v9 = vld [vmem:[%s16553_s4 + $0x18] sm:$0xff] }
0x1beb   :  { %v4291_v14 = vmul.f32 1.442695, %v4289_v12 }
0x1bed   :  { %13791 = vpow2.f32 %v4291_v14 }
0x1bfa   :  { %v13792_v16 = vpop.eup %13791 }
0x1bfb   :  { %v4295_v17 = vsel %vm842_vm2, %v13792_v16, 0.0 }
0x1bfc   :  { %4296 = vadd.xlane.f32.xlu0 %v4295_v17 }
0x1c24   :  { %v12996_v19 = vpop.f32.mrf.mxu0 }
0x1c25   :  { %v4124_v21 = vadd.f32 %v12996_v19, %v3706_v18 }
0x1c26   :  { %v4114_v22 = vpop.f32.mrf.mxu0 }
0x1c27   :  { %v4123_v23 = vadd.f32 %v4114_v22, %v3701_v20  ;;  %v4840_v20 = vlaneseq }
0x1c28   :  { %v4277_v24 = vpop.f32.mrf.mxu0 }
0x1c29   :  { %v4282_v27 = vmul.f32 0.35355338, %v4277_v24 }
0x1c2a   :  { %v13006_v25 = vpop.f32.mrf.mxu0 }
0x1c2b   :  { %v4286_v29 = vsel %vm842_vm2, %v4282_v27, -inf  ;;  %v15639_v25 = vld [vmem:[%s16536_s25 + $0x8] sm:$0xff] }
0x1c2c   :  { %4287 = vmax.xlane.f32.xlu1 %v4286_v29  ;;  %v4879_v29 = vrot.slane %v15639_v25, 7 }
0x1c3d   :  { %4305 = vrot.lane.b32.xlu1 %v15466_v15, %s14796_s27  ;;  %v4457_v15 = vld [vmem:[%s16550_s0 + $0x18] sm:$0xff] }
0x1c85   :  { %v4297_v31 = vpop.xlane.xlu0 %4296 }
0x1c86   :  { %13793 = vrcp.f32 %v4297_v31  ;;  %v15643_v31 = vld [vmem:[%s16536_s25] sm:$0xff]  ;;  %s16554_s25 = sld [smem:[#allocation101_spill]] }
0x1c93   :  { %v13794_v10 = vpop.eup %13793 }
0x1c94   :  { %v4302_v34 = vmul.f32 %v13794_v10, %v13792_v16 }
0x1cb5   :  { %v4288_v28 = vpop.xlane.xlu1 %4287 }
0x1cb6   :  { %v4290_v32 = vsub.f32 %v4282_v27, %v4288_v28  ;;  %v4882_v28 = vrot.slane %v15643_v31, 7 }
0x1cb8   :  { %v4293_v33 = vmul.f32 1.442695, %v4290_v32 }
0x1cb9   :  { %v4306_v30 = vpop.permute.xlu1 %4305 }
0x1cba   :  { %13795 = vpow2.f32 %v4293_v33  ;;  %13008 = vmatpush3.msra.mxu1 %v4306_v30 }
0x1cbb   :  { %13010 = vmatmul.mubr.msk.f32.vlgmr.msra.gmra.mxu1 %vm842_vm2, %v4302_v34  ;;  %13017 = vmatprep.subr.mxu1 %v4457_v15  ;;  %v12139_v34 = vld [vmem:[#allocation6] ss:$0 sm:$0xff] }
0x1cbc   :  { %13018 = vmatpush3.msra.mxu1 %v4457_v15 }
0x1cbd   :  { %13033 = vmatprep.subr.mxu1 %v4697_v0 }
0x1cc7   :  { %v13796_v35 = vpop.eup %13795 }
0x1cc8   :  { %v4298_v37 = vsel %vm842_vm2, %v13796_v35, 0.0 }
0x1cc9   :  { %4299 = vadd.xlane.f32.xlu0 %v4298_v37  ;;  %v4886_v37 = vsel %vm4881_vm4, %v4879_v29, %v4882_v28 }
0x1cdf   :  { %4381 = vrot.lane.b32.xlu0 %v15464_v13, %s14796_s27 }
0x1d52   :  { %v4300_v38 = vpop.xlane.xlu0 %4299 }
0x1d53   :  { %13797 = vrcp.f32 %v4300_v38 }
0x1d56   :  { %v4382_v39 = vpop.permute.xlu0 %4381 }
0x1d57   :  { %13013 = vmatpush3.msra.mxu0 %v4382_v39 }
0x1d58   :  { %13022 = vmatprep.subr.mxu0 %v4599_v59 }
0x1d60   :  { %v13798_v11 = vpop.eup %13797 }
0x1d61   :  { %v4304_v40 = vmul.f32 %v13798_v11, %v13796_v35 }
0x1d63   :  { %13015 = vmatmul.mubr.msk.f32.vlgmr.msra.gmra.mxu0 %vm842_vm2, %v4304_v40  ;;  %v12150_v40 = vld [vmem:[%s16552_s12 + $0x30] sm:$0xff] }
0x1d64   :  { %13023 = vmatpush3.msra.mxu0 %v4599_v59  ;;  %v12158_v59 = vld [vmem:[%s16552_s12 + $0x50] sm:$0xff] }
0x1d65   :  { %13024 = vmatprep.subr.mxu0 %v4598_v60 }
0x1d66   :  { %13025 = vmatpush3.msra.mxu0 %v4598_v60  ;;  %v12157_v60 = vld [vmem:[%s16552_s12 + $0x48] sm:$0xff] }
0x1d67   :  { %13026 = vmatprep.subr.mxu0 %v4597_v61 }
0x1d68   :  { %13027 = vmatpush3.msra.mxu0 %v4597_v61  ;;  %v12156_v61 = vld [vmem:[%s16552_s12 + $0x40] sm:$0xff] }
0x1d69   :  { %13028 = vmatprep.subr.mxu0 %v4596_v62 }
0x1d6a   :  { %13029 = vmatpush3.msra.mxu0 %v4596_v62  ;;  %v5167_v62 = vld [vmem:[%s16554_s25 + $0x8] sm:$0xff] }
0x1d6b   :  { %13052 = vmatprep.subr.mxu0 %v12151_v63 }
0x1d7b   :  { %v4377_v41 = vpop.f32.mrf.mxu1 }
0x1d7c   :  { %13019 = vmatprep.mubr.msk.f32.mxu1 %vm842_vm2, %v4377_v41  ;;  %v12149_v41 = vld [vmem:[%s16552_s12 + $0x28] sm:$0xff] }
0x1d7d   :  { %v13011_v42 = vpop.f32.mrf.mxu1 }
0x1d7e   :  { %v4883_v42 = vsel %vm4881_vm4, %v4882_v28, %v4879_v29 }
0x1e23   :  { %v4453_v43 = vpop.f32.mrf.mxu0 }
0x1e24   :  { %13020 = vmatmul.mubr.msk.f32.vlgmr.msra.gmra.mxu1 %vm842_vm2, %v4453_v43  ;;  %v12148_v43 = vld [vmem:[%s16552_s12 + $0x20] sm:$0xff] }
0x1e25   :  { %v13016_v44 = vpop.f32.mrf.mxu0  ;;  %13034 = vmatpush3.msra.mxu1 %v4697_v0  ;;  %v5166_v0 = vld [vmem:[%s16554_s25] sm:$0xff] }
0x1e26   :  { %13035 = vmatprep.subr.mxu1 %v4696_v1  ;;  %v4878_v44 = vld [vmem:[%s16552_s12 + $0x18] sm:$0xff] }
0x1e27   :  { %13036 = vmatpush3.msra.mxu1 %v4696_v1  ;;  %v12163_v1 = vld [vmem:[%s16554_s25 + $0x10] sm:$0xff] }
0x1e28   :  { %13037 = vmatprep.subr.mxu1 %v4695_v3 }
0x1e29   :  { %13038 = vmatpush3.msra.mxu1 %v4695_v3  ;;  %v5441_v3 = vld [vmem:[%s16555_s9 + $0x18] sm:$0xff] }
0x1e2a   :  { %13039 = vmatprep.subr.mxu1 %v4694_v4 }
0x1e2b   :  { %13040 = vmatpush3.msra.mxu1 %v4694_v4  ;;  %v12170_v4 = vld [vmem:[%s16554_s25 + $0x28] sm:$0xff] }
0x1e2c   :  { %13041 = vmatprep.subr.mxu1 %v4693_v9 }
0x1e2d   :  { %13042 = vmatpush3.msra.mxu1 %v4693_v9 }
0x1ee4   :  { %v13021_v13 = vpop.f32.mrf.mxu1 }
0x1ee5   :  { %v4540_v46 = vadd.f32 %v13021_v13, %v4124_v21  ;;  %v4841_v21 = vshrl.u32 %v4840_v20, 7 }
0x1ee6   :  { %v4530_v47 = vpop.f32.mrf.mxu1 }
0x1ee7   :  { %v4549_v48 = vadd.f32 %v12137_v45, %v4540_v46  ;;  %v4539_v49 = vadd.f32 %v4530_v47, %v4123_v23  ;;  %v12138_v23 = vld [vmem:[#allocation4] ss:$0 sm:$0xff]  ;;  %v15636_v27 = vand.u32 7, %v4841_v21  ;;  %v4842_v30 = vadd.s32 8, %v4841_v21  ;;  %v4876_v46 = vld [vmem:[%s16552_s12 + $0x8] sm:$0xff] }
0x1ee8   :  { %v4832_v47 = vrot.slane %v15639_v25, 6 }
0x1ee9   :  { %v4548_v50 = vadd.f32 %v12137_v45, %v4539_v49  ;;  %v4551_v51 = vadd.f32 %v4549_v48, %v15455_v8  ;;  %vm4887_vm5 = vcmp.ge.s32.totalorder %v15636_v27, 1  ;;  %v15654_v11 = vand.u32 7, %v4842_v30  ;;  %v4877_v45 = vld [vmem:[%s16552_s12 + $0x10] sm:$0xff] }
0x1eea   :  { %v4893_v39 = vsel %vm4887_vm5, %v4886_v37, 0.0  ;;  %vm4867_vm7 = vcmp.ge.s32.totalorder %v15636_v27, 2  ;;  %v4835_v48 = vrot.slane %v15643_v31, 6  ;;  %v4692_v49 = vld [vmem:[%s16553_s4 + $0x10] sm:$0xff]  ;;  %vm5538_vm12 = vcmp.ge.s32.totalorder %v15636_v27, 4 }
0x1eeb   :  { %v4557_v52 = vsel %vm757_vm0, %v4551_v51, 0.0  ;;  %v4550_v26 = vadd.f32 %v4548_v50, %v15453_v7  ;;  %vm4888_vm6 = vcmp.ge.s32.totalorder %v15654_v11, 1  ;;  %vm4868_vm8 = vcmp.ge.s32.totalorder %v15654_v11, 2  ;;  %13043 = vmatprep.subr.mxu1 %v4692_v49  ;;  %v4875_v50 = vld [vmem:[%s16552_s12] sm:$0xff]  ;;  %v12298_v27 = vld [vmem:[#allocation46] ss:$0 sm:$0xff] }
0x1eec   :  { %4558 = vadd.xlane.f32.xlu0 %v4557_v52  ;;  %v4894_v13 = vsel %vm4888_vm6, %v4883_v42, 0.0  ;;  %13044 = vmatpush3.msra.mxu1 %v4692_v49  ;;  %v4691_v52 = vld [vmem:[%s16553_s4 + $0x8] sm:$0xff]  ;;  %vm5539_vm13 = vcmp.ge.s32.totalorder %v15654_v11, 4 }
0x1eed   :  { %v4554_v36 = vsel %vm757_vm0, %v4550_v26, 0.0  ;;  %13045 = vmatprep.subr.mxu1 %v4691_v52 }
0x1eee   :  { %4555 = vadd.xlane.f32.xlu1 %v4554_v36  ;;  %v4836_v36 = vsel %vm4834_vm9, %v4835_v48, %v4832_v47  ;;  %13046 = vmatpush3.msra.mxu1 %v4691_v52  ;;  %v12169_v52 = vld [vmem:[%s16554_s25 + $0x20] sm:$0xff] }
0x1f75   :  { %v4559_v53 = vpop.xlane.xlu0 %4558 }
0x1f76   :  { %v4561_v54 = vmul.f32 0.03125, %v4559_v53  ;;  %v4874_v53 = vsel %vm4868_vm8, %v4836_v36, 0.0  ;;  %v5438_v36 = vld [vmem:[%s16555_s9] sm:$0xff] }
0x1f77   :  { %v4556_v55 = vpop.xlane.xlu1 %4555 }
0x1f78   :  { %v4563_v56 = vsub.f32 %v4551_v51, %v4561_v54  ;;  %v4560_v57 = vmul.f32 0.03125, %v4556_v55  ;;  %v4839_v51 = vsel %vm4834_vm9, %v4832_v47, %v4835_v48  ;;  %v4690_v54 = vld [vmem:[%s16553_s4] sm:$0xff]  ;;  %v12159_v55 = vld [vmem:[%s16552_s12 + $0x58] sm:$0xff] }
0x1f79   :  { %13047 = vmatprep.subr.mxu1 %v4690_v54 }
0x1f7a   :  { %v4562_v5 = vsub.f32 %v4550_v26, %v4560_v57  ;;  %v4565_v58 = vmul.f32 %v4563_v56, %v4563_v56  ;;  %v4873_v26 = vsel %vm4867_vm7, %v4839_v51, 0.0  ;;  %13048 = vmatpush3.msra.mxu1 %v4690_v54  ;;  %v5440_v51 = vld [vmem:[%s16555_s9 + $0x10] sm:$0xff]  ;;  %v12183_v54 = vld [vmem:[%s16556_s20 + $0x20] sm:$0xff] }
0x1f7b   :  { %13074 = vmatprep.subr.mxu1 %v12159_v55 }
0x1f7c   :  { %v4569_v8 = vsel %vm757_vm0, %v4565_v58, 0.0  ;;  %v4564_v2 = vmul.f32 %v4562_v5, %v4562_v5 }
0x1f7d   :  { %4570 = vadd.xlane.f32.xlu0 %v4569_v8 }
0x1f7e   :  { %v4566_v7 = vsel %vm757_vm0, %v4564_v2, 0.0 }
0x1f7f   :  { %4567 = vadd.xlane.f32.xlu1 %v4566_v7 }
0x2006   :  { %v4571_v12 = vpop.xlane.xlu0 %4570 }
0x2007   :  { %v4573_v14 = vmul.f32 0.03125, %v4571_v12 }
0x2008   :  { %v4568_v16 = vpop.xlane.xlu1 %4567 }
0x2009   :  { %v4575_v17 = vadd.f32 1e-05, %v4573_v14  ;;  %v4572_v18 = vmul.f32 0.03125, %v4568_v16  ;;  %v12143_v14 = vld [vmem:[#allocation9] ss:$0 sm:$0xff] }
0x200b   :  { %13799 = vrsqrt.f32 %v4575_v17  ;;  %v4574_v19 = vadd.f32 1e-05, %v4572_v18 }
0x200d   :  { %13801 = vrsqrt.f32 %v4574_v19 }
0x2018   :  { %v13800_v22 = vpop.eup %13799 }
0x2019   :  { %v4579_v24 = vmul.f32 %v13800_v22, %v4563_v56  ;;  %v12140_v56 = vld [vmem:[#allocation7] ss:$0 sm:$0xff] }
0x201a   :  { %v13802_v10 = vpop.eup %13801 }
0x201b   :  { %v4578_v32 = vmul.f32 %v13802_v10, %v4562_v5  ;;  %v4587_v33 = vmul.f32 %v12138_v23, %v4579_v24 }
0x201d   :  { %v4586_v35 = vmul.f32 %v12138_v23, %v4578_v32  ;;  %v15650_v38 = vadd.f32 %v12139_v34, %v4587_v33  ;;  %v12162_v32 = vld [vmem:[#allocation13] ss:$0 sm:$0xff] }
0x201f   :  { %v15648_v15 = vadd.f32 %v12139_v34, %v4586_v35 }
0x2021   :  { %13030 = vmatprep.mubr.msk.f32.mxu0 %vm757_vm0, %v15648_v15 }
0x2022   :  { %13031 = vmatmul.mubr.msk.f32.vlgmr.msra.gmra.mxu0 %vm757_vm0, %v15650_v38 }
0x2023   :  { %13053 = vmatpush3.msra.mxu0 %v12151_v63  ;;  %13060 = vmatprep.mubr.msk.f32.mxu0 %vm757_vm0, %v4893_v39  ;;  %v12164_v63 = vld [vmem:[%s16554_s25 + $0x18] sm:$0xff] }
0x2024   :  { %13054 = vmatprep.subr.mxu0 %v12150_v40 }
0x2025   :  { %13055 = vmatpush3.msra.mxu0 %v12150_v40 }
0x2026   :  { %13056 = vmatprep.subr.mxu0 %v12149_v41 }
0x2027   :  { %13057 = vmatpush3.msra.mxu0 %v12149_v41 }
0x2028   :  { %13058 = vmatprep.subr.mxu0 %v12148_v43 }
0x2029   :  { %13059 = vmatpush3.msra.mxu0 %v12148_v43 }
0x202a   :  { %13063 = vmatprep.subr.mxu0 %v4878_v44  ;;  %13061 = vmatmul.mubr.msk.f32.vlgmr.msra.gmra.mxu0 %vm757_vm0, %v4894_v13 }
0x202b   :  { %13064 = vmatpush3.msra.mxu0 %v4878_v44  ;;  %13071 = vmatprep.mubr.msk.f32.mxu0 %vm757_vm0, %v4873_v26  ;;  %v5439_v26 = vld [vmem:[%s16555_s9 + $0x8] sm:$0xff] }
0x202c   :  { %13065 = vmatprep.subr.mxu0 %v4877_v45 }
0x202d   :  { %13066 = vmatpush3.msra.mxu0 %v4877_v45 }
0x202e   :  { %13067 = vmatprep.subr.mxu0 %v4876_v46 }
0x202f   :  { %13068 = vmatpush3.msra.mxu0 %v4876_v46 }
0x2030   :  { %13069 = vmatprep.subr.mxu0 %v4875_v50 }
0x2031   :  { %13070 = vmatpush3.msra.mxu0 %v4875_v50 }
0x2032   :  { %13072 = vmatmul.mubr.msk.f32.vlgmr.msra.gmra.mxu0 %vm757_vm0, %v4874_v53  ;;  %13085 = vmatprep.subr.mxu0 %v12164_v63  ;;  %v12184_v53 = vld [vmem:[%s16556_s20 + $0x28] sm:$0xff] }
0x2033   :  { %13086 = vmatpush3.msra.mxu0 %v12164_v63 }
0x2034   :  { %13087 = vmatprep.subr.mxu0 %v12163_v1 }
0x2035   :  { %13088 = vmatpush3.msra.mxu0 %v12163_v1 }
0x2036   :  { %13099 = vmatprep.subr.mxu0 %v12170_v4 }
0x20e2   :  { %v13032_v57 = vpop.f32.mrf.mxu0 }
0x20e3   :  { %v4685_v5 = vadd.f32 %v13032_v57, %v12140_v56  ;;  %v5547_v57 = vld [vmem:[%s16556_s20 + $0x8] sm:$0xff] }
0x20e4   :  { %v4679_v58 = vpop.f32.mrf.mxu0 }
0x20e5   :  { %v4680_v8 = vadd.f32 %v12140_v56, %v4679_v58  ;;  %v4689_v7 = vmax.f32 %v4685_v5, 0.0  ;;  %v12177_v56 = vld [vmem:[%s16556_s20 + $0x10] sm:$0xff] }
0x20e7   :  { %v4688_v2 = vmax.f32 %v4680_v8, 0.0 }
0x20e9   :  { %13049 = vmatprep.mubr.msk.f32.mxu1 %vm2663_vm3, %v4688_v2 }
0x20ea   :  { %13050 = vmatmul.mubr.msk.f32.vlgmr.msra.gmra.mxu1 %vm2663_vm3, %v4689_v7  ;;  %v13062_v9 = vpop.f32.mrf.mxu0 }
0x20eb   :  { %13075 = vmatpush3.msra.mxu1 %v12159_v55  ;;  %13082 = vmatprep.mubr.msk.f32.mxu1 %vm757_vm0, %v15643_v31  ;;  %v12178_v55 = vld [vmem:[%s16556_s20 + $0x18] sm:$0xff] }
0x20ec   :  { %13076 = vmatprep.subr.mxu1 %v12158_v59  ;;  %v4972_v12 = vpop.f32.mrf.mxu0 }
0x20ed   :  { %13077 = vmatpush3.msra.mxu1 %v12158_v59 }
0x20ee   :  { %13078 = vmatprep.subr.mxu1 %v12157_v60 }
0x20ef   :  { %13079 = vmatpush3.msra.mxu1 %v12157_v60 }
0x20f0   :  { %13080 = vmatprep.subr.mxu1 %v12156_v61 }
0x20f1   :  { %13081 = vmatpush3.msra.mxu1 %v12156_v61 }
0x20f2   :  { %13083 = vmatmul.mubr.msk.f32.vlgmr.msra.gmra.mxu1 %vm757_vm0, %v15639_v25  ;;  %13092 = vmatprep.subr.mxu1 %v5167_v62  ;;  %v13073_v18 = vpop.f32.mrf.mxu0 }
0x20f3   :  { %13093 = vmatpush3.msra.mxu1 %v5167_v62  ;;  %v5059_v29 = vadd.f32 %v13073_v18, %v13062_v9  ;;  %v12173_v9 = vld [vmem:[#allocation15] ss:$0 sm:$0xff] }
0x20f4   :  { %13094 = vmatprep.subr.mxu1 %v5166_v0  ;;  %v5053_v24 = vpop.f32.mrf.mxu0 }
0x20f5   :  { %13095 = vmatpush3.msra.mxu1 %v5166_v0  ;;  %v5054_v33 = vadd.f32 %v5053_v24, %v4972_v12 }
0x20f6   :  { %13106 = vmatprep.subr.mxu1 %v5441_v3 }
0x21aa   :  { %v13051_v16 = vpop.f32.mrf.mxu1 }
0x21ab   :  { %v4783_v17 = vadd.f32 %v13051_v16, %v12143_v14  ;;  %v12174_v16 = vld [vmem:[#allocation16] ss:$0 sm:$0xff] }
0x21ac   :  { %v4777_v19 = vpop.f32.mrf.mxu1 }
0x21ad   :  { %v4778_v20 = vadd.f32 %v12143_v14, %v4777_v19  ;;  %v15705_v21 = vadd.f32 %v4783_v17, %v15650_v38 }
0x21af   :  { %v4793_v22 = vsel %vm757_vm0, %v15705_v21, 0.0  ;;  %v15710_v23 = vadd.f32 %v4778_v20, %v15648_v15 }
0x21b0   :  { %4794 = vadd.xlane.f32.xlu0 %v4793_v22 }
0x21b1   :  { %v4790_v28 = vsel %vm757_vm0, %v15710_v23, 0.0 }
0x21b2   :  { %v13084_v10 = vpop.f32.mrf.mxu1  ;;  %4791 = vadd.xlane.f32.xlu1 %v4790_v28 }
0x21b3   :  { %v5143_v30 = vadd.f32 %v13084_v10, %v5059_v29 }
0x21b4   :  { %v5133_v34 = vpop.f32.mrf.mxu1 }
0x21b5   :  { %v5152_v35 = vadd.f32 %v12162_v32, %v5143_v30  ;;  %v5142_v37 = vadd.f32 %v5133_v34, %v5054_v33 }
0x21b7   :  { %v5154_v38 = vmax.f32 %v5152_v35, 0.0  ;;  %v5151_v39 = vadd.f32 %v12162_v32, %v5142_v37 }
0x21b9   :  { %v5153_v40 = vmax.f32 %v5151_v39, 0.0  ;;  %v5156_v15 = vrot.slane %v5154_v38, 6  ;;  %v5168_v41 = vrot.slane %v5154_v38, 7 }
0x21bb   :  { %v5159_v42 = vrot.slane %v5153_v40, 6  ;;  %v5170_v43 = vrot.slane %v5153_v40, 7 }
0x21bd   :  { %v5174_v44 = vsel %vm4881_vm4, %v5168_v41, %v5170_v43  ;;  %v5163_v13 = vsel %vm4834_vm9, %v5156_v15, %v5159_v42  ;;  %v5171_v45 = vsel %vm4881_vm4, %v5170_v43, %v5168_v41  ;;  %v5160_v46 = vsel %vm4834_vm9, %v5159_v42, %v5156_v15  ;;  %v5546_v43 = vld [vmem:[%s16556_s20] sm:$0xff] }
0x21be   :  { %v5175_v47 = vsel %vm4887_vm5, %v5174_v44, 0.0  ;;  %v5164_v48 = vsel %vm4867_vm7, %v5163_v13, 0.0  ;;  %v5176_v49 = vsel %vm4888_vm6, %v5171_v45, 0.0  ;;  %v5165_v50 = vsel %vm4868_vm8, %v5160_v46, 0.0  ;;  %v5829_v46 = vld [vmem:[%s16557_s28 + $0x8] sm:$0xff] }
0x21bf   :  { %13089 = vmatprep.mubr.msk.f32.mxu0 %vm5180_vm10, %v5175_v47  ;;  %13096 = vmatprep.mubr.msk.f32.mxu1 %vm5180_vm10, %v5164_v48  ;;  %v12189_v47 = vld [vmem:[%s16557_s28 + $0x18] sm:$0xff]  ;;  %v5828_v48 = vld [vmem:[%s16557_s28] sm:$0xff] }
0x21c0   :  { %13090 = vmatmul.mubr.msk.f32.vlgmr.msra.gmra.mxu0 %vm5180_vm10, %v5176_v49  ;;  %13097 = vmatmul.mubr.msk.f32.vlgmr.msra.gmra.mxu1 %vm5180_vm10, %v5165_v50  ;;  %v12188_v49 = vld [vmem:[%s16557_s28 + $0x10] sm:$0xff]  ;;  %v6106_v50 = vld [vmem:[%s16558_s14 + $0x18] sm:$0xff] }
0x21c1   :  { %13107 = vmatpush3.msra.mxu1 %v5441_v3  ;;  %13100 = vmatpush3.msra.mxu0 %v12170_v4 }
0x21c2   :  { %13103 = vmatprep.mubr.msk.f32.mxu0 %vm5180_vm10, %v5153_v40  ;;  %13108 = vmatprep.subr.mxu1 %v5440_v51 }
0x21c3   :  { %13101 = vmatprep.subr.mxu0 %v12169_v52  ;;  %13109 = vmatpush3.msra.mxu1 %v5440_v51  ;;  %v12195_v51 = vld [vmem:[%s16557_s28 + $0x28] sm:$0xff] }
0x21c4   :  { %13102 = vmatpush3.msra.mxu0 %v12169_v52  ;;  %13110 = vmatprep.subr.mxu1 %v5439_v26 }
0x21c5   :  { %13104 = vmatmul.mubr.msk.f32.vlgmr.msra.gmra.mxu0 %vm5180_vm10, %v5154_v38  ;;  %13111 = vmatpush3.msra.mxu1 %v5439_v26 }
0x21c6   :  { %13112 = vmatprep.subr.mxu1 %v5438_v36  ;;  %13114 = vmatprep.mubr.msk.f32.mxu1 %vm757_vm0, %v15643_v31 }
0x21c7   :  { %13113 = vmatpush3.msra.mxu1 %v5438_v36  ;;  %13117 = vmatprep.subr.mxu0 %v12178_v55 }
0x21c8   :  { %13115 = vmatmul.mubr.msk.f32.vlgmr.msra.gmra.mxu1 %vm757_vm0, %v15639_v25  ;;  %13131 = vmatprep.subr.mxu1 %v12184_v53 }
0x21c9   :  { %13132 = vmatpush3.msra.mxu1 %v12184_v53  ;;  %13118 = vmatpush3.msra.mxu0 %v12178_v55 }
0x21ca   :  { %13133 = vmatprep.subr.mxu1 %v12183_v54  ;;  %13119 = vmatprep.subr.mxu0 %v12177_v56 }
0x21cb   :  { %13134 = vmatpush3.msra.mxu1 %v12183_v54  ;;  %13120 = vmatpush3.msra.mxu0 %v12177_v56 }
0x21cc   :  { %13124 = vmatprep.subr.mxu0 %v5547_v57  ;;  %13145 = vmatprep.subr.mxu1 %v5829_v46 }
0x2239   :  { %v4795_v5 = vpop.xlane.xlu0 %4794 }
0x223a   :  { %v4797_v31 = vmul.f32 0.03125, %v4795_v5 }
0x223b   :  { %v4792_v58 = vpop.xlane.xlu1 %4791 }
0x223c   :  { %v15746_v8 = vsub.f32 %v15705_v21, %v4797_v31  ;;  %v4796_v25 = vmul.f32 0.03125, %v4792_v58 }
0x223e   :  { %v15749_v2 = vsub.f32 %v15710_v23, %v4796_v25  ;;  %v4801_v7 = vmul.f32 %v15746_v8, %v15746_v8  ;;  %v12187_v25 = vld [vmem:[#allocation18] ss:$0 sm:$0xff] }
0x2240   :  { %v4805_v59 = vsel %vm757_vm0, %v4801_v7, 0.0  ;;  %v4800_v60 = vmul.f32 %v15749_v2, %v15749_v2 }
0x2241   :  { %4806 = vadd.xlane.f32.xlu0 %v4805_v59 }
0x2242   :  { %v4802_v61 = vsel %vm757_vm0, %v4800_v60, 0.0 }
0x2243   :  { %4803 = vadd.xlane.f32.xlu1 %v4802_v61 }
0x2280   :  { %v13091_v62 = vpop.f32.mrf.mxu0  ;;  %v13098_v63 = vpop.f32.mrf.mxu1 }
0x2281   :  { %v5340_v3 = vadd.f32 %v13098_v63, %v13091_v62 }
0x2282   :  { %v5253_v0 = vpop.f32.mrf.mxu0  ;;  %v5334_v1 = vpop.f32.mrf.mxu1 }
0x2283   :  { %v5335_v12 = vadd.f32 %v5334_v1, %v5253_v0 }
0x2285   :  { %v13105_v4 = vpop.f32.mrf.mxu0 }
0x2286   :  { %v5426_v14 = vadd.f32 %v13105_v4, %v5340_v3 }
0x2287   :  { %v5416_v17 = vpop.f32.mrf.mxu0 }
0x2288   :  { %v5435_v18 = vadd.f32 %v12173_v9, %v5426_v14  ;;  %v5425_v19 = vadd.f32 %v5416_v17, %v5335_v12  ;;  %v13116_v20 = vpop.f32.mrf.mxu1 }
0x2289   :  { %v5521_v21 = vadd.f32 %v13116_v20, %v12174_v16 }
0x228a   :  { %v5437_v22 = vmax.f32 %v5435_v18, 0.0  ;;  %v5434_v23 = vadd.f32 %v12173_v9, %v5425_v19  ;;  %v5515_v24 = vpop.f32.mrf.mxu1  ;;  %v12146_v18 = vld [vmem:[#allocation10] ss:$0 sm:$0xff] }
0x228b   :  { %v5516_v29 = vadd.f32 %v12174_v16, %v5515_v24 }
0x228c   :  { %v5436_v28 = vmax.f32 %v5434_v23, 0.0  ;;  %v5525_v10 = vadd.f32 %v5521_v21, %v5437_v22 }
0x228e   :  { %v15757_v32 = vmax.f32 %v5525_v10, 0.0  ;;  %v5524_v33 = vadd.f32 %v5516_v29, %v5436_v28 }
0x2290   :  { %v15759_v30 = vmax.f32 %v5524_v33, 0.0  ;;  %v5548_v34 = vrot.slane %v15757_v32, 6  ;;  %v5529_v37 = vrot.slane %v15757_v32, 4  ;;  %v6105_v33 = vld [vmem:[%s16558_s14 + $0x10] sm:$0xff] }
0x2292   :  { %13135 = vmatprep.mubr.msk.f32.mxu1 %vm5180_vm10, %v15759_v30  ;;  %v5550_v35 = vrot.slane %v15759_v30, 6  ;;  %v5533_v38 = vrot.slane %v15759_v30, 4 }
0x2293   :  { %13136 = vmatmul.mubr.msk.f32.vlgmr.msra.gmra.mxu1 %vm5180_vm10, %v15757_v32 }
0x2294   :  { %v5554_v39 = vsel %vm4834_vm9, %v5548_v34, %v5550_v35  ;;  %v5551_v40 = vsel %vm4834_vm9, %v5550_v35, %v5548_v34  ;;  %v5537_v15 = vsel %vm5532_vm11, %v5529_v37, %v5533_v38  ;;  %v5534_v13 = vsel %vm5532_vm11, %v5533_v38, %v5529_v37  ;;  %13146 = vmatpush3.msra.mxu1 %v5829_v46  ;;  %v12147_v35 = vld [vmem:[#allocation12] ss:$0 sm:$0xff]  ;;  %v12194_v37 = vld [vmem:[%s16557_s28 + $0x20] sm:$0xff]  ;;  %v6198_v46 = vld [vmem:[%s16561_s8 + $0x18] sm:$0xff] }
0x2295   :  { %v5555_v41 = vsel %vm4867_vm7, %v5554_v39, 0.0  ;;  %v5556_v42 = vsel %vm4868_vm8, %v5551_v40, 0.0  ;;  %v5544_v44 = vsel %vm5538_vm12, %v5537_v15, 0.0  ;;  %v5545_v45 = vsel %vm5539_vm13, %v5534_v13, 0.0  ;;  %13147 = vmatprep.subr.mxu1 %v5828_v48  ;;  %v6104_v39 = vld [vmem:[%s16558_s14 + $0x8] sm:$0xff]  ;;  %v6375_v15 = vld [vmem:[%s16559_s5 + $0x18] sm:$0xff] }
0x2296   :  { %13121 = vmatprep.mubr.msk.f32.mxu0 %vm5180_vm10, %v5555_v41  ;;  %13148 = vmatpush3.msra.mxu1 %v5828_v48  ;;  %v6372_v13 = vld [vmem:[%s16559_s5] sm:$0xff]  ;;  %v6196_v48 = vld [vmem:[%s16561_s8 + $0x8] sm:$0xff] }
0x2297   :  { %13122 = vmatmul.mubr.msk.f32.vlgmr.msra.gmra.mxu0 %vm5180_vm10, %v5556_v42  ;;  %13159 = vmatprep.subr.mxu1 %v6106_v50  ;;  %v15821_v42 = vld [vmem:[%s16560_s1] sm:$0xff] }
0x2298   :  { %13125 = vmatpush3.msra.mxu0 %v5547_v57  ;;  %13128 = vmatprep.mubr.msk.f32.mxu0 %vm5180_vm10, %v5544_v44  ;;  %v6373_v44 = vld [vmem:[%s16559_s5 + $0x8] sm:$0xff] }
0x2299   :  { %13126 = vmatprep.subr.mxu0 %v5546_v43 }
0x229a   :  { %13127 = vmatpush3.msra.mxu0 %v5546_v43  ;;  %v6374_v43 = vld [vmem:[%s16559_s5 + $0x10] sm:$0xff] }
0x229b   :  { %13129 = vmatmul.mubr.msk.f32.vlgmr.msra.gmra.mxu0 %vm5180_vm10, %v5545_v45  ;;  %13138 = vmatprep.subr.mxu0 %v12189_v47  ;;  %v15830_v45 = vld [vmem:[%s16560_s1 + $0x8] sm:$0xff] }
0x229c   :  { %13139 = vmatpush3.msra.mxu0 %v12189_v47  ;;  %v6197_v47 = vld [vmem:[%s16561_s8 + $0x10] sm:$0xff] }
0x229d   :  { %13140 = vmatprep.subr.mxu0 %v12188_v49 }
0x229e   :  { %13141 = vmatpush3.msra.mxu0 %v12188_v49 }
0x229f   :  { %13152 = vmatprep.subr.mxu0 %v12195_v51 }
0x22ca   :  { %v4807_v36 = vpop.xlane.xlu0 %4806 }
0x22cb   :  { %v4809_v54 = vmul.f32 0.03125, %v4807_v36 }
0x22cc   :  { %v4804_v52 = vpop.xlane.xlu1 %4803 }
0x22cd   :  { %v4808_v26 = vmul.f32 0.03125, %v4804_v52  ;;  %v4811_v55 = vadd.f32 1e-05, %v4809_v54 }
0x22cf   :  { %v4810_v53 = vadd.f32 1e-05, %v4808_v26 }
0x22d1   :  { %13803 = vrsqrt.f32 %v4810_v53  ;;  %v12198_v53 = vld [vmem:[#allocation19] ss:$0 sm:$0xff] }
0x22d2   :  { %13805 = vrsqrt.f32 %v4811_v55 }
0x22de   :  { %v13804_v62 = vpop.eup %13803 }
0x22df   :  { %v4814_v4 = vmul.f32 %v13804_v62, %v15749_v2  ;;  %v13806_v19 = vpop.eup %13805 }
0x22e0   :  { %v4815_v34 = vmul.f32 %v13806_v19, %v15746_v8  ;;  %v6103_v8 = vld [vmem:[%s16558_s14] sm:$0xff] }
0x22e1   :  { %v4822_v20 = vmul.f32 %v12146_v18, %v4814_v4 }
0x22e2   :  { %v4823_v40 = vmul.f32 %v12146_v18, %v4815_v34 }
0x22e3   :  { %v4830_v38 = vadd.f32 %v12147_v35, %v4822_v20 }
0x22e4   :  { %v4831_v41 = vadd.f32 %v12147_v35, %v4823_v40 }
0x2353   :  { %v13137_v5 = vpop.f32.mrf.mxu1 }
0x2355   :  { %v5795_v61 = vpop.f32.mrf.mxu1 }
0x2357   :  { %v13123_v56 = vpop.f32.mrf.mxu0 }
0x2359   :  { %v5632_v57 = vpop.f32.mrf.mxu0 }
0x235b   :  { %v13130_v31 = vpop.f32.mrf.mxu0 }
0x235c   :  { %v5719_v58 = vadd.f32 %v13130_v31, %v13123_v56 }
0x235d   :  { %v5713_v7 = vpop.f32.mrf.mxu0 }
0x235e   :  { %v5805_v59 = vadd.f32 %v13137_v5, %v5719_v58  ;;  %v5714_v60 = vadd.f32 %v5713_v7, %v5632_v57  ;;  %v12199_v7 = vld [vmem:[#allocation21] ss:$0 sm:$0xff] }
0x2360   :  { %v5814_v63 = vadd.f32 %v12187_v25, %v5805_v59  ;;  %v5804_v0 = vadd.f32 %v5795_v61, %v5714_v60 }
0x2362   :  { %v5816_v1 = vmax.f32 %v5814_v63, 0.0  ;;  %v5813_v3 = vadd.f32 %v12187_v25, %v5804_v0 }
0x2364   :  { %v5815_v9 = vmax.f32 %v5813_v3, 0.0  ;;  %v5830_v12 = vrot.slane %v5816_v1, 6  ;;  %v5818_v16 = vrot.slane %v5816_v1, 4  ;;  %v12207_v3 = vld [vmem:[#allocation24] ss:$0 sm:$0xff] }
0x2366   :  { %v5832_v14 = vrot.slane %v5815_v9, 6  ;;  %v5821_v17 = vrot.slane %v5815_v9, 4 }
0x2368   :  { %v5836_v21 = vsel %vm4834_vm9, %v5830_v12, %v5832_v14  ;;  %v5825_v22 = vsel %vm5532_vm11, %v5818_v16, %v5821_v17  ;;  %v5833_v23 = vsel %vm4834_vm9, %v5832_v14, %v5830_v12  ;;  %v5822_v24 = vsel %vm5532_vm11, %v5821_v17, %v5818_v16 }
0x2369   :  { %v5837_v2 = vsel %vm4867_vm7, %v5836_v21, 0.0  ;;  %v5826_v29 = vsel %vm5538_vm12, %v5825_v22, 0.0  ;;  %v5838_v28 = vsel %vm4868_vm8, %v5833_v23, 0.0  ;;  %v5827_v10 = vsel %vm5539_vm13, %v5822_v24, 0.0 }
0x236a   :  { %13142 = vmatprep.mubr.msk.f32.mxu0 %vm5180_vm10, %v5837_v2  ;;  %13149 = vmatprep.mubr.msk.f32.mxu1 %vm5180_vm10, %v5826_v29 }
0x236b   :  { %13143 = vmatmul.mubr.msk.f32.vlgmr.msra.gmra.mxu0 %vm5180_vm10, %v5838_v28  ;;  %13150 = vmatmul.mubr.msk.f32.vlgmr.msra.gmra.mxu1 %vm5180_vm10, %v5827_v10 }
0x236c   :  { %13160 = vmatpush3.msra.mxu1 %v6106_v50  ;;  %13153 = vmatpush3.msra.mxu0 %v12195_v51 }
0x236d   :  { %13156 = vmatprep.mubr.msk.f32.mxu0 %vm5180_vm10, %v5815_v9  ;;  %13161 = vmatprep.subr.mxu1 %v6105_v33 }
0x236e   :  { %13167 = vmatprep.mubr.msk.f32.mxu1 %vm757_vm0, %v4830_v38  ;;  %13154 = vmatprep.subr.mxu0 %v12194_v37 }
0x236f   :  { %13162 = vmatpush3.msra.mxu1 %v6105_v33  ;;  %13155 = vmatpush3.msra.mxu0 %v12194_v37 }
0x2370   :  { %13163 = vmatprep.subr.mxu1 %v6104_v39  ;;  %13157 = vmatmul.mubr.msk.f32.vlgmr.msra.gmra.mxu0 %vm5180_vm10, %v5816_v1  ;;  %v6195_v1 = vld [vmem:[%s16561_s8] sm:$0xff] }
0x2371   :  { %13164 = vmatpush3.msra.mxu1 %v6104_v39  ;;  %13170 = vmatprep.subr.mxu0 %v6198_v46 }
0x2372   :  { %13165 = vmatprep.subr.mxu1 %v6103_v8  ;;  %13171 = vmatpush3.msra.mxu0 %v6198_v46 }
0x2373   :  { %13166 = vmatpush3.msra.mxu1 %v6103_v8  ;;  %13172 = vmatprep.subr.mxu0 %v6197_v47 }
0x2374   :  { %13168 = vmatmul.mubr.msk.f32.vlgmr.msra.gmra.mxu1 %vm757_vm0, %v4831_v41  ;;  %13184 = vmatprep.subr.mxu1 %v6375_v15 }
0x2375   :  { %13185 = vmatpush3.msra.mxu1 %v6375_v15  ;;  %13192 = vmatprep.mubr.msk.f32.mxu1 %vm757_vm0, %v15821_v42 }
0x2376   :  { %13186 = vmatprep.subr.mxu1 %v6374_v43  ;;  %13173 = vmatpush3.msra.mxu0 %v6197_v47 }
0x2377   :  { %13187 = vmatpush3.msra.mxu1 %v6374_v43  ;;  %13177 = vmatprep.subr.mxu0 %v6196_v48 }
0x2378   :  { %13188 = vmatprep.subr.mxu1 %v6373_v44 }
0x2379   :  { %13189 = vmatpush3.msra.mxu1 %v6373_v44 }
0x237a   :  { %13190 = vmatprep.subr.mxu1 %v6372_v13 }
0x237b   :  { %13191 = vmatpush3.msra.mxu1 %v6372_v13 }
0x237c   :  { %13193 = vmatmul.mubr.msk.f32.vlgmr.msra.gmra.mxu1 %vm757_vm0, %v15830_v45  ;;  %13205 = vmatprep.subr.mxu1 %v14784_v6 }
0x237d   :  { %13207 = vmatprep.mubr.msk.f32.mxu1 %vm14785_vm1, %v14784_v6 }
0x242b   :  { %v13144_v49 = vpop.f32.mrf.mxu0  ;;  %v13151_v50 = vpop.f32.mrf.mxu1 }
0x242c   :  { %v6001_v26 = vadd.f32 %v13151_v50, %v13144_v49 }
0x242d   :  { %v5914_v51 = vpop.f32.mrf.mxu0  ;;  %v5995_v52 = vpop.f32.mrf.mxu1 }
0x242e   :  { %v5996_v54 = vadd.f32 %v5995_v52, %v5914_v51 }
0x2430   :  { %v13158_v36 = vpop.f32.mrf.mxu0 }
0x2431   :  { %v6087_v55 = vadd.f32 %v13158_v36, %v6001_v26 }
0x2432   :  { %v6077_v56 = vpop.f32.mrf.mxu0 }
0x2433   :  { %v6096_v57 = vadd.f32 %v12198_v53, %v6087_v55  ;;  %v6086_v5 = vadd.f32 %v6077_v56, %v5996_v54 }
0x2434   :  { %v13169_v31 = vpop.f32.mrf.mxu1 }
0x2435   :  { %v6098_v58 = vmax.f32 %v6096_v57, 0.0  ;;  %v6095_v25 = vadd.f32 %v12198_v53, %v6086_v5  ;;  %v6192_v63 = vadd.f32 %v13169_v31, %v12199_v7 }
0x2436   :  { %v6186_v59 = vpop.f32.mrf.mxu1 }
0x2437   :  { %v6097_v60 = vmax.f32 %v6095_v25, 0.0  ;;  %v6187_v61 = vadd.f32 %v12199_v7, %v6186_v59  ;;  %v6100_v62 = vadd.f32 %v6098_v58, %v15757_v32 }
0x2439   :  { %v6099_v0 = vadd.f32 %v6097_v60, %v15759_v30  ;;  %13174 = vmatprep.mubr.msk.f32.mxu0 %vm5180_vm10, %v6187_v61  ;;  %v6102_v9 = vmax.f32 %v6100_v62, 0.0 }
0x243a   :  { %13175 = vmatmul.mubr.msk.f32.vlgmr.msra.gmra.mxu0 %vm5180_vm10, %v6192_v63 }
0x243b   :  { %v6101_v4 = vmax.f32 %v6099_v0, 0.0  ;;  %13178 = vmatpush3.msra.mxu0 %v6196_v48 }
0x243c   :  { %v13194_v12 = vpop.f32.mrf.mxu1  ;;  %13179 = vmatprep.subr.mxu0 %v6195_v1 }
0x243d   :  { %v15845_v14 = vadd.f32 %v13194_v12, %v12207_v3  ;;  %13180 = vmatpush3.msra.mxu0 %v6195_v1  ;;  %13181 = vmatprep.mubr.msk.f32.mxu0 %vm5180_vm10, %v6101_v4 }
0x243e   :  { %v6455_v32 = vpop.f32.mrf.mxu1  ;;  %13182 = vmatmul.mubr.msk.f32.vlgmr.msra.gmra.mxu0 %vm5180_vm10, %v6102_v9  ;;  %13195 = vmatprep.subr.mxu0 %v14784_v6 }
0x243f   :  { %v15850_v30 = vadd.f32 %v12207_v3, %v6455_v32  ;;  %6542 = vrot.lane.b32.xlu0 %v15845_v14, %s14786_s15  ;;  %13197 = vmatprep.mubr.msk.f32.mxu0 %vm14785_vm1, %v14784_v6 }
0x2441   :  { %6465 = vrot.lane.b32.xlu1 %v15850_v30, %s14786_s15 }
0x24b1   :  { %v6543_v17 = vpop.permute.xlu0 %6542 }
0x24b3   :  { %v6466_v16 = vpop.permute.xlu1 %6465 }
0x24b4   :  { %13196 = vmatpush3.xpose.msk.msra.mxu0 %vm842_vm2, %v6466_v16 }
0x24b5   :  { %13200 = vmatprep.subr.mxu0 %v14784_v6 }
0x24b7   :  { %13198 = vmatmul.mubr.msk.f32.vlgmr.msra.gmra.mxu0 %vm842_vm2, %v15850_v30 }
0x24b8   :  { %13201 = vmatpush3.xpose.msk.msra.mxu0 %vm842_vm2, %v6543_v17  ;;  %13202 = vmatprep.mubr.msk.f32.mxu0 %vm14785_vm1, %v14784_v6 }
0x24b9   :  { %13210 = vmatprep.subr.mxu0 %v14784_v6 }
0x24bb   :  { %13203 = vmatmul.mubr.msk.f32.vlgmr.msra.gmra.mxu0 %vm842_vm2, %v15845_v14 }
0x24bc   :  { %13212 = vmatprep.mubr.msk.f32.mxu0 %vm14785_vm1, %v14784_v6 }
0x24fa   :  { %v13176_v18 = vpop.f32.mrf.mxu0 }
0x24fc   :  { %v15870_v19 = vpop.f32.mrf.mxu0 }
0x24fe   :  { %v13183_v20 = vpop.f32.mrf.mxu0 }
0x24ff   :  { %v15872_v21 = vadd.f32 %v13183_v20, %v13176_v18 }
0x2500   :  { %v15874_v22 = vpop.f32.mrf.mxu0 }
0x2577   :  { %v6537_v23 = vpop.f32.mrf.mxu0 }
0x2578   :  { %v6618_v24 = vmul.f32 0.35355338, %v6537_v23 }
0x2579   :  { %v13199_v2 = vpop.f32.mrf.mxu0 }
0x257a   :  { %v6620_v29 = vsel %vm842_vm2, %v6618_v24, -inf }
0x257b   :  { %6621 = vmax.xlane.f32.xlu1 %v6620_v29  ;;  %v6614_v28 = vpop.f32.mrf.mxu0 }
0x257c   :  { %v6619_v10 = vmul.f32 0.35355338, %v6614_v28 }
0x257d   :  { %v13204_v33 = vpop.f32.mrf.mxu0 }
0x257e   :  { %v6623_v34 = vsel %vm842_vm2, %v6619_v10, -inf }
0x257f   :  { %6624 = vmax.xlane.f32.xlu0 %v6623_v34 }
0x258c   :  { %6642 = vrot.lane.b32.xlu1 %v15850_v30, %s14787_s6 }
0x2590   :  { %6797 = vrot.lane.b32.xlu1 %v15850_v30, %s14788_s16 }
0x2594   :  { %6875 = vrot.lane.b32.xlu1 %v15845_v14, %s14788_s16 }
0x2595   :  { %6718 = vrot.lane.b32.xlu0 %v15845_v14, %s14787_s6 }
0x2604   :  { %v6622_v35 = vpop.xlane.xlu1 %6621 }
0x2605   :  { %v6626_v37 = vsub.f32 %v6618_v24, %v6622_v35  ;;  %v6794_v24 = vld [vmem:[%s16562_s2] sm:$0xff] }
0x2607   :  { %v6628_v38 = vmul.f32 1.442695, %v6626_v37 }
0x2608   :  { %v6643_v39 = vpop.permute.xlu1 %6642  ;;  %v6625_v40 = vpop.xlane.xlu0 %6624 }
0x2609   :  { %13807 = vpow2.f32 %v6628_v38  ;;  %v6627_v8 = vsub.f32 %v6619_v10, %v6625_v40  ;;  %13206 = vmatpush3.msra.mxu1 %v6643_v39  ;;  %v7127_v38 = vld [vmem:[%s16562_s2 + $0x8] sm:$0xff] }
0x260a   :  { %13215 = vmatprep.subr.mxu1 %v14784_v6 }
0x260b   :  { %v6630_v15 = vmul.f32 1.442695, %v6627_v8 }
0x260c   :  { %v6719_v41 = vpop.permute.xlu0 %6718  ;;  %v6798_v47 = vpop.permute.xlu1 %6797 }
0x260d   :  { %13809 = vpow2.f32 %v6630_v15  ;;  %13211 = vmatpush3.msra.mxu0 %v6719_v41 }
0x260e   :  { %13220 = vmatprep.subr.mxu0 %v14784_v6 }
0x2610   :  { %v6876_v48 = vpop.permute.xlu1 %6875 }
0x2616   :  { %v13808_v43 = vpop.eup %13807 }
0x2617   :  { %v6632_v44 = vsel %vm842_vm2, %v13808_v43, 0.0 }
0x2618   :  { %6633 = vadd.xlane.f32.xlu1 %v6632_v44 }
0x261a   :  { %v13810_v13 = vpop.eup %13809 }
0x261b   :  { %v6635_v46 = vsel %vm842_vm2, %v13810_v13, 0.0 }
0x261c   :  { %6636 = vadd.xlane.f32.xlu0 %v6635_v46 }
0x2629   :  { %6873 = vrot.lane.b32.xlu1 %v15845_v14, %s14789_s29 }
0x2632   :  { %6795 = vrot.lane.b32.xlu0 %v15850_v30, %s14789_s29 }
0x26a1   :  { %v6634_v49 = vpop.xlane.xlu1 %6633 }
0x26a2   :  { %13811 = vrcp.f32 %v6634_v49 }
0x26a5   :  { %v6637_v50 = vpop.xlane.xlu0 %6636  ;;  %v6874_v54 = vpop.permute.xlu1 %6873 }
0x26a6   :  { %13813 = vrcp.f32 %v6637_v50 }
0x26a9   :  { %v6796_v53 = vpop.permute.xlu0 %6795 }
0x26af   :  { %v13812_v51 = vpop.eup %13811 }
0x26b0   :  { %v6639_v52 = vmul.f32 %v13812_v51, %v13808_v43 }
0x26b2   :  { %13208 = vmatmul.mubr.msk.f32.vlgmr.msra.gmra.mxu1 %vm842_vm2, %v6639_v52 }
0x26b3   :  { %v13814_v26 = vpop.eup %13813  ;;  %13216 = vmatpush3.xpose.msk.msra.mxu1 %vm842_vm2, %v6798_v47  ;;  %13217 = vmatprep.mubr.msk.f32.mxu1 %vm14785_vm1, %v14784_v6 }
0x26b4   :  { %v6641_v36 = vmul.f32 %v13814_v26, %v13810_v13  ;;  %13225 = vmatprep.subr.mxu1 %v14784_v6 }
0x26b6   :  { %13213 = vmatmul.mubr.msk.f32.vlgmr.msra.gmra.mxu0 %vm842_vm2, %v6641_v36  ;;  %13218 = vmatmul.mubr.msk.f32.vlgmr.msra.gmra.mxu1 %vm842_vm2, %v6796_v53 }
0x26b7   :  { %13221 = vmatpush3.xpose.msk.msra.mxu0 %vm842_vm2, %v6876_v48  ;;  %13222 = vmatprep.mubr.msk.f32.mxu0 %vm14785_vm1, %v14784_v6 }
0x26b8   :  { %13230 = vmatprep.subr.mxu0 %v14784_v6  ;;  %13227 = vmatprep.mubr.msk.f32.mxu1 %vm14785_vm1, %v14784_v6 }
0x26ba   :  { %13223 = vmatmul.mubr.msk.f32.vlgmr.msra.gmra.mxu0 %vm842_vm2, %v6874_v54 }
0x26bb   :  { %13232 = vmatprep.mubr.msk.f32.mxu0 %vm14785_vm1, %v14784_v6 }
0x2772   :  { %v6714_v55 = vpop.f32.mrf.mxu1 }
0x2774   :  { %v13209_v56 = vpop.f32.mrf.mxu1 }
0x2776   :  { %v6790_v57 = vpop.f32.mrf.mxu0  ;;  %v6869_v5 = vpop.f32.mrf.mxu1 }
0x2777   :  { %v6951_v31 = vmul.f32 0.35355338, %v6869_v5 }
0x2778   :  { %v13214_v58 = vpop.f32.mrf.mxu0  ;;  %v13219_v25 = vpop.f32.mrf.mxu1 }
0x2779   :  { %v6953_v7 = vsel %vm842_vm2, %v6951_v31, -inf }
0x277a   :  { %6954 = vmax.xlane.f32.xlu0 %v6953_v7  ;;  %v6947_v59 = vpop.f32.mrf.mxu0 }
0x277b   :  { %v6952_v60 = vmul.f32 0.35355338, %v6947_v59 }
0x277c   :  { %v13224_v61 = vpop.f32.mrf.mxu0 }
0x277d   :  { %v6956_v62 = vsel %vm842_vm2, %v6952_v60, -inf }
0x277e   :  { %6957 = vmax.xlane.f32.xlu1 %v6956_v62 }
0x278f   :  { %6975 = vrot.lane.b32.xlu1 %v15850_v30, %s14790_s18 }
0x2793   :  { %7292 = vrot.lane.b32.xlu1 %v15850_v30, %s14792_s22 }
0x2797   :  { %7370 = vrot.lane.b32.xlu1 %v15845_v14, %s14792_s22 }
0x279b   :  { %7368 = vrot.lane.b32.xlu1 %v15845_v14, %s14791_s17 }
0x2803   :  { %v6955_v63 = vpop.xlane.xlu0 %6954 }
0x2804   :  { %v6959_v0 = vsub.f32 %v6951_v31, %v6955_v63 }
0x2806   :  { %v6961_v1 = vmul.f32 1.442695, %v6959_v0 }
0x2807   :  { %v6958_v3 = vpop.xlane.xlu1 %6957 }
0x2808   :  { %13815 = vpow2.f32 %v6961_v1  ;;  %v6960_v4 = vsub.f32 %v6952_v60, %v6958_v3 }
0x280a   :  { %v6963_v9 = vmul.f32 1.442695, %v6960_v4 }
0x280b   :  { %v6976_v12 = vpop.permute.xlu1 %6975 }
0x280c   :  { %13817 = vpow2.f32 %v6963_v9  ;;  %13226 = vmatpush3.msra.mxu1 %v6976_v12  ;;  %v7622_v12 = vld [vmem:[%s16562_s2 + $0x10] sm:$0xff] }
0x280d   :  { %13235 = vmatprep.subr.mxu1 %v7127_v38 }
0x280f   :  { %v7293_v10 = vpop.permute.xlu1 %7292 }
0x2813   :  { %v7371_v35 = vpop.permute.xlu1 %7370 }
0x2815   :  { %v13816_v32 = vpop.eup %13815 }
0x2816   :  { %v6965_v16 = vsel %vm842_vm2, %v13816_v32, 0.0 }
0x2817   :  { %6966 = vadd.xlane.f32.xlu0 %v6965_v16  ;;  %v7369_v37 = vpop.permute.xlu1 %7368 }
0x2819   :  { %v13818_v17 = vpop.eup %13817 }
0x281a   :  { %v6968_v18 = vsel %vm842_vm2, %v13818_v17, 0.0 }
0x281b   :  { %6969 = vadd.xlane.f32.xlu0 %v6968_v18 }
0x2831   :  { %7051 = vrot.lane.b32.xlu0 %v15845_v14, %s14790_s18 }
0x2835   :  { %7290 = vrot.lane.b32.xlu0 %v15850_v30, %s14791_s17 }
0x28a0   :  { %v6967_v20 = vpop.xlane.xlu0 %6966 }
0x28a1   :  { %13819 = vrcp.f32 %v6967_v20 }
0x28a4   :  { %v6970_v23 = vpop.xlane.xlu0 %6969 }
0x28a5   :  { %13821 = vrcp.f32 %v6970_v23 }
0x28a8   :  { %v7052_v2 = vpop.permute.xlu0 %7051 }
0x28a9   :  { %13231 = vmatpush3.msra.mxu0 %v7052_v2 }
0x28aa   :  { %13240 = vmatprep.subr.mxu0 %v6794_v24 }
0x28ac   :  { %v7291_v41 = vpop.permute.xlu0 %7290 }
0x28ae   :  { %v13820_v29 = vpop.eup %13819 }
0x28af   :  { %v6972_v28 = vmul.f32 %v13820_v29, %v13816_v32 }
0x28b1   :  { %13228 = vmatmul.mubr.msk.f32.vlgmr.msra.gmra.mxu1 %vm842_vm2, %v6972_v28 }
0x28b2   :  { %v13822_v33 = vpop.eup %13821  ;;  %13236 = vmatpush3.msra.mxu1 %v7127_v38 }
0x28b3   :  { %v6974_v34 = vmul.f32 %v13822_v33, %v13818_v17  ;;  %13245 = vmatprep.subr.mxu1 %v14784_v6 }
0x28b5   :  { %13233 = vmatmul.mubr.msk.f32.vlgmr.msra.gmra.mxu0 %vm842_vm2, %v6974_v34 }
0x28b6   :  { %13242 = vmatprep.mubr.msk.f32.mxu0 %vm842_vm2, %v6714_v55  ;;  %13241 = vmatpush3.msra.mxu0 %v6794_v24 }
0x28b7   :  { %13250 = vmatprep.subr.mxu0 %v14784_v6 }
0x28b9   :  { %13243 = vmatmul.mubr.msk.f32.vlgmr.msra.gmra.mxu0 %vm842_vm2, %v6790_v57 }
0x28ba   :  { %13251 = vmatpush3.xpose.msk.msra.mxu0 %vm842_vm2, %v7371_v35  ;;  %13252 = vmatprep.mubr.msk.f32.mxu0 %vm14785_vm1, %v14784_v6 }
0x28bb   :  { %13260 = vmatprep.subr.mxu0 %v14784_v6 }
0x28bd   :  { %13253 = vmatmul.mubr.msk.f32.vlgmr.msra.gmra.mxu0 %vm842_vm2, %v7369_v37 }
0x28be   :  { %13262 = vmatprep.mubr.msk.f32.mxu0 %vm14785_vm1, %v14784_v6 }
0x2971   :  { %v7047_v39 = vpop.f32.mrf.mxu1 }
0x2972   :  { %13237 = vmatprep.mubr.msk.f32.mxu1 %vm842_vm2, %v7047_v39 }
0x2973   :  { %v13229_v40 = vpop.f32.mrf.mxu1 }
0x2975   :  { %v7123_v8 = vpop.f32.mrf.mxu0 }
0x2976   :  { %13238 = vmatmul.mubr.msk.f32.vlgmr.msra.gmra.mxu1 %vm842_vm2, %v7123_v8 }
0x2977   :  { %13246 = vmatpush3.xpose.msk.msra.mxu1 %vm842_vm2, %v7293_v10  ;;  %v13234_v15 = vpop.f32.mrf.mxu0  ;;  %13247 = vmatprep.mubr.msk.f32.mxu1 %vm14785_vm1, %v14784_v6 }
0x2978   :  { %13255 = vmatprep.subr.mxu1 %v14784_v6 }
0x2979   :  { %v15947_v43 = vpop.f32.mrf.mxu0 }
0x297a   :  { %13248 = vmatmul.mubr.msk.f32.vlgmr.msra.gmra.mxu1 %vm842_vm2, %v7291_v41 }
0x297b   :  { %v15950_v44 = vpop.f32.mrf.mxu0  ;;  %13257 = vmatprep.mubr.msk.f32.mxu1 %vm14785_vm1, %v14784_v6 }
0x297d   :  { %v7442_v13 = vpop.f32.mrf.mxu0 }
0x297e   :  { %v7447_v46 = vmul.f32 0.35355338, %v7442_v13 }
0x297f   :  { %v13254_v47 = vpop.f32.mrf.mxu0 }
0x2980   :  { %v7451_v48 = vsel %vm842_vm2, %v7447_v46, -inf }
0x2981   :  { %7452 = vmax.xlane.f32.xlu1 %v7451_v48 }
0x2992   :  { %7470 = vrot.lane.b32.xlu1 %v15850_v30, %s14793_s13 }
0x2996   :  { %7708 = vrot.lane.b32.xlu1 %v15850_v30, %s14794_s23 }
0x299a   :  { %7786 = vrot.lane.b32.xlu1 %v15845_v14, %s14794_s23 }
0x299e   :  { %7784 = vrot.lane.b32.xlu1 %v15845_v14, %s14795_s26 }
0x2a0a   :  { %v7453_v49 = vpop.xlane.xlu1 %7452 }
0x2a0b   :  { %v7455_v51 = vsub.f32 %v7447_v46, %v7453_v49 }
0x2a0d   :  { %v7458_v52 = vmul.f32 1.442695, %v7455_v51 }
0x2a0e   :  { %v7471_v50 = vpop.permute.xlu1 %7470 }
0x2a0f   :  { %13256 = vmatpush3.msra.mxu1 %v7471_v50  ;;  %13823 = vpow2.f32 %v7458_v52 }
0x2a10   :  { %13265 = vmatprep.subr.mxu1 %v7622_v12 }
0x2a12   :  { %v7709_v1 = vpop.permute.xlu1 %7708 }
0x2a16   :  { %v7787_v24 = vpop.permute.xlu1 %7786 }
0x2a1a   :  { %v7785_v28 = vpop.permute.xlu1 %7784 }
0x2a1c   :  { %v13824_v57 = vpop.eup %13823 }
0x2a1d   :  { %v7463_v5 = vsel %vm842_vm2, %v13824_v57, 0.0 }
0x2a36   :  { %v15963_v26 = vpop.f32.mrf.mxu1 }
0x2a37   :  { %v7287_v38 = vadd.f32 %v15947_v43, %v15963_v26 }
0x2a38   :  { %v15965_v36 = vpop.f32.mrf.mxu1 }
0x2a39   :  { %v7282_v40 = vadd.f32 %v15950_v44, %v15965_v36 }
0x2a3a   :  { %v7364_v53 = vpop.f32.mrf.mxu1 }
0x2a3b   :  { %v7446_v54 = vmul.f32 0.35355338, %v7364_v53 }
0x2a3c   :  { %v13249_v55 = vpop.f32.mrf.mxu1 }
0x2a3d   :  { %v7448_v56 = vsel %vm842_vm2, %v7446_v54, -inf }
0x2a3e   :  { %7449 = vmax.xlane.f32.xlu0 %v7448_v56 }
0x2a42   :  { %7464 = vadd.xlane.f32.xlu0 %v7463_v5 }
0x2ac7   :  { %v7450_v31 = vpop.xlane.xlu0 %7449 }
0x2ac8   :  { %v7454_v58 = vsub.f32 %v7446_v54, %v7450_v31 }
0x2aca   :  { %v7456_v25 = vmul.f32 1.442695, %v7454_v58 }
0x2acb   :  { %v7465_v60 = vpop.xlane.xlu0 %7464 }
0x2acc   :  { %13825 = vpow2.f32 %v7456_v25 }
0x2acd   :  { %13827 = vrcp.f32 %v7465_v60 }
0x2ad9   :  { %v13826_v7 = vpop.eup %13825 }
0x2ada   :  { %v7460_v59 = vsel %vm842_vm2, %v13826_v7, 0.0  ;;  %v13828_v62 = vpop.eup %13827 }
0x2adb   :  { %7461 = vadd.xlane.f32.xlu0 %v7460_v59  ;;  %v7469_v0 = vmul.f32 %v13828_v62, %v13824_v57 }
0x2af1   :  { %7546 = vrot.lane.b32.xlu0 %v15845_v14, %s14793_s13 }
0x2af5   :  { %7706 = vrot.lane.b32.xlu0 %v15850_v30, %s14795_s26 }
0x2b64   :  { %v7462_v61 = vpop.xlane.xlu0 %7461 }
0x2b65   :  { %13829 = vrcp.f32 %v7462_v61 }
0x2b68   :  { %v7547_v63 = vpop.permute.xlu0 %7546 }
0x2b69   :  { %13261 = vmatpush3.msra.mxu0 %v7547_v63 }
0x2b6a   :  { %13263 = vmatmul.mubr.msk.f32.vlgmr.msra.gmra.mxu0 %vm842_vm2, %v7469_v0  ;;  %13270 = vmatprep.subr.mxu0 %v14784_v6 }
0x2b6b   :  { %13271 = vmatpush3.xpose.msk.msra.mxu0 %vm842_vm2, %v7709_v1  ;;  %13272 = vmatprep.mubr.msk.f32.mxu0 %vm14785_vm1, %v14784_v6 }
0x2b6c   :  { %v7707_v3 = vpop.permute.xlu0 %7706  ;;  %13280 = vmatprep.subr.mxu0 %v14784_v6 }
0x2b6e   :  { %13273 = vmatmul.mubr.msk.f32.vlgmr.msra.gmra.mxu0 %vm842_vm2, %v7707_v3 }
0x2b6f   :  { %13282 = vmatprep.mubr.msk.f32.mxu0 %vm14785_vm1, %v14784_v6 }
0x2b72   :  { %v13830_v4 = vpop.eup %13829 }
0x2b73   :  { %v7467_v9 = vmul.f32 %v13830_v4, %v13826_v7  ;;  %v12242_v7 = vld [vmem:[#allocation25] ss:$0 sm:$0xff] }
0x2b75   :  { %13258 = vmatmul.mubr.msk.f32.vlgmr.msra.gmra.mxu1 %vm842_vm2, %v7467_v9 }
0x2b76   :  { %13266 = vmatpush3.msra.mxu1 %v7622_v12 }
0x2b77   :  { %13275 = vmatprep.subr.mxu1 %v14784_v6 }
0x2c2a   :  { %v7618_v32 = vpop.f32.mrf.mxu0 }
0x2c2c   :  { %v13264_v16 = vpop.f32.mrf.mxu0 }
0x2c2e   :  { %v7780_v17 = vpop.f32.mrf.mxu0 }
0x2c2f   :  { %v7862_v18 = vmul.f32 0.35355338, %v7780_v17 }
0x2c30   :  { %v13274_v20 = vpop.f32.mrf.mxu0 }
0x2c31   :  { %v7864_v23 = vsel %vm842_vm2, %v7862_v18, -inf }
0x2c32   :  { %7865 = vmax.xlane.f32.xlu0 %v7864_v23 }
0x2c35   :  { %v7542_v2 = vpop.f32.mrf.mxu1 }
0x2c36   :  { %13267 = vmatprep.mubr.msk.f32.mxu1 %vm842_vm2, %v7542_v2  ;;  %v8179_v2 = vld [vmem:[%s16563_s7 + $0x10] sm:$0xff] }
0x2c37   :  { %v13259_v29 = vpop.f32.mrf.mxu1  ;;  %13268 = vmatmul.mubr.msk.f32.vlgmr.msra.gmra.mxu1 %vm842_vm2, %v7618_v32 }
0x2c38   :  { %13276 = vmatpush3.xpose.msk.msra.mxu1 %vm842_vm2, %v7787_v24  ;;  %13277 = vmatprep.mubr.msk.f32.mxu1 %vm14785_vm1, %v14784_v6  ;;  %v8180_v24 = vld [vmem:[%s16563_s7 + $0x18] sm:$0xff]  ;;  %v8178_v29 = vld [vmem:[%s16563_s7 + $0x8] sm:$0xff] }
0x2c39   :  { %13285 = vmatprep.subr.mxu1 %v14784_v6 }
0x2c3b   :  { %13278 = vmatmul.mubr.msk.f32.vlgmr.msra.gmra.mxu1 %vm842_vm2, %v7785_v28  ;;  %v8177_v28 = vld [vmem:[%s16563_s7] sm:$0xff] }
0x2c3c   :  { %13287 = vmatprep.mubr.msk.f32.mxu1 %vm14785_vm1, %v14784_v6 }
0x2cbb   :  { %v7866_v10 = vpop.xlane.xlu0 %7865 }
0x2cbc   :  { %v7870_v33 = vsub.f32 %v7862_v18, %v7866_v10  ;;  %v8278_v10 = vld [vmem:[%s16564_s10 + $0x38] sm:$0xff] }
0x2cbe   :  { %v7872_v34 = vmul.f32 1.442695, %v7870_v33  ;;  %v8277_v33 = vld [vmem:[%s16564_s10 + $0x30] sm:$0xff] }
0x2cc0   :  { %13831 = vpow2.f32 %v7872_v34  ;;  %v8276_v34 = vld [vmem:[%s16564_s10 + $0x28] sm:$0xff] }
0x2ccd   :  { %v13832_v35 = vpop.eup %13831 }
0x2cce   :  { %v7876_v37 = vsel %vm842_vm2, %v13832_v35, 0.0 }
0x2ccf   :  { %7877 = vadd.xlane.f32.xlu0 %v7876_v37 }
0x2cf7   :  { %v13269_v39 = vpop.f32.mrf.mxu1 }
0x2cf8   :  { %v7705_v8 = vadd.f32 %v13269_v39, %v7287_v38 }
0x2cf9   :  { %v7695_v15 = vpop.f32.mrf.mxu1 }
0x2cfa   :  { %v7704_v41 = vadd.f32 %v7695_v15, %v7282_v40 }
0x2cfb   :  { %v7858_v13 = vpop.f32.mrf.mxu1 }
0x2cfc   :  { %v7863_v46 = vmul.f32 0.35355338, %v7858_v13  ;;  %v12243_v13 = vld [vmem:[#allocation27] ss:$0 sm:$0xff] }
0x2cfd   :  { %v13279_v47 = vpop.f32.mrf.mxu1 }
0x2cfe   :  { %v7867_v48 = vsel %vm842_vm2, %v7863_v46, -inf }
0x2cff   :  { %7868 = vmax.xlane.f32.xlu1 %v7867_v48 }
0x2d10   :  { %7886 = vrot.lane.b32.xlu1 %v15850_v30, %s14796_s27  ;;  %v8038_v30 = vld [vmem:[%s16562_s2 + $0x18] sm:$0xff] }
0x2d58   :  { %v7878_v49 = vpop.xlane.xlu0 %7877 }
0x2d59   :  { %13833 = vrcp.f32 %v7878_v49 }
0x2d66   :  { %v13834_v50 = vpop.eup %13833 }
0x2d67   :  { %v7883_v26 = vmul.f32 %v13834_v50, %v13832_v35  ;;  %v8275_v35 = vld [vmem:[%s16564_s10 + $0x20] sm:$0xff] }
0x2d88   :  { %v7869_v43 = vpop.xlane.xlu1 %7868 }
0x2d89   :  { %v7871_v51 = vsub.f32 %v7863_v46, %v7869_v43  ;;  %v12244_v43 = vld [vmem:[#allocation28] ss:$0 sm:$0xff] }
0x2d8b   :  { %v7874_v52 = vmul.f32 1.442695, %v7871_v51 }
0x2d8c   :  { %v7887_v44 = vpop.permute.xlu1 %7886 }
0x2d8d   :  { %13835 = vpow2.f32 %v7874_v52  ;;  %13281 = vmatpush3.msra.mxu0 %v7887_v44  ;;  %v8274_v44 = vld [vmem:[%s16564_s10 + $0x18] sm:$0xff] }
0x2d8e   :  { %13283 = vmatmul.mubr.msk.f32.vlgmr.msra.gmra.mxu0 %vm842_vm2, %v7883_v26  ;;  %13290 = vmatprep.subr.mxu0 %v8038_v30  ;;  %v8273_v26 = vld [vmem:[%s16564_s10 + $0x10] sm:$0xff] }
0x2d8f   :  { %13291 = vmatpush3.msra.mxu0 %v8038_v30  ;;  %v12245_v30 = vld [vmem:[#allocation30] ss:$0 sm:$0xff] }
0x2d90   :  { %13306 = vmatprep.subr.mxu0 %v8278_v10 }
0x2d9a   :  { %v13836_v36 = vpop.eup %13835 }
0x2d9b   :  { %v7879_v53 = vsel %vm842_vm2, %v13836_v36, 0.0 }
0x2d9c   :  { %7880 = vadd.xlane.f32.xlu0 %v7879_v53  ;;  %v8271_v53 = vld [vmem:[%s16564_s10] sm:$0xff] }
0x2db2   :  { %7962 = vrot.lane.b32.xlu0 %v15845_v14, %s14796_s27 }
0x2e25   :  { %v7881_v54 = vpop.xlane.xlu0 %7880 }
0x2e26   :  { %13837 = vrcp.f32 %v7881_v54 }
0x2e29   :  { %v7963_v55 = vpop.permute.xlu0 %7962 }
0x2e2a   :  { %13286 = vmatpush3.msra.mxu1 %v7963_v55 }
0x2e2b   :  { %13295 = vmatprep.subr.mxu1 %v8180_v24 }
0x2e33   :  { %v13838_v56 = vpop.eup %13837 }
0x2e34   :  { %v7885_v57 = vmul.f32 %v13838_v56, %v13836_v36  ;;  %v8272_v36 = vld [vmem:[%s16564_s10 + $0x8] sm:$0xff] }
0x2e36   :  { %13288 = vmatmul.mubr.msk.f32.vlgmr.msra.gmra.mxu1 %vm842_vm2, %v7885_v57 }
0x2e37   :  { %13296 = vmatpush3.msra.mxu1 %v8180_v24 }
0x2e38   :  { %13297 = vmatprep.subr.mxu1 %v8179_v2 }
0x2e39   :  { %13298 = vmatpush3.msra.mxu1 %v8179_v2 }
0x2e3a   :  { %13299 = vmatprep.subr.mxu1 %v8178_v29 }
0x2e3b   :  { %13300 = vmatpush3.msra.mxu1 %v8178_v29 }
0x2e3c   :  { %13301 = vmatprep.subr.mxu1 %v8177_v28 }
0x2e3d   :  { %13302 = vmatpush3.msra.mxu1 %v8177_v28 }
0x2e4e   :  { %v7958_v5 = vpop.f32.mrf.mxu0 }
0x2e4f   :  { %13292 = vmatprep.mubr.msk.f32.mxu0 %vm842_vm2, %v7958_v5 }
0x2e50   :  { %v13284_v31 = vpop.f32.mrf.mxu0 }
0x2ef6   :  { %v8034_v58 = vpop.f32.mrf.mxu1 }
0x2ef7   :  { %13293 = vmatmul.mubr.msk.f32.vlgmr.msra.gmra.mxu0 %vm842_vm2, %v8034_v58  ;;  %v12248_v58 = vld [vmem:[#allocation31] ss:$0 sm:$0xff] }
0x2ef8   :  { %v13289_v25 = vpop.f32.mrf.mxu1  ;;  %13307 = vmatpush3.msra.mxu0 %v8278_v10 }
0x2ef9   :  { %13308 = vmatprep.subr.mxu0 %v8277_v33 }
0x2efa   :  { %13309 = vmatpush3.msra.mxu0 %v8277_v33 }
0x2efb   :  { %13310 = vmatprep.subr.mxu0 %v8276_v34 }
0x2efc   :  { %13311 = vmatpush3.msra.mxu0 %v8276_v34 }
0x2efd   :  { %13312 = vmatprep.subr.mxu0 %v8275_v35 }
0x2efe   :  { %13313 = vmatpush3.msra.mxu0 %v8275_v35  ;;  %v12251_v35 = vld [vmem:[#allocation33] ss:$0 sm:$0xff] }
0x2eff   :  { %13314 = vmatprep.subr.mxu0 %v8274_v44 }
0x2f00   :  { %13315 = vmatpush3.msra.mxu0 %v8274_v44 }
0x2f01   :  { %13316 = vmatprep.subr.mxu0 %v8273_v26 }
0x2f02   :  { %13317 = vmatpush3.msra.mxu0 %v8273_v26 }
0x2f03   :  { %13318 = vmatprep.subr.mxu0 %v8272_v36 }
0x2f04   :  { %13319 = vmatpush3.msra.mxu0 %v8272_v36 }
0x2f05   :  { %13320 = vmatprep.subr.mxu0 %v8271_v53 }
0x2f06   :  { %13321 = vmatpush3.msra.mxu0 %v8271_v53 }
0x2f07   :  { %13341 = vmatprep.subr.mxu0 %v14784_v6 }
0x2fb7   :  { %v13294_v14 = vpop.f32.mrf.mxu0 }
0x2fb8   :  { %v8121_v59 = vadd.f32 %v13294_v14, %v7705_v8 }
0x2fb9   :  { %v8111_v60 = vpop.f32.mrf.mxu0 }
0x2fba   :  { %v8130_v61 = vadd.f32 %v12242_v7, %v8121_v59  ;;  %v8120_v62 = vadd.f32 %v8111_v60, %v7704_v41 }
0x2fbc   :  { %v8129_v63 = vadd.f32 %v12242_v7, %v8120_v62  ;;  %v8132_v0 = vadd.f32 %v8130_v61, %v15830_v45 }
0x2fbe   :  { %v8138_v1 = vsel %vm757_vm0, %v8132_v0, 0.0  ;;  %v8131_v3 = vadd.f32 %v8129_v63, %v15821_v42 }
0x2fbf   :  { %8139 = vadd.xlane.f32.xlu0 %v8138_v1 }
0x2fc0   :  { %v8135_v4 = vsel %vm757_vm0, %v8131_v3, 0.0 }
0x2fc1   :  { %8136 = vadd.xlane.f32.xlu1 %v8135_v4 }
0x3048   :  { %v8140_v9 = vpop.xlane.xlu0 %8139 }
0x3049   :  { %v8142_v12 = vmul.f32 0.03125, %v8140_v9 }
0x304a   :  { %v8137_v32 = vpop.xlane.xlu1 %8136 }
0x304b   :  { %v8144_v16 = vsub.f32 %v8132_v0, %v8142_v12  ;;  %v8141_v17 = vmul.f32 0.03125, %v8137_v32 }
0x304d   :  { %v8143_v18 = vsub.f32 %v8131_v3, %v8141_v17  ;;  %v8146_v20 = vmul.f32 %v8144_v16, %v8144_v16 }
0x304f   :  { %v8150_v45 = vsel %vm757_vm0, %v8146_v20, 0.0  ;;  %v8145_v23 = vmul.f32 %v8143_v18, %v8143_v18  ;;  %v8416_v20 = vld [vmem:[%s16565_s11 + $0x18] sm:$0xff] }
0x3050   :  { %8151 = vadd.xlane.f32.xlu0 %v8150_v45  ;;  %v8415_v45 = vld [vmem:[%s16565_s11 + $0x10] sm:$0xff]  ;;  %13325 = vmatprep.subr.mxu1 %v8416_v20 }
0x3051   :  { %v8147_v42 = vsel %vm757_vm0, %v8145_v23, 0.0  ;;  %v8414_v23 = vld [vmem:[%s16565_s11 + $0x8] sm:$0xff] }
0x3052   :  { %8148 = vadd.xlane.f32.xlu1 %v8147_v42  ;;  %v8413_v42 = vld [vmem:[%s16565_s11] sm:$0xff] }
0x30d9   :  { %v8152_v37 = vpop.xlane.xlu0 %8151 }
0x30da   :  { %v8154_v38 = vmul.f32 0.03125, %v8152_v37 }
0x30db   :  { %v8149_v39 = vpop.xlane.xlu1 %8148 }
0x30dc   :  { %v8156_v40 = vadd.f32 1e-05, %v8154_v38  ;;  %v8153_v8 = vmul.f32 0.03125, %v8149_v39 }
0x30de   :  { %13839 = vrsqrt.f32 %v8156_v40  ;;  %v8155_v15 = vadd.f32 1e-05, %v8153_v8  ;;  %v12252_v8 = vld [vmem:[#allocation34] ss:$0 sm:$0xff] }
0x30e0   :  { %13841 = vrsqrt.f32 %v8155_v15 }
0x30eb   :  { %v13840_v41 = vpop.eup %13839 }
0x30ec   :  { %v8160_v46 = vmul.f32 %v13840_v41, %v8144_v16 }
0x30ed   :  { %v13842_v47 = vpop.eup %13841 }
0x30ee   :  { %v8159_v48 = vmul.f32 %v13842_v47, %v8143_v18  ;;  %v8168_v49 = vmul.f32 %v12243_v13, %v8160_v46  ;;  %v12253_v46 = vld [vmem:[#allocation36] ss:$0 sm:$0xff] }
0x30f0   :  { %v8167_v50 = vmul.f32 %v12243_v13, %v8159_v48  ;;  %v8176_v52 = vadd.f32 %v12244_v43, %v8168_v49 }
0x30f2   :  { %v8175_v51 = vadd.f32 %v12244_v43, %v8167_v50 }
0x30f4   :  { %13303 = vmatprep.mubr.msk.f32.mxu1 %vm757_vm0, %v8175_v51 }
0x30f5   :  { %13304 = vmatmul.mubr.msk.f32.vlgmr.msra.gmra.mxu1 %vm757_vm0, %v8176_v52 }
0x30f6   :  { %13326 = vmatpush3.msra.mxu1 %v8416_v20 }
0x30f7   :  { %13327 = vmatprep.subr.mxu1 %v8415_v45 }
0x30f8   :  { %13328 = vmatpush3.msra.mxu1 %v8415_v45 }
0x30f9   :  { %13329 = vmatprep.subr.mxu1 %v8414_v23 }
0x30fa   :  { %13330 = vmatpush3.msra.mxu1 %v8414_v23 }
0x30fb   :  { %13331 = vmatprep.subr.mxu1 %v8413_v42 }
0x30fc   :  { %13332 = vmatpush3.msra.mxu1 %v8413_v42 }
0x30fd   :  { %13336 = vmatprep.subr.mxu1 %v14784_v6 }
0x31b5   :  { %v13305_v54 = vpop.f32.mrf.mxu1 }
0x31b6   :  { %v8266_v55 = vadd.f32 %v13305_v54, %v12245_v30 }
0x31b7   :  { %v8260_v56 = vpop.f32.mrf.mxu1 }
0x31b8   :  { %v8261_v57 = vadd.f32 %v12245_v30, %v8260_v56  ;;  %v8270_v31 = vmax.f32 %v8266_v55, 0.0 }
0x31ba   :  { %v8269_v5 = vmax.f32 %v8261_v57, 0.0 }
0x31bc   :  { %13322 = vmatprep.mubr.msk.f32.mxu0 %vm2663_vm3, %v8269_v5 }
0x31bd   :  { %13323 = vmatmul.mubr.msk.f32.vlgmr.msra.gmra.mxu0 %vm2663_vm3, %v8270_v31 }
0x31be   :  { %13343 = vmatprep.mubr.msk.f32.mxu0 %vm14785_vm1, %v14784_v6 }
0x327d   :  { %v13324_v25 = vpop.f32.mrf.mxu0 }
0x327e   :  { %v8364_v14 = vadd.f32 %v13324_v25, %v12248_v58 }
0x327f   :  { %v8358_v7 = vpop.f32.mrf.mxu0 }
0x3280   :  { %v8368_v59 = vadd.f32 %v8364_v14, %v8176_v52  ;;  %v8359_v60 = vadd.f32 %v12248_v58, %v8358_v7 }
0x3282   :  { %v8367_v61 = vadd.f32 %v8359_v60, %v8175_v51  ;;  %v8374_v62 = vsel %vm757_vm0, %v8368_v59, 0.0 }
0x3283   :  { %8375 = vadd.xlane.f32.xlu0 %v8374_v62 }
0x3284   :  { %v8371_v63 = vsel %vm757_vm0, %v8367_v61, 0.0 }
0x3285   :  { %8372 = vadd.xlane.f32.xlu1 %v8371_v63 }
0x330c   :  { %v8376_v0 = vpop.xlane.xlu0 %8375 }
0x330d   :  { %v8378_v1 = vmul.f32 0.03125, %v8376_v0 }
0x330e   :  { %v8373_v3 = vpop.xlane.xlu1 %8372 }
0x330f   :  { %v8380_v4 = vsub.f32 %v8368_v59, %v8378_v1  ;;  %v8377_v9 = vmul.f32 0.03125, %v8373_v3 }
0x3311   :  { %v8379_v12 = vsub.f32 %v8367_v61, %v8377_v9  ;;  %v8382_v32 = vmul.f32 %v8380_v4, %v8380_v4 }
0x3313   :  { %v8386_v16 = vsel %vm757_vm0, %v8382_v32, 0.0  ;;  %v8381_v17 = vmul.f32 %v8379_v12, %v8379_v12 }
0x3314   :  { %8387 = vadd.xlane.f32.xlu0 %v8386_v16 }
0x3315   :  { %v8383_v18 = vsel %vm757_vm0, %v8381_v17, 0.0 }
0x3316   :  { %8384 = vadd.xlane.f32.xlu1 %v8383_v18 }
0x339d   :  { %v8388_v24 = vpop.xlane.xlu0 %8387 }
0x339e   :  { %v8390_v2 = vmul.f32 0.03125, %v8388_v24 }
0x339f   :  { %v8385_v29 = vpop.xlane.xlu1 %8384 }
0x33a0   :  { %v8392_v28 = vadd.f32 1e-05, %v8390_v2  ;;  %v8389_v10 = vmul.f32 0.03125, %v8385_v29 }
0x33a2   :  { %13843 = vrsqrt.f32 %v8392_v28  ;;  %v8391_v33 = vadd.f32 1e-05, %v8389_v10 }
0x33a4   :  { %13845 = vrsqrt.f32 %v8391_v33 }
0x33af   :  { %v13844_v34 = vpop.eup %13843 }
0x33b0   :  { %v8396_v37 = vmul.f32 %v13844_v34, %v8380_v4 }
0x33b1   :  { %v13846_v38 = vpop.eup %13845 }
0x33b2   :  { %v8395_v39 = vmul.f32 %v13846_v38, %v8379_v12  ;;  %v8404_v40 = vmul.f32 %v12251_v35, %v8396_v37 }
0x33b4   :  { %v8403_v15 = vmul.f32 %v12251_v35, %v8395_v39  ;;  %v16048_v13 = vadd.f32 %v12252_v8, %v8404_v40 }
0x33b6   :  { %v16046_v41 = vadd.f32 %v12252_v8, %v8403_v15 }
0x33b8   :  { %13333 = vmatprep.mubr.msk.f32.mxu1 %vm757_vm0, %v16046_v41 }
0x33b9   :  { %13334 = vmatmul.mubr.msk.f32.vlgmr.msra.gmra.mxu1 %vm757_vm0, %v16048_v13 }
0x33ba   :  { %13338 = vmatprep.mubr.msk.f32.mxu1 %vm14785_vm1, %v14784_v6 }
0x3479   :  { %v13335_v47 = vpop.f32.mrf.mxu1 }
0x347a   :  { %v16056_v48 = vadd.f32 %v13335_v47, %v12253_v46 }
0x347b   :  { %v8496_v49 = vpop.f32.mrf.mxu1 }
0x347c   :  { %v16058_v43 = vadd.f32 %v12253_v46, %v8496_v49  ;;  %8583 = vrot.lane.b32.xlu0 %v16056_v48, %s14786_s15 }
0x347e   :  { %8506 = vrot.lane.b32.xlu1 %v16058_v43, %s14786_s15  ;;  %s16566_s15 = sld [smem:[#allocation120_spill]] }
0x34ee   :  { %v8584_v50 = vpop.permute.xlu0 %8583 }
0x34ef   :  { %13342 = vmatpush3.xpose.msk.msra.mxu0 %vm842_vm2, %v8584_v50 }
0x34f0   :  { %v8507_v51 = vpop.permute.xlu1 %8506  ;;  %13351 = vmatprep.subr.mxu0 %v14784_v6 }
0x34f1   :  { %13337 = vmatpush3.xpose.msk.msra.mxu1 %vm842_vm2, %v8507_v51 }
0x34f2   :  { %13344 = vmatmul.mubr.msk.f32.vlgmr.msra.gmra.mxu0 %vm842_vm2, %v16056_v48  ;;  %13346 = vmatprep.subr.mxu1 %v14784_v6 }
0x34f3   :  { %13353 = vmatprep.mubr.msk.f32.mxu0 %vm14785_vm1, %v14784_v6 }
0x34f4   :  { %13339 = vmatmul.mubr.msk.f32.vlgmr.msra.gmra.mxu1 %vm842_vm2, %v16058_v43 }
0x34f5   :  { %13348 = vmatprep.mubr.msk.f32.mxu1 %vm14785_vm1, %v14784_v6 }
0x35b2   :  { %v8655_v52 = vpop.f32.mrf.mxu0 }
0x35b3   :  { %v8660_v44 = vmul.f32 0.35355338, %v8655_v52 }
0x35b4   :  { %v8578_v26 = vpop.f32.mrf.mxu1  ;;  %v13345_v36 = vpop.f32.mrf.mxu0 }
0x35b5   :  { %v8659_v53 = vmul.f32 0.35355338, %v8578_v26  ;;  %v8664_v30 = vsel %vm842_vm2, %v8660_v44, -inf }
0x35b6   :  { %8665 = vmax.xlane.f32.xlu0 %v8664_v30  ;;  %v13340_v54 = vpop.f32.mrf.mxu1 }
0x35b7   :  { %v8661_v55 = vsel %vm842_vm2, %v8659_v53, -inf }
0x35b8   :  { %8662 = vmax.xlane.f32.xlu1 %v8661_v55 }
0x35c9   :  { %8683 = vrot.lane.b32.xlu1 %v16058_v43, %s14787_s6 }
0x35cc   :  { %8759 = vrot.lane.b32.xlu0 %v16056_v48, %s14787_s6  ;;  %s16567_s6 = sld [smem:[#allocation122_spill]] }
0x35cd   :  { %8838 = vrot.lane.b32.xlu1 %v16058_v43, %s14788_s16 }
0x35d1   :  { %8916 = vrot.lane.b32.xlu1 %v16056_v48, %s14788_s16  ;;  %s16568_s16 = sld [smem:[#allocation127_spill]] }
0x363f   :  { %v8666_v56 = vpop.xlane.xlu0 %8665 }
0x3640   :  { %v8668_v57 = vsub.f32 %v8660_v44, %v8666_v56  ;;  %v8835_v44 = vld [vmem:[%s16566_s15] sm:$0xff] }
0x3641   :  { %v8663_v5 = vpop.xlane.xlu1 %8662 }
0x3642   :  { %v8671_v31 = vmul.f32 1.442695, %v8668_v57  ;;  %v8667_v58 = vsub.f32 %v8659_v53, %v8663_v5  ;;  %v9168_v5 = vld [vmem:[%s16566_s15 + $0x8] sm:$0xff] }
0x3643   :  { %v8760_v25 = vpop.permute.xlu0 %8759 }
0x3644   :  { %13847 = vpow2.f32 %v8671_v31  ;;  %v8669_v14 = vmul.f32 1.442695, %v8667_v58  ;;  %13352 = vmatpush3.msra.mxu0 %v8760_v25 }
0x3645   :  { %v8684_v7 = vpop.permute.xlu1 %8683  ;;  %13361 = vmatprep.subr.mxu0 %v14784_v6 }
0x3646   :  { %13849 = vpow2.f32 %v8669_v14  ;;  %13347 = vmatpush3.msra.mxu1 %v8684_v7 }
0x3647   :  { %13356 = vmatprep.subr.mxu1 %v14784_v6 }
0x3649   :  { %v8839_v63 = vpop.permute.xlu1 %8838 }
0x364d   :  { %v8917_v0 = vpop.permute.xlu1 %8916 }
0x3651   :  { %v13848_v59 = vpop.eup %13847 }
0x3652   :  { %v8676_v60 = vsel %vm842_vm2, %v13848_v59, 0.0 }
0x3653   :  { %v13850_v61 = vpop.eup %13849  ;;  %8677 = vadd.xlane.f32.xlu0 %v8676_v60 }
0x3654   :  { %v8673_v62 = vsel %vm842_vm2, %v13850_v61, 0.0 }
0x3655   :  { %8674 = vadd.xlane.f32.xlu1 %v8673_v62 }
0x3666   :  { %8914 = vrot.lane.b32.xlu1 %v16056_v48, %s14789_s29 }
0x3669   :  { %8836 = vrot.lane.b32.xlu0 %v16058_v43, %s14789_s29  ;;  %s16569_s29 = sld [smem:[#allocation124_spill]] }
0x36dc   :  { %v8678_v1 = vpop.xlane.xlu0 %8677 }
0x36dd   :  { %13851 = vrcp.f32 %v8678_v1 }
0x36de   :  { %v8675_v3 = vpop.xlane.xlu1 %8674 }
0x36df   :  { %13853 = vrcp.f32 %v8675_v3 }
0x36e0   :  { %v8837_v17 = vpop.permute.xlu0 %8836 }
0x36e2   :  { %v8915_v16 = vpop.permute.xlu1 %8914 }
0x36ea   :  { %v13852_v4 = vpop.eup %13851 }
0x36eb   :  { %v8682_v9 = vmul.f32 %v13852_v4, %v13848_v59 }
0x36ec   :  { %v13854_v12 = vpop.eup %13853 }
0x36ed   :  { %13354 = vmatmul.mubr.msk.f32.vlgmr.msra.gmra.mxu0 %vm842_vm2, %v8682_v9  ;;  %v8680_v32 = vmul.f32 %v13854_v12, %v13850_v61 }
0x36ee   :  { %13362 = vmatpush3.xpose.msk.msra.mxu0 %vm842_vm2, %v8917_v0  ;;  %13363 = vmatprep.mubr.msk.f32.mxu0 %vm14785_vm1, %v14784_v6 }
0x36ef   :  { %13349 = vmatmul.mubr.msk.f32.vlgmr.msra.gmra.mxu1 %vm842_vm2, %v8680_v32  ;;  %13371 = vmatprep.subr.mxu0 %v14784_v6 }
0x36f0   :  { %13357 = vmatpush3.xpose.msk.msra.mxu1 %vm842_vm2, %v8839_v63  ;;  %13358 = vmatprep.mubr.msk.f32.mxu1 %vm14785_vm1, %v14784_v6 }
0x36f1   :  { %13364 = vmatmul.mubr.msk.f32.vlgmr.msra.gmra.mxu0 %vm842_vm2, %v8915_v16  ;;  %13366 = vmatprep.subr.mxu1 %v14784_v6 }
0x36f2   :  { %13373 = vmatprep.mubr.msk.f32.mxu0 %vm14785_vm1, %v14784_v6 }
0x36f3   :  { %13359 = vmatmul.mubr.msk.f32.vlgmr.msra.gmra.mxu1 %vm842_vm2, %v8837_v17 }
0x36f4   :  { %13368 = vmatprep.mubr.msk.f32.mxu1 %vm14785_vm1, %v14784_v6 }
0x37ad   :  { %v8831_v18 = vpop.f32.mrf.mxu0 }
0x37af   :  { %v8755_v20 = vpop.f32.mrf.mxu1  ;;  %v13355_v45 = vpop.f32.mrf.mxu0 }
0x37b1   :  { %v13350_v23 = vpop.f32.mrf.mxu1  ;;  %v8988_v42 = vpop.f32.mrf.mxu0 }
0x37b2   :  { %v8993_v24 = vmul.f32 0.35355338, %v8988_v42 }
0x37b3   :  { %v8910_v2 = vpop.f32.mrf.mxu1  ;;  %v13365_v29 = vpop.f32.mrf.mxu0 }
0x37b4   :  { %v8992_v28 = vmul.f32 0.35355338, %v8910_v2  ;;  %v8997_v10 = vsel %vm842_vm2, %v8993_v24, -inf }
0x37b5   :  { %8998 = vmax.xlane.f32.xlu1 %v8997_v10  ;;  %v13360_v33 = vpop.f32.mrf.mxu1 }
0x37b6   :  { %v8994_v34 = vsel %vm842_vm2, %v8992_v28, -inf }
0x37b7   :  { %8995 = vmax.xlane.f32.xlu0 %v8994_v34 }
0x37c6   :  { %9016 = vrot.lane.b32.xlu1 %v16058_v43, %s14790_s18 }
0x37ca   :  { %9333 = vrot.lane.b32.xlu1 %v16058_v43, %s14792_s22 }
0x37ce   :  { %9411 = vrot.lane.b32.xlu1 %v16056_v48, %s14792_s22  ;;  %s16572_s22 = sld [smem:[#allocation133_spill]] }
0x37d2   :  { %9409 = vrot.lane.b32.xlu1 %v16056_v48, %s14791_s17 }
0x383e   :  { %v8999_v35 = vpop.xlane.xlu1 %8998 }
0x383f   :  { %v9001_v37 = vsub.f32 %v8993_v24, %v8999_v35 }
0x3840   :  { %v8996_v38 = vpop.xlane.xlu0 %8995 }
0x3841   :  { %v9004_v39 = vmul.f32 1.442695, %v9001_v37  ;;  %v9000_v40 = vsub.f32 %v8992_v28, %v8996_v38 }
0x3842   :  { %v9017_v8 = vpop.permute.xlu1 %9016 }
0x3843   :  { %13855 = vpow2.f32 %v9004_v39  ;;  %v9002_v15 = vmul.f32 1.442695, %v9000_v40  ;;  %13367 = vmatpush3.msra.mxu1 %v9017_v8 }
0x3844   :  { %13376 = vmatprep.subr.mxu1 %v9168_v5 }
0x3845   :  { %13857 = vpow2.f32 %v9002_v15  ;;  %v9663_v15 = vld [vmem:[%s16566_s15 + $0x10] sm:$0xff] }
0x3846   :  { %v9334_v36 = vpop.permute.xlu1 %9333 }
0x384a   :  { %v9412_v55 = vpop.permute.xlu1 %9411 }
0x384e   :  { %v9410_v57 = vpop.permute.xlu1 %9409 }
0x3850   :  { %v13856_v46 = vpop.eup %13855 }
0x3851   :  { %v9009_v47 = vsel %vm842_vm2, %v13856_v46, 0.0 }
0x3852   :  { %v13858_v49 = vpop.eup %13857  ;;  %9010 = vadd.xlane.f32.xlu0 %v9009_v47 }
0x3853   :  { %v9006_v50 = vsel %vm842_vm2, %v13858_v49, 0.0 }
0x3856   :  { %9007 = vadd.xlane.f32.xlu0 %v9006_v50 }
0x386c   :  { %9092 = vrot.lane.b32.xlu0 %v16056_v48, %s14790_s18  ;;  %s16570_s18 = sld [smem:[#allocation129_spill]] }
0x3870   :  { %9331 = vrot.lane.b32.xlu0 %v16058_v43, %s14791_s17  ;;  %s16571_s17 = sld [smem:[#allocation131_spill]] }
0x38db   :  { %v9011_v51 = vpop.xlane.xlu0 %9010 }
0x38dc   :  { %13859 = vrcp.f32 %v9011_v51 }
0x38df   :  { %v9008_v52 = vpop.xlane.xlu0 %9007 }
0x38e0   :  { %13861 = vrcp.f32 %v9008_v52 }
0x38e3   :  { %v9093_v26 = vpop.permute.xlu0 %9092 }
0x38e4   :  { %13372 = vmatpush3.msra.mxu0 %v9093_v26 }
0x38e5   :  { %13381 = vmatprep.subr.mxu0 %v8835_v44 }
0x38e7   :  { %v9332_v61 = vpop.permute.xlu0 %9331 }
0x38e9   :  { %v13860_v53 = vpop.eup %13859 }
0x38ea   :  { %v9015_v30 = vmul.f32 %v13860_v53, %v13856_v46 }
0x38ec   :  { %13374 = vmatmul.mubr.msk.f32.vlgmr.msra.gmra.mxu0 %vm842_vm2, %v9015_v30 }
0x38ed   :  { %v13862_v54 = vpop.eup %13861  ;;  %13383 = vmatprep.mubr.msk.f32.mxu0 %vm842_vm2, %v8755_v20  ;;  %13382 = vmatpush3.msra.mxu0 %v8835_v44 }
0x38ee   :  { %13391 = vmatprep.subr.mxu0 %v14784_v6  ;;  %v9013_v56 = vmul.f32 %v13862_v54, %v13858_v49 }
0x38f0   :  { %13369 = vmatmul.mubr.msk.f32.vlgmr.msra.gmra.mxu1 %vm842_vm2, %v9013_v56  ;;  %13384 = vmatmul.mubr.msk.f32.vlgmr.msra.gmra.mxu0 %vm842_vm2, %v8831_v18 }
0x38f1   :  { %13392 = vmatpush3.xpose.msk.msra.mxu0 %vm842_vm2, %v9412_v55  ;;  %13393 = vmatprep.mubr.msk.f32.mxu0 %vm14785_vm1, %v14784_v6 }
0x38f2   :  { %13401 = vmatprep.subr.mxu0 %v14784_v6  ;;  %13377 = vmatpush3.msra.mxu1 %v9168_v5 }
0x38f3   :  { %13386 = vmatprep.subr.mxu1 %v14784_v6 }
0x38f4   :  { %13394 = vmatmul.mubr.msk.f32.vlgmr.msra.gmra.mxu0 %vm842_vm2, %v9410_v57 }
0x38f5   :  { %13403 = vmatprep.mubr.msk.f32.mxu0 %vm14785_vm1, %v14784_v6 }
0x39ac   :  { %v9164_v31 = vpop.f32.mrf.mxu0 }
0x39ae   :  { %v13375_v58 = vpop.f32.mrf.mxu0 }
0x39b0   :  { %v9088_v25 = vpop.f32.mrf.mxu1  ;;  %v16141_v14 = vpop.f32.mrf.mxu0 }
0x39b1   :  { %13378 = vmatprep.mubr.msk.f32.mxu1 %vm842_vm2, %v9088_v25 }
0x39b2   :  { %v13370_v7 = vpop.f32.mrf.mxu1  ;;  %13379 = vmatmul.mubr.msk.f32.vlgmr.msra.gmra.mxu1 %vm842_vm2, %v9164_v31  ;;  %v16145_v59 = vpop.f32.mrf.mxu0 }
0x39b3   :  { %13387 = vmatpush3.xpose.msk.msra.mxu1 %vm842_vm2, %v9334_v36  ;;  %13388 = vmatprep.mubr.msk.f32.mxu1 %vm14785_vm1, %v14784_v6 }
0x39b4   :  { %v9483_v60 = vpop.f32.mrf.mxu0  ;;  %13396 = vmatprep.subr.mxu1 %v14784_v6 }
0x39b5   :  { %v9488_v62 = vmul.f32 0.35355338, %v9483_v60 }
0x39b6   :  { %13389 = vmatmul.mubr.msk.f32.vlgmr.msra.gmra.mxu1 %vm842_vm2, %v9332_v61  ;;  %v13395_v63 = vpop.f32.mrf.mxu0 }
0x39b7   :  { %v9492_v0 = vsel %vm842_vm2, %v9488_v62, -inf  ;;  %13398 = vmatprep.mubr.msk.f32.mxu1 %vm14785_vm1, %v14784_v6 }
0x39b8   :  { %9493 = vmax.xlane.f32.xlu1 %v9492_v0 }
0x39c9   :  { %9511 = vrot.lane.b32.xlu1 %v16058_v43, %s14793_s13 }
0x39cd   :  { %9749 = vrot.lane.b32.xlu1 %v16058_v43, %s14794_s23 }
0x39d1   :  { %9827 = vrot.lane.b32.xlu1 %v16056_v48, %s14794_s23  ;;  %s16574_s23 = sld [smem:[#allocation137_spill]] }
0x39d5   :  { %9825 = vrot.lane.b32.xlu1 %v16056_v48, %s14795_s26 }
0x39d7   :  { %v11677_v11 = vld [vmem:[%s16574_s23 + $0x8] sm:$0xff] }
0x3a41   :  { %v9494_v1 = vpop.xlane.xlu1 %9493 }
0x3a42   :  { %v9496_v4 = vsub.f32 %v9488_v62, %v9494_v1 }
0x3a44   :  { %v9499_v9 = vmul.f32 1.442695, %v9496_v4 }
0x3a45   :  { %v9512_v3 = vpop.permute.xlu1 %9511 }
0x3a46   :  { %13397 = vmatpush3.msra.mxu1 %v9512_v3  ;;  %13863 = vpow2.f32 %v9499_v9 }
0x3a47   :  { %13406 = vmatprep.subr.mxu1 %v9663_v15 }
0x3a49   :  { %v9750_v38 = vpop.permute.xlu1 %9749 }
0x3a4d   :  { %v9828_v44 = vpop.permute.xlu1 %9827 }
0x3a51   :  { %v9826_v53 = vpop.permute.xlu1 %9825 }
0x3a53   :  { %v13864_v45 = vpop.eup %13863 }
0x3a54   :  { %v9504_v23 = vsel %vm842_vm2, %v13864_v45, 0.0 }
0x3a72   :  { %v16163_v12 = vpop.f32.mrf.mxu1 }
0x3a73   :  { %v9328_v5 = vadd.f32 %v16141_v14, %v16163_v12 }
0x3a74   :  { %v16165_v32 = vpop.f32.mrf.mxu1 }
0x3a75   :  { %v9323_v58 = vadd.f32 %v16145_v59, %v16165_v32 }
0x3a76   :  { %v9405_v16 = vpop.f32.mrf.mxu1 }
0x3a77   :  { %v9487_v17 = vmul.f32 0.35355338, %v9405_v16 }
0x3a78   :  { %v13390_v18 = vpop.f32.mrf.mxu1 }
0x3a79   :  { %v9489_v20 = vsel %vm842_vm2, %v9487_v17, -inf }
0x3a7a   :  { %9490 = vmax.xlane.f32.xlu0 %v9489_v20 }
0x3a7e   :  { %9505 = vadd.xlane.f32.xlu0 %v9504_v23 }
0x3b03   :  { %v9491_v42 = vpop.xlane.xlu0 %9490 }
0x3b04   :  { %v9495_v24 = vsub.f32 %v9487_v17, %v9491_v42 }
0x3b06   :  { %v9497_v2 = vmul.f32 1.442695, %v9495_v24 }
0x3b07   :  { %v9506_v10 = vpop.xlane.xlu0 %9505 }
0x3b08   :  { %13865 = vpow2.f32 %v9497_v2  ;;  %v12288_v2 = vld [vmem:[#allocation37] ss:$0 sm:$0xff] }
0x3b09   :  { %13867 = vrcp.f32 %v9506_v10 }
0x3b15   :  { %v13866_v29 = vpop.eup %13865 }
0x3b16   :  { %v9501_v28 = vsel %vm842_vm2, %v13866_v29, 0.0  ;;  %v13868_v34 = vpop.eup %13867 }
0x3b17   :  { %9502 = vadd.xlane.f32.xlu0 %v9501_v28  ;;  %v9510_v37 = vmul.f32 %v13868_v34, %v13864_v45 }
0x3b2d   :  { %9587 = vrot.lane.b32.xlu0 %v16056_v48, %s14793_s13  ;;  %s16573_s13 = sld [smem:[#allocation135_spill]] }
0x3b31   :  { %9747 = vrot.lane.b32.xlu0 %v16058_v43, %s14795_s26 }
0x3ba0   :  { %v9503_v33 = vpop.xlane.xlu0 %9502 }
0x3ba1   :  { %13869 = vrcp.f32 %v9503_v33 }
0x3ba4   :  { %v9588_v35 = vpop.permute.xlu0 %9587 }
0x3ba5   :  { %13402 = vmatpush3.msra.mxu0 %v9588_v35 }
0x3ba6   :  { %13404 = vmatmul.mubr.msk.f32.vlgmr.msra.gmra.mxu0 %vm842_vm2, %v9510_v37  ;;  %13411 = vmatprep.subr.mxu0 %v14784_v6 }
0x3ba7   :  { %13412 = vmatpush3.xpose.msk.msra.mxu0 %vm842_vm2, %v9750_v38  ;;  %13413 = vmatprep.mubr.msk.f32.mxu0 %vm14785_vm1, %v14784_v6 }
0x3ba8   :  { %v9748_v39 = vpop.permute.xlu0 %9747  ;;  %13421 = vmatprep.subr.mxu0 %v14784_v6 }
0x3baa   :  { %13414 = vmatmul.mubr.msk.f32.vlgmr.msra.gmra.mxu0 %vm842_vm2, %v9748_v39 }
0x3bab   :  { %13423 = vmatprep.mubr.msk.f32.mxu0 %vm14785_vm1, %v14784_v6 }
0x3bae   :  { %v13870_v40 = vpop.eup %13869 }
0x3baf   :  { %v9508_v8 = vmul.f32 %v13870_v40, %v13866_v29 }
0x3bb1   :  { %13399 = vmatmul.mubr.msk.f32.vlgmr.msra.gmra.mxu1 %vm842_vm2, %v9508_v8 }
0x3bb2   :  { %13407 = vmatpush3.msra.mxu1 %v9663_v15 }
0x3bb3   :  { %13416 = vmatprep.subr.mxu1 %v14784_v6 }
0x3c66   :  { %v9659_v46 = vpop.f32.mrf.mxu0 }
0x3c68   :  { %v13405_v47 = vpop.f32.mrf.mxu0 }
0x3c6a   :  { %v9821_v49 = vpop.f32.mrf.mxu0 }
0x3c6b   :  { %v9903_v50 = vmul.f32 0.35355338, %v9821_v49 }
0x3c6c   :  { %v13415_v51 = vpop.f32.mrf.mxu0 }
0x3c6d   :  { %v9905_v52 = vsel %vm842_vm2, %v9903_v50, -inf }
0x3c6e   :  { %9906 = vmax.xlane.f32.xlu0 %v9905_v52  ;;  %v10221_v52 = vld [vmem:[%s16567_s6 + $0x18] sm:$0xff] }
0x3c71   :  { %v9583_v26 = vpop.f32.mrf.mxu1 }
0x3c72   :  { %13408 = vmatprep.mubr.msk.f32.mxu1 %vm842_vm2, %v9583_v26  ;;  %v10219_v26 = vld [vmem:[%s16567_s6 + $0x8] sm:$0xff] }
0x3c73   :  { %v13400_v36 = vpop.f32.mrf.mxu1  ;;  %13409 = vmatmul.mubr.msk.f32.vlgmr.msra.gmra.mxu1 %vm842_vm2, %v9659_v46 }
0x3c74   :  { %13417 = vmatpush3.xpose.msk.msra.mxu1 %vm842_vm2, %v9828_v44  ;;  %13418 = vmatprep.mubr.msk.f32.mxu1 %vm14785_vm1, %v14784_v6  ;;  %v10220_v44 = vld [vmem:[%s16567_s6 + $0x10] sm:$0xff]  ;;  %v10218_v36 = vld [vmem:[%s16567_s6] sm:$0xff] }
0x3c75   :  { %13426 = vmatprep.subr.mxu1 %v14784_v6 }
0x3c77   :  { %13419 = vmatmul.mubr.msk.f32.vlgmr.msra.gmra.mxu1 %vm842_vm2, %v9826_v53  ;;  %v12302_v53 = vld [vmem:[%s16568_s16 + $0x38] sm:$0xff] }
0x3c78   :  { %13428 = vmatprep.mubr.msk.f32.mxu1 %vm14785_vm1, %v14784_v6 }
0x3cf7   :  { %v9907_v30 = vpop.xlane.xlu0 %9906 }
0x3cf8   :  { %v9911_v54 = vsub.f32 %v9903_v50, %v9907_v30  ;;  %v10319_v30 = vld [vmem:[%s16569_s29 + $0x38] sm:$0xff] }
0x3cfa   :  { %v9913_v55 = vmul.f32 1.442695, %v9911_v54  ;;  %v10318_v54 = vld [vmem:[%s16569_s29 + $0x30] sm:$0xff] }
0x3cfc   :  { %13871 = vpow2.f32 %v9913_v55  ;;  %v10317_v55 = vld [vmem:[%s16569_s29 + $0x28] sm:$0xff] }
0x3d09   :  { %v13872_v56 = vpop.eup %13871 }
0x3d0a   :  { %v9917_v57 = vsel %vm842_vm2, %v13872_v56, 0.0 }
0x3d0b   :  { %9918 = vadd.xlane.f32.xlu0 %v9917_v57  ;;  %v10315_v57 = vld [vmem:[%s16569_s29 + $0x18] sm:$0xff] }
0x3d33   :  { %v13410_v31 = vpop.f32.mrf.mxu1 }
0x3d34   :  { %v9746_v25 = vadd.f32 %v13410_v31, %v9328_v5 }
0x3d35   :  { %v9736_v7 = vpop.f32.mrf.mxu1 }
0x3d36   :  { %v9745_v60 = vadd.f32 %v9736_v7, %v9323_v58 }
0x3d37   :  { %v9899_v61 = vpop.f32.mrf.mxu1 }
0x3d38   :  { %v9904_v6 = vmul.f32 0.35355338, %v9899_v61 }
0x3d39   :  { %v13420_v62 = vpop.f32.mrf.mxu1 }
0x3d3a   :  { %v9908_v63 = vsel %vm842_vm2, %v9904_v6, -inf }
0x3d3b   :  { %9909 = vmax.xlane.f32.xlu1 %v9908_v63  ;;  %v16229_v63 = vld [vmem:[%s16560_s1 + $0x8] sm:$0xff] }
0x3d4c   :  { %9927 = vrot.lane.b32.xlu1 %v16058_v43, %s14796_s27  ;;  %v10079_v43 = vld [vmem:[%s16566_s15 + $0x18] sm:$0xff] }
0x3d94   :  { %v9919_v0 = vpop.xlane.xlu0 %9918 }
0x3d95   :  { %13873 = vrcp.f32 %v9919_v0  ;;  %v10467_v0 = vrot.slane %v16229_v63, 7 }
0x3da2   :  { %v13874_v1 = vpop.eup %13873 }
0x3da3   :  { %v9924_v9 = vmul.f32 %v13874_v1, %v13872_v56  ;;  %v10316_v56 = vld [vmem:[%s16569_s29 + $0x20] sm:$0xff] }
0x3dc4   :  { %v9910_v14 = vpop.xlane.xlu1 %9909 }
0x3dc5   :  { %v9912_v3 = vsub.f32 %v9904_v6, %v9910_v14  ;;  %v12289_v6 = vld [vmem:[#allocation39] ss:$0 sm:$0xff]  ;;  %v16233_v14 = vld [vmem:[%s16560_s1] sm:$0xff] }
0x3dc6   :  { %v10469_v1 = vrot.slane %v16233_v14, 7 }
0x3dc7   :  { %v9915_v4 = vmul.f32 1.442695, %v9912_v3 }
0x3dc8   :  { %v9928_v59 = vpop.permute.xlu1 %9927 }
0x3dc9   :  { %13875 = vpow2.f32 %v9915_v4  ;;  %13422 = vmatpush3.msra.mxu0 %v9928_v59 }
0x3dca   :  { %13424 = vmatmul.mubr.msk.f32.vlgmr.msra.gmra.mxu0 %vm842_vm2, %v9924_v9  ;;  %13431 = vmatprep.subr.mxu0 %v10079_v43  ;;  %v12290_v9 = vld [vmem:[#allocation40] ss:$0 sm:$0xff] }
0x3dcb   :  { %13432 = vmatpush3.msra.mxu0 %v10079_v43 }
0x3dcc   :  { %13447 = vmatprep.subr.mxu0 %v10319_v30 }
0x3dd6   :  { %v13876_v12 = vpop.eup %13875 }
0x3dd7   :  { %v9920_v32 = vsel %vm842_vm2, %v13876_v12, 0.0 }
0x3dd8   :  { %9921 = vadd.xlane.f32.xlu0 %v9920_v32  ;;  %v10473_v32 = vsel %vm4881_vm4, %v10467_v0, %v10469_v1 }
0x3dee   :  { %10003 = vrot.lane.b32.xlu0 %v16056_v48, %s14796_s27 }
0x3e61   :  { %v9922_v16 = vpop.xlane.xlu0 %9921 }
0x3e62   :  { %13877 = vrcp.f32 %v9922_v16 }
0x3e65   :  { %v10004_v17 = vpop.permute.xlu0 %10003 }
0x3e66   :  { %13427 = vmatpush3.msra.mxu1 %v10004_v17  ;;  %v10474_v17 = vsel %vm4887_vm5, %v10473_v32, 0.0 }
0x3e67   :  { %13436 = vmatprep.subr.mxu1 %v10221_v52 }
0x3e6f   :  { %v13878_v18 = vpop.eup %13877 }
0x3e70   :  { %v9926_v20 = vmul.f32 %v13878_v18, %v13876_v12  ;;  %v12301_v18 = vld [vmem:[%s16568_s16 + $0x30] sm:$0xff] }
0x3e72   :  { %13429 = vmatmul.mubr.msk.f32.vlgmr.msra.gmra.mxu1 %vm842_vm2, %v9926_v20  ;;  %v12300_v20 = vld [vmem:[%s16568_s16 + $0x28] sm:$0xff] }
0x3e73   :  { %13437 = vmatpush3.msra.mxu1 %v10221_v52  ;;  %v12308_v52 = vld [vmem:[%s16568_s16 + $0x48] sm:$0xff] }
0x3e74   :  { %13438 = vmatprep.subr.mxu1 %v10220_v44 }
0x3e75   :  { %13439 = vmatpush3.msra.mxu1 %v10220_v44  ;;  %v12307_v44 = vld [vmem:[%s16568_s16 + $0x40] sm:$0xff] }
0x3e76   :  { %13440 = vmatprep.subr.mxu1 %v10219_v26 }
0x3e77   :  { %13441 = vmatpush3.msra.mxu1 %v10219_v26  ;;  %v10748_v26 = vld [vmem:[%s16570_s18 + $0x8] sm:$0xff] }
0x3e78   :  { %13442 = vmatprep.subr.mxu1 %v10218_v36 }
0x3e79   :  { %13443 = vmatpush3.msra.mxu1 %v10218_v36  ;;  %v12315_v36 = vld [vmem:[%s16570_s18 + $0x18] sm:$0xff] }
0x3e7a   :  { %13466 = vmatprep.subr.mxu1 %v12302_v53 }
0x3e8a   :  { %v9999_v45 = vpop.f32.mrf.mxu0 }
0x3e8b   :  { %13433 = vmatprep.mubr.msk.f32.mxu0 %vm842_vm2, %v9999_v45  ;;  %v10470_v45 = vsel %vm4881_vm4, %v10469_v1, %v10467_v0 }
0x3e8c   :  { %v13425_v23 = vpop.f32.mrf.mxu0 }
0x3e8d   :  { %v12299_v23 = vld [vmem:[%s16568_s16 + $0x20] sm:$0xff] }
0x3f32   :  { %v10075_v42 = vpop.f32.mrf.mxu1 }
0x3f33   :  { %13434 = vmatmul.mubr.msk.f32.vlgmr.msra.gmra.mxu0 %vm842_vm2, %v10075_v42  ;;  %v10466_v42 = vld [vmem:[%s16568_s16 + $0x18] sm:$0xff] }
0x3f34   :  { %v13430_v24 = vpop.f32.mrf.mxu1  ;;  %13448 = vmatpush3.msra.mxu0 %v10319_v30  ;;  %v12314_v30 = vld [vmem:[%s16570_s18 + $0x10] sm:$0xff] }
0x3f35   :  { %13449 = vmatprep.subr.mxu0 %v10318_v54  ;;  %v10475_v24 = vsel %vm4888_vm6, %v10470_v45, 0.0 }
0x3f36   :  { %13450 = vmatpush3.msra.mxu0 %v10318_v54  ;;  %v11021_v54 = vld [vmem:[%s16571_s17 + $0x18] sm:$0xff] }
0x3f37   :  { %13451 = vmatprep.subr.mxu0 %v10317_v55 }
0x3f38   :  { %13452 = vmatpush3.msra.mxu0 %v10317_v55  ;;  %v12321_v55 = vld [vmem:[%s16570_s18 + $0x28] sm:$0xff] }
0x3f39   :  { %13453 = vmatprep.subr.mxu0 %v10316_v56 }
0x3f3a   :  { %13454 = vmatpush3.msra.mxu0 %v10316_v56 }
0x3f3b   :  { %13455 = vmatprep.subr.mxu0 %v10315_v57 }
0x3f3c   :  { %13456 = vmatpush3.msra.mxu0 %v10315_v57 }
0x3ff3   :  { %v13435_v48 = vpop.f32.mrf.mxu0 }
0x3ff4   :  { %v10162_v29 = vadd.f32 %v13435_v48, %v9746_v25  ;;  %v10465_v48 = vld [vmem:[%s16568_s16 + $0x10] sm:$0xff] }
0x3ff5   :  { %v10152_v28 = vpop.f32.mrf.mxu0 }
0x3ff6   :  { %v10171_v10 = vadd.f32 %v12288_v2, %v10162_v29  ;;  %v10161_v33 = vadd.f32 %v10152_v28, %v9745_v60  ;;  %v10454_v29 = vrot.slane %v16229_v63, 6  ;;  %v10456_v28 = vrot.slane %v16233_v14, 6 }
0x3ff8   :  { %v10170_v34 = vadd.f32 %v12288_v2, %v10161_v33  ;;  %v10173_v35 = vadd.f32 %v10171_v10, %v16048_v13  ;;  %v10464_v2 = vld [vmem:[%s16568_s16 + $0x8] sm:$0xff]  ;;  %v10314_v10 = vld [vmem:[%s16569_s29 + $0x10] sm:$0xff]  ;;  %v10463_v33 = vld [vmem:[%s16568_s16] sm:$0xff] }
0x3ff9   :  { %13457 = vmatprep.subr.mxu0 %v10314_v10 }
0x3ffa   :  { %v10179_v37 = vsel %vm757_vm0, %v10173_v35, 0.0  ;;  %v10172_v38 = vadd.f32 %v10170_v34, %v16046_v41  ;;  %v10460_v34 = vsel %vm4834_vm9, %v10454_v29, %v10456_v28  ;;  %13458 = vmatpush3.msra.mxu0 %v10314_v10 }
0x3ffb   :  { %10180 = vadd.xlane.f32.xlu0 %v10179_v37  ;;  %v10461_v37 = vsel %vm4867_vm7, %v10460_v34, 0.0 }
0x3ffc   :  { %v10176_v39 = vsel %vm757_vm0, %v10172_v38, 0.0 }
0x3ffd   :  { %10177 = vadd.xlane.f32.xlu1 %v10176_v39 }
0x4084   :  { %v10181_v40 = vpop.xlane.xlu0 %10180 }
0x4085   :  { %v10183_v8 = vmul.f32 0.03125, %v10181_v40  ;;  %v10312_v40 = vld [vmem:[%s16569_s29] sm:$0xff] }
0x4086   :  { %v10178_v15 = vpop.xlane.xlu1 %10177 }
0x4087   :  { %v10185_v46 = vsub.f32 %v10173_v35, %v10183_v8  ;;  %v10182_v47 = vmul.f32 0.03125, %v10178_v15  ;;  %v10313_v35 = vld [vmem:[%s16569_s29 + $0x8] sm:$0xff]  ;;  %v12310_v8 = vld [vmem:[%s16568_s16 + $0x58] sm:$0xff]  ;;  %v12291_v15 = vld [vmem:[#allocation42] ss:$0 sm:$0xff] }
0x4088   :  { %13459 = vmatprep.subr.mxu0 %v10313_v35 }
0x4089   :  { %v10184_v49 = vsub.f32 %v10172_v38, %v10182_v47  ;;  %v10187_v50 = vmul.f32 %v10185_v46, %v10185_v46  ;;  %v10457_v38 = vsel %vm4834_vm9, %v10456_v28, %v10454_v29  ;;  %13460 = vmatpush3.msra.mxu0 %v10313_v35 }
0x408a   :  { %v10462_v39 = vsel %vm4868_vm8, %v10457_v38, 0.0  ;;  %13461 = vmatprep.subr.mxu0 %v10312_v40  ;;  %v12320_v38 = vld [vmem:[%s16570_s18 + $0x20] sm:$0xff] }
0x408b   :  { %v10191_v13 = vsel %vm757_vm0, %v10187_v50, 0.0  ;;  %v10186_v51 = vmul.f32 %v10184_v49, %v10184_v49  ;;  %13462 = vmatpush3.msra.mxu0 %v10312_v40  ;;  %v11018_v40 = vld [vmem:[%s16571_s17] sm:$0xff] }
0x408c   :  { %10192 = vadd.xlane.f32.xlu0 %v10191_v13  ;;  %13488 = vmatprep.subr.mxu0 %v12310_v8 }
0x408d   :  { %v10188_v41 = vsel %vm757_vm0, %v10186_v51, 0.0 }
0x408e   :  { %10189 = vadd.xlane.f32.xlu1 %v10188_v41  ;;  %v12309_v41 = vld [vmem:[%s16568_s16 + $0x50] sm:$0xff] }
0x4115   :  { %v10193_v5 = vpop.xlane.xlu0 %10192 }
0x4116   :  { %v10195_v31 = vmul.f32 0.03125, %v10193_v5  ;;  %v12294_v5 = vld [vmem:[#allocation43] ss:$0 sm:$0xff] }
0x4117   :  { %v10190_v58 = vpop.xlane.xlu1 %10189 }
0x4118   :  { %v10197_v25 = vadd.f32 1e-05, %v10195_v31  ;;  %v10194_v7 = vmul.f32 0.03125, %v10190_v58 }
0x411a   :  { %13879 = vrsqrt.f32 %v10197_v25  ;;  %v10196_v60 = vadd.f32 1e-05, %v10194_v7 }
0x411c   :  { %13881 = vrsqrt.f32 %v10196_v60 }
0x4127   :  { %v13880_v61 = vpop.eup %13879 }
0x4128   :  { %v10201_v62 = vmul.f32 %v13880_v61, %v10185_v46 }
0x4129   :  { %v13882_v3 = vpop.eup %13881 }
0x412a   :  { %v10200_v4 = vmul.f32 %v13882_v3, %v10184_v49  ;;  %v10209_v59 = vmul.f32 %v12289_v6, %v10201_v62 }
0x412c   :  { %v10208_v12 = vmul.f32 %v12289_v6, %v10200_v4  ;;  %v16239_v16 = vadd.f32 %v12290_v9, %v10209_v59  ;;  %v12313_v59 = vld [vmem:[#allocation48] ss:$0 sm:$0xff] }
0x412e   :  { %v16237_v43 = vadd.f32 %v12290_v9, %v10208_v12 }
0x4130   :  { %13444 = vmatprep.mubr.msk.f32.mxu1 %vm757_vm0, %v16237_v43 }
0x4131   :  { %13445 = vmatmul.mubr.msk.f32.vlgmr.msra.gmra.mxu1 %vm757_vm0, %v16239_v16 }
0x4132   :  { %13467 = vmatpush3.msra.mxu1 %v12302_v53  ;;  %13474 = vmatprep.mubr.msk.f32.mxu1 %vm757_vm0, %v10474_v17  ;;  %v10747_v53 = vld [vmem:[%s16570_s18] sm:$0xff] }
0x4133   :  { %13468 = vmatprep.subr.mxu1 %v12301_v18 }
0x4134   :  { %13469 = vmatpush3.msra.mxu1 %v12301_v18 }
0x4135   :  { %13470 = vmatprep.subr.mxu1 %v12300_v20 }
0x4136   :  { %13471 = vmatpush3.msra.mxu1 %v12300_v20 }
0x4137   :  { %13472 = vmatprep.subr.mxu1 %v12299_v23 }
0x4138   :  { %13473 = vmatpush3.msra.mxu1 %v12299_v23 }
0x4139   :  { %13477 = vmatprep.subr.mxu1 %v10466_v42  ;;  %13475 = vmatmul.mubr.msk.f32.vlgmr.msra.gmra.mxu1 %vm757_vm0, %v10475_v24 }
0x413a   :  { %13478 = vmatpush3.msra.mxu1 %v10466_v42  ;;  %13485 = vmatprep.mubr.msk.f32.mxu1 %vm757_vm0, %v10461_v37  ;;  %v11020_v37 = vld [vmem:[%s16571_s17 + $0x10] sm:$0xff] }
0x413b   :  { %13479 = vmatprep.subr.mxu1 %v10465_v48 }
0x413c   :  { %13480 = vmatpush3.msra.mxu1 %v10465_v48 }
0x413d   :  { %13481 = vmatprep.subr.mxu1 %v10464_v2 }
0x413e   :  { %13482 = vmatpush3.msra.mxu1 %v10464_v2 }
0x413f   :  { %13483 = vmatprep.subr.mxu1 %v10463_v33 }
0x4140   :  { %13484 = vmatpush3.msra.mxu1 %v10463_v33 }
0x4141   :  { %13486 = vmatmul.mubr.msk.f32.vlgmr.msra.gmra.mxu1 %vm757_vm0, %v10462_v39  ;;  %13499 = vmatprep.subr.mxu1 %v12315_v36  ;;  %v11019_v39 = vld [vmem:[%s16571_s17 + $0x8] sm:$0xff] }
0x4142   :  { %13500 = vmatpush3.msra.mxu1 %v12315_v36 }
0x4143   :  { %13501 = vmatprep.subr.mxu1 %v12314_v30 }
0x4144   :  { %13502 = vmatpush3.msra.mxu1 %v12314_v30 }
0x4145   :  { %13513 = vmatprep.subr.mxu1 %v12321_v55 }
0x41f1   :  { %v13446_v46 = vpop.f32.mrf.mxu1 }
0x41f2   :  { %v10307_v47 = vadd.f32 %v13446_v46, %v12291_v15  ;;  %v12329_v46 = vld [vmem:[%s16572_s22 + $0x18] sm:$0xff] }
0x41f3   :  { %v10301_v49 = vpop.f32.mrf.mxu1 }
0x41f4   :  { %v10302_v50 = vadd.f32 %v12291_v15, %v10301_v49  ;;  %v10311_v51 = vmax.f32 %v10307_v47, 0.0  ;;  %v12334_v15 = vld [vmem:[%s16572_s22 + $0x20] sm:$0xff]  ;;  %v12328_v47 = vld [vmem:[%s16572_s22 + $0x10] sm:$0xff]  ;;  %v11120_v49 = vld [vmem:[%s16572_s22 + $0x8] sm:$0xff] }
0x41f6   :  { %v10310_v13 = vmax.f32 %v10302_v50, 0.0 }
0x41f8   :  { %13463 = vmatprep.mubr.msk.f32.mxu0 %vm2663_vm3, %v10310_v13 }
0x41f9   :  { %13464 = vmatmul.mubr.msk.f32.vlgmr.msra.gmra.mxu0 %vm2663_vm3, %v10311_v51  ;;  %v13476_v56 = vpop.f32.mrf.mxu1 }
0x41fa   :  { %13489 = vmatpush3.msra.mxu0 %v12310_v8  ;;  %13496 = vmatprep.mubr.msk.f32.mxu0 %vm757_vm0, %v16233_v14  ;;  %v12335_v8 = vld [vmem:[%s16572_s22 + $0x28] sm:$0xff] }
0x41fb   :  { %13490 = vmatprep.subr.mxu0 %v12309_v41  ;;  %v10553_v57 = vpop.f32.mrf.mxu1 }
0x41fc   :  { %13491 = vmatpush3.msra.mxu0 %v12309_v41 }
0x41fd   :  { %13492 = vmatprep.subr.mxu0 %v12308_v52 }
0x41fe   :  { %13493 = vmatpush3.msra.mxu0 %v12308_v52 }
0x41ff   :  { %13494 = vmatprep.subr.mxu0 %v12307_v44 }
0x4200   :  { %13495 = vmatpush3.msra.mxu0 %v12307_v44 }
0x4201   :  { %13497 = vmatmul.mubr.msk.f32.vlgmr.msra.gmra.mxu0 %vm757_vm0, %v16229_v63  ;;  %13506 = vmatprep.subr.mxu0 %v10748_v26  ;;  %v13487_v25 = vpop.f32.mrf.mxu1 }
0x4202   :  { %13507 = vmatpush3.msra.mxu0 %v10748_v26  ;;  %v10640_v1 = vadd.f32 %v13487_v25, %v13476_v56  ;;  %v12325_v25 = vld [vmem:[#allocation51] ss:$0 sm:$0xff] }
0x4203   :  { %13508 = vmatprep.subr.mxu0 %v10747_v53  ;;  %v10634_v0 = vpop.f32.mrf.mxu1 }
0x4204   :  { %13509 = vmatpush3.msra.mxu0 %v10747_v53  ;;  %v10635_v9 = vadd.f32 %v10634_v0, %v10553_v57 }
0x4205   :  { %13520 = vmatprep.subr.mxu0 %v11021_v54 }
0x42b9   :  { %v13465_v31 = vpop.f32.mrf.mxu0 }
0x42ba   :  { %v10405_v58 = vadd.f32 %v13465_v31, %v12294_v5 }
0x42bb   :  { %v10399_v7 = vpop.f32.mrf.mxu0 }
0x42bc   :  { %v16289_v60 = vadd.f32 %v10405_v58, %v16239_v16  ;;  %v10400_v61 = vadd.f32 %v12294_v5, %v10399_v7  ;;  %v12324_v5 = vld [vmem:[#allocation49] ss:$0 sm:$0xff] }
0x42be   :  { %v16292_v6 = vadd.f32 %v10400_v61, %v16237_v43  ;;  %v10415_v62 = vsel %vm757_vm0, %v16289_v60, 0.0 }
0x42bf   :  { %10416 = vadd.xlane.f32.xlu0 %v10415_v62 }
0x42c0   :  { %v10412_v3 = vsel %vm757_vm0, %v16292_v6, 0.0 }
0x42c1   :  { %v13498_v4 = vpop.f32.mrf.mxu0  ;;  %10413 = vadd.xlane.f32.xlu1 %v10412_v3 }
0x42c2   :  { %v10724_v12 = vadd.f32 %v13498_v4, %v10640_v1 }
0x42c3   :  { %v10714_v32 = vpop.f32.mrf.mxu0 }
0x42c4   :  { %v10733_v16 = vadd.f32 %v12313_v59, %v10724_v12  ;;  %v10723_v17 = vadd.f32 %v10714_v32, %v10635_v9 }
0x42c6   :  { %v10735_v18 = vmax.f32 %v10733_v16, 0.0  ;;  %v10732_v43 = vadd.f32 %v12313_v59, %v10723_v17 }
0x42c8   :  { %v10734_v20 = vmax.f32 %v10732_v43, 0.0  ;;  %v10737_v45 = vrot.slane %v10735_v18, 6  ;;  %v10749_v23 = vrot.slane %v10735_v18, 7 }
0x42ca   :  { %v10740_v42 = vrot.slane %v10734_v20, 6  ;;  %v10751_v24 = vrot.slane %v10734_v20, 7 }
0x42cc   :  { %v10755_v48 = vsel %vm4881_vm4, %v10749_v23, %v10751_v24  ;;  %v10744_v2 = vsel %vm4834_vm9, %v10737_v45, %v10740_v42  ;;  %v10752_v29 = vsel %vm4881_vm4, %v10751_v24, %v10749_v23  ;;  %v10741_v28 = vsel %vm4834_vm9, %v10740_v42, %v10737_v45 }
0x42cd   :  { %v10756_v10 = vsel %vm4887_vm5, %v10755_v48, 0.0  ;;  %v10745_v33 = vsel %vm4867_vm7, %v10744_v2, 0.0  ;;  %v10757_v34 = vsel %vm4888_vm6, %v10752_v29, 0.0  ;;  %v10746_v35 = vsel %vm4868_vm8, %v10741_v28, 0.0  ;;  %v11119_v2 = vld [vmem:[%s16572_s22] sm:$0xff] }
0x42ce   :  { %13503 = vmatprep.mubr.msk.f32.mxu1 %vm5180_vm10, %v10756_v10  ;;  %13510 = vmatprep.mubr.msk.f32.mxu0 %vm5180_vm10, %v10745_v33  ;;  %v11402_v33 = vld [vmem:[%s16573_s13 + $0x8] sm:$0xff] }
0x42cf   :  { %13504 = vmatmul.mubr.msk.f32.vlgmr.msra.gmra.mxu1 %vm5180_vm10, %v10757_v34  ;;  %13511 = vmatmul.mubr.msk.f32.vlgmr.msra.gmra.mxu0 %vm5180_vm10, %v10746_v35  ;;  %v12340_v34 = vld [vmem:[%s16573_s13 + $0x18] sm:$0xff]  ;;  %v11401_v35 = vld [vmem:[%s16573_s13] sm:$0xff] }
0x42d0   :  { %13521 = vmatpush3.msra.mxu0 %v11021_v54  ;;  %13514 = vmatpush3.msra.mxu1 %v12321_v55 }
0x42d1   :  { %13517 = vmatprep.mubr.msk.f32.mxu1 %vm5180_vm10, %v10734_v20  ;;  %13522 = vmatprep.subr.mxu0 %v11020_v37 }
0x42d2   :  { %13515 = vmatprep.subr.mxu1 %v12320_v38  ;;  %13523 = vmatpush3.msra.mxu0 %v11020_v37  ;;  %v12339_v37 = vld [vmem:[%s16573_s13 + $0x10] sm:$0xff] }
0x42d3   :  { %13516 = vmatpush3.msra.mxu1 %v12320_v38  ;;  %13524 = vmatprep.subr.mxu0 %v11019_v39  ;;  %v11679_v38 = vld [vmem:[%s16574_s23 + $0x18] sm:$0xff] }
0x42d4   :  { %13518 = vmatmul.mubr.msk.f32.vlgmr.msra.gmra.mxu1 %vm5180_vm10, %v10735_v18  ;;  %13525 = vmatpush3.msra.mxu0 %v11019_v39  ;;  %v12346_v39 = vld [vmem:[%s16573_s13 + $0x28] sm:$0xff] }
0x42d5   :  { %13526 = vmatprep.subr.mxu0 %v11018_v40  ;;  %13528 = vmatprep.mubr.msk.f32.mxu0 %vm757_vm0, %v16233_v14 }
0x42d6   :  { %13527 = vmatpush3.msra.mxu0 %v11018_v40  ;;  %13531 = vmatprep.subr.mxu1 %v12329_v46 }
0x42d7   :  { %13529 = vmatmul.mubr.msk.f32.vlgmr.msra.gmra.mxu0 %vm757_vm0, %v16229_v63  ;;  %13545 = vmatprep.subr.mxu0 %v12335_v8 }
0x42d8   :  { %13546 = vmatpush3.msra.mxu0 %v12335_v8  ;;  %13532 = vmatpush3.msra.mxu1 %v12329_v46 }
0x42d9   :  { %13547 = vmatprep.subr.mxu0 %v12334_v15  ;;  %13533 = vmatprep.subr.mxu1 %v12328_v47 }
0x42da   :  { %13548 = vmatpush3.msra.mxu0 %v12334_v15  ;;  %13534 = vmatpush3.msra.mxu1 %v12328_v47 }
0x42db   :  { %13538 = vmatprep.subr.mxu1 %v11120_v49  ;;  %13559 = vmatprep.subr.mxu0 %v11402_v33 }
0x4348   :  { %v10417_v50 = vpop.xlane.xlu0 %10416 }
0x4349   :  { %v10419_v14 = vmul.f32 0.03125, %v10417_v50 }
0x434a   :  { %v10414_v13 = vpop.xlane.xlu1 %10413 }
0x434b   :  { %v16330_v51 = vsub.f32 %v16289_v60, %v10419_v14  ;;  %v10418_v63 = vmul.f32 0.03125, %v10414_v13 }
0x434d   :  { %v16333_v41 = vsub.f32 %v16292_v6, %v10418_v63  ;;  %v10423_v52 = vmul.f32 %v16330_v51, %v16330_v51 }
0x434f   :  { %v10427_v44 = vsel %vm757_vm0, %v10423_v52, 0.0  ;;  %v10422_v26 = vmul.f32 %v16333_v41, %v16333_v41 }
0x4350   :  { %10428 = vadd.xlane.f32.xlu0 %v10427_v44  ;;  %v12338_v44 = vld [vmem:[#allocation52] ss:$0 sm:$0xff] }
0x4351   :  { %v10424_v36 = vsel %vm757_vm0, %v10422_v26, 0.0 }
0x4352   :  { %10425 = vadd.xlane.f32.xlu1 %v10424_v36 }
0x438f   :  { %v13505_v53 = vpop.f32.mrf.mxu1  ;;  %v13512_v30 = vpop.f32.mrf.mxu0 }
0x4390   :  { %v10920_v56 = vadd.f32 %v13512_v30, %v13505_v53 }
0x4391   :  { %v10833_v54 = vpop.f32.mrf.mxu1  ;;  %v10914_v55 = vpop.f32.mrf.mxu0 }
0x4392   :  { %v10915_v31 = vadd.f32 %v10914_v55, %v10833_v54 }
0x4394   :  { %v13519_v57 = vpop.f32.mrf.mxu1 }
0x4395   :  { %v11006_v58 = vadd.f32 %v13519_v57, %v10920_v56 }
0x4396   :  { %v10996_v7 = vpop.f32.mrf.mxu1 }
0x4397   :  { %v11015_v60 = vadd.f32 %v12324_v5, %v11006_v58  ;;  %v11005_v61 = vadd.f32 %v10996_v7, %v10915_v31  ;;  %v13530_v6 = vpop.f32.mrf.mxu0 }
0x4398   :  { %v11101_v62 = vadd.f32 %v13530_v6, %v12325_v25  ;;  %v12297_v6 = vld [vmem:[#allocation45] ss:$0 sm:$0xff] }
0x4399   :  { %v11017_v0 = vmax.f32 %v11015_v60, 0.0  ;;  %v11014_v1 = vadd.f32 %v12324_v5, %v11005_v61  ;;  %v11095_v3 = vpop.f32.mrf.mxu0 }
0x439a   :  { %v11096_v4 = vadd.f32 %v12325_v25, %v11095_v3 }
0x439b   :  { %v11016_v59 = vmax.f32 %v11014_v1, 0.0  ;;  %v11105_v9 = vadd.f32 %v11101_v62, %v11017_v0 }
0x439d   :  { %v16341_v12 = vmax.f32 %v11105_v9, 0.0  ;;  %v11104_v32 = vadd.f32 %v11096_v4, %v11016_v59 }
0x439f   :  { %v16343_v16 = vmax.f32 %v11104_v32, 0.0  ;;  %v11121_v17 = vrot.slane %v16341_v12, 6  ;;  %v11109_v43 = vrot.slane %v16341_v12, 4 }
0x43a1   :  { %13549 = vmatprep.mubr.msk.f32.mxu0 %vm5180_vm10, %v16343_v16  ;;  %v11123_v18 = vrot.slane %v16343_v16, 6  ;;  %v11112_v20 = vrot.slane %v16343_v16, 4 }
0x43a2   :  { %13550 = vmatmul.mubr.msk.f32.vlgmr.msra.gmra.mxu0 %vm5180_vm10, %v16341_v12 }
0x43a3   :  { %v11127_v45 = vsel %vm4834_vm9, %v11121_v17, %v11123_v18  ;;  %v11124_v23 = vsel %vm4834_vm9, %v11123_v18, %v11121_v17  ;;  %v11116_v42 = vsel %vm5532_vm11, %v11109_v43, %v11112_v20  ;;  %v11113_v28 = vsel %vm5532_vm11, %v11112_v20, %v11109_v43  ;;  %13560 = vmatpush3.msra.mxu0 %v11402_v33  ;;  %v11678_v18 = vld [vmem:[%s16574_s23 + $0x10] sm:$0xff]  ;;  %v12345_v20 = vld [vmem:[%s16573_s13 + $0x20] sm:$0xff] }
0x43a4   :  { %v11128_v24 = vsel %vm4867_vm7, %v11127_v45, 0.0  ;;  %v11129_v48 = vsel %vm4868_vm8, %v11124_v23, 0.0  ;;  %v11117_v29 = vsel %vm5538_vm12, %v11116_v42, 0.0  ;;  %v11118_v10 = vsel %vm5539_vm13, %v11113_v28, 0.0  ;;  %13561 = vmatprep.subr.mxu0 %v11401_v35 }
0x43a5   :  { %13535 = vmatprep.mubr.msk.f32.mxu1 %vm5180_vm10, %v11128_v24  ;;  %13562 = vmatpush3.msra.mxu0 %v11401_v35  ;;  %v11771_v24 = vld [vmem:[%s15186_s3 + $0x18] sm:$0xff] }
0x43a6   :  { %13536 = vmatmul.mubr.msk.f32.vlgmr.msra.gmra.mxu1 %vm5180_vm10, %v11129_v48  ;;  %13573 = vmatprep.subr.mxu0 %v11679_v38  ;;  %v11770_v48 = vld [vmem:[%s15186_s3 + $0x10] sm:$0xff] }
0x43a7   :  { %13539 = vmatpush3.msra.mxu1 %v11120_v49  ;;  %13542 = vmatprep.mubr.msk.f32.mxu1 %vm5180_vm10, %v11117_v29 }
0x43a8   :  { %13540 = vmatprep.subr.mxu1 %v11119_v2 }
0x43a9   :  { %13541 = vmatpush3.msra.mxu1 %v11119_v2  ;;  %v11769_v2 = vld [vmem:[%s15186_s3 + $0x8] sm:$0xff] }
0x43aa   :  { %13543 = vmatmul.mubr.msk.f32.vlgmr.msra.gmra.mxu1 %vm5180_vm10, %v11118_v10  ;;  %13552 = vmatprep.subr.mxu1 %v12340_v34 }
0x43ab   :  { %13553 = vmatpush3.msra.mxu1 %v12340_v34 }
0x43ac   :  { %13554 = vmatprep.subr.mxu1 %v12339_v37 }
0x43ad   :  { %13555 = vmatpush3.msra.mxu1 %v12339_v37  ;;  %v12349_v37 = vld [vmem:[#allocation54] ss:$0 sm:$0xff] }
0x43ae   :  { %13566 = vmatprep.subr.mxu1 %v12346_v39 }
0x43d9   :  { %v10429_v15 = vpop.xlane.xlu0 %10428 }
0x43da   :  { %v10431_v47 = vmul.f32 0.03125, %v10429_v15 }
0x43db   :  { %v10426_v40 = vpop.xlane.xlu1 %10425 }
0x43dc   :  { %v10430_v8 = vmul.f32 0.03125, %v10426_v40  ;;  %v10433_v49 = vadd.f32 1e-05, %v10431_v47 }
0x43de   :  { %v10432_v46 = vadd.f32 1e-05, %v10430_v8 }
0x43e0   :  { %13883 = vrsqrt.f32 %v10432_v46 }
0x43e1   :  { %13885 = vrsqrt.f32 %v10433_v49 }
0x43ed   :  { %v13884_v54 = vpop.eup %13883 }
0x43ee   :  { %v10436_v31 = vmul.f32 %v13884_v54, %v16333_v41  ;;  %v13886_v62 = vpop.eup %13885 }
0x43ef   :  { %v10437_v43 = vmul.f32 %v13886_v62, %v16330_v51  ;;  %v11676_v51 = vld [vmem:[%s16574_s23] sm:$0xff] }
0x43f0   :  { %v10444_v0 = vmul.f32 %v12297_v6, %v10436_v31 }
0x43f1   :  { %v10445_v23 = vmul.f32 %v12297_v6, %v10437_v43 }
0x43f2   :  { %v10452_v45 = vadd.f32 %v12298_v27, %v10444_v0 }
0x43f3   :  { %v10453_v42 = vadd.f32 %v12298_v27, %v10445_v23 }
0x4462   :  { %v13551_v13 = vpop.f32.mrf.mxu0 }
0x4464   :  { %v11368_v30 = vpop.f32.mrf.mxu0 }
0x4466   :  { %v13537_v50 = vpop.f32.mrf.mxu1 }
0x4468   :  { %v11205_v14 = vpop.f32.mrf.mxu1 }
0x446a   :  { %v13544_v63 = vpop.f32.mrf.mxu1 }
0x446b   :  { %v11292_v52 = vadd.f32 %v13544_v63, %v13537_v50  ;;  %v12350_v50 = vld [vmem:[#allocation55] ss:$0 sm:$0xff] }
0x446c   :  { %v11286_v26 = vpop.f32.mrf.mxu1 }
0x446d   :  { %v11378_v36 = vadd.f32 %v13551_v13, %v11292_v52  ;;  %v11287_v53 = vadd.f32 %v11286_v26, %v11205_v14 }
0x446f   :  { %v11387_v55 = vadd.f32 %v12338_v44, %v11378_v36  ;;  %v11377_v56 = vadd.f32 %v11368_v30, %v11287_v53  ;;  %v11768_v36 = vld [vmem:[%s15186_s3] sm:$0xff]  ;;  %s14797_s3 = smov 16  }
0x4471   :  { %v11389_v57 = vmax.f32 %v11387_v55, 0.0  ;;  %v11386_v5 = vadd.f32 %v12338_v44, %v11377_v56  ;;  %v12357_v56 = vld [vmem:[#allocation57] ss:$0 sm:$0xff] }
0x4473   :  { %v11388_v58 = vmax.f32 %v11386_v5, 0.0  ;;  %v11403_v25 = vrot.slane %v11389_v57, 6  ;;  %v11391_v60 = vrot.slane %v11389_v57, 4 }
0x4475   :  { %v11405_v7 = vrot.slane %v11388_v58, 6  ;;  %v11394_v61 = vrot.slane %v11388_v58, 4 }
0x4477   :  { %v11409_v1 = vsel %vm4834_vm9, %v11403_v25, %v11405_v7  ;;  %v11398_v3 = vsel %vm5532_vm11, %v11391_v60, %v11394_v61  ;;  %v11406_v4 = vsel %vm4834_vm9, %v11405_v7, %v11403_v25  ;;  %v11395_v59 = vsel %vm5532_vm11, %v11394_v61, %v11391_v60  ;;  %v12206_v25 = vld [vmem:[#allocation22] ss:$0 sm:$0xff] }
0x4478   :  { %v11410_v41 = vsel %vm4867_vm7, %v11409_v1, 0.0  ;;  %v11399_v9 = vsel %vm5538_vm12, %v11398_v3, 0.0  ;;  %v11411_v32 = vsel %vm4868_vm8, %v11406_v4, 0.0  ;;  %v11400_v17 = vsel %vm5539_vm13, %v11395_v59, 0.0 }
0x4479   :  { %13556 = vmatprep.mubr.msk.f32.mxu1 %vm5180_vm10, %v11410_v41  ;;  %13563 = vmatprep.mubr.msk.f32.mxu0 %vm5180_vm10, %v11399_v9  ;;  %v6353_v7 = vadd.f32 %v15874_v22, %v15870_v19  ;;  %v6369_v60 = vadd.f32 %v12206_v25, %v15872_v21 }
0x447a   :  { %13557 = vmatmul.mubr.msk.f32.vlgmr.msra.gmra.mxu1 %vm5180_vm10, %v11411_v32  ;;  %13564 = vmatmul.mubr.msk.f32.vlgmr.msra.gmra.mxu0 %vm5180_vm10, %v11400_v17 }
0x447b   :  { %13574 = vmatpush3.msra.mxu0 %v11679_v38  ;;  %13567 = vmatpush3.msra.mxu1 %v12346_v39  ;;  %v6368_v6 = vadd.f32 %v12206_v25, %v6353_v7 }
0x447c   :  { %13570 = vmatprep.mubr.msk.f32.mxu1 %vm5180_vm10, %v11388_v58  ;;  %13575 = vmatprep.subr.mxu0 %v11678_v18 }
0x447d   :  { %13581 = vmatprep.mubr.msk.f32.mxu0 %vm757_vm0, %v10452_v45  ;;  %13568 = vmatprep.subr.mxu1 %v12345_v20 }
0x447e   :  { %13576 = vmatpush3.msra.mxu0 %v11678_v18  ;;  %13569 = vmatpush3.msra.mxu1 %v12345_v20 }
0x447f   :  { %13577 = vmatprep.subr.mxu0 %v11677_v11  ;;  %13571 = vmatmul.mubr.msk.f32.vlgmr.msra.gmra.mxu1 %vm5180_vm10, %v11389_v57 }
0x4480   :  { %13578 = vmatpush3.msra.mxu0 %v11677_v11  ;;  %13584 = vmatprep.subr.mxu1 %v11771_v24 }
0x4481   :  { %13579 = vmatprep.subr.mxu0 %v11676_v51  ;;  %13585 = vmatpush3.msra.mxu1 %v11771_v24 }
0x4482   :  { %13580 = vmatpush3.msra.mxu0 %v11676_v51  ;;  %13586 = vmatprep.subr.mxu1 %v11770_v48 }
0x4483   :  { %13582 = vmatmul.mubr.msk.f32.vlgmr.msra.gmra.mxu0 %vm757_vm0, %v10453_v42  ;;  %13587 = vmatpush3.msra.mxu1 %v11770_v48 }
0x4484   :  { %13591 = vmatprep.subr.mxu1 %v11769_v2 }
0x453a   :  { %v13558_v29 = vpop.f32.mrf.mxu1  ;;  %v13565_v28 = vpop.f32.mrf.mxu0 }
0x453b   :  { %v11574_v34 = vadd.f32 %v13565_v28, %v13558_v29 }
0x453c   :  { %v11487_v10 = vpop.f32.mrf.mxu1  ;;  %v11568_v33 = vpop.f32.mrf.mxu0 }
0x453d   :  { %v11569_v38 = vadd.f32 %v11568_v33, %v11487_v10 }
0x453f   :  { %v13572_v35 = vpop.f32.mrf.mxu1 }
0x4540   :  { %v11660_v39 = vadd.f32 %v13572_v35, %v11574_v34 }
0x4541   :  { %v11650_v40 = vpop.f32.mrf.mxu1 }
0x4542   :  { %v11669_v8 = vadd.f32 %v12349_v37, %v11660_v39  ;;  %v11659_v15 = vadd.f32 %v11650_v40, %v11569_v38 }
0x4543   :  { %v13583_v46 = vpop.f32.mrf.mxu0 }
0x4544   :  { %v11671_v47 = vmax.f32 %v11669_v8, 0.0  ;;  %v11668_v49 = vadd.f32 %v12349_v37, %v11659_v15  ;;  %v11765_v44 = vadd.f32 %v13583_v46, %v12350_v50 }
0x4545   :  { %v11759_v14 = vpop.f32.mrf.mxu0 }
0x4546   :  { %v11670_v13 = vmax.f32 %v11668_v49, 0.0  ;;  %v11760_v63 = vadd.f32 %v12350_v50, %v11759_v14  ;;  %v11673_v52 = vadd.f32 %v11671_v47, %v16341_v12 }
0x4548   :  { %v11672_v26 = vadd.f32 %v11670_v13, %v16343_v16  ;;  %13588 = vmatprep.mubr.msk.f32.mxu1 %vm5180_vm10, %v11760_v63  ;;  %v11675_v30 = vmax.f32 %v11673_v52, 0.0 }
0x4549   :  { %13589 = vmatmul.mubr.msk.f32.vlgmr.msra.gmra.mxu1 %vm5180_vm10, %v11765_v44 }
0x454a   :  { %v11674_v53 = vmax.f32 %v11672_v26, 0.0  ;;  %13592 = vmatpush3.msra.mxu1 %v11769_v2 }
0x454b   :  { %13593 = vmatprep.subr.mxu1 %v11768_v36 }
0x454c   :  { %13594 = vmatpush3.msra.mxu1 %v11768_v36  ;;  %13595 = vmatprep.mubr.msk.f32.mxu1 %vm5180_vm10, %v11674_v53 }
0x454d   :  { %13596 = vmatmul.mubr.msk.f32.vlgmr.msra.gmra.mxu1 %vm5180_vm10, %v11675_v30 }
0x4609   :  { %v13590_v54 = vpop.f32.mrf.mxu1 }
0x460b   :  { %v11844_v55 = vpop.f32.mrf.mxu1 }
0x460d   :  { %v13597_v12 = vpop.f32.mrf.mxu1 }
0x460e   :  { %v11931_v16 = vadd.f32 %v13597_v12, %v13590_v54 }
0x460f   :  { %v11925_v57 = vpop.f32.mrf.mxu1 }
0x4610   :  { %v11942_v5 = vadd.f32 %v12357_v56, %v11931_v16  ;;  %v11926_v31 = vadd.f32 %v11925_v57, %v11844_v55 }
0x4612   :  { %v11941_v58 = vadd.f32 %v12357_v56, %v11926_v31  ;;  %11947 = vrot.lane.b32.xlu0 %v11942_v5, %s14797_s3 }
0x4614   :  { %11945 = vrot.lane.b32.xlu1 %v11941_v58, %s14797_s3 }
0x4684   :  { %v11948_v61 = vpop.permute.xlu0 %11947 }
0x4685   :  { %v11952_v62 = vsel %vm5180_vm10, %v6369_v60, %v11948_v61 }
0x4686   :  { %11954 = vst.msk [vmem:[%s15196_s30 + $0x8] sm:$0xff] %vm757_vm0, %v11952_v62  ;;  %v11946_v0 = vpop.permute.xlu1 %11945 }
0x4687   :  { %v11951_v1 = vsel %vm5180_vm10, %v6368_v6, %v11946_v0 }
0x4688   :  { %11953 = vst.msk [vmem:[%s15196_s30] sm:$0xff] %vm757_vm0, %v11951_v1 }
0x4689   :  { %11959 = vsyncpa [#allocation3], 1 }
0x468a   :  { %11960 = vsyncpa [#allocation5], 1 }
0x468b   :  { %11961 = vsyncpa [#allocation8], 1 }
0x468c   :  { %11962 = vsyncpa [#allocation11], 1 }
0x468d   :  { %11963 = vsyncpa [#allocation14], 1 }
0x468e   :  { %11964 = vsyncpa [#allocation17], 1 }
0x468f   :  { %11965 = vsyncpa [#allocation20], 1 }
0x4690   :  { %11966 = vsyncpa [#allocation23], 1 }
0x4691   :  { %11967 = vsyncpa [#allocation26], 1 }
0x4692   :  { %11968 = vsyncpa [#allocation29], 1 }
0x4693   :  { %11969 = vsyncpa [#allocation32], 1 }
0x4694   :  { %11970 = vsyncpa [#allocation35], 1 }
0x4695   :  { %11971 = vsyncpa [#allocation38], 1 }
0x4696   :  { %11972 = vsyncpa [#allocation41], 1 }
0x4697   :  { %11973 = vsyncpa [#allocation44], 1 }
0x4698   :  { %11974 = vsyncpa [#allocation47], 1 }
0x4699   :  { %11975 = vsyncpa [#allocation50], 1 }
0x469a   :  { %11976 = vsyncpa [#allocation53], 1 }
0x469b   :  { %11977 = vsyncpa [#allocation56], 1 }

</bundles_post_ra>
